<compile_context>
chip_gen: v7x
topology: tpu7x:2x2x1
jax: 0.10.0
libtpu: 0.0.40
codegen_flags: <defaults>
</compile_context>

<pallas_src>
import functools
import math

import jax
import jax.numpy as jnp
from jax import lax
from jax.experimental import pallas as pl
from jax.experimental.pallas import tpu as pltpu

# ----------------------- model config (small synthetic shapes) -----------------------
NUM_CLASSES = 5
D_MODEL = 64
NUM_HEADS = 4
FFN_DIM = 128
ENC_LAYERS = 2
DEC_LAYERS = 2
NUM_QUERIES = 8
IN_CH = 3
PATCH = 8
BACKBONE_CH = 32
LN_EPS = 1e-5


# ----------------------- in-kernel helpers (pure array ops, run inside Pallas) -----------------------
def _layer_norm(x, g, b, eps):
    """x: (M, D); g, b: (1, D)."""
    mu = jnp.mean(x, axis=-1, keepdims=True)
    xc = x - mu
    var = jnp.mean(xc * xc, axis=-1, keepdims=True)
    return xc * lax.rsqrt(var + eps) * g + b


def _attention(q, k, v, w_o, b_o, num_heads, mask_add):
    """Multi-head attention on VMEM-resident projected q/k/v.

    q: (Lq, D), k/v: (Lk, D), w_o: (D, D), b_o: (1, D).
    mask_add: None or (1, Lk) additive key-padding mask. Returns (Lq, D).
    The per-head output projection is accumulated (o @ Wo == sum_h oh @ Wo[h*Dh:(h+1)*Dh]).
    """
    Lq, D = q.shape
    Dh = D // num_heads
    scale = 1.0 / math.sqrt(Dh)
    out = jnp.zeros((Lq, D), jnp.float32)
    for h in range(num_heads):
        sl = slice(h * Dh, (h + 1) * Dh)
        s = lax.dot_general(q[:, sl] * scale, k[:, sl], (((1,), (1,)), ((), ())),
                            preferred_element_type=jnp.float32)            # (Lq, Lk)
        if mask_add is not None:
            s = s + mask_add
        s = s - jnp.max(s, axis=-1, keepdims=True)
        p = jnp.exp(s)
        p = p / jnp.sum(p, axis=-1, keepdims=True)                          # exact divide
        oh = jnp.dot(p, v[:, sl], preferred_element_type=jnp.float32)       # (Lq, Dh)
        out = out + jnp.dot(oh, w_o[sl, :], preferred_element_type=jnp.float32)
    return out + b_o


# ----------------------- fused stack kernels -----------------------
def _encoder_stack_kernel(*refs, num_layers, num_heads, eps, has_mask):
    """Patch embed + 1x1 proj + ALL encoder layers for one batch element, VMEM-resident.

    Per-layer vector slab `vecs[l]` (8, 128) rows:
      0: [b_q | b_k]   1: [b_v | b_o]   2: [ln1_g | ln1_b]   3: [ln2_g | ln2_b]
      4: fc1_b(128)    5: [fc2_b | 0]   6-7: padding
    """
    if has_mask:
        (patches_ref, pos_ref, mask_ref, bbw_ref, pjw_ref, embv_ref,
         wqk_ref, sq_ref, fc1_ref, fc2_ref, vecs_ref, o_ref) = refs
        mask = mask_ref[0]                                   # (1, L)
    else:
        (patches_ref, pos_ref, bbw_ref, pjw_ref, embv_ref,
         wqk_ref, sq_ref, fc1_ref, fc2_ref, vecs_ref, o_ref) = refs
        mask = None

    pos = pos_ref[...]                                       # (L, D)
    L, D = pos.shape
    ev = embv_ref[...]                                       # (8, 128)

    # --- fused backbone: im2col patches @ conv-weight -> ReLU -> 1x1 input projection ---
    h = jnp.dot(patches_ref[0], bbw_ref[...], preferred_element_type=jnp.float32)
    h = jnp.maximum(h + ev[0:1, :h.shape[1]], 0.0)
    x = jnp.dot(h, pjw_ref[...], preferred_element_type=jnp.float32) + ev[1:2, :D]

    # --- encoder layers (post-norm DETR), fully unrolled, no HBM round-trips ---
    for l in range(num_layers):
        vs = vecs_ref[l]                                     # (8, 128)
        sq = sq_ref[l]                                       # (2, D, D): [Wv, Wo]
        xp = x + pos
        qk = jnp.dot(xp, wqk_ref[l], preferred_element_type=jnp.float32)     # (L, 2D)
        q = qk[:, :D] + vs[0:1, 0:D]
        k = qk[:, D:] + vs[0:1, D:]
        v = jnp.dot(x, sq[0], preferred_element_type=jnp.float32) + vs[1:2, 0:D]
        a = _attention(q, k, v, sq[1], vs[1:2, D:], num_heads, mask)
        x = _layer_norm(x + a, vs[2:3, 0:D], vs[2:3, D:], eps)
        f = jnp.maximum(jnp.dot(x, fc1_ref[l], preferred_element_type=jnp.float32)
                        + vs[4:5, :], 0.0)
        f = jnp.dot(f, fc2_ref[l], preferred_element_type=jnp.float32) + vs[5:6, 0:D]
        x = _layer_norm(x + f, vs[3:4, 0:D], vs[3:4, D:], eps)

    o_ref[0] = x


def _decoder_stack_kernel(*refs, num_layers, num_heads, eps, has_mask):
    """ALL decoder layers + final LN + class head + bbox MLP for one batch element.

    Per-layer vector slab `vecs[l]` (16, 128) rows:
      0: self [b_q | b_k]   1: self [b_v | b_o]   2: cross [b_q | b_k]  3: cross [b_v | b_o]
      4: [ln1_g | ln1_b]    5: [ln2_g | ln2_b]    6: [ln3_g | ln3_b]
      7: fc1_b(128)         8: [fc2_b | 0]        9-15: padding
    Head slab `hv` (8, 128) rows:
      0: [dec_ln_g | dec_ln_b]  1: class_b @ lanes 0:C  2: [bbox_b1 | bbox_b2]
      3: bbox_b3 @ lanes 64:68  4-7: padding
    Output (Q, 128): logits in lanes 0:C, boxes in lanes 64:68 (lane-dense single store).
    """
    if has_mask:
        (mem_ref, mpos_ref, qpos_ref, mask_ref, wqk_ref, sq_ref, fc1_ref, fc2_ref,
         vecs_ref, hw12_ref, hcb_ref, hv_ref, o_ref) = refs
        mask = mask_ref[0]                                   # (1, L)
    else:
        (mem_ref, mpos_ref, qpos_ref, wqk_ref, sq_ref, fc1_ref, fc2_ref,
         vecs_ref, hw12_ref, hcb_ref, hv_ref, o_ref) = refs
        mask = None

    mem = mem_ref[0]                                         # (L, D)
    mpos = mpos_ref[...]                                     # (L, D)
    qpos = qpos_ref[...]                                     # (Q, D)
    Q, D = qpos.shape
    t = jnp.zeros((Q, D), jnp.float32)
    mem_p = mem + mpos                                       # hoisted: reused by every layer

    for l in range(num_layers):
        vs = vecs_ref[l]                                     # (16, 128)
        sq = sq_ref[l]                                       # (6, D, D): [sWv,sWo,cWq,cWk,cWv,cWo]

        # --- self-attention (never masked) ---
        tq = t + qpos
        qk = jnp.dot(tq, wqk_ref[l], preferred_element_type=jnp.float32)     # (Q, 2D)
        q = qk[:, :D] + vs[0:1, 0:D]
        k = qk[:, D:] + vs[0:1, D:]
        v = jnp.dot(t, sq[0], preferred_element_type=jnp.float32) + vs[1:2, 0:D]
        a = _attention(q, k, v, sq[1], vs[1:2, D:], num_heads, None)
        t = _layer_norm(t + a, vs[4:5, 0:D], vs[4:5, D:], eps)

        # --- cross-attention to encoder memory ---
        q = jnp.dot(t + qpos, sq[2], preferred_element_type=jnp.float32) + vs[2:3, 0:D]
        k = jnp.dot(mem_p, sq[3], preferred_element_type=jnp.float32) + vs[2:3, D:]
        v = jnp.dot(mem, sq[4], preferred_element_type=jnp.float32) + vs[3:4, 0:D]
        a = _attention(q, k, v, sq[5], vs[3:4, D:], num_heads, mask)
        t = _layer_norm(t + a, vs[5:6, 0:D], vs[5:6, D:], eps)

        # --- FFN ---
        f = jnp.maximum(jnp.dot(t, fc1_ref[l], preferred_element_type=jnp.float32)
                        + vs[7:8, :], 0.0)
        f = jnp.dot(f, fc2_ref[l], preferred_element_type=jnp.float32) + vs[8:9, 0:D]
        t = _layer_norm(t + f, vs[6:7, 0:D], vs[6:7, D:], eps)

    # --- fused heads: final LN + class head + 3-layer bbox MLP + sigmoid ---
    hv = hv_ref[...]                                         # (8, 128)
    t_ln = _layer_norm(t, hv[0:1, 0:D], hv[0:1, D:], eps)
    cls_full = jnp.dot(t_ln, hcb_ref[0], preferred_element_type=jnp.float32) + hv[1:2, :]
    h1 = jnp.maximum(jnp.dot(t_ln, hw12_ref[0], preferred_element_type=jnp.float32)
                     + hv[2:3, 0:D], 0.0)
    h2 = jnp.maximum(jnp.dot(h1, hw12_ref[1], preferred_element_type=jnp.float32)
                     + hv[2:3, D:], 0.0)
    box_full = jax.nn.sigmoid(jnp.dot(h2, hcb_ref[1], preferred_element_type=jnp.float32)
                              + hv[3:4, :])
    lane = lax.broadcasted_iota(jnp.int32, cls_full.shape, 1)
    o_ref[0] = jnp.where(lane < D, cls_full, box_full)       # single lane-dense (Q,128) store


# ----------------------- pallas_call wrappers -----------------------
def _bcast_spec(arr):
    """Whole-array block, same block for every grid step (weights: DMA'd once)."""
    nd = arr.ndim
    return pl.BlockSpec(arr.shape, lambda b, _nd=nd: (0,) * _nd)


def run_encoder(patches, pos, enc_w, add_mask):
    B, L, Cpp = patches.shape
    has_mask = add_mask is not None
    kernel = functools.partial(_encoder_stack_kernel, num_layers=ENC_LAYERS,
                               num_heads=NUM_HEADS, eps=LN_EPS, has_mask=has_mask)
    in_specs = [pl.BlockSpec((1, L, Cpp), lambda b: (b, 0, 0)), _bcast_spec(pos)]
    inputs = [patches, pos]
    if has_mask:
        in_specs.append(pl.BlockSpec((1, 1, L), lambda b: (b, 0, 0)))
        inputs.append(add_mask)
    weights = [enc_w["bb_w"], enc_w["proj_w"], enc_w["emb_vecs"],
               enc_w["wqk"], enc_w["sq"], enc_w["fc1"], enc_w["fc2"], enc_w["vecs"]]
    in_specs += [_bcast_spec(w) for w in weights]
    inputs += weights
    return pl.pallas_call(
        kernel,
        out_shape=jax.ShapeDtypeStruct((B, L, D_MODEL), jnp.float32),
        grid=(B,),
        in_specs=in_specs,
        out_specs=pl.BlockSpec((1, L, D_MODEL), lambda b: (b, 0, 0)),
        compiler_params=pltpu.CompilerParams(dimension_semantics=("parallel",)),
    )(*inputs)


def run_decoder_and_heads(memory, pos, query_pos, dec_w, head_w, add_mask):
    B, L, D = memory.shape
    Q = query_pos.shape[0]
    has_mask = add_mask is not None
    kernel = functools.partial(_decoder_stack_kernel, num_layers=DEC_LAYERS,
                               num_heads=NUM_HEADS, eps=LN_EPS, has_mask=has_mask)
    in_specs = [pl.BlockSpec((1, L, D), lambda b: (b, 0, 0)),
                _bcast_spec(pos), _bcast_spec(query_pos)]
    inputs = [memory, pos, query_pos]
    if has_mask:
        in_specs.append(pl.BlockSpec((1, 1, L), lambda b: (b, 0, 0)))
        inputs.append(add_mask)
    weights = [dec_w["wqk_self"], dec_w["sq"], dec_w["fc1"], dec_w["fc2"], dec_w["vecs"],
               head_w["w12"], head_w["cb"], head_w["vecs"]]
    in_specs += [_bcast_spec(w) for w in weights]
    inputs += weights
    return pl.pallas_call(
        kernel,
        out_shape=jax.ShapeDtypeStruct((B, Q, 128), jnp.float32),
        grid=(B,),
        in_specs=in_specs,
        out_specs=pl.BlockSpec((1, Q, 128), lambda b: (b, 0, 0)),
        compiler_params=pltpu.CompilerParams(dimension_semantics=("parallel",)),
    )(*inputs)


# ----------------------- glue: sine position embedding (parameter-free) -----------------------
def sine_pos_embed(hf, wf, d_model, temperature=10000.0):
    half = d_model // 2
    scale = 2.0 * math.pi
    y = (jnp.arange(1, hf + 1, dtype=jnp.float32) / (hf + 1e-6)) * scale
    x = (jnp.arange(1, wf + 1, dtype=jnp.float32) / (wf + 1e-6)) * scale
    dim_t = jnp.arange(half, dtype=jnp.float32)
    dim_t = temperature ** (2.0 * jnp.floor(dim_t / 2.0) / half)
    pos_x = x[:, None] / dim_t
    pos_y = y[:, None] / dim_t
    pos_x = jnp.stack([jnp.sin(pos_x[:, 0::2]), jnp.cos(pos_x[:, 1::2])], axis=2).reshape(wf, half)
    pos_y = jnp.stack([jnp.sin(pos_y[:, 0::2]), jnp.cos(pos_y[:, 1::2])], axis=2).reshape(hf, half)
    pos = jnp.concatenate(
        [jnp.broadcast_to(pos_y[:, None, :], (hf, wf, half)),
         jnp.broadcast_to(pos_x[None, :, :], (hf, wf, half))],
        axis=-1,
    )
    return pos.reshape(hf * wf, d_model)


# ----------------------- parameter init (deterministic, kernel-friendly packing) -----------------------
def _row128(*pieces):
    """Pack 1-D pieces into one 128-lane row (zero padded)."""
    if pieces:
        v = jnp.concatenate([jnp.asarray(p, jnp.float32).reshape(-1) for p in pieces])
    else:
        v = jnp.zeros((0,), jnp.float32)
    return jnp.pad(v, (0, 128 - v.shape[0]))


def init_params(key, num_classes):
    keys = iter(jax.random.split(key, 128))

    def w(fi, fo):
        return jax.random.normal(next(keys), (fi, fo), jnp.float32) * 0.02

    D, F = D_MODEL, FFN_DIM
    zD = jnp.zeros((D,), jnp.float32)
    oD = jnp.ones((D,), jnp.float32)
    zF = jnp.zeros((F,), jnp.float32)
    Cpp = IN_CH * PATCH * PATCH

    # --- backbone patch-conv + 1x1 projection ---
    enc = dict(
        bb_w=w(Cpp, BACKBONE_CH),
        proj_w=w(BACKBONE_CH, D),
        emb_vecs=jnp.stack([_row128(jnp.zeros((BACKBONE_CH,), jnp.float32)),  # conv bias
                            _row128(zD)]                                      # proj bias
                           + [_row128()] * 6),
    )

    # --- encoder stack (weights stacked along layer axis) ---
    wqk_l, sq_l, fc1_l, fc2_l, vec_l = [], [], [], [], []
    for _ in range(ENC_LAYERS):
        Wq, Wk, Wv, Wo = w(D, D), w(D, D), w(D, D), w(D, D)
        wqk_l.append(jnp.concatenate([Wq, Wk], axis=1))                 # (D, 2D) fused QK
        sq_l.append(jnp.stack([Wv, Wo]))                                # (2, D, D)
        fc1_l.append(w(D, F))
        fc2_l.append(w(F, D))
        vec_l.append(jnp.stack([
            _row128(zD, zD),        # [b_q | b_k]
            _row128(zD, zD),        # [b_v | b_o]
            _row128(oD, zD),        # [ln1_g | ln1_b]
            _row128(oD, zD),        # [ln2_g | ln2_b]
            _row128(zF),            # fc1_b
            _row128(zD),            # fc2_b
            _row128(), _row128()]))
    enc.update(wqk=jnp.stack(wqk_l), sq=jnp.stack(sq_l),
               fc1=jnp.stack(fc1_l), fc2=jnp.stack(fc2_l), vecs=jnp.stack(vec_l))

    # --- decoder stack ---
    wqk_l, sq_l, fc1_l, fc2_l, vec_l = [], [], [], [], []
    for _ in range(DEC_LAYERS):
        sWq, sWk, sWv, sWo = w(D, D), w(D, D), w(D, D), w(D, D)
        cWq, cWk, cWv, cWo = w(D, D), w(D, D), w(D, D), w(D, D)
        wqk_l.append(jnp.concatenate([sWq, sWk], axis=1))               # fused self QK
        sq_l.append(jnp.stack([sWv, sWo, cWq, cWk, cWv, cWo]))          # (6, D, D)
        fc1_l.append(w(D, F))
        fc2_l.append(w(F, D))
        vec_l.append(jnp.stack([
            _row128(zD, zD),        # self  [b_q | b_k]
            _row128(zD, zD),        # self  [b_v | b_o]
            _row128(zD, zD),        # cross [b_q | b_k]
            _row128(zD, zD),        # cross [b_v | b_o]
            _row128(oD, zD),        # [ln1_g | ln1_b]
            _row128(oD, zD),        # [ln2_g | ln2_b]
            _row128(oD, zD),        # [ln3_g | ln3_b]
            _row128(zF),            # fc1_b
            _row128(zD)]            # fc2_b
            + [_row128()] * 7))
    dec = dict(wqk_self=jnp.stack(wqk_l), sq=jnp.stack(sq_l),
               fc1=jnp.stack(fc1_l), fc2=jnp.stack(fc2_l), vecs=jnp.stack(vec_l))

    # --- heads: replaced class head (Linear(D, num_classes)) + 3-layer bbox MLP ---
    class_w = w(D, num_classes)
    bbox_w1, bbox_w2, bbox_w3 = w(D, D), w(D, D), w(D, 4)
    cls_slab = jnp.zeros((D, 128), jnp.float32).at[:, :num_classes].set(class_w)
    box_slab = jnp.zeros((D, 128), jnp.float32).at[:, D:D + 4].set(bbox_w3)
    head = dict(
        w12=jnp.stack([bbox_w1, bbox_w2]),                              # (2, D, D)
        cb=jnp.stack([cls_slab, box_slab]),                             # (2, D, 128)
        vecs=jnp.stack([
            _row128(oD, zD),                                            # [dec_ln_g | dec_ln_b]
            _row128(jnp.zeros((num_classes,), jnp.float32)),            # class_b @ lanes 0:C
            _row128(zD, zD),                                            # [bbox_b1 | bbox_b2]
            _row128(zD, jnp.zeros((4,), jnp.float32)),                  # bbox_b3 @ lanes 64:68
        ] + [_row128()] * 4),
    )

    query_embed = jax.random.normal(next(keys), (NUM_QUERIES, D), jnp.float32) * 0.02
    return dict(enc=enc, dec=dec, head=head, query_embed=query_embed)


# ----------------------- forward pass -----------------------
def detr_vit_forward(params, pixel_values, pixel_mask=None):
    B, C, H, W = pixel_values.shape
    hf, wf = H // PATCH, W // PATCH
    L = hf * wf

    # backbone im2col (XLA glue); the matmul itself is fused into the encoder kernel
    patches = pixel_values.reshape(B, C, hf, PATCH, wf, PATCH)
    patches = patches.transpose(0, 2, 4, 1, 3, 5).reshape(B, L, C * PATCH * PATCH)

    # position embeddings (shared across batch)
    pos = sine_pos_embed(hf, wf, D_MODEL)                               # (L, D)

    # pixel mask -> additive key-padding mask at feature resolution
    if pixel_mask is None:
        add_mask = None                                                 # no-mask kernel variant
    else:
        keep = (pixel_mask[:, ::PATCH, ::PATCH] > 0).reshape(B, 1, L)
        add_mask = jnp.where(keep, 0.0, -1e9).astype(jnp.float32)       # (B, 1, L)

    # ONE fused kernel: patch embed + full encoder stack
    memory = run_encoder(patches, pos, params["enc"], add_mask)         # (B, L, D)

    # ONE fused kernel: full decoder stack + final LN + class/bbox heads
    head_out = run_decoder_and_heads(memory, pos, params["query_embed"],
                                     params["dec"], params["head"], add_mask)  # (B, Q, 128)

    logits = head_out[:, :, :NUM_CLASSES]
    boxes = head_out[:, :, D_MODEL:D_MODEL + 4]
    return {"logits": logits, "pred_boxes": boxes}


# ----------------------- main -----------------------
if __name__ == "__main__":
    key = jax.random.PRNGKey(0)
    pkey, xkey = jax.random.split(key)
    params = init_params(pkey, NUM_CLASSES)
    # pixel_values: NCHW, small synthetic image batch
    pixel_values = jax.random.uniform(xkey, (2, IN_CH, 32, 32), jnp.float32)

    fwd = jax.jit(detr_vit_forward)
    out = fwd(params, pixel_values)
    jax.block_until_ready(out)

    assert out["logits"].shape == (2, NUM_QUERIES, NUM_CLASSES)
    assert out["pred_boxes"].shape == (2, NUM_QUERIES, 4)
    print("KERNEL_OK")
</pallas_src>

<mosaic_0001>
module attributes {stable_mosaic.version = 11 : i64} {
  func.func @_encoder_stack_kernel(%arg0: i32, %arg1: memref<1x16x192xf32, #tpu.memory_space<vmem>>, %arg2: memref<16x64xf32, #tpu.memory_space<vmem>>, %arg3: memref<192x32xf32, #tpu.memory_space<vmem>>, %arg4: memref<32x64xf32, #tpu.memory_space<vmem>>, %arg5: memref<8x128xf32, #tpu.memory_space<vmem>>, %arg6: memref<2x64x128xf32, #tpu.memory_space<vmem>>, %arg7: memref<2x2x64x64xf32, #tpu.memory_space<vmem>>, %arg8: memref<2x64x128xf32, #tpu.memory_space<vmem>>, %arg9: memref<2x128x64xf32, #tpu.memory_space<vmem>>, %arg10: memref<2x8x128xf32, #tpu.memory_space<vmem>>, %arg11: memref<1x16x64xf32, #tpu.memory_space<vmem>>) attributes {dimension_semantics = [#tpu.dimension_semantics<parallel>], iteration_bounds = array<i64: 2>, scalar_prefetch = 0 : i64, scratch_operands = 0 : i64, tpu.core_type = #tpu.core_type<tc>, window_params = [{transform_indices = @transform_0, window_bounds = array<i64: 1, 16, 192>}, {pipeline_mode = #tpu.pipeline_mode<synchronous>, transform_indices = @transform_1, window_bounds = array<i64: 16, 64>}, {pipeline_mode = #tpu.pipeline_mode<synchronous>, transform_indices = @transform_2, window_bounds = array<i64: 192, 32>}, {pipeline_mode = #tpu.pipeline_mode<synchronous>, transform_indices = @transform_3, window_bounds = array<i64: 32, 64>}, {pipeline_mode = #tpu.pipeline_mode<synchronous>, transform_indices = @transform_4, window_bounds = array<i64: 8, 128>}, {pipeline_mode = #tpu.pipeline_mode<synchronous>, transform_indices = @transform_5, window_bounds = array<i64: 2, 64, 128>}, {pipeline_mode = #tpu.pipeline_mode<synchronous>, transform_indices = @transform_6, window_bounds = array<i64: 2, 2, 64, 64>}, {pipeline_mode = #tpu.pipeline_mode<synchronous>, transform_indices = @transform_7, window_bounds = array<i64: 2, 64, 128>}, {pipeline_mode = #tpu.pipeline_mode<synchronous>, transform_indices = @transform_8, window_bounds = array<i64: 2, 128, 64>}, {pipeline_mode = #tpu.pipeline_mode<synchronous>, transform_indices = @transform_9, window_bounds = array<i64: 2, 8, 128>}, {transform_indices = @transform_10, window_bounds = array<i64: 1, 16, 64>}]} {
    %c0 = arith.constant 0 : index
    %c0_0 = arith.constant 0 : index
    %0 = vector.load %arg2[%c0, %c0_0] : memref<16x64xf32, #tpu.memory_space<vmem>>, vector<16x64xf32>
    %c0_1 = arith.constant 0 : index
    %c0_2 = arith.constant 0 : index
    %1 = vector.load %arg5[%c0_1, %c0_2] : memref<8x128xf32, #tpu.memory_space<vmem>>, vector<8x128xf32>
    %c0_3 = arith.constant 0 : index
    %c0_4 = arith.constant 0 : index
    %c0_5 = arith.constant 0 : index
    %2 = vector.load %arg1[%c0_3, %c0_4, %c0_5] : memref<1x16x192xf32, #tpu.memory_space<vmem>>, vector<1x16x192xf32>
    %3 = vector.shape_cast %2 : vector<1x16x192xf32> to vector<16x192xf32>
    %c0_6 = arith.constant 0 : index
    %c0_7 = arith.constant 0 : index
    %4 = vector.load %arg3[%c0_6, %c0_7] : memref<192x32xf32, #tpu.memory_space<vmem>>, vector<192x32xf32>
    %cst = arith.constant dense<0.000000e+00> : vector<16x32xf32>
    %5 = tpu.matmul %3, %4, %cst {dimension_numbers = #tpu.dot_dimension_numbers<[1], [0], [0], [1], [0, 0, 1, 1], [], []>} : vector<16x192xf32>, vector<192x32xf32>, vector<16x32xf32> -> vector<16x32xf32>
    %6 = vector.extract_strided_slice %1 {offsets = [0, 0], sizes = [1, 32], strides = [1, 1]} : vector<8x128xf32> to vector<1x32xf32>
    %7 = vector.broadcast %6 : vector<1x32xf32> to vector<16x32xf32>
    %8 = arith.addf %5, %7 : vector<16x32xf32>
    %cst_8 = arith.constant 0.000000e+00 : f32
    %9 = vector.broadcast %cst_8 : f32 to vector<16x32xf32>
    %10 = arith.maximumf %8, %9 : vector<16x32xf32>
    %c0_9 = arith.constant 0 : index
    %c0_10 = arith.constant 0 : index
    %11 = vector.load %arg4[%c0_9, %c0_10] : memref<32x64xf32, #tpu.memory_space<vmem>>, vector<32x64xf32>
    %cst_11 = arith.constant dense<0.000000e+00> : vector<16x64xf32>
    %12 = tpu.matmul %10, %11, %cst_11 {dimension_numbers = #tpu.dot_dimension_numbers<[1], [0], [0], [1], [0, 0, 1, 1], [], []>} : vector<16x32xf32>, vector<32x64xf32>, vector<16x64xf32> -> vector<16x64xf32>
    %13 = vector.extract_strided_slice %1 {offsets = [1, 0], sizes = [1, 64], strides = [1, 1]} : vector<8x128xf32> to vector<1x64xf32>
    %14 = vector.broadcast %13 : vector<1x64xf32> to vector<16x64xf32>
    %15 = arith.addf %12, %14 : vector<16x64xf32>
    %c0_12 = arith.constant 0 : index
    %c0_13 = arith.constant 0 : index
    %c0_14 = arith.constant 0 : index
    %16 = vector.load %arg10[%c0_12, %c0_13, %c0_14] : memref<2x8x128xf32, #tpu.memory_space<vmem>>, vector<1x8x128xf32>
    %17 = vector.shape_cast %16 : vector<1x8x128xf32> to vector<8x128xf32>
    %c0_15 = arith.constant 0 : index
    %c0_16 = arith.constant 0 : index
    %c0_17 = arith.constant 0 : index
    %c0_18 = arith.constant 0 : index
    %18 = vector.load %arg7[%c0_15, %c0_16, %c0_17, %c0_18] : memref<2x2x64x64xf32, #tpu.memory_space<vmem>>, vector<1x2x64x64xf32>
    %19 = vector.shape_cast %18 : vector<1x2x64x64xf32> to vector<2x64x64xf32>
    %20 = arith.addf %15, %0 : vector<16x64xf32>
    %c0_19 = arith.constant 0 : index
    %c0_20 = arith.constant 0 : index
    %c0_21 = arith.constant 0 : index
    %21 = vector.load %arg6[%c0_19, %c0_20, %c0_21] : memref<2x64x128xf32, #tpu.memory_space<vmem>>, vector<1x64x128xf32>
    %22 = vector.shape_cast %21 : vector<1x64x128xf32> to vector<64x128xf32>
    %cst_22 = arith.constant dense<0.000000e+00> : vector<16x128xf32>
    %23 = tpu.matmul %20, %22, %cst_22 {dimension_numbers = #tpu.dot_dimension_numbers<[1], [0], [0], [1], [0, 0, 1, 1], [], []>} : vector<16x64xf32>, vector<64x128xf32>, vector<16x128xf32> -> vector<16x128xf32>
    %24 = vector.extract_strided_slice %23 {offsets = [0, 0], sizes = [16, 64], strides = [1, 1]} : vector<16x128xf32> to vector<16x64xf32>
    %25 = vector.extract_strided_slice %17 {offsets = [0, 0], sizes = [1, 64], strides = [1, 1]} : vector<8x128xf32> to vector<1x64xf32>
    %26 = vector.broadcast %25 : vector<1x64xf32> to vector<16x64xf32>
    %27 = arith.addf %24, %26 : vector<16x64xf32>
    %28 = vector.extract_strided_slice %23 {offsets = [0, 64], sizes = [16, 64], strides = [1, 1]} : vector<16x128xf32> to vector<16x64xf32>
    %29 = vector.extract_strided_slice %17 {offsets = [0, 64], sizes = [1, 64], strides = [1, 1]} : vector<8x128xf32> to vector<1x64xf32>
    %30 = vector.broadcast %29 : vector<1x64xf32> to vector<16x64xf32>
    %31 = arith.addf %28, %30 : vector<16x64xf32>
    %32 = vector.extract_strided_slice %19 {offsets = [0, 0, 0], sizes = [1, 64, 64], strides = [1, 1, 1]} : vector<2x64x64xf32> to vector<1x64x64xf32>
    %33 = vector.shape_cast %32 : vector<1x64x64xf32> to vector<64x64xf32>
    %cst_23 = arith.constant dense<0.000000e+00> : vector<16x64xf32>
    %34 = tpu.matmul %15, %33, %cst_23 {dimension_numbers = #tpu.dot_dimension_numbers<[1], [0], [0], [1], [0, 0, 1, 1], [], []>} : vector<16x64xf32>, vector<64x64xf32>, vector<16x64xf32> -> vector<16x64xf32>
    %35 = vector.extract_strided_slice %17 {offsets = [1, 0], sizes = [1, 64], strides = [1, 1]} : vector<8x128xf32> to vector<1x64xf32>
    %36 = vector.broadcast %35 : vector<1x64xf32> to vector<16x64xf32>
    %37 = arith.addf %34, %36 : vector<16x64xf32>
    %38 = vector.extract_strided_slice %19 {offsets = [1, 0, 0], sizes = [1, 64, 64], strides = [1, 1, 1]} : vector<2x64x64xf32> to vector<1x64x64xf32>
    %39 = vector.shape_cast %38 : vector<1x64x64xf32> to vector<64x64xf32>
    %40 = vector.extract_strided_slice %17 {offsets = [1, 64], sizes = [1, 64], strides = [1, 1]} : vector<8x128xf32> to vector<1x64xf32>
    %cst_24 = arith.constant 0.000000e+00 : f32
    %41 = vector.broadcast %cst_24 : f32 to vector<16x64xf32>
    %42 = vector.extract_strided_slice %27 {offsets = [0, 0], sizes = [16, 16], strides = [1, 1]} : vector<16x64xf32> to vector<16x16xf32>
    %cst_25 = arith.constant 2.500000e-01 : f32
    %43 = vector.broadcast %cst_25 : f32 to vector<16x16xf32>
    %44 = arith.mulf %42, %43 : vector<16x16xf32>
    %45 = vector.extract_strided_slice %31 {offsets = [0, 0], sizes = [16, 16], strides = [1, 1]} : vector<16x64xf32> to vector<16x16xf32>
    %cst_26 = arith.constant dense<0.000000e+00> : vector<16x16xf32>
    %46 = tpu.matmul %44, %45, %cst_26 {dimension_numbers = #tpu.dot_dimension_numbers<[1], [1], [0], [0], [0, 0, 1, 0], [], []>} : vector<16x16xf32>, vector<16x16xf32>, vector<16x16xf32> -> vector<16x16xf32>
    %cst_27 = arith.constant dense<0xFF800000> : vector<16xf32>
    %47 = vector.multi_reduction <maximumf>, %46, %cst_27 [1] : vector<16x16xf32> to vector<16xf32>
    %48 = vector.shape_cast %47 : vector<16xf32> to vector<16x1xf32>
    %49 = vector.broadcast %48 : vector<16x1xf32> to vector<16x16xf32>
    %50 = arith.subf %46, %49 : vector<16x16xf32>
    %51 = math.exp %50 : vector<16x16xf32>
    %cst_28 = arith.constant dense<0.000000e+00> : vector<16xf32>
    %52 = vector.multi_reduction <add>, %51, %cst_28 [1] : vector<16x16xf32> to vector<16xf32>
    %53 = vector.shape_cast %52 : vector<16xf32> to vector<16x1xf32>
    %54 = vector.broadcast %53 : vector<16x1xf32> to vector<16x16xf32>
    %55 = arith.divf %51, %54 : vector<16x16xf32>
    %56 = vector.extract_strided_slice %37 {offsets = [0, 0], sizes = [16, 16], strides = [1, 1]} : vector<16x64xf32> to vector<16x16xf32>
    %cst_29 = arith.constant dense<0.000000e+00> : vector<16x16xf32>
    %57 = tpu.matmul %55, %56, %cst_29 {dimension_numbers = #tpu.dot_dimension_numbers<[1], [0], [0], [1], [0, 0, 1, 1], [], []>} : vector<16x16xf32>, vector<16x16xf32>, vector<16x16xf32> -> vector<16x16xf32>
    %58 = vector.extract_strided_slice %39 {offsets = [0, 0], sizes = [16, 64], strides = [1, 1]} : vector<64x64xf32> to vector<16x64xf32>
    %cst_30 = arith.constant dense<0.000000e+00> : vector<16x64xf32>
    %59 = tpu.matmul %57, %58, %cst_30 {dimension_numbers = #tpu.dot_dimension_numbers<[1], [0], [0], [1], [0, 0, 1, 1], [], []>} : vector<16x16xf32>, vector<16x64xf32>, vector<16x64xf32> -> vector<16x64xf32>
    %60 = arith.addf %41, %59 : vector<16x64xf32>
    %61 = vector.extract_strided_slice %27 {offsets = [0, 16], sizes = [16, 16], strides = [1, 1]} : vector<16x64xf32> to vector<16x16xf32>
    %cst_31 = arith.constant 2.500000e-01 : f32
    %62 = vector.broadcast %cst_31 : f32 to vector<16x16xf32>
    %63 = arith.mulf %61, %62 : vector<16x16xf32>
    %64 = vector.extract_strided_slice %31 {offsets = [0, 16], sizes = [16, 16], strides = [1, 1]} : vector<16x64xf32> to vector<16x16xf32>
    %cst_32 = arith.constant dense<0.000000e+00> : vector<16x16xf32>
    %65 = tpu.matmul %63, %64, %cst_32 {dimension_numbers = #tpu.dot_dimension_numbers<[1], [1], [0], [0], [0, 0, 1, 0], [], []>} : vector<16x16xf32>, vector<16x16xf32>, vector<16x16xf32> -> vector<16x16xf32>
    %cst_33 = arith.constant dense<0xFF800000> : vector<16xf32>
    %66 = vector.multi_reduction <maximumf>, %65, %cst_33 [1] : vector<16x16xf32> to vector<16xf32>
    %67 = vector.shape_cast %66 : vector<16xf32> to vector<16x1xf32>
    %68 = vector.broadcast %67 : vector<16x1xf32> to vector<16x16xf32>
    %69 = arith.subf %65, %68 : vector<16x16xf32>
    %70 = math.exp %69 : vector<16x16xf32>
    %cst_34 = arith.constant dense<0.000000e+00> : vector<16xf32>
    %71 = vector.multi_reduction <add>, %70, %cst_34 [1] : vector<16x16xf32> to vector<16xf32>
    %72 = vector.shape_cast %71 : vector<16xf32> to vector<16x1xf32>
    %73 = vector.broadcast %72 : vector<16x1xf32> to vector<16x16xf32>
    %74 = arith.divf %70, %73 : vector<16x16xf32>
    %75 = vector.extract_strided_slice %37 {offsets = [0, 16], sizes = [16, 16], strides = [1, 1]} : vector<16x64xf32> to vector<16x16xf32>
    %cst_35 = arith.constant dense<0.000000e+00> : vector<16x16xf32>
    %76 = tpu.matmul %74, %75, %cst_35 {dimension_numbers = #tpu.dot_dimension_numbers<[1], [0], [0], [1], [0, 0, 1, 1], [], []>} : vector<16x16xf32>, vector<16x16xf32>, vector<16x16xf32> -> vector<16x16xf32>
    %77 = vector.extract_strided_slice %39 {offsets = [16, 0], sizes = [16, 64], strides = [1, 1]} : vector<64x64xf32> to vector<16x64xf32>
    %cst_36 = arith.constant dense<0.000000e+00> : vector<16x64xf32>
    %78 = tpu.matmul %76, %77, %cst_36 {dimension_numbers = #tpu.dot_dimension_numbers<[1], [0], [0], [1], [0, 0, 1, 1], [], []>} : vector<16x16xf32>, vector<16x64xf32>, vector<16x64xf32> -> vector<16x64xf32>
    %79 = arith.addf %60, %78 : vector<16x64xf32>
    %80 = vector.extract_strided_slice %27 {offsets = [0, 32], sizes = [16, 16], strides = [1, 1]} : vector<16x64xf32> to vector<16x16xf32>
    %cst_37 = arith.constant 2.500000e-01 : f32
    %81 = vector.broadcast %cst_37 : f32 to vector<16x16xf32>
    %82 = arith.mulf %80, %81 : vector<16x16xf32>
    %83 = vector.extract_strided_slice %31 {offsets = [0, 32], sizes = [16, 16], strides = [1, 1]} : vector<16x64xf32> to vector<16x16xf32>
    %cst_38 = arith.constant dense<0.000000e+00> : vector<16x16xf32>
    %84 = tpu.matmul %82, %83, %cst_38 {dimension_numbers = #tpu.dot_dimension_numbers<[1], [1], [0], [0], [0, 0, 1, 0], [], []>} : vector<16x16xf32>, vector<16x16xf32>, vector<16x16xf32> -> vector<16x16xf32>
    %cst_39 = arith.constant dense<0xFF800000> : vector<16xf32>
    %85 = vector.multi_reduction <maximumf>, %84, %cst_39 [1] : vector<16x16xf32> to vector<16xf32>
    %86 = vector.shape_cast %85 : vector<16xf32> to vector<16x1xf32>
    %87 = vector.broadcast %86 : vector<16x1xf32> to vector<16x16xf32>
    %88 = arith.subf %84, %87 : vector<16x16xf32>
    %89 = math.exp %88 : vector<16x16xf32>
    %cst_40 = arith.constant dense<0.000000e+00> : vector<16xf32>
    %90 = vector.multi_reduction <add>, %89, %cst_40 [1] : vector<16x16xf32> to vector<16xf32>
    %91 = vector.shape_cast %90 : vector<16xf32> to vector<16x1xf32>
    %92 = vector.broadcast %91 : vector<16x1xf32> to vector<16x16xf32>
    %93 = arith.divf %89, %92 : vector<16x16xf32>
    %94 = vector.extract_strided_slice %37 {offsets = [0, 32], sizes = [16, 16], strides = [1, 1]} : vector<16x64xf32> to vector<16x16xf32>
    %cst_41 = arith.constant dense<0.000000e+00> : vector<16x16xf32>
    %95 = tpu.matmul %93, %94, %cst_41 {dimension_numbers = #tpu.dot_dimension_numbers<[1], [0], [0], [1], [0, 0, 1, 1], [], []>} : vector<16x16xf32>, vector<16x16xf32>, vector<16x16xf32> -> vector<16x16xf32>
    %96 = vector.extract_strided_slice %39 {offsets = [32, 0], sizes = [16, 64], strides = [1, 1]} : vector<64x64xf32> to vector<16x64xf32>
    %cst_42 = arith.constant dense<0.000000e+00> : vector<16x64xf32>
    %97 = tpu.matmul %95, %96, %cst_42 {dimension_numbers = #tpu.dot_dimension_numbers<[1], [0], [0], [1], [0, 0, 1, 1], [], []>} : vector<16x16xf32>, vector<16x64xf32>, vector<16x64xf32> -> vector<16x64xf32>
    %98 = arith.addf %79, %97 : vector<16x64xf32>
    %99 = vector.extract_strided_slice %27 {offsets = [0, 48], sizes = [16, 16], strides = [1, 1]} : vector<16x64xf32> to vector<16x16xf32>
    %cst_43 = arith.constant 2.500000e-01 : f32
    %100 = vector.broadcast %cst_43 : f32 to vector<16x16xf32>
    %101 = arith.mulf %99, %100 : vector<16x16xf32>
    %102 = vector.extract_strided_slice %31 {offsets = [0, 48], sizes = [16, 16], strides = [1, 1]} : vector<16x64xf32> to vector<16x16xf32>
    %cst_44 = arith.constant dense<0.000000e+00> : vector<16x16xf32>
    %103 = tpu.matmul %101, %102, %cst_44 {dimension_numbers = #tpu.dot_dimension_numbers<[1], [1], [0], [0], [0, 0, 1, 0], [], []>} : vector<16x16xf32>, vector<16x16xf32>, vector<16x16xf32> -> vector<16x16xf32>
    %cst_45 = arith.constant dense<0xFF800000> : vector<16xf32>
    %104 = vector.multi_reduction <maximumf>, %103, %cst_45 [1] : vector<16x16xf32> to vector<16xf32>
    %105 = vector.shape_cast %104 : vector<16xf32> to vector<16x1xf32>
    %106 = vector.broadcast %105 : vector<16x1xf32> to vector<16x16xf32>
    %107 = arith.subf %103, %106 : vector<16x16xf32>
    %108 = math.exp %107 : vector<16x16xf32>
    %cst_46 = arith.constant dense<0.000000e+00> : vector<16xf32>
    %109 = vector.multi_reduction <add>, %108, %cst_46 [1] : vector<16x16xf32> to vector<16xf32>
    %110 = vector.shape_cast %109 : vector<16xf32> to vector<16x1xf32>
    %111 = vector.broadcast %110 : vector<16x1xf32> to vector<16x16xf32>
    %112 = arith.divf %108, %111 : vector<16x16xf32>
    %113 = vector.extract_strided_slice %37 {offsets = [0, 48], sizes = [16, 16], strides = [1, 1]} : vector<16x64xf32> to vector<16x16xf32>
    %cst_47 = arith.constant dense<0.000000e+00> : vector<16x16xf32>
    %114 = tpu.matmul %112, %113, %cst_47 {dimension_numbers = #tpu.dot_dimension_numbers<[1], [0], [0], [1], [0, 0, 1, 1], [], []>} : vector<16x16xf32>, vector<16x16xf32>, vector<16x16xf32> -> vector<16x16xf32>
    %115 = vector.extract_strided_slice %39 {offsets = [48, 0], sizes = [16, 64], strides = [1, 1]} : vector<64x64xf32> to vector<16x64xf32>
    %cst_48 = arith.constant dense<0.000000e+00> : vector<16x64xf32>
    %116 = tpu.matmul %114, %115, %cst_48 {dimension_numbers = #tpu.dot_dimension_numbers<[1], [0], [0], [1], [0, 0, 1, 1], [], []>} : vector<16x16xf32>, vector<16x64xf32>, vector<16x64xf32> -> vector<16x64xf32>
    %117 = arith.addf %98, %116 : vector<16x64xf32>
    %118 = vector.broadcast %40 : vector<1x64xf32> to vector<16x64xf32>
    %119 = arith.addf %117, %118 : vector<16x64xf32>
    %120 = arith.addf %15, %119 : vector<16x64xf32>
    %121 = vector.extract_strided_slice %17 {offsets = [2, 0], sizes = [1, 64], strides = [1, 1]} : vector<8x128xf32> to vector<1x64xf32>
    %122 = vector.extract_strided_slice %17 {offsets = [2, 64], sizes = [1, 64], strides = [1, 1]} : vector<8x128xf32> to vector<1x64xf32>
    %cst_49 = arith.constant dense<0.000000e+00> : vector<16xf32>
    %123 = vector.multi_reduction <add>, %120, %cst_49 [1] : vector<16x64xf32> to vector<16xf32>
    %124 = vector.shape_cast %123 : vector<16xf32> to vector<16x1xf32>
    %cst_50 = arith.constant 6.400000e+01 : f32
    %125 = vector.broadcast %cst_50 : f32 to vector<16x1xf32>
    %126 = arith.divf %124, %125 : vector<16x1xf32>
    %127 = vector.broadcast %126 : vector<16x1xf32> to vector<16x64xf32>
    %128 = arith.subf %120, %127 : vector<16x64xf32>
    %129 = arith.mulf %128, %128 : vector<16x64xf32>
    %cst_51 = arith.constant dense<0.000000e+00> : vector<16xf32>
    %130 = vector.multi_reduction <add>, %129, %cst_51 [1] : vector<16x64xf32> to vector<16xf32>
    %131 = vector.shape_cast %130 : vector<16xf32> to vector<16x1xf32>
    %cst_52 = arith.constant 6.400000e+01 : f32
    %132 = vector.broadcast %cst_52 : f32 to vector<16x1xf32>
    %133 = arith.divf %131, %132 : vector<16x1xf32>
    %cst_53 = arith.constant 9.99999974E-6 : f32
    %134 = vector.broadcast %cst_53 : f32 to vector<16x1xf32>
    %135 = arith.addf %133, %134 : vector<16x1xf32>
    %136 = math.rsqrt %135 : vector<16x1xf32>
    %137 = vector.broadcast %136 : vector<16x1xf32> to vector<16x64xf32>
    %138 = arith.mulf %128, %137 : vector<16x64xf32>
    %139 = vector.broadcast %121 : vector<1x64xf32> to vector<16x64xf32>
    %140 = arith.mulf %138, %139 : vector<16x64xf32>
    %141 = vector.broadcast %122 : vector<1x64xf32> to vector<16x64xf32>
    %142 = arith.addf %140, %141 : vector<16x64xf32>
    %c0_54 = arith.constant 0 : index
    %c0_55 = arith.constant 0 : index
    %c0_56 = arith.constant 0 : index
    %143 = vector.load %arg8[%c0_54, %c0_55, %c0_56] : memref<2x64x128xf32, #tpu.memory_space<vmem>>, vector<1x64x128xf32>
    %144 = vector.shape_cast %143 : vector<1x64x128xf32> to vector<64x128xf32>
    %cst_57 = arith.constant dense<0.000000e+00> : vector<16x128xf32>
    %145 = tpu.matmul %142, %144, %cst_57 {dimension_numbers = #tpu.dot_dimension_numbers<[1], [0], [0], [1], [0, 0, 1, 1], [], []>} : vector<16x64xf32>, vector<64x128xf32>, vector<16x128xf32> -> vector<16x128xf32>
    %146 = vector.extract_strided_slice %17 {offsets = [4, 0], sizes = [1, 128], strides = [1, 1]} : vector<8x128xf32> to vector<1x128xf32>
    %147 = vector.broadcast %146 : vector<1x128xf32> to vector<16x128xf32>
    %148 = arith.addf %145, %147 : vector<16x128xf32>
    %cst_58 = arith.constant 0.000000e+00 : f32
    %149 = vector.broadcast %cst_58 : f32 to vector<16x128xf32>
    %150 = arith.maximumf %148, %149 : vector<16x128xf32>
    %c0_59 = arith.constant 0 : index
    %c0_60 = arith.constant 0 : index
    %c0_61 = arith.constant 0 : index
    %151 = vector.load %arg9[%c0_59, %c0_60, %c0_61] : memref<2x128x64xf32, #tpu.memory_space<vmem>>, vector<1x128x64xf32>
    %152 = vector.shape_cast %151 : vector<1x128x64xf32> to vector<128x64xf32>
    %cst_62 = arith.constant dense<0.000000e+00> : vector<16x64xf32>
    %153 = tpu.matmul %150, %152, %cst_62 {dimension_numbers = #tpu.dot_dimension_numbers<[1], [0], [0], [1], [0, 0, 1, 1], [], []>} : vector<16x128xf32>, vector<128x64xf32>, vector<16x64xf32> -> vector<16x64xf32>
    %154 = vector.extract_strided_slice %17 {offsets = [5, 0], sizes = [1, 64], strides = [1, 1]} : vector<8x128xf32> to vector<1x64xf32>
    %155 = vector.broadcast %154 : vector<1x64xf32> to vector<16x64xf32>
    %156 = arith.addf %153, %155 : vector<16x64xf32>
    %157 = arith.addf %142, %156 : vector<16x64xf32>
    %158 = vector.extract_strided_slice %17 {offsets = [3, 0], sizes = [1, 64], strides = [1, 1]} : vector<8x128xf32> to vector<1x64xf32>
    %159 = vector.extract_strided_slice %17 {offsets = [3, 64], sizes = [1, 64], strides = [1, 1]} : vector<8x128xf32> to vector<1x64xf32>
    %cst_63 = arith.constant dense<0.000000e+00> : vector<16xf32>
    %160 = vector.multi_reduction <add>, %157, %cst_63 [1] : vector<16x64xf32> to vector<16xf32>
    %161 = vector.shape_cast %160 : vector<16xf32> to vector<16x1xf32>
    %cst_64 = arith.constant 6.400000e+01 : f32
    %162 = vector.broadcast %cst_64 : f32 to vector<16x1xf32>
    %163 = arith.divf %161, %162 : vector<16x1xf32>
    %164 = vector.broadcast %163 : vector<16x1xf32> to vector<16x64xf32>
    %165 = arith.subf %157, %164 : vector<16x64xf32>
    %166 = arith.mulf %165, %165 : vector<16x64xf32>
    %cst_65 = arith.constant dense<0.000000e+00> : vector<16xf32>
    %167 = vector.multi_reduction <add>, %166, %cst_65 [1] : vector<16x64xf32> to vector<16xf32>
    %168 = vector.shape_cast %167 : vector<16xf32> to vector<16x1xf32>
    %cst_66 = arith.constant 6.400000e+01 : f32
    %169 = vector.broadcast %cst_66 : f32 to vector<16x1xf32>
    %170 = arith.divf %168, %169 : vector<16x1xf32>
    %cst_67 = arith.constant 9.99999974E-6 : f32
    %171 = vector.broadcast %cst_67 : f32 to vector<16x1xf32>
    %172 = arith.addf %170, %171 : vector<16x1xf32>
    %173 = math.rsqrt %172 : vector<16x1xf32>
    %174 = vector.broadcast %173 : vector<16x1xf32> to vector<16x64xf32>
    %175 = arith.mulf %165, %174 : vector<16x64xf32>
    %176 = vector.broadcast %158 : vector<1x64xf32> to vector<16x64xf32>
    %177 = arith.mulf %175, %176 : vector<16x64xf32>
    %178 = vector.broadcast %159 : vector<1x64xf32> to vector<16x64xf32>
    %179 = arith.addf %177, %178 : vector<16x64xf32>
    %c1 = arith.constant 1 : index
    %c0_68 = arith.constant 0 : index
    %c0_69 = arith.constant 0 : index
    %180 = vector.load %arg10[%c1, %c0_68, %c0_69] : memref<2x8x128xf32, #tpu.memory_space<vmem>>, vector<1x8x128xf32>
    %181 = vector.shape_cast %180 : vector<1x8x128xf32> to vector<8x128xf32>
    %c1_70 = arith.constant 1 : index
    %c0_71 = arith.constant 0 : index
    %c0_72 = arith.constant 0 : index
    %c0_73 = arith.constant 0 : index
    %182 = vector.load %arg7[%c1_70, %c0_71, %c0_72, %c0_73] : memref<2x2x64x64xf32, #tpu.memory_space<vmem>>, vector<1x2x64x64xf32>
    %183 = vector.shape_cast %182 : vector<1x2x64x64xf32> to vector<2x64x64xf32>
    %184 = arith.addf %179, %0 : vector<16x64xf32>
    %c1_74 = arith.constant 1 : index
    %c0_75 = arith.constant 0 : index
    %c0_76 = arith.constant 0 : index
    %185 = vector.load %arg6[%c1_74, %c0_75, %c0_76] : memref<2x64x128xf32, #tpu.memory_space<vmem>>, vector<1x64x128xf32>
    %186 = vector.shape_cast %185 : vector<1x64x128xf32> to vector<64x128xf32>
    %cst_77 = arith.constant dense<0.000000e+00> : vector<16x128xf32>
    %187 = tpu.matmul %184, %186, %cst_77 {dimension_numbers = #tpu.dot_dimension_numbers<[1], [0], [0], [1], [0, 0, 1, 1], [], []>} : vector<16x64xf32>, vector<64x128xf32>, vector<16x128xf32> -> vector<16x128xf32>
    %188 = vector.extract_strided_slice %187 {offsets = [0, 0], sizes = [16, 64], strides = [1, 1]} : vector<16x128xf32> to vector<16x64xf32>
    %189 = vector.extract_strided_slice %181 {offsets = [0, 0], sizes = [1, 64], strides = [1, 1]} : vector<8x128xf32> to vector<1x64xf32>
    %190 = vector.broadcast %189 : vector<1x64xf32> to vector<16x64xf32>
    %191 = arith.addf %188, %190 : vector<16x64xf32>
    %192 = vector.extract_strided_slice %187 {offsets = [0, 64], sizes = [16, 64], strides = [1, 1]} : vector<16x128xf32> to vector<16x64xf32>
    %193 = vector.extract_strided_slice %181 {offsets = [0, 64], sizes = [1, 64], strides = [1, 1]} : vector<8x128xf32> to vector<1x64xf32>
    %194 = vector.broadcast %193 : vector<1x64xf32> to vector<16x64xf32>
    %195 = arith.addf %192, %194 : vector<16x64xf32>
    %196 = vector.extract_strided_slice %183 {offsets = [0, 0, 0], sizes = [1, 64, 64], strides = [1, 1, 1]} : vector<2x64x64xf32> to vector<1x64x64xf32>
    %197 = vector.shape_cast %196 : vector<1x64x64xf32> to vector<64x64xf32>
    %cst_78 = arith.constant dense<0.000000e+00> : vector<16x64xf32>
    %198 = tpu.matmul %179, %197, %cst_78 {dimension_numbers = #tpu.dot_dimension_numbers<[1], [0], [0], [1], [0, 0, 1, 1], [], []>} : vector<16x64xf32>, vector<64x64xf32>, vector<16x64xf32> -> vector<16x64xf32>
    %199 = vector.extract_strided_slice %181 {offsets = [1, 0], sizes = [1, 64], strides = [1, 1]} : vector<8x128xf32> to vector<1x64xf32>
    %200 = vector.broadcast %199 : vector<1x64xf32> to vector<16x64xf32>
    %201 = arith.addf %198, %200 : vector<16x64xf32>
    %202 = vector.extract_strided_slice %183 {offsets = [1, 0, 0], sizes = [1, 64, 64], strides = [1, 1, 1]} : vector<2x64x64xf32> to vector<1x64x64xf32>
    %203 = vector.shape_cast %202 : vector<1x64x64xf32> to vector<64x64xf32>
    %204 = vector.extract_strided_slice %181 {offsets = [1, 64], sizes = [1, 64], strides = [1, 1]} : vector<8x128xf32> to vector<1x64xf32>
    %cst_79 = arith.constant 0.000000e+00 : f32
    %205 = vector.broadcast %cst_79 : f32 to vector<16x64xf32>
    %206 = vector.extract_strided_slice %191 {offsets = [0, 0], sizes = [16, 16], strides = [1, 1]} : vector<16x64xf32> to vector<16x16xf32>
    %cst_80 = arith.constant 2.500000e-01 : f32
    %207 = vector.broadcast %cst_80 : f32 to vector<16x16xf32>
    %208 = arith.mulf %206, %207 : vector<16x16xf32>
    %209 = vector.extract_strided_slice %195 {offsets = [0, 0], sizes = [16, 16], strides = [1, 1]} : vector<16x64xf32> to vector<16x16xf32>
    %cst_81 = arith.constant dense<0.000000e+00> : vector<16x16xf32>
    %210 = tpu.matmul %208, %209, %cst_81 {dimension_numbers = #tpu.dot_dimension_numbers<[1], [1], [0], [0], [0, 0, 1, 0], [], []>} : vector<16x16xf32>, vector<16x16xf32>, vector<16x16xf32> -> vector<16x16xf32>
    %cst_82 = arith.constant dense<0xFF800000> : vector<16xf32>
    %211 = vector.multi_reduction <maximumf>, %210, %cst_82 [1] : vector<16x16xf32> to vector<16xf32>
    %212 = vector.shape_cast %211 : vector<16xf32> to vector<16x1xf32>
    %213 = vector.broadcast %212 : vector<16x1xf32> to vector<16x16xf32>
    %214 = arith.subf %210, %213 : vector<16x16xf32>
    %215 = math.exp %214 : vector<16x16xf32>
    %cst_83 = arith.constant dense<0.000000e+00> : vector<16xf32>
    %216 = vector.multi_reduction <add>, %215, %cst_83 [1] : vector<16x16xf32> to vector<16xf32>
    %217 = vector.shape_cast %216 : vector<16xf32> to vector<16x1xf32>
    %218 = vector.broadcast %217 : vector<16x1xf32> to vector<16x16xf32>
    %219 = arith.divf %215, %218 : vector<16x16xf32>
    %220 = vector.extract_strided_slice %201 {offsets = [0, 0], sizes = [16, 16], strides = [1, 1]} : vector<16x64xf32> to vector<16x16xf32>
    %cst_84 = arith.constant dense<0.000000e+00> : vector<16x16xf32>
    %221 = tpu.matmul %219, %220, %cst_84 {dimension_numbers = #tpu.dot_dimension_numbers<[1], [0], [0], [1], [0, 0, 1, 1], [], []>} : vector<16x16xf32>, vector<16x16xf32>, vector<16x16xf32> -> vector<16x16xf32>
    %222 = vector.extract_strided_slice %203 {offsets = [0, 0], sizes = [16, 64], strides = [1, 1]} : vector<64x64xf32> to vector<16x64xf32>
    %cst_85 = arith.constant dense<0.000000e+00> : vector<16x64xf32>
    %223 = tpu.matmul %221, %222, %cst_85 {dimension_numbers = #tpu.dot_dimension_numbers<[1], [0], [0], [1], [0, 0, 1, 1], [], []>} : vector<16x16xf32>, vector<16x64xf32>, vector<16x64xf32> -> vector<16x64xf32>
    %224 = arith.addf %205, %223 : vector<16x64xf32>
    %225 = vector.extract_strided_slice %191 {offsets = [0, 16], sizes = [16, 16], strides = [1, 1]} : vector<16x64xf32> to vector<16x16xf32>
    %cst_86 = arith.constant 2.500000e-01 : f32
    %226 = vector.broadcast %cst_86 : f32 to vector<16x16xf32>
    %227 = arith.mulf %225, %226 : vector<16x16xf32>
    %228 = vector.extract_strided_slice %195 {offsets = [0, 16], sizes = [16, 16], strides = [1, 1]} : vector<16x64xf32> to vector<16x16xf32>
    %cst_87 = arith.constant dense<0.000000e+00> : vector<16x16xf32>
    %229 = tpu.matmul %227, %228, %cst_87 {dimension_numbers = #tpu.dot_dimension_numbers<[1], [1], [0], [0], [0, 0, 1, 0], [], []>} : vector<16x16xf32>, vector<16x16xf32>, vector<16x16xf32> -> vector<16x16xf32>
    %cst_88 = arith.constant dense<0xFF800000> : vector<16xf32>
    %230 = vector.multi_reduction <maximumf>, %229, %cst_88 [1] : vector<16x16xf32> to vector<16xf32>
    %231 = vector.shape_cast %230 : vector<16xf32> to vector<16x1xf32>
    %232 = vector.broadcast %231 : vector<16x1xf32> to vector<16x16xf32>
    %233 = arith.subf %229, %232 : vector<16x16xf32>
    %234 = math.exp %233 : vector<16x16xf32>
    %cst_89 = arith.constant dense<0.000000e+00> : vector<16xf32>
    %235 = vector.multi_reduction <add>, %234, %cst_89 [1] : vector<16x16xf32> to vector<16xf32>
    %236 = vector.shape_cast %235 : vector<16xf32> to vector<16x1xf32>
    %237 = vector.broadcast %236 : vector<16x1xf32> to vector<16x16xf32>
    %238 = arith.divf %234, %237 : vector<16x16xf32>
    %239 = vector.extract_strided_slice %201 {offsets = [0, 16], sizes = [16, 16], strides = [1, 1]} : vector<16x64xf32> to vector<16x16xf32>
    %cst_90 = arith.constant dense<0.000000e+00> : vector<16x16xf32>
    %240 = tpu.matmul %238, %239, %cst_90 {dimension_numbers = #tpu.dot_dimension_numbers<[1], [0], [0], [1], [0, 0, 1, 1], [], []>} : vector<16x16xf32>, vector<16x16xf32>, vector<16x16xf32> -> vector<16x16xf32>
    %241 = vector.extract_strided_slice %203 {offsets = [16, 0], sizes = [16, 64], strides = [1, 1]} : vector<64x64xf32> to vector<16x64xf32>
    %cst_91 = arith.constant dense<0.000000e+00> : vector<16x64xf32>
    %242 = tpu.matmul %240, %241, %cst_91 {dimension_numbers = #tpu.dot_dimension_numbers<[1], [0], [0], [1], [0, 0, 1, 1], [], []>} : vector<16x16xf32>, vector<16x64xf32>, vector<16x64xf32> -> vector<16x64xf32>
    %243 = arith.addf %224, %242 : vector<16x64xf32>
    %244 = vector.extract_strided_slice %191 {offsets = [0, 32], sizes = [16, 16], strides = [1, 1]} : vector<16x64xf32> to vector<16x16xf32>
    %cst_92 = arith.constant 2.500000e-01 : f32
    %245 = vector.broadcast %cst_92 : f32 to vector<16x16xf32>
    %246 = arith.mulf %244, %245 : vector<16x16xf32>
    %247 = vector.extract_strided_slice %195 {offsets = [0, 32], sizes = [16, 16], strides = [1, 1]} : vector<16x64xf32> to vector<16x16xf32>
    %cst_93 = arith.constant dense<0.000000e+00> : vector<16x16xf32>
    %248 = tpu.matmul %246, %247, %cst_93 {dimension_numbers = #tpu.dot_dimension_numbers<[1], [1], [0], [0], [0, 0, 1, 0], [], []>} : vector<16x16xf32>, vector<16x16xf32>, vector<16x16xf32> -> vector<16x16xf32>
    %cst_94 = arith.constant dense<0xFF800000> : vector<16xf32>
    %249 = vector.multi_reduction <maximumf>, %248, %cst_94 [1] : vector<16x16xf32> to vector<16xf32>
    %250 = vector.shape_cast %249 : vector<16xf32> to vector<16x1xf32>
    %251 = vector.broadcast %250 : vector<16x1xf32> to vector<16x16xf32>
    %252 = arith.subf %248, %251 : vector<16x16xf32>
    %253 = math.exp %252 : vector<16x16xf32>
    %cst_95 = arith.constant dense<0.000000e+00> : vector<16xf32>
    %254 = vector.multi_reduction <add>, %253, %cst_95 [1] : vector<16x16xf32> to vector<16xf32>
    %255 = vector.shape_cast %254 : vector<16xf32> to vector<16x1xf32>
    %256 = vector.broadcast %255 : vector<16x1xf32> to vector<16x16xf32>
    %257 = arith.divf %253, %256 : vector<16x16xf32>
    %258 = vector.extract_strided_slice %201 {offsets = [0, 32], sizes = [16, 16], strides = [1, 1]} : vector<16x64xf32> to vector<16x16xf32>
    %cst_96 = arith.constant dense<0.000000e+00> : vector<16x16xf32>
    %259 = tpu.matmul %257, %258, %cst_96 {dimension_numbers = #tpu.dot_dimension_numbers<[1], [0], [0], [1], [0, 0, 1, 1], [], []>} : vector<16x16xf32>, vector<16x16xf32>, vector<16x16xf32> -> vector<16x16xf32>
    %260 = vector.extract_strided_slice %203 {offsets = [32, 0], sizes = [16, 64], strides = [1, 1]} : vector<64x64xf32> to vector<16x64xf32>
    %cst_97 = arith.constant dense<0.000000e+00> : vector<16x64xf32>
    %261 = tpu.matmul %259, %260, %cst_97 {dimension_numbers = #tpu.dot_dimension_numbers<[1], [0], [0], [1], [0, 0, 1, 1], [], []>} : vector<16x16xf32>, vector<16x64xf32>, vector<16x64xf32> -> vector<16x64xf32>
    %262 = arith.addf %243, %261 : vector<16x64xf32>
    %263 = vector.extract_strided_slice %191 {offsets = [0, 48], sizes = [16, 16], strides = [1, 1]} : vector<16x64xf32> to vector<16x16xf32>
    %cst_98 = arith.constant 2.500000e-01 : f32
    %264 = vector.broadcast %cst_98 : f32 to vector<16x16xf32>
    %265 = arith.mulf %263, %264 : vector<16x16xf32>
    %266 = vector.extract_strided_slice %195 {offsets = [0, 48], sizes = [16, 16], strides = [1, 1]} : vector<16x64xf32> to vector<16x16xf32>
    %cst_99 = arith.constant dense<0.000000e+00> : vector<16x16xf32>
    %267 = tpu.matmul %265, %266, %cst_99 {dimension_numbers = #tpu.dot_dimension_numbers<[1], [1], [0], [0], [0, 0, 1, 0], [], []>} : vector<16x16xf32>, vector<16x16xf32>, vector<16x16xf32> -> vector<16x16xf32>
    %cst_100 = arith.constant dense<0xFF800000> : vector<16xf32>
    %268 = vector.multi_reduction <maximumf>, %267, %cst_100 [1] : vector<16x16xf32> to vector<16xf32>
    %269 = vector.shape_cast %268 : vector<16xf32> to vector<16x1xf32>
    %270 = vector.broadcast %269 : vector<16x1xf32> to vector<16x16xf32>
    %271 = arith.subf %267, %270 : vector<16x16xf32>
    %272 = math.exp %271 : vector<16x16xf32>
    %cst_101 = arith.constant dense<0.000000e+00> : vector<16xf32>
    %273 = vector.multi_reduction <add>, %272, %cst_101 [1] : vector<16x16xf32> to vector<16xf32>
    %274 = vector.shape_cast %273 : vector<16xf32> to vector<16x1xf32>
    %275 = vector.broadcast %274 : vector<16x1xf32> to vector<16x16xf32>
    %276 = arith.divf %272, %275 : vector<16x16xf32>
    %277 = vector.extract_strided_slice %201 {offsets = [0, 48], sizes = [16, 16], strides = [1, 1]} : vector<16x64xf32> to vector<16x16xf32>
    %cst_102 = arith.constant dense<0.000000e+00> : vector<16x16xf32>
    %278 = tpu.matmul %276, %277, %cst_102 {dimension_numbers = #tpu.dot_dimension_numbers<[1], [0], [0], [1], [0, 0, 1, 1], [], []>} : vector<16x16xf32>, vector<16x16xf32>, vector<16x16xf32> -> vector<16x16xf32>
    %279 = vector.extract_strided_slice %203 {offsets = [48, 0], sizes = [16, 64], strides = [1, 1]} : vector<64x64xf32> to vector<16x64xf32>
    %cst_103 = arith.constant dense<0.000000e+00> : vector<16x64xf32>
    %280 = tpu.matmul %278, %279, %cst_103 {dimension_numbers = #tpu.dot_dimension_numbers<[1], [0], [0], [1], [0, 0, 1, 1], [], []>} : vector<16x16xf32>, vector<16x64xf32>, vector<16x64xf32> -> vector<16x64xf32>
    %281 = arith.addf %262, %280 : vector<16x64xf32>
    %282 = vector.broadcast %204 : vector<1x64xf32> to vector<16x64xf32>
    %283 = arith.addf %281, %282 : vector<16x64xf32>
    %284 = arith.addf %179, %283 : vector<16x64xf32>
    %285 = vector.extract_strided_slice %181 {offsets = [2, 0], sizes = [1, 64], strides = [1, 1]} : vector<8x128xf32> to vector<1x64xf32>
    %286 = vector.extract_strided_slice %181 {offsets = [2, 64], sizes = [1, 64], strides = [1, 1]} : vector<8x128xf32> to vector<1x64xf32>
    %cst_104 = arith.constant dense<0.000000e+00> : vector<16xf32>
    %287 = vector.multi_reduction <add>, %284, %cst_104 [1] : vector<16x64xf32> to vector<16xf32>
    %288 = vector.shape_cast %287 : vector<16xf32> to vector<16x1xf32>
    %cst_105 = arith.constant 6.400000e+01 : f32
    %289 = vector.broadcast %cst_105 : f32 to vector<16x1xf32>
    %290 = arith.divf %288, %289 : vector<16x1xf32>
    %291 = vector.broadcast %290 : vector<16x1xf32> to vector<16x64xf32>
    %292 = arith.subf %284, %291 : vector<16x64xf32>
    %293 = arith.mulf %292, %292 : vector<16x64xf32>
    %cst_106 = arith.constant dense<0.000000e+00> : vector<16xf32>
    %294 = vector.multi_reduction <add>, %293, %cst_106 [1] : vector<16x64xf32> to vector<16xf32>
    %295 = vector.shape_cast %294 : vector<16xf32> to vector<16x1xf32>
    %cst_107 = arith.constant 6.400000e+01 : f32
    %296 = vector.broadcast %cst_107 : f32 to vector<16x1xf32>
    %297 = arith.divf %295, %296 : vector<16x1xf32>
    %cst_108 = arith.constant 9.99999974E-6 : f32
    %298 = vector.broadcast %cst_108 : f32 to vector<16x1xf32>
    %299 = arith.addf %297, %298 : vector<16x1xf32>
    %300 = math.rsqrt %299 : vector<16x1xf32>
    %301 = vector.broadcast %300 : vector<16x1xf32> to vector<16x64xf32>
    %302 = arith.mulf %292, %301 : vector<16x64xf32>
    %303 = vector.broadcast %285 : vector<1x64xf32> to vector<16x64xf32>
    %304 = arith.mulf %302, %303 : vector<16x64xf32>
    %305 = vector.broadcast %286 : vector<1x64xf32> to vector<16x64xf32>
    %306 = arith.addf %304, %305 : vector<16x64xf32>
    %c1_109 = arith.constant 1 : index
    %c0_110 = arith.constant 0 : index
    %c0_111 = arith.constant 0 : index
    %307 = vector.load %arg8[%c1_109, %c0_110, %c0_111] : memref<2x64x128xf32, #tpu.memory_space<vmem>>, vector<1x64x128xf32>
    %308 = vector.shape_cast %307 : vector<1x64x128xf32> to vector<64x128xf32>
    %cst_112 = arith.constant dense<0.000000e+00> : vector<16x128xf32>
    %309 = tpu.matmul %306, %308, %cst_112 {dimension_numbers = #tpu.dot_dimension_numbers<[1], [0], [0], [1], [0, 0, 1, 1], [], []>} : vector<16x64xf32>, vector<64x128xf32>, vector<16x128xf32> -> vector<16x128xf32>
    %310 = vector.extract_strided_slice %181 {offsets = [4, 0], sizes = [1, 128], strides = [1, 1]} : vector<8x128xf32> to vector<1x128xf32>
    %311 = vector.broadcast %310 : vector<1x128xf32> to vector<16x128xf32>
    %312 = arith.addf %309, %311 : vector<16x128xf32>
    %cst_113 = arith.constant 0.000000e+00 : f32
    %313 = vector.broadcast %cst_113 : f32 to vector<16x128xf32>
    %314 = arith.maximumf %312, %313 : vector<16x128xf32>
    %c1_114 = arith.constant 1 : index
    %c0_115 = arith.constant 0 : index
    %c0_116 = arith.constant 0 : index
    %315 = vector.load %arg9[%c1_114, %c0_115, %c0_116] : memref<2x128x64xf32, #tpu.memory_space<vmem>>, vector<1x128x64xf32>
    %316 = vector.shape_cast %315 : vector<1x128x64xf32> to vector<128x64xf32>
    %cst_117 = arith.constant dense<0.000000e+00> : vector<16x64xf32>
    %317 = tpu.matmul %314, %316, %cst_117 {dimension_numbers = #tpu.dot_dimension_numbers<[1], [0], [0], [1], [0, 0, 1, 1], [], []>} : vector<16x128xf32>, vector<128x64xf32>, vector<16x64xf32> -> vector<16x64xf32>
    %318 = vector.extract_strided_slice %181 {offsets = [5, 0], sizes = [1, 64], strides = [1, 1]} : vector<8x128xf32> to vector<1x64xf32>
    %319 = vector.broadcast %318 : vector<1x64xf32> to vector<16x64xf32>
    %320 = arith.addf %317, %319 : vector<16x64xf32>
    %321 = arith.addf %306, %320 : vector<16x64xf32>
    %322 = vector.extract_strided_slice %181 {offsets = [3, 0], sizes = [1, 64], strides = [1, 1]} : vector<8x128xf32> to vector<1x64xf32>
    %323 = vector.extract_strided_slice %181 {offsets = [3, 64], sizes = [1, 64], strides = [1, 1]} : vector<8x128xf32> to vector<1x64xf32>
    %cst_118 = arith.constant dense<0.000000e+00> : vector<16xf32>
    %324 = vector.multi_reduction <add>, %321, %cst_118 [1] : vector<16x64xf32> to vector<16xf32>
    %325 = vector.shape_cast %324 : vector<16xf32> to vector<16x1xf32>
    %cst_119 = arith.constant 6.400000e+01 : f32
    %326 = vector.broadcast %cst_119 : f32 to vector<16x1xf32>
    %327 = arith.divf %325, %326 : vector<16x1xf32>
    %328 = vector.broadcast %327 : vector<16x1xf32> to vector<16x64xf32>
    %329 = arith.subf %321, %328 : vector<16x64xf32>
    %330 = arith.mulf %329, %329 : vector<16x64xf32>
    %cst_120 = arith.constant dense<0.000000e+00> : vector<16xf32>
    %331 = vector.multi_reduction <add>, %330, %cst_120 [1] : vector<16x64xf32> to vector<16xf32>
    %332 = vector.shape_cast %331 : vector<16xf32> to vector<16x1xf32>
    %cst_121 = arith.constant 6.400000e+01 : f32
    %333 = vector.broadcast %cst_121 : f32 to vector<16x1xf32>
    %334 = arith.divf %332, %333 : vector<16x1xf32>
    %cst_122 = arith.constant 9.99999974E-6 : f32
    %335 = vector.broadcast %cst_122 : f32 to vector<16x1xf32>
    %336 = arith.addf %334, %335 : vector<16x1xf32>
    %337 = math.rsqrt %336 : vector<16x1xf32>
    %338 = vector.broadcast %337 : vector<16x1xf32> to vector<16x64xf32>
    %339 = arith.mulf %329, %338 : vector<16x64xf32>
    %340 = vector.broadcast %322 : vector<1x64xf32> to vector<16x64xf32>
    %341 = arith.mulf %339, %340 : vector<16x64xf32>
    %342 = vector.broadcast %323 : vector<1x64xf32> to vector<16x64xf32>
    %343 = arith.addf %341, %342 : vector<16x64xf32>
    %c0_123 = arith.constant 0 : index
    %c0_124 = arith.constant 0 : index
    %c0_125 = arith.constant 0 : index
    %344 = vector.load %arg11[%c0_123, %c0_124, %c0_125] : memref<1x16x64xf32, #tpu.memory_space<vmem>>, vector<1x16x64xf32>
    %345 = vector.shape_cast %344 : vector<1x16x64xf32> to vector<16x64xf32>
    %346 = vector.shape_cast %343 : vector<16x64xf32> to vector<1x16x64xf32>
    tpu.vector_store %arg11[%c0_123, %c0_124, %c0_125], %346 {strides = array<i32>} : memref<1x16x64xf32, #tpu.memory_space<vmem>>, vector<1x16x64xf32>,
    return
  }
  func.func @transform_0(%arg0: i32) -> (i32, i32, i32) {
    %c0_i32 = arith.constant 0 : i32
    %c0_i32_0 = arith.constant 0 : i32
    %c0_i32_1 = arith.constant 0 : i32
    return %arg0, %c0_i32, %c0_i32_0 : i32, i32, i32
  }
  func.func @transform_1(%arg0: i32) -> (i32, i32) {
    %c0_i32 = arith.constant 0 : i32
    %c0_i32_0 = arith.constant 0 : i32
    %c0_i32_1 = arith.constant 0 : i32
    return %c0_i32, %c0_i32_0 : i32, i32
  }
  func.func @transform_2(%arg0: i32) -> (i32, i32) {
    %c0_i32 = arith.constant 0 : i32
    %c0_i32_0 = arith.constant 0 : i32
    %c0_i32_1 = arith.constant 0 : i32
    return %c0_i32, %c0_i32_0 : i32, i32
  }
  func.func @transform_3(%arg0: i32) -> (i32, i32) {
    %c0_i32 = arith.constant 0 : i32
    %c0_i32_0 = arith.constant 0 : i32
    %c0_i32_1 = arith.constant 0 : i32
    return %c0_i32, %c0_i32_0 : i32, i32
  }
  func.func @transform_4(%arg0: i32) -> (i32, i32) {
    %c0_i32 = arith.constant 0 : i32
    %c0_i32_0 = arith.constant 0 : i32
    %c0_i32_1 = arith.constant 0 : i32
    return %c0_i32, %c0_i32_0 : i32, i32
  }
  func.func @transform_5(%arg0: i32) -> (i32, i32, i32) {
    %c0_i32 = arith.constant 0 : i32
    %c0_i32_0 = arith.constant 0 : i32
    %c0_i32_1 = arith.constant 0 : i32
    %c0_i32_2 = arith.constant 0 : i32
    return %c0_i32, %c0_i32_0, %c0_i32_1 : i32, i32, i32
  }
  func.func @transform_6(%arg0: i32) -> (i32, i32, i32, i32) {
    %c0_i32 = arith.constant 0 : i32
    %c0_i32_0 = arith.constant 0 : i32
    %c0_i32_1 = arith.constant 0 : i32
    %c0_i32_2 = arith.constant 0 : i32
    %c0_i32_3 = arith.constant 0 : i32
    return %c0_i32, %c0_i32_0, %c0_i32_1, %c0_i32_2 : i32, i32, i32, i32
  }
  func.func @transform_7(%arg0: i32) -> (i32, i32, i32) {
    %c0_i32 = arith.constant 0 : i32
    %c0_i32_0 = arith.constant 0 : i32
    %c0_i32_1 = arith.constant 0 : i32
    %c0_i32_2 = arith.constant 0 : i32
    return %c0_i32, %c0_i32_0, %c0_i32_1 : i32, i32, i32
  }
  func.func @transform_8(%arg0: i32) -> (i32, i32, i32) {
    %c0_i32 = arith.constant 0 : i32
    %c0_i32_0 = arith.constant 0 : i32
    %c0_i32_1 = arith.constant 0 : i32
    %c0_i32_2 = arith.constant 0 : i32
    return %c0_i32, %c0_i32_0, %c0_i32_1 : i32, i32, i32
  }
  func.func @transform_9(%arg0: i32) -> (i32, i32, i32) {
    %c0_i32 = arith.constant 0 : i32
    %c0_i32_0 = arith.constant 0 : i32
    %c0_i32_1 = arith.constant 0 : i32
    %c0_i32_2 = arith.constant 0 : i32
    return %c0_i32, %c0_i32_0, %c0_i32_1 : i32, i32, i32
  }
  func.func @transform_10(%arg0: i32) -> (i32, i32, i32) {
    %c0_i32 = arith.constant 0 : i32
    %c0_i32_0 = arith.constant 0 : i32
    %c0_i32_1 = arith.constant 0 : i32
    return %arg0, %c0_i32, %c0_i32_0 : i32, i32, i32
  }
}

module attributes {stable_mosaic.version = 11 : i64} {
  func.func @_decoder_stack_kernel(%arg0: i32, %arg1: memref<1x16x64xf32, #tpu.memory_space<vmem>>, %arg2: memref<16x64xf32, #tpu.memory_space<vmem>>, %arg3: memref<8x64xf32, #tpu.memory_space<vmem>>, %arg4: memref<2x64x128xf32, #tpu.memory_space<vmem>>, %arg5: memref<2x6x64x64xf32, #tpu.memory_space<vmem>>, %arg6: memref<2x64x128xf32, #tpu.memory_space<vmem>>, %arg7: memref<2x128x64xf32, #tpu.memory_space<vmem>>, %arg8: memref<2x16x128xf32, #tpu.memory_space<vmem>>, %arg9: memref<2x64x64xf32, #tpu.memory_space<vmem>>, %arg10: memref<2x64x128xf32, #tpu.memory_space<vmem>>, %arg11: memref<8x128xf32, #tpu.memory_space<vmem>>, %arg12: memref<1x8x128xf32, #tpu.memory_space<vmem>>) attributes {dimension_semantics = [#tpu.dimension_semantics<parallel>], iteration_bounds = array<i64: 2>, scalar_prefetch = 0 : i64, scratch_operands = 0 : i64, tpu.core_type = #tpu.core_type<tc>, window_params = [{transform_indices = @transform_0, window_bounds = array<i64: 1, 16, 64>}, {pipeline_mode = #tpu.pipeline_mode<synchronous>, transform_indices = @transform_1, window_bounds = array<i64: 16, 64>}, {pipeline_mode = #tpu.pipeline_mode<synchronous>, transform_indices = @transform_2, window_bounds = array<i64: 8, 64>}, {pipeline_mode = #tpu.pipeline_mode<synchronous>, transform_indices = @transform_3, window_bounds = array<i64: 2, 64, 128>}, {pipeline_mode = #tpu.pipeline_mode<synchronous>, transform_indices = @transform_4, window_bounds = array<i64: 2, 6, 64, 64>}, {pipeline_mode = #tpu.pipeline_mode<synchronous>, transform_indices = @transform_5, window_bounds = array<i64: 2, 64, 128>}, {pipeline_mode = #tpu.pipeline_mode<synchronous>, transform_indices = @transform_6, window_bounds = array<i64: 2, 128, 64>}, {pipeline_mode = #tpu.pipeline_mode<synchronous>, transform_indices = @transform_7, window_bounds = array<i64: 2, 16, 128>}, {pipeline_mode = #tpu.pipeline_mode<synchronous>, transform_indices = @transform_8, window_bounds = array<i64: 2, 64, 64>}, {pipeline_mode = #tpu.pipeline_mode<synchronous>, transform_indices = @transform_9, window_bounds = array<i64: 2, 64, 128>}, {pipeline_mode = #tpu.pipeline_mode<synchronous>, transform_indices = @transform_10, window_bounds = array<i64: 8, 128>}, {transform_indices = @transform_11, window_bounds = array<i64: 1, 8, 128>}]} {
    %c0 = arith.constant 0 : index
    %c0_0 = arith.constant 0 : index
    %c0_1 = arith.constant 0 : index
    %0 = vector.load %arg1[%c0, %c0_0, %c0_1] : memref<1x16x64xf32, #tpu.memory_space<vmem>>, vector<1x16x64xf32>
    %1 = vector.shape_cast %0 : vector<1x16x64xf32> to vector<16x64xf32>
    %c0_2 = arith.constant 0 : index
    %c0_3 = arith.constant 0 : index
    %2 = vector.load %arg2[%c0_2, %c0_3] : memref<16x64xf32, #tpu.memory_space<vmem>>, vector<16x64xf32>
    %c0_4 = arith.constant 0 : index
    %c0_5 = arith.constant 0 : index
    %3 = vector.load %arg3[%c0_4, %c0_5] : memref<8x64xf32, #tpu.memory_space<vmem>>, vector<8x64xf32>
    %cst = arith.constant 0.000000e+00 : f32
    %4 = vector.broadcast %cst : f32 to vector<8x64xf32>
    %5 = arith.addf %1, %2 : vector<16x64xf32>
    %c0_6 = arith.constant 0 : index
    %c0_7 = arith.constant 0 : index
    %c0_8 = arith.constant 0 : index
    %6 = vector.load %arg8[%c0_6, %c0_7, %c0_8] : memref<2x16x128xf32, #tpu.memory_space<vmem>>, vector<1x16x128xf32>
    %7 = vector.shape_cast %6 : vector<1x16x128xf32> to vector<16x128xf32>
    %c0_9 = arith.constant 0 : index
    %c0_10 = arith.constant 0 : index
    %c0_11 = arith.constant 0 : index
    %c0_12 = arith.constant 0 : index
    %8 = vector.load %arg5[%c0_9, %c0_10, %c0_11, %c0_12] : memref<2x6x64x64xf32, #tpu.memory_space<vmem>>, vector<1x6x64x64xf32>
    %9 = vector.shape_cast %8 : vector<1x6x64x64xf32> to vector<6x64x64xf32>
    %10 = arith.addf %4, %3 : vector<8x64xf32>
    %c0_13 = arith.constant 0 : index
    %c0_14 = arith.constant 0 : index
    %c0_15 = arith.constant 0 : index
    %11 = vector.load %arg4[%c0_13, %c0_14, %c0_15] : memref<2x64x128xf32, #tpu.memory_space<vmem>>, vector<1x64x128xf32>
    %12 = vector.shape_cast %11 : vector<1x64x128xf32> to vector<64x128xf32>
    %cst_16 = arith.constant dense<0.000000e+00> : vector<8x128xf32>
    %13 = tpu.matmul %10, %12, %cst_16 {dimension_numbers = #tpu.dot_dimension_numbers<[1], [0], [0], [1], [0, 0, 1, 1], [], []>} : vector<8x64xf32>, vector<64x128xf32>, vector<8x128xf32> -> vector<8x128xf32>
    %14 = vector.extract_strided_slice %13 {offsets = [0, 0], sizes = [8, 64], strides = [1, 1]} : vector<8x128xf32> to vector<8x64xf32>
    %15 = vector.extract_strided_slice %7 {offsets = [0, 0], sizes = [1, 64], strides = [1, 1]} : vector<16x128xf32> to vector<1x64xf32>
    %16 = vector.broadcast %15 : vector<1x64xf32> to vector<8x64xf32>
    %17 = arith.addf %14, %16 : vector<8x64xf32>
    %18 = vector.extract_strided_slice %13 {offsets = [0, 64], sizes = [8, 64], strides = [1, 1]} : vector<8x128xf32> to vector<8x64xf32>
    %19 = vector.extract_strided_slice %7 {offsets = [0, 64], sizes = [1, 64], strides = [1, 1]} : vector<16x128xf32> to vector<1x64xf32>
    %20 = vector.broadcast %19 : vector<1x64xf32> to vector<8x64xf32>
    %21 = arith.addf %18, %20 : vector<8x64xf32>
    %22 = vector.extract_strided_slice %9 {offsets = [0, 0, 0], sizes = [1, 64, 64], strides = [1, 1, 1]} : vector<6x64x64xf32> to vector<1x64x64xf32>
    %23 = vector.shape_cast %22 : vector<1x64x64xf32> to vector<64x64xf32>
    %cst_17 = arith.constant dense<0.000000e+00> : vector<8x64xf32>
    %24 = tpu.matmul %4, %23, %cst_17 {dimension_numbers = #tpu.dot_dimension_numbers<[1], [0], [0], [1], [0, 0, 1, 1], [], []>} : vector<8x64xf32>, vector<64x64xf32>, vector<8x64xf32> -> vector<8x64xf32>
    %25 = vector.extract_strided_slice %7 {offsets = [1, 0], sizes = [1, 64], strides = [1, 1]} : vector<16x128xf32> to vector<1x64xf32>
    %26 = vector.broadcast %25 : vector<1x64xf32> to vector<8x64xf32>
    %27 = arith.addf %24, %26 : vector<8x64xf32>
    %28 = vector.extract_strided_slice %9 {offsets = [1, 0, 0], sizes = [1, 64, 64], strides = [1, 1, 1]} : vector<6x64x64xf32> to vector<1x64x64xf32>
    %29 = vector.shape_cast %28 : vector<1x64x64xf32> to vector<64x64xf32>
    %30 = vector.extract_strided_slice %7 {offsets = [1, 64], sizes = [1, 64], strides = [1, 1]} : vector<16x128xf32> to vector<1x64xf32>
    %cst_18 = arith.constant 0.000000e+00 : f32
    %31 = vector.broadcast %cst_18 : f32 to vector<8x64xf32>
    %32 = vector.extract_strided_slice %17 {offsets = [0, 0], sizes = [8, 16], strides = [1, 1]} : vector<8x64xf32> to vector<8x16xf32>
    %cst_19 = arith.constant 2.500000e-01 : f32
    %33 = vector.broadcast %cst_19 : f32 to vector<8x16xf32>
    %34 = arith.mulf %32, %33 : vector<8x16xf32>
    %35 = vector.extract_strided_slice %21 {offsets = [0, 0], sizes = [8, 16], strides = [1, 1]} : vector<8x64xf32> to vector<8x16xf32>
    %cst_20 = arith.constant dense<0.000000e+00> : vector<8x8xf32>
    %36 = tpu.matmul %34, %35, %cst_20 {dimension_numbers = #tpu.dot_dimension_numbers<[1], [1], [0], [0], [0, 0, 1, 0], [], []>} : vector<8x16xf32>, vector<8x16xf32>, vector<8x8xf32> -> vector<8x8xf32>
    %cst_21 = arith.constant dense<0xFF800000> : vector<8xf32>
    %37 = vector.multi_reduction <maximumf>, %36, %cst_21 [1] : vector<8x8xf32> to vector<8xf32>
    %38 = vector.shape_cast %37 : vector<8xf32> to vector<8x1xf32>
    %39 = vector.broadcast %38 : vector<8x1xf32> to vector<8x8xf32>
    %40 = arith.subf %36, %39 : vector<8x8xf32>
    %41 = math.exp %40 : vector<8x8xf32>
    %cst_22 = arith.constant dense<0.000000e+00> : vector<8xf32>
    %42 = vector.multi_reduction <add>, %41, %cst_22 [1] : vector<8x8xf32> to vector<8xf32>
    %43 = vector.shape_cast %42 : vector<8xf32> to vector<8x1xf32>
    %44 = vector.broadcast %43 : vector<8x1xf32> to vector<8x8xf32>
    %45 = arith.divf %41, %44 : vector<8x8xf32>
    %46 = vector.extract_strided_slice %27 {offsets = [0, 0], sizes = [8, 16], strides = [1, 1]} : vector<8x64xf32> to vector<8x16xf32>
    %cst_23 = arith.constant dense<0.000000e+00> : vector<8x16xf32>
    %47 = tpu.matmul %45, %46, %cst_23 {dimension_numbers = #tpu.dot_dimension_numbers<[1], [0], [0], [1], [0, 0, 1, 1], [], []>} : vector<8x8xf32>, vector<8x16xf32>, vector<8x16xf32> -> vector<8x16xf32>
    %48 = vector.extract_strided_slice %29 {offsets = [0, 0], sizes = [16, 64], strides = [1, 1]} : vector<64x64xf32> to vector<16x64xf32>
    %cst_24 = arith.constant dense<0.000000e+00> : vector<8x64xf32>
    %49 = tpu.matmul %47, %48, %cst_24 {dimension_numbers = #tpu.dot_dimension_numbers<[1], [0], [0], [1], [0, 0, 1, 1], [], []>} : vector<8x16xf32>, vector<16x64xf32>, vector<8x64xf32> -> vector<8x64xf32>
    %50 = arith.addf %31, %49 : vector<8x64xf32>
    %51 = vector.extract_strided_slice %17 {offsets = [0, 16], sizes = [8, 16], strides = [1, 1]} : vector<8x64xf32> to vector<8x16xf32>
    %cst_25 = arith.constant 2.500000e-01 : f32
    %52 = vector.broadcast %cst_25 : f32 to vector<8x16xf32>
    %53 = arith.mulf %51, %52 : vector<8x16xf32>
    %54 = vector.extract_strided_slice %21 {offsets = [0, 16], sizes = [8, 16], strides = [1, 1]} : vector<8x64xf32> to vector<8x16xf32>
    %cst_26 = arith.constant dense<0.000000e+00> : vector<8x8xf32>
    %55 = tpu.matmul %53, %54, %cst_26 {dimension_numbers = #tpu.dot_dimension_numbers<[1], [1], [0], [0], [0, 0, 1, 0], [], []>} : vector<8x16xf32>, vector<8x16xf32>, vector<8x8xf32> -> vector<8x8xf32>
    %cst_27 = arith.constant dense<0xFF800000> : vector<8xf32>
    %56 = vector.multi_reduction <maximumf>, %55, %cst_27 [1] : vector<8x8xf32> to vector<8xf32>
    %57 = vector.shape_cast %56 : vector<8xf32> to vector<8x1xf32>
    %58 = vector.broadcast %57 : vector<8x1xf32> to vector<8x8xf32>
    %59 = arith.subf %55, %58 : vector<8x8xf32>
    %60 = math.exp %59 : vector<8x8xf32>
    %cst_28 = arith.constant dense<0.000000e+00> : vector<8xf32>
    %61 = vector.multi_reduction <add>, %60, %cst_28 [1] : vector<8x8xf32> to vector<8xf32>
    %62 = vector.shape_cast %61 : vector<8xf32> to vector<8x1xf32>
    %63 = vector.broadcast %62 : vector<8x1xf32> to vector<8x8xf32>
    %64 = arith.divf %60, %63 : vector<8x8xf32>
    %65 = vector.extract_strided_slice %27 {offsets = [0, 16], sizes = [8, 16], strides = [1, 1]} : vector<8x64xf32> to vector<8x16xf32>
    %cst_29 = arith.constant dense<0.000000e+00> : vector<8x16xf32>
    %66 = tpu.matmul %64, %65, %cst_29 {dimension_numbers = #tpu.dot_dimension_numbers<[1], [0], [0], [1], [0, 0, 1, 1], [], []>} : vector<8x8xf32>, vector<8x16xf32>, vector<8x16xf32> -> vector<8x16xf32>
    %67 = vector.extract_strided_slice %29 {offsets = [16, 0], sizes = [16, 64], strides = [1, 1]} : vector<64x64xf32> to vector<16x64xf32>
    %cst_30 = arith.constant dense<0.000000e+00> : vector<8x64xf32>
    %68 = tpu.matmul %66, %67, %cst_30 {dimension_numbers = #tpu.dot_dimension_numbers<[1], [0], [0], [1], [0, 0, 1, 1], [], []>} : vector<8x16xf32>, vector<16x64xf32>, vector<8x64xf32> -> vector<8x64xf32>
    %69 = arith.addf %50, %68 : vector<8x64xf32>
    %70 = vector.extract_strided_slice %17 {offsets = [0, 32], sizes = [8, 16], strides = [1, 1]} : vector<8x64xf32> to vector<8x16xf32>
    %cst_31 = arith.constant 2.500000e-01 : f32
    %71 = vector.broadcast %cst_31 : f32 to vector<8x16xf32>
    %72 = arith.mulf %70, %71 : vector<8x16xf32>
    %73 = vector.extract_strided_slice %21 {offsets = [0, 32], sizes = [8, 16], strides = [1, 1]} : vector<8x64xf32> to vector<8x16xf32>
    %cst_32 = arith.constant dense<0.000000e+00> : vector<8x8xf32>
    %74 = tpu.matmul %72, %73, %cst_32 {dimension_numbers = #tpu.dot_dimension_numbers<[1], [1], [0], [0], [0, 0, 1, 0], [], []>} : vector<8x16xf32>, vector<8x16xf32>, vector<8x8xf32> -> vector<8x8xf32>
    %cst_33 = arith.constant dense<0xFF800000> : vector<8xf32>
    %75 = vector.multi_reduction <maximumf>, %74, %cst_33 [1] : vector<8x8xf32> to vector<8xf32>
    %76 = vector.shape_cast %75 : vector<8xf32> to vector<8x1xf32>
    %77 = vector.broadcast %76 : vector<8x1xf32> to vector<8x8xf32>
    %78 = arith.subf %74, %77 : vector<8x8xf32>
    %79 = math.exp %78 : vector<8x8xf32>
    %cst_34 = arith.constant dense<0.000000e+00> : vector<8xf32>
    %80 = vector.multi_reduction <add>, %79, %cst_34 [1] : vector<8x8xf32> to vector<8xf32>
    %81 = vector.shape_cast %80 : vector<8xf32> to vector<8x1xf32>
    %82 = vector.broadcast %81 : vector<8x1xf32> to vector<8x8xf32>
    %83 = arith.divf %79, %82 : vector<8x8xf32>
    %84 = vector.extract_strided_slice %27 {offsets = [0, 32], sizes = [8, 16], strides = [1, 1]} : vector<8x64xf32> to vector<8x16xf32>
    %cst_35 = arith.constant dense<0.000000e+00> : vector<8x16xf32>
    %85 = tpu.matmul %83, %84, %cst_35 {dimension_numbers = #tpu.dot_dimension_numbers<[1], [0], [0], [1], [0, 0, 1, 1], [], []>} : vector<8x8xf32>, vector<8x16xf32>, vector<8x16xf32> -> vector<8x16xf32>
    %86 = vector.extract_strided_slice %29 {offsets = [32, 0], sizes = [16, 64], strides = [1, 1]} : vector<64x64xf32> to vector<16x64xf32>
    %cst_36 = arith.constant dense<0.000000e+00> : vector<8x64xf32>
    %87 = tpu.matmul %85, %86, %cst_36 {dimension_numbers = #tpu.dot_dimension_numbers<[1], [0], [0], [1], [0, 0, 1, 1], [], []>} : vector<8x16xf32>, vector<16x64xf32>, vector<8x64xf32> -> vector<8x64xf32>
    %88 = arith.addf %69, %87 : vector<8x64xf32>
    %89 = vector.extract_strided_slice %17 {offsets = [0, 48], sizes = [8, 16], strides = [1, 1]} : vector<8x64xf32> to vector<8x16xf32>
    %cst_37 = arith.constant 2.500000e-01 : f32
    %90 = vector.broadcast %cst_37 : f32 to vector<8x16xf32>
    %91 = arith.mulf %89, %90 : vector<8x16xf32>
    %92 = vector.extract_strided_slice %21 {offsets = [0, 48], sizes = [8, 16], strides = [1, 1]} : vector<8x64xf32> to vector<8x16xf32>
    %cst_38 = arith.constant dense<0.000000e+00> : vector<8x8xf32>
    %93 = tpu.matmul %91, %92, %cst_38 {dimension_numbers = #tpu.dot_dimension_numbers<[1], [1], [0], [0], [0, 0, 1, 0], [], []>} : vector<8x16xf32>, vector<8x16xf32>, vector<8x8xf32> -> vector<8x8xf32>
    %cst_39 = arith.constant dense<0xFF800000> : vector<8xf32>
    %94 = vector.multi_reduction <maximumf>, %93, %cst_39 [1] : vector<8x8xf32> to vector<8xf32>
    %95 = vector.shape_cast %94 : vector<8xf32> to vector<8x1xf32>
    %96 = vector.broadcast %95 : vector<8x1xf32> to vector<8x8xf32>
    %97 = arith.subf %93, %96 : vector<8x8xf32>
    %98 = math.exp %97 : vector<8x8xf32>
    %cst_40 = arith.constant dense<0.000000e+00> : vector<8xf32>
    %99 = vector.multi_reduction <add>, %98, %cst_40 [1] : vector<8x8xf32> to vector<8xf32>
    %100 = vector.shape_cast %99 : vector<8xf32> to vector<8x1xf32>
    %101 = vector.broadcast %100 : vector<8x1xf32> to vector<8x8xf32>
    %102 = arith.divf %98, %101 : vector<8x8xf32>
    %103 = vector.extract_strided_slice %27 {offsets = [0, 48], sizes = [8, 16], strides = [1, 1]} : vector<8x64xf32> to vector<8x16xf32>
    %cst_41 = arith.constant dense<0.000000e+00> : vector<8x16xf32>
    %104 = tpu.matmul %102, %103, %cst_41 {dimension_numbers = #tpu.dot_dimension_numbers<[1], [0], [0], [1], [0, 0, 1, 1], [], []>} : vector<8x8xf32>, vector<8x16xf32>, vector<8x16xf32> -> vector<8x16xf32>
    %105 = vector.extract_strided_slice %29 {offsets = [48, 0], sizes = [16, 64], strides = [1, 1]} : vector<64x64xf32> to vector<16x64xf32>
    %cst_42 = arith.constant dense<0.000000e+00> : vector<8x64xf32>
    %106 = tpu.matmul %104, %105, %cst_42 {dimension_numbers = #tpu.dot_dimension_numbers<[1], [0], [0], [1], [0, 0, 1, 1], [], []>} : vector<8x16xf32>, vector<16x64xf32>, vector<8x64xf32> -> vector<8x64xf32>
    %107 = arith.addf %88, %106 : vector<8x64xf32>
    %108 = vector.broadcast %30 : vector<1x64xf32> to vector<8x64xf32>
    %109 = arith.addf %107, %108 : vector<8x64xf32>
    %110 = arith.addf %4, %109 : vector<8x64xf32>
    %111 = vector.extract_strided_slice %7 {offsets = [4, 0], sizes = [1, 64], strides = [1, 1]} : vector<16x128xf32> to vector<1x64xf32>
    %112 = vector.extract_strided_slice %7 {offsets = [4, 64], sizes = [1, 64], strides = [1, 1]} : vector<16x128xf32> to vector<1x64xf32>
    %cst_43 = arith.constant dense<0.000000e+00> : vector<8xf32>
    %113 = vector.multi_reduction <add>, %110, %cst_43 [1] : vector<8x64xf32> to vector<8xf32>
    %114 = vector.shape_cast %113 : vector<8xf32> to vector<8x1xf32>
    %cst_44 = arith.constant 6.400000e+01 : f32
    %115 = vector.broadcast %cst_44 : f32 to vector<8x1xf32>
    %116 = arith.divf %114, %115 : vector<8x1xf32>
    %117 = vector.broadcast %116 : vector<8x1xf32> to vector<8x64xf32>
    %118 = arith.subf %110, %117 : vector<8x64xf32>
    %119 = arith.mulf %118, %118 : vector<8x64xf32>
    %cst_45 = arith.constant dense<0.000000e+00> : vector<8xf32>
    %120 = vector.multi_reduction <add>, %119, %cst_45 [1] : vector<8x64xf32> to vector<8xf32>
    %121 = vector.shape_cast %120 : vector<8xf32> to vector<8x1xf32>
    %cst_46 = arith.constant 6.400000e+01 : f32
    %122 = vector.broadcast %cst_46 : f32 to vector<8x1xf32>
    %123 = arith.divf %121, %122 : vector<8x1xf32>
    %cst_47 = arith.constant 9.99999974E-6 : f32
    %124 = vector.broadcast %cst_47 : f32 to vector<8x1xf32>
    %125 = arith.addf %123, %124 : vector<8x1xf32>
    %126 = math.rsqrt %125 : vector<8x1xf32>
    %127 = vector.broadcast %126 : vector<8x1xf32> to vector<8x64xf32>
    %128 = arith.mulf %118, %127 : vector<8x64xf32>
    %129 = vector.broadcast %111 : vector<1x64xf32> to vector<8x64xf32>
    %130 = arith.mulf %128, %129 : vector<8x64xf32>
    %131 = vector.broadcast %112 : vector<1x64xf32> to vector<8x64xf32>
    %132 = arith.addf %130, %131 : vector<8x64xf32>
    %133 = arith.addf %132, %3 : vector<8x64xf32>
    %134 = vector.extract_strided_slice %9 {offsets = [2, 0, 0], sizes = [1, 64, 64], strides = [1, 1, 1]} : vector<6x64x64xf32> to vector<1x64x64xf32>
    %135 = vector.shape_cast %134 : vector<1x64x64xf32> to vector<64x64xf32>
    %cst_48 = arith.constant dense<0.000000e+00> : vector<8x64xf32>
    %136 = tpu.matmul %133, %135, %cst_48 {dimension_numbers = #tpu.dot_dimension_numbers<[1], [0], [0], [1], [0, 0, 1, 1], [], []>} : vector<8x64xf32>, vector<64x64xf32>, vector<8x64xf32> -> vector<8x64xf32>
    %137 = vector.extract_strided_slice %7 {offsets = [2, 0], sizes = [1, 64], strides = [1, 1]} : vector<16x128xf32> to vector<1x64xf32>
    %138 = vector.broadcast %137 : vector<1x64xf32> to vector<8x64xf32>
    %139 = arith.addf %136, %138 : vector<8x64xf32>
    %140 = vector.extract_strided_slice %9 {offsets = [3, 0, 0], sizes = [1, 64, 64], strides = [1, 1, 1]} : vector<6x64x64xf32> to vector<1x64x64xf32>
    %141 = vector.shape_cast %140 : vector<1x64x64xf32> to vector<64x64xf32>
    %cst_49 = arith.constant dense<0.000000e+00> : vector<16x64xf32>
    %142 = tpu.matmul %5, %141, %cst_49 {dimension_numbers = #tpu.dot_dimension_numbers<[1], [0], [0], [1], [0, 0, 1, 1], [], []>} : vector<16x64xf32>, vector<64x64xf32>, vector<16x64xf32> -> vector<16x64xf32>
    %143 = vector.extract_strided_slice %7 {offsets = [2, 64], sizes = [1, 64], strides = [1, 1]} : vector<16x128xf32> to vector<1x64xf32>
    %144 = vector.broadcast %143 : vector<1x64xf32> to vector<16x64xf32>
    %145 = arith.addf %142, %144 : vector<16x64xf32>
    %146 = vector.extract_strided_slice %9 {offsets = [4, 0, 0], sizes = [1, 64, 64], strides = [1, 1, 1]} : vector<6x64x64xf32> to vector<1x64x64xf32>
    %147 = vector.shape_cast %146 : vector<1x64x64xf32> to vector<64x64xf32>
    %cst_50 = arith.constant dense<0.000000e+00> : vector<16x64xf32>
    %148 = tpu.matmul %1, %147, %cst_50 {dimension_numbers = #tpu.dot_dimension_numbers<[1], [0], [0], [1], [0, 0, 1, 1], [], []>} : vector<16x64xf32>, vector<64x64xf32>, vector<16x64xf32> -> vector<16x64xf32>
    %149 = vector.extract_strided_slice %7 {offsets = [3, 0], sizes = [1, 64], strides = [1, 1]} : vector<16x128xf32> to vector<1x64xf32>
    %150 = vector.broadcast %149 : vector<1x64xf32> to vector<16x64xf32>
    %151 = arith.addf %148, %150 : vector<16x64xf32>
    %152 = vector.extract_strided_slice %9 {offsets = [5, 0, 0], sizes = [1, 64, 64], strides = [1, 1, 1]} : vector<6x64x64xf32> to vector<1x64x64xf32>
    %153 = vector.shape_cast %152 : vector<1x64x64xf32> to vector<64x64xf32>
    %154 = vector.extract_strided_slice %7 {offsets = [3, 64], sizes = [1, 64], strides = [1, 1]} : vector<16x128xf32> to vector<1x64xf32>
    %cst_51 = arith.constant 0.000000e+00 : f32
    %155 = vector.broadcast %cst_51 : f32 to vector<8x64xf32>
    %156 = vector.extract_strided_slice %139 {offsets = [0, 0], sizes = [8, 16], strides = [1, 1]} : vector<8x64xf32> to vector<8x16xf32>
    %cst_52 = arith.constant 2.500000e-01 : f32
    %157 = vector.broadcast %cst_52 : f32 to vector<8x16xf32>
    %158 = arith.mulf %156, %157 : vector<8x16xf32>
    %159 = vector.extract_strided_slice %145 {offsets = [0, 0], sizes = [16, 16], strides = [1, 1]} : vector<16x64xf32> to vector<16x16xf32>
    %cst_53 = arith.constant dense<0.000000e+00> : vector<8x16xf32>
    %160 = tpu.matmul %158, %159, %cst_53 {dimension_numbers = #tpu.dot_dimension_numbers<[1], [1], [0], [0], [0, 0, 1, 0], [], []>} : vector<8x16xf32>, vector<16x16xf32>, vector<8x16xf32> -> vector<8x16xf32>
    %cst_54 = arith.constant dense<0xFF800000> : vector<8xf32>
    %161 = vector.multi_reduction <maximumf>, %160, %cst_54 [1] : vector<8x16xf32> to vector<8xf32>
    %162 = vector.shape_cast %161 : vector<8xf32> to vector<8x1xf32>
    %163 = vector.broadcast %162 : vector<8x1xf32> to vector<8x16xf32>
    %164 = arith.subf %160, %163 : vector<8x16xf32>
    %165 = math.exp %164 : vector<8x16xf32>
    %cst_55 = arith.constant dense<0.000000e+00> : vector<8xf32>
    %166 = vector.multi_reduction <add>, %165, %cst_55 [1] : vector<8x16xf32> to vector<8xf32>
    %167 = vector.shape_cast %166 : vector<8xf32> to vector<8x1xf32>
    %168 = vector.broadcast %167 : vector<8x1xf32> to vector<8x16xf32>
    %169 = arith.divf %165, %168 : vector<8x16xf32>
    %170 = vector.extract_strided_slice %151 {offsets = [0, 0], sizes = [16, 16], strides = [1, 1]} : vector<16x64xf32> to vector<16x16xf32>
    %cst_56 = arith.constant dense<0.000000e+00> : vector<8x16xf32>
    %171 = tpu.matmul %169, %170, %cst_56 {dimension_numbers = #tpu.dot_dimension_numbers<[1], [0], [0], [1], [0, 0, 1, 1], [], []>} : vector<8x16xf32>, vector<16x16xf32>, vector<8x16xf32> -> vector<8x16xf32>
    %172 = vector.extract_strided_slice %153 {offsets = [0, 0], sizes = [16, 64], strides = [1, 1]} : vector<64x64xf32> to vector<16x64xf32>
    %cst_57 = arith.constant dense<0.000000e+00> : vector<8x64xf32>
    %173 = tpu.matmul %171, %172, %cst_57 {dimension_numbers = #tpu.dot_dimension_numbers<[1], [0], [0], [1], [0, 0, 1, 1], [], []>} : vector<8x16xf32>, vector<16x64xf32>, vector<8x64xf32> -> vector<8x64xf32>
    %174 = arith.addf %155, %173 : vector<8x64xf32>
    %175 = vector.extract_strided_slice %139 {offsets = [0, 16], sizes = [8, 16], strides = [1, 1]} : vector<8x64xf32> to vector<8x16xf32>
    %cst_58 = arith.constant 2.500000e-01 : f32
    %176 = vector.broadcast %cst_58 : f32 to vector<8x16xf32>
    %177 = arith.mulf %175, %176 : vector<8x16xf32>
    %178 = vector.extract_strided_slice %145 {offsets = [0, 16], sizes = [16, 16], strides = [1, 1]} : vector<16x64xf32> to vector<16x16xf32>
    %cst_59 = arith.constant dense<0.000000e+00> : vector<8x16xf32>
    %179 = tpu.matmul %177, %178, %cst_59 {dimension_numbers = #tpu.dot_dimension_numbers<[1], [1], [0], [0], [0, 0, 1, 0], [], []>} : vector<8x16xf32>, vector<16x16xf32>, vector<8x16xf32> -> vector<8x16xf32>
    %cst_60 = arith.constant dense<0xFF800000> : vector<8xf32>
    %180 = vector.multi_reduction <maximumf>, %179, %cst_60 [1] : vector<8x16xf32> to vector<8xf32>
    %181 = vector.shape_cast %180 : vector<8xf32> to vector<8x1xf32>
    %182 = vector.broadcast %181 : vector<8x1xf32> to vector<8x16xf32>
    %183 = arith.subf %179, %182 : vector<8x16xf32>
    %184 = math.exp %183 : vector<8x16xf32>
    %cst_61 = arith.constant dense<0.000000e+00> : vector<8xf32>
    %185 = vector.multi_reduction <add>, %184, %cst_61 [1] : vector<8x16xf32> to vector<8xf32>
    %186 = vector.shape_cast %185 : vector<8xf32> to vector<8x1xf32>
    %187 = vector.broadcast %186 : vector<8x1xf32> to vector<8x16xf32>
    %188 = arith.divf %184, %187 : vector<8x16xf32>
    %189 = vector.extract_strided_slice %151 {offsets = [0, 16], sizes = [16, 16], strides = [1, 1]} : vector<16x64xf32> to vector<16x16xf32>
    %cst_62 = arith.constant dense<0.000000e+00> : vector<8x16xf32>
    %190 = tpu.matmul %188, %189, %cst_62 {dimension_numbers = #tpu.dot_dimension_numbers<[1], [0], [0], [1], [0, 0, 1, 1], [], []>} : vector<8x16xf32>, vector<16x16xf32>, vector<8x16xf32> -> vector<8x16xf32>
    %191 = vector.extract_strided_slice %153 {offsets = [16, 0], sizes = [16, 64], strides = [1, 1]} : vector<64x64xf32> to vector<16x64xf32>
    %cst_63 = arith.constant dense<0.000000e+00> : vector<8x64xf32>
    %192 = tpu.matmul %190, %191, %cst_63 {dimension_numbers = #tpu.dot_dimension_numbers<[1], [0], [0], [1], [0, 0, 1, 1], [], []>} : vector<8x16xf32>, vector<16x64xf32>, vector<8x64xf32> -> vector<8x64xf32>
    %193 = arith.addf %174, %192 : vector<8x64xf32>
    %194 = vector.extract_strided_slice %139 {offsets = [0, 32], sizes = [8, 16], strides = [1, 1]} : vector<8x64xf32> to vector<8x16xf32>
    %cst_64 = arith.constant 2.500000e-01 : f32
    %195 = vector.broadcast %cst_64 : f32 to vector<8x16xf32>
    %196 = arith.mulf %194, %195 : vector<8x16xf32>
    %197 = vector.extract_strided_slice %145 {offsets = [0, 32], sizes = [16, 16], strides = [1, 1]} : vector<16x64xf32> to vector<16x16xf32>
    %cst_65 = arith.constant dense<0.000000e+00> : vector<8x16xf32>
    %198 = tpu.matmul %196, %197, %cst_65 {dimension_numbers = #tpu.dot_dimension_numbers<[1], [1], [0], [0], [0, 0, 1, 0], [], []>} : vector<8x16xf32>, vector<16x16xf32>, vector<8x16xf32> -> vector<8x16xf32>
    %cst_66 = arith.constant dense<0xFF800000> : vector<8xf32>
    %199 = vector.multi_reduction <maximumf>, %198, %cst_66 [1] : vector<8x16xf32> to vector<8xf32>
    %200 = vector.shape_cast %199 : vector<8xf32> to vector<8x1xf32>
    %201 = vector.broadcast %200 : vector<8x1xf32> to vector<8x16xf32>
    %202 = arith.subf %198, %201 : vector<8x16xf32>
    %203 = math.exp %202 : vector<8x16xf32>
    %cst_67 = arith.constant dense<0.000000e+00> : vector<8xf32>
    %204 = vector.multi_reduction <add>, %203, %cst_67 [1] : vector<8x16xf32> to vector<8xf32>
    %205 = vector.shape_cast %204 : vector<8xf32> to vector<8x1xf32>
    %206 = vector.broadcast %205 : vector<8x1xf32> to vector<8x16xf32>
    %207 = arith.divf %203, %206 : vector<8x16xf32>
    %208 = vector.extract_strided_slice %151 {offsets = [0, 32], sizes = [16, 16], strides = [1, 1]} : vector<16x64xf32> to vector<16x16xf32>
    %cst_68 = arith.constant dense<0.000000e+00> : vector<8x16xf32>
    %209 = tpu.matmul %207, %208, %cst_68 {dimension_numbers = #tpu.dot_dimension_numbers<[1], [0], [0], [1], [0, 0, 1, 1], [], []>} : vector<8x16xf32>, vector<16x16xf32>, vector<8x16xf32> -> vector<8x16xf32>
    %210 = vector.extract_strided_slice %153 {offsets = [32, 0], sizes = [16, 64], strides = [1, 1]} : vector<64x64xf32> to vector<16x64xf32>
    %cst_69 = arith.constant dense<0.000000e+00> : vector<8x64xf32>
    %211 = tpu.matmul %209, %210, %cst_69 {dimension_numbers = #tpu.dot_dimension_numbers<[1], [0], [0], [1], [0, 0, 1, 1], [], []>} : vector<8x16xf32>, vector<16x64xf32>, vector<8x64xf32> -> vector<8x64xf32>
    %212 = arith.addf %193, %211 : vector<8x64xf32>
    %213 = vector.extract_strided_slice %139 {offsets = [0, 48], sizes = [8, 16], strides = [1, 1]} : vector<8x64xf32> to vector<8x16xf32>
    %cst_70 = arith.constant 2.500000e-01 : f32
    %214 = vector.broadcast %cst_70 : f32 to vector<8x16xf32>
    %215 = arith.mulf %213, %214 : vector<8x16xf32>
    %216 = vector.extract_strided_slice %145 {offsets = [0, 48], sizes = [16, 16], strides = [1, 1]} : vector<16x64xf32> to vector<16x16xf32>
    %cst_71 = arith.constant dense<0.000000e+00> : vector<8x16xf32>
    %217 = tpu.matmul %215, %216, %cst_71 {dimension_numbers = #tpu.dot_dimension_numbers<[1], [1], [0], [0], [0, 0, 1, 0], [], []>} : vector<8x16xf32>, vector<16x16xf32>, vector<8x16xf32> -> vector<8x16xf32>
    %cst_72 = arith.constant dense<0xFF800000> : vector<8xf32>
    %218 = vector.multi_reduction <maximumf>, %217, %cst_72 [1] : vector<8x16xf32> to vector<8xf32>
    %219 = vector.shape_cast %218 : vector<8xf32> to vector<8x1xf32>
    %220 = vector.broadcast %219 : vector<8x1xf32> to vector<8x16xf32>
    %221 = arith.subf %217, %220 : vector<8x16xf32>
    %222 = math.exp %221 : vector<8x16xf32>
    %cst_73 = arith.constant dense<0.000000e+00> : vector<8xf32>
    %223 = vector.multi_reduction <add>, %222, %cst_73 [1] : vector<8x16xf32> to vector<8xf32>
    %224 = vector.shape_cast %223 : vector<8xf32> to vector<8x1xf32>
    %225 = vector.broadcast %224 : vector<8x1xf32> to vector<8x16xf32>
    %226 = arith.divf %222, %225 : vector<8x16xf32>
    %227 = vector.extract_strided_slice %151 {offsets = [0, 48], sizes = [16, 16], strides = [1, 1]} : vector<16x64xf32> to vector<16x16xf32>
    %cst_74 = arith.constant dense<0.000000e+00> : vector<8x16xf32>
    %228 = tpu.matmul %226, %227, %cst_74 {dimension_numbers = #tpu.dot_dimension_numbers<[1], [0], [0], [1], [0, 0, 1, 1], [], []>} : vector<8x16xf32>, vector<16x16xf32>, vector<8x16xf32> -> vector<8x16xf32>
    %229 = vector.extract_strided_slice %153 {offsets = [48, 0], sizes = [16, 64], strides = [1, 1]} : vector<64x64xf32> to vector<16x64xf32>
    %cst_75 = arith.constant dense<0.000000e+00> : vector<8x64xf32>
    %230 = tpu.matmul %228, %229, %cst_75 {dimension_numbers = #tpu.dot_dimension_numbers<[1], [0], [0], [1], [0, 0, 1, 1], [], []>} : vector<8x16xf32>, vector<16x64xf32>, vector<8x64xf32> -> vector<8x64xf32>
    %231 = arith.addf %212, %230 : vector<8x64xf32>
    %232 = vector.broadcast %154 : vector<1x64xf32> to vector<8x64xf32>
    %233 = arith.addf %231, %232 : vector<8x64xf32>
    %234 = arith.addf %132, %233 : vector<8x64xf32>
    %235 = vector.extract_strided_slice %7 {offsets = [5, 0], sizes = [1, 64], strides = [1, 1]} : vector<16x128xf32> to vector<1x64xf32>
    %236 = vector.extract_strided_slice %7 {offsets = [5, 64], sizes = [1, 64], strides = [1, 1]} : vector<16x128xf32> to vector<1x64xf32>
    %cst_76 = arith.constant dense<0.000000e+00> : vector<8xf32>
    %237 = vector.multi_reduction <add>, %234, %cst_76 [1] : vector<8x64xf32> to vector<8xf32>
    %238 = vector.shape_cast %237 : vector<8xf32> to vector<8x1xf32>
    %cst_77 = arith.constant 6.400000e+01 : f32
    %239 = vector.broadcast %cst_77 : f32 to vector<8x1xf32>
    %240 = arith.divf %238, %239 : vector<8x1xf32>
    %241 = vector.broadcast %240 : vector<8x1xf32> to vector<8x64xf32>
    %242 = arith.subf %234, %241 : vector<8x64xf32>
    %243 = arith.mulf %242, %242 : vector<8x64xf32>
    %cst_78 = arith.constant dense<0.000000e+00> : vector<8xf32>
    %244 = vector.multi_reduction <add>, %243, %cst_78 [1] : vector<8x64xf32> to vector<8xf32>
    %245 = vector.shape_cast %244 : vector<8xf32> to vector<8x1xf32>
    %cst_79 = arith.constant 6.400000e+01 : f32
    %246 = vector.broadcast %cst_79 : f32 to vector<8x1xf32>
    %247 = arith.divf %245, %246 : vector<8x1xf32>
    %cst_80 = arith.constant 9.99999974E-6 : f32
    %248 = vector.broadcast %cst_80 : f32 to vector<8x1xf32>
    %249 = arith.addf %247, %248 : vector<8x1xf32>
    %250 = math.rsqrt %249 : vector<8x1xf32>
    %251 = vector.broadcast %250 : vector<8x1xf32> to vector<8x64xf32>
    %252 = arith.mulf %242, %251 : vector<8x64xf32>
    %253 = vector.broadcast %235 : vector<1x64xf32> to vector<8x64xf32>
    %254 = arith.mulf %252, %253 : vector<8x64xf32>
    %255 = vector.broadcast %236 : vector<1x64xf32> to vector<8x64xf32>
    %256 = arith.addf %254, %255 : vector<8x64xf32>
    %c0_81 = arith.constant 0 : index
    %c0_82 = arith.constant 0 : index
    %c0_83 = arith.constant 0 : index
    %257 = vector.load %arg6[%c0_81, %c0_82, %c0_83] : memref<2x64x128xf32, #tpu.memory_space<vmem>>, vector<1x64x128xf32>
    %258 = vector.shape_cast %257 : vector<1x64x128xf32> to vector<64x128xf32>
    %cst_84 = arith.constant dense<0.000000e+00> : vector<8x128xf32>
    %259 = tpu.matmul %256, %258, %cst_84 {dimension_numbers = #tpu.dot_dimension_numbers<[1], [0], [0], [1], [0, 0, 1, 1], [], []>} : vector<8x64xf32>, vector<64x128xf32>, vector<8x128xf32> -> vector<8x128xf32>
    %260 = vector.extract_strided_slice %7 {offsets = [7, 0], sizes = [1, 128], strides = [1, 1]} : vector<16x128xf32> to vector<1x128xf32>
    %261 = vector.broadcast %260 : vector<1x128xf32> to vector<8x128xf32>
    %262 = arith.addf %259, %261 : vector<8x128xf32>
    %cst_85 = arith.constant 0.000000e+00 : f32
    %263 = vector.broadcast %cst_85 : f32 to vector<8x128xf32>
    %264 = arith.maximumf %262, %263 : vector<8x128xf32>
    %c0_86 = arith.constant 0 : index
    %c0_87 = arith.constant 0 : index
    %c0_88 = arith.constant 0 : index
    %265 = vector.load %arg7[%c0_86, %c0_87, %c0_88] : memref<2x128x64xf32, #tpu.memory_space<vmem>>, vector<1x128x64xf32>
    %266 = vector.shape_cast %265 : vector<1x128x64xf32> to vector<128x64xf32>
    %cst_89 = arith.constant dense<0.000000e+00> : vector<8x64xf32>
    %267 = tpu.matmul %264, %266, %cst_89 {dimension_numbers = #tpu.dot_dimension_numbers<[1], [0], [0], [1], [0, 0, 1, 1], [], []>} : vector<8x128xf32>, vector<128x64xf32>, vector<8x64xf32> -> vector<8x64xf32>
    %268 = vector.extract_strided_slice %7 {offsets = [8, 0], sizes = [1, 64], strides = [1, 1]} : vector<16x128xf32> to vector<1x64xf32>
    %269 = vector.broadcast %268 : vector<1x64xf32> to vector<8x64xf32>
    %270 = arith.addf %267, %269 : vector<8x64xf32>
    %271 = arith.addf %256, %270 : vector<8x64xf32>
    %272 = vector.extract_strided_slice %7 {offsets = [6, 0], sizes = [1, 64], strides = [1, 1]} : vector<16x128xf32> to vector<1x64xf32>
    %273 = vector.extract_strided_slice %7 {offsets = [6, 64], sizes = [1, 64], strides = [1, 1]} : vector<16x128xf32> to vector<1x64xf32>
    %cst_90 = arith.constant dense<0.000000e+00> : vector<8xf32>
    %274 = vector.multi_reduction <add>, %271, %cst_90 [1] : vector<8x64xf32> to vector<8xf32>
    %275 = vector.shape_cast %274 : vector<8xf32> to vector<8x1xf32>
    %cst_91 = arith.constant 6.400000e+01 : f32
    %276 = vector.broadcast %cst_91 : f32 to vector<8x1xf32>
    %277 = arith.divf %275, %276 : vector<8x1xf32>
    %278 = vector.broadcast %277 : vector<8x1xf32> to vector<8x64xf32>
    %279 = arith.subf %271, %278 : vector<8x64xf32>
    %280 = arith.mulf %279, %279 : vector<8x64xf32>
    %cst_92 = arith.constant dense<0.000000e+00> : vector<8xf32>
    %281 = vector.multi_reduction <add>, %280, %cst_92 [1] : vector<8x64xf32> to vector<8xf32>
    %282 = vector.shape_cast %281 : vector<8xf32> to vector<8x1xf32>
    %cst_93 = arith.constant 6.400000e+01 : f32
    %283 = vector.broadcast %cst_93 : f32 to vector<8x1xf32>
    %284 = arith.divf %282, %283 : vector<8x1xf32>
    %cst_94 = arith.constant 9.99999974E-6 : f32
    %285 = vector.broadcast %cst_94 : f32 to vector<8x1xf32>
    %286 = arith.addf %284, %285 : vector<8x1xf32>
    %287 = math.rsqrt %286 : vector<8x1xf32>
    %288 = vector.broadcast %287 : vector<8x1xf32> to vector<8x64xf32>
    %289 = arith.mulf %279, %288 : vector<8x64xf32>
    %290 = vector.broadcast %272 : vector<1x64xf32> to vector<8x64xf32>
    %291 = arith.mulf %289, %290 : vector<8x64xf32>
    %292 = vector.broadcast %273 : vector<1x64xf32> to vector<8x64xf32>
    %293 = arith.addf %291, %292 : vector<8x64xf32>
    %c1 = arith.constant 1 : index
    %c0_95 = arith.constant 0 : index
    %c0_96 = arith.constant 0 : index
    %294 = vector.load %arg8[%c1, %c0_95, %c0_96] : memref<2x16x128xf32, #tpu.memory_space<vmem>>, vector<1x16x128xf32>
    %295 = vector.shape_cast %294 : vector<1x16x128xf32> to vector<16x128xf32>
    %c1_97 = arith.constant 1 : index
    %c0_98 = arith.constant 0 : index
    %c0_99 = arith.constant 0 : index
    %c0_100 = arith.constant 0 : index
    %296 = vector.load %arg5[%c1_97, %c0_98, %c0_99, %c0_100] : memref<2x6x64x64xf32, #tpu.memory_space<vmem>>, vector<1x6x64x64xf32>
    %297 = vector.shape_cast %296 : vector<1x6x64x64xf32> to vector<6x64x64xf32>
    %298 = arith.addf %293, %3 : vector<8x64xf32>
    %c1_101 = arith.constant 1 : index
    %c0_102 = arith.constant 0 : index
    %c0_103 = arith.constant 0 : index
    %299 = vector.load %arg4[%c1_101, %c0_102, %c0_103] : memref<2x64x128xf32, #tpu.memory_space<vmem>>, vector<1x64x128xf32>
    %300 = vector.shape_cast %299 : vector<1x64x128xf32> to vector<64x128xf32>
    %cst_104 = arith.constant dense<0.000000e+00> : vector<8x128xf32>
    %301 = tpu.matmul %298, %300, %cst_104 {dimension_numbers = #tpu.dot_dimension_numbers<[1], [0], [0], [1], [0, 0, 1, 1], [], []>} : vector<8x64xf32>, vector<64x128xf32>, vector<8x128xf32> -> vector<8x128xf32>
    %302 = vector.extract_strided_slice %301 {offsets = [0, 0], sizes = [8, 64], strides = [1, 1]} : vector<8x128xf32> to vector<8x64xf32>
    %303 = vector.extract_strided_slice %295 {offsets = [0, 0], sizes = [1, 64], strides = [1, 1]} : vector<16x128xf32> to vector<1x64xf32>
    %304 = vector.broadcast %303 : vector<1x64xf32> to vector<8x64xf32>
    %305 = arith.addf %302, %304 : vector<8x64xf32>
    %306 = vector.extract_strided_slice %301 {offsets = [0, 64], sizes = [8, 64], strides = [1, 1]} : vector<8x128xf32> to vector<8x64xf32>
    %307 = vector.extract_strided_slice %295 {offsets = [0, 64], sizes = [1, 64], strides = [1, 1]} : vector<16x128xf32> to vector<1x64xf32>
    %308 = vector.broadcast %307 : vector<1x64xf32> to vector<8x64xf32>
    %309 = arith.addf %306, %308 : vector<8x64xf32>
    %310 = vector.extract_strided_slice %297 {offsets = [0, 0, 0], sizes = [1, 64, 64], strides = [1, 1, 1]} : vector<6x64x64xf32> to vector<1x64x64xf32>
    %311 = vector.shape_cast %310 : vector<1x64x64xf32> to vector<64x64xf32>
    %cst_105 = arith.constant dense<0.000000e+00> : vector<8x64xf32>
    %312 = tpu.matmul %293, %311, %cst_105 {dimension_numbers = #tpu.dot_dimension_numbers<[1], [0], [0], [1], [0, 0, 1, 1], [], []>} : vector<8x64xf32>, vector<64x64xf32>, vector<8x64xf32> -> vector<8x64xf32>
    %313 = vector.extract_strided_slice %295 {offsets = [1, 0], sizes = [1, 64], strides = [1, 1]} : vector<16x128xf32> to vector<1x64xf32>
    %314 = vector.broadcast %313 : vector<1x64xf32> to vector<8x64xf32>
    %315 = arith.addf %312, %314 : vector<8x64xf32>
    %316 = vector.extract_strided_slice %297 {offsets = [1, 0, 0], sizes = [1, 64, 64], strides = [1, 1, 1]} : vector<6x64x64xf32> to vector<1x64x64xf32>
    %317 = vector.shape_cast %316 : vector<1x64x64xf32> to vector<64x64xf32>
    %318 = vector.extract_strided_slice %295 {offsets = [1, 64], sizes = [1, 64], strides = [1, 1]} : vector<16x128xf32> to vector<1x64xf32>
    %cst_106 = arith.constant 0.000000e+00 : f32
    %319 = vector.broadcast %cst_106 : f32 to vector<8x64xf32>
    %320 = vector.extract_strided_slice %305 {offsets = [0, 0], sizes = [8, 16], strides = [1, 1]} : vector<8x64xf32> to vector<8x16xf32>
    %cst_107 = arith.constant 2.500000e-01 : f32
    %321 = vector.broadcast %cst_107 : f32 to vector<8x16xf32>
    %322 = arith.mulf %320, %321 : vector<8x16xf32>
    %323 = vector.extract_strided_slice %309 {offsets = [0, 0], sizes = [8, 16], strides = [1, 1]} : vector<8x64xf32> to vector<8x16xf32>
    %cst_108 = arith.constant dense<0.000000e+00> : vector<8x8xf32>
    %324 = tpu.matmul %322, %323, %cst_108 {dimension_numbers = #tpu.dot_dimension_numbers<[1], [1], [0], [0], [0, 0, 1, 0], [], []>} : vector<8x16xf32>, vector<8x16xf32>, vector<8x8xf32> -> vector<8x8xf32>
    %cst_109 = arith.constant dense<0xFF800000> : vector<8xf32>
    %325 = vector.multi_reduction <maximumf>, %324, %cst_109 [1] : vector<8x8xf32> to vector<8xf32>
    %326 = vector.shape_cast %325 : vector<8xf32> to vector<8x1xf32>
    %327 = vector.broadcast %326 : vector<8x1xf32> to vector<8x8xf32>
    %328 = arith.subf %324, %327 : vector<8x8xf32>
    %329 = math.exp %328 : vector<8x8xf32>
    %cst_110 = arith.constant dense<0.000000e+00> : vector<8xf32>
    %330 = vector.multi_reduction <add>, %329, %cst_110 [1] : vector<8x8xf32> to vector<8xf32>
    %331 = vector.shape_cast %330 : vector<8xf32> to vector<8x1xf32>
    %332 = vector.broadcast %331 : vector<8x1xf32> to vector<8x8xf32>
    %333 = arith.divf %329, %332 : vector<8x8xf32>
    %334 = vector.extract_strided_slice %315 {offsets = [0, 0], sizes = [8, 16], strides = [1, 1]} : vector<8x64xf32> to vector<8x16xf32>
    %cst_111 = arith.constant dense<0.000000e+00> : vector<8x16xf32>
    %335 = tpu.matmul %333, %334, %cst_111 {dimension_numbers = #tpu.dot_dimension_numbers<[1], [0], [0], [1], [0, 0, 1, 1], [], []>} : vector<8x8xf32>, vector<8x16xf32>, vector<8x16xf32> -> vector<8x16xf32>
    %336 = vector.extract_strided_slice %317 {offsets = [0, 0], sizes = [16, 64], strides = [1, 1]} : vector<64x64xf32> to vector<16x64xf32>
    %cst_112 = arith.constant dense<0.000000e+00> : vector<8x64xf32>
    %337 = tpu.matmul %335, %336, %cst_112 {dimension_numbers = #tpu.dot_dimension_numbers<[1], [0], [0], [1], [0, 0, 1, 1], [], []>} : vector<8x16xf32>, vector<16x64xf32>, vector<8x64xf32> -> vector<8x64xf32>
    %338 = arith.addf %319, %337 : vector<8x64xf32>
    %339 = vector.extract_strided_slice %305 {offsets = [0, 16], sizes = [8, 16], strides = [1, 1]} : vector<8x64xf32> to vector<8x16xf32>
    %cst_113 = arith.constant 2.500000e-01 : f32
    %340 = vector.broadcast %cst_113 : f32 to vector<8x16xf32>
    %341 = arith.mulf %339, %340 : vector<8x16xf32>
    %342 = vector.extract_strided_slice %309 {offsets = [0, 16], sizes = [8, 16], strides = [1, 1]} : vector<8x64xf32> to vector<8x16xf32>
    %cst_114 = arith.constant dense<0.000000e+00> : vector<8x8xf32>
    %343 = tpu.matmul %341, %342, %cst_114 {dimension_numbers = #tpu.dot_dimension_numbers<[1], [1], [0], [0], [0, 0, 1, 0], [], []>} : vector<8x16xf32>, vector<8x16xf32>, vector<8x8xf32> -> vector<8x8xf32>
    %cst_115 = arith.constant dense<0xFF800000> : vector<8xf32>
    %344 = vector.multi_reduction <maximumf>, %343, %cst_115 [1] : vector<8x8xf32> to vector<8xf32>
    %345 = vector.shape_cast %344 : vector<8xf32> to vector<8x1xf32>
    %346 = vector.broadcast %345 : vector<8x1xf32> to vector<8x8xf32>
    %347 = arith.subf %343, %346 : vector<8x8xf32>
    %348 = math.exp %347 : vector<8x8xf32>
    %cst_116 = arith.constant dense<0.000000e+00> : vector<8xf32>
    %349 = vector.multi_reduction <add>, %348, %cst_116 [1] : vector<8x8xf32> to vector<8xf32>
    %350 = vector.shape_cast %349 : vector<8xf32> to vector<8x1xf32>
    %351 = vector.broadcast %350 : vector<8x1xf32> to vector<8x8xf32>
    %352 = arith.divf %348, %351 : vector<8x8xf32>
    %353 = vector.extract_strided_slice %315 {offsets = [0, 16], sizes = [8, 16], strides = [1, 1]} : vector<8x64xf32> to vector<8x16xf32>
    %cst_117 = arith.constant dense<0.000000e+00> : vector<8x16xf32>
    %354 = tpu.matmul %352, %353, %cst_117 {dimension_numbers = #tpu.dot_dimension_numbers<[1], [0], [0], [1], [0, 0, 1, 1], [], []>} : vector<8x8xf32>, vector<8x16xf32>, vector<8x16xf32> -> vector<8x16xf32>
    %355 = vector.extract_strided_slice %317 {offsets = [16, 0], sizes = [16, 64], strides = [1, 1]} : vector<64x64xf32> to vector<16x64xf32>
    %cst_118 = arith.constant dense<0.000000e+00> : vector<8x64xf32>
    %356 = tpu.matmul %354, %355, %cst_118 {dimension_numbers = #tpu.dot_dimension_numbers<[1], [0], [0], [1], [0, 0, 1, 1], [], []>} : vector<8x16xf32>, vector<16x64xf32>, vector<8x64xf32> -> vector<8x64xf32>
    %357 = arith.addf %338, %356 : vector<8x64xf32>
    %358 = vector.extract_strided_slice %305 {offsets = [0, 32], sizes = [8, 16], strides = [1, 1]} : vector<8x64xf32> to vector<8x16xf32>
    %cst_119 = arith.constant 2.500000e-01 : f32
    %359 = vector.broadcast %cst_119 : f32 to vector<8x16xf32>
    %360 = arith.mulf %358, %359 : vector<8x16xf32>
    %361 = vector.extract_strided_slice %309 {offsets = [0, 32], sizes = [8, 16], strides = [1, 1]} : vector<8x64xf32> to vector<8x16xf32>
    %cst_120 = arith.constant dense<0.000000e+00> : vector<8x8xf32>
    %362 = tpu.matmul %360, %361, %cst_120 {dimension_numbers = #tpu.dot_dimension_numbers<[1], [1], [0], [0], [0, 0, 1, 0], [], []>} : vector<8x16xf32>, vector<8x16xf32>, vector<8x8xf32> -> vector<8x8xf32>
    %cst_121 = arith.constant dense<0xFF800000> : vector<8xf32>
    %363 = vector.multi_reduction <maximumf>, %362, %cst_121 [1] : vector<8x8xf32> to vector<8xf32>
    %364 = vector.shape_cast %363 : vector<8xf32> to vector<8x1xf32>
    %365 = vector.broadcast %364 : vector<8x1xf32> to vector<8x8xf32>
    %366 = arith.subf %362, %365 : vector<8x8xf32>
    %367 = math.exp %366 : vector<8x8xf32>
    %cst_122 = arith.constant dense<0.000000e+00> : vector<8xf32>
    %368 = vector.multi_reduction <add>, %367, %cst_122 [1] : vector<8x8xf32> to vector<8xf32>
    %369 = vector.shape_cast %368 : vector<8xf32> to vector<8x1xf32>
    %370 = vector.broadcast %369 : vector<8x1xf32> to vector<8x8xf32>
    %371 = arith.divf %367, %370 : vector<8x8xf32>
    %372 = vector.extract_strided_slice %315 {offsets = [0, 32], sizes = [8, 16], strides = [1, 1]} : vector<8x64xf32> to vector<8x16xf32>
    %cst_123 = arith.constant dense<0.000000e+00> : vector<8x16xf32>
    %373 = tpu.matmul %371, %372, %cst_123 {dimension_numbers = #tpu.dot_dimension_numbers<[1], [0], [0], [1], [0, 0, 1, 1], [], []>} : vector<8x8xf32>, vector<8x16xf32>, vector<8x16xf32> -> vector<8x16xf32>
    %374 = vector.extract_strided_slice %317 {offsets = [32, 0], sizes = [16, 64], strides = [1, 1]} : vector<64x64xf32> to vector<16x64xf32>
    %cst_124 = arith.constant dense<0.000000e+00> : vector<8x64xf32>
    %375 = tpu.matmul %373, %374, %cst_124 {dimension_numbers = #tpu.dot_dimension_numbers<[1], [0], [0], [1], [0, 0, 1, 1], [], []>} : vector<8x16xf32>, vector<16x64xf32>, vector<8x64xf32> -> vector<8x64xf32>
    %376 = arith.addf %357, %375 : vector<8x64xf32>
    %377 = vector.extract_strided_slice %305 {offsets = [0, 48], sizes = [8, 16], strides = [1, 1]} : vector<8x64xf32> to vector<8x16xf32>
    %cst_125 = arith.constant 2.500000e-01 : f32
    %378 = vector.broadcast %cst_125 : f32 to vector<8x16xf32>
    %379 = arith.mulf %377, %378 : vector<8x16xf32>
    %380 = vector.extract_strided_slice %309 {offsets = [0, 48], sizes = [8, 16], strides = [1, 1]} : vector<8x64xf32> to vector<8x16xf32>
    %cst_126 = arith.constant dense<0.000000e+00> : vector<8x8xf32>
    %381 = tpu.matmul %379, %380, %cst_126 {dimension_numbers = #tpu.dot_dimension_numbers<[1], [1], [0], [0], [0, 0, 1, 0], [], []>} : vector<8x16xf32>, vector<8x16xf32>, vector<8x8xf32> -> vector<8x8xf32>
    %cst_127 = arith.constant dense<0xFF800000> : vector<8xf32>
    %382 = vector.multi_reduction <maximumf>, %381, %cst_127 [1] : vector<8x8xf32> to vector<8xf32>
    %383 = vector.shape_cast %382 : vector<8xf32> to vector<8x1xf32>
    %384 = vector.broadcast %383 : vector<8x1xf32> to vector<8x8xf32>
    %385 = arith.subf %381, %384 : vector<8x8xf32>
    %386 = math.exp %385 : vector<8x8xf32>
    %cst_128 = arith.constant dense<0.000000e+00> : vector<8xf32>
    %387 = vector.multi_reduction <add>, %386, %cst_128 [1] : vector<8x8xf32> to vector<8xf32>
    %388 = vector.shape_cast %387 : vector<8xf32> to vector<8x1xf32>
    %389 = vector.broadcast %388 : vector<8x1xf32> to vector<8x8xf32>
    %390 = arith.divf %386, %389 : vector<8x8xf32>
    %391 = vector.extract_strided_slice %315 {offsets = [0, 48], sizes = [8, 16], strides = [1, 1]} : vector<8x64xf32> to vector<8x16xf32>
    %cst_129 = arith.constant dense<0.000000e+00> : vector<8x16xf32>
    %392 = tpu.matmul %390, %391, %cst_129 {dimension_numbers = #tpu.dot_dimension_numbers<[1], [0], [0], [1], [0, 0, 1, 1], [], []>} : vector<8x8xf32>, vector<8x16xf32>, vector<8x16xf32> -> vector<8x16xf32>
    %393 = vector.extract_strided_slice %317 {offsets = [48, 0], sizes = [16, 64], strides = [1, 1]} : vector<64x64xf32> to vector<16x64xf32>
    %cst_130 = arith.constant dense<0.000000e+00> : vector<8x64xf32>
    %394 = tpu.matmul %392, %393, %cst_130 {dimension_numbers = #tpu.dot_dimension_numbers<[1], [0], [0], [1], [0, 0, 1, 1], [], []>} : vector<8x16xf32>, vector<16x64xf32>, vector<8x64xf32> -> vector<8x64xf32>
    %395 = arith.addf %376, %394 : vector<8x64xf32>
    %396 = vector.broadcast %318 : vector<1x64xf32> to vector<8x64xf32>
    %397 = arith.addf %395, %396 : vector<8x64xf32>
    %398 = arith.addf %293, %397 : vector<8x64xf32>
    %399 = vector.extract_strided_slice %295 {offsets = [4, 0], sizes = [1, 64], strides = [1, 1]} : vector<16x128xf32> to vector<1x64xf32>
    %400 = vector.extract_strided_slice %295 {offsets = [4, 64], sizes = [1, 64], strides = [1, 1]} : vector<16x128xf32> to vector<1x64xf32>
    %cst_131 = arith.constant dense<0.000000e+00> : vector<8xf32>
    %401 = vector.multi_reduction <add>, %398, %cst_131 [1] : vector<8x64xf32> to vector<8xf32>
    %402 = vector.shape_cast %401 : vector<8xf32> to vector<8x1xf32>
    %cst_132 = arith.constant 6.400000e+01 : f32
    %403 = vector.broadcast %cst_132 : f32 to vector<8x1xf32>
    %404 = arith.divf %402, %403 : vector<8x1xf32>
    %405 = vector.broadcast %404 : vector<8x1xf32> to vector<8x64xf32>
    %406 = arith.subf %398, %405 : vector<8x64xf32>
    %407 = arith.mulf %406, %406 : vector<8x64xf32>
    %cst_133 = arith.constant dense<0.000000e+00> : vector<8xf32>
    %408 = vector.multi_reduction <add>, %407, %cst_133 [1] : vector<8x64xf32> to vector<8xf32>
    %409 = vector.shape_cast %408 : vector<8xf32> to vector<8x1xf32>
    %cst_134 = arith.constant 6.400000e+01 : f32
    %410 = vector.broadcast %cst_134 : f32 to vector<8x1xf32>
    %411 = arith.divf %409, %410 : vector<8x1xf32>
    %cst_135 = arith.constant 9.99999974E-6 : f32
    %412 = vector.broadcast %cst_135 : f32 to vector<8x1xf32>
    %413 = arith.addf %411, %412 : vector<8x1xf32>
    %414 = math.rsqrt %413 : vector<8x1xf32>
    %415 = vector.broadcast %414 : vector<8x1xf32> to vector<8x64xf32>
    %416 = arith.mulf %406, %415 : vector<8x64xf32>
    %417 = vector.broadcast %399 : vector<1x64xf32> to vector<8x64xf32>
    %418 = arith.mulf %416, %417 : vector<8x64xf32>
    %419 = vector.broadcast %400 : vector<1x64xf32> to vector<8x64xf32>
    %420 = arith.addf %418, %419 : vector<8x64xf32>
    %421 = arith.addf %420, %3 : vector<8x64xf32>
    %422 = vector.extract_strided_slice %297 {offsets = [2, 0, 0], sizes = [1, 64, 64], strides = [1, 1, 1]} : vector<6x64x64xf32> to vector<1x64x64xf32>
    %423 = vector.shape_cast %422 : vector<1x64x64xf32> to vector<64x64xf32>
    %cst_136 = arith.constant dense<0.000000e+00> : vector<8x64xf32>
    %424 = tpu.matmul %421, %423, %cst_136 {dimension_numbers = #tpu.dot_dimension_numbers<[1], [0], [0], [1], [0, 0, 1, 1], [], []>} : vector<8x64xf32>, vector<64x64xf32>, vector<8x64xf32> -> vector<8x64xf32>
    %425 = vector.extract_strided_slice %295 {offsets = [2, 0], sizes = [1, 64], strides = [1, 1]} : vector<16x128xf32> to vector<1x64xf32>
    %426 = vector.broadcast %425 : vector<1x64xf32> to vector<8x64xf32>
    %427 = arith.addf %424, %426 : vector<8x64xf32>
    %428 = vector.extract_strided_slice %297 {offsets = [3, 0, 0], sizes = [1, 64, 64], strides = [1, 1, 1]} : vector<6x64x64xf32> to vector<1x64x64xf32>
    %429 = vector.shape_cast %428 : vector<1x64x64xf32> to vector<64x64xf32>
    %cst_137 = arith.constant dense<0.000000e+00> : vector<16x64xf32>
    %430 = tpu.matmul %5, %429, %cst_137 {dimension_numbers = #tpu.dot_dimension_numbers<[1], [0], [0], [1], [0, 0, 1, 1], [], []>} : vector<16x64xf32>, vector<64x64xf32>, vector<16x64xf32> -> vector<16x64xf32>
    %431 = vector.extract_strided_slice %295 {offsets = [2, 64], sizes = [1, 64], strides = [1, 1]} : vector<16x128xf32> to vector<1x64xf32>
    %432 = vector.broadcast %431 : vector<1x64xf32> to vector<16x64xf32>
    %433 = arith.addf %430, %432 : vector<16x64xf32>
    %434 = vector.extract_strided_slice %297 {offsets = [4, 0, 0], sizes = [1, 64, 64], strides = [1, 1, 1]} : vector<6x64x64xf32> to vector<1x64x64xf32>
    %435 = vector.shape_cast %434 : vector<1x64x64xf32> to vector<64x64xf32>
    %cst_138 = arith.constant dense<0.000000e+00> : vector<16x64xf32>
    %436 = tpu.matmul %1, %435, %cst_138 {dimension_numbers = #tpu.dot_dimension_numbers<[1], [0], [0], [1], [0, 0, 1, 1], [], []>} : vector<16x64xf32>, vector<64x64xf32>, vector<16x64xf32> -> vector<16x64xf32>
    %437 = vector.extract_strided_slice %295 {offsets = [3, 0], sizes = [1, 64], strides = [1, 1]} : vector<16x128xf32> to vector<1x64xf32>
    %438 = vector.broadcast %437 : vector<1x64xf32> to vector<16x64xf32>
    %439 = arith.addf %436, %438 : vector<16x64xf32>
    %440 = vector.extract_strided_slice %297 {offsets = [5, 0, 0], sizes = [1, 64, 64], strides = [1, 1, 1]} : vector<6x64x64xf32> to vector<1x64x64xf32>
    %441 = vector.shape_cast %440 : vector<1x64x64xf32> to vector<64x64xf32>
    %442 = vector.extract_strided_slice %295 {offsets = [3, 64], sizes = [1, 64], strides = [1, 1]} : vector<16x128xf32> to vector<1x64xf32>
    %cst_139 = arith.constant 0.000000e+00 : f32
    %443 = vector.broadcast %cst_139 : f32 to vector<8x64xf32>
    %444 = vector.extract_strided_slice %427 {offsets = [0, 0], sizes = [8, 16], strides = [1, 1]} : vector<8x64xf32> to vector<8x16xf32>
    %cst_140 = arith.constant 2.500000e-01 : f32
    %445 = vector.broadcast %cst_140 : f32 to vector<8x16xf32>
    %446 = arith.mulf %444, %445 : vector<8x16xf32>
    %447 = vector.extract_strided_slice %433 {offsets = [0, 0], sizes = [16, 16], strides = [1, 1]} : vector<16x64xf32> to vector<16x16xf32>
    %cst_141 = arith.constant dense<0.000000e+00> : vector<8x16xf32>
    %448 = tpu.matmul %446, %447, %cst_141 {dimension_numbers = #tpu.dot_dimension_numbers<[1], [1], [0], [0], [0, 0, 1, 0], [], []>} : vector<8x16xf32>, vector<16x16xf32>, vector<8x16xf32> -> vector<8x16xf32>
    %cst_142 = arith.constant dense<0xFF800000> : vector<8xf32>
    %449 = vector.multi_reduction <maximumf>, %448, %cst_142 [1] : vector<8x16xf32> to vector<8xf32>
    %450 = vector.shape_cast %449 : vector<8xf32> to vector<8x1xf32>
    %451 = vector.broadcast %450 : vector<8x1xf32> to vector<8x16xf32>
    %452 = arith.subf %448, %451 : vector<8x16xf32>
    %453 = math.exp %452 : vector<8x16xf32>
    %cst_143 = arith.constant dense<0.000000e+00> : vector<8xf32>
    %454 = vector.multi_reduction <add>, %453, %cst_143 [1] : vector<8x16xf32> to vector<8xf32>
    %455 = vector.shape_cast %454 : vector<8xf32> to vector<8x1xf32>
    %456 = vector.broadcast %455 : vector<8x1xf32> to vector<8x16xf32>
    %457 = arith.divf %453, %456 : vector<8x16xf32>
    %458 = vector.extract_strided_slice %439 {offsets = [0, 0], sizes = [16, 16], strides = [1, 1]} : vector<16x64xf32> to vector<16x16xf32>
    %cst_144 = arith.constant dense<0.000000e+00> : vector<8x16xf32>
    %459 = tpu.matmul %457, %458, %cst_144 {dimension_numbers = #tpu.dot_dimension_numbers<[1], [0], [0], [1], [0, 0, 1, 1], [], []>} : vector<8x16xf32>, vector<16x16xf32>, vector<8x16xf32> -> vector<8x16xf32>
    %460 = vector.extract_strided_slice %441 {offsets = [0, 0], sizes = [16, 64], strides = [1, 1]} : vector<64x64xf32> to vector<16x64xf32>
    %cst_145 = arith.constant dense<0.000000e+00> : vector<8x64xf32>
    %461 = tpu.matmul %459, %460, %cst_145 {dimension_numbers = #tpu.dot_dimension_numbers<[1], [0], [0], [1], [0, 0, 1, 1], [], []>} : vector<8x16xf32>, vector<16x64xf32>, vector<8x64xf32> -> vector<8x64xf32>
    %462 = arith.addf %443, %461 : vector<8x64xf32>
    %463 = vector.extract_strided_slice %427 {offsets = [0, 16], sizes = [8, 16], strides = [1, 1]} : vector<8x64xf32> to vector<8x16xf32>
    %cst_146 = arith.constant 2.500000e-01 : f32
    %464 = vector.broadcast %cst_146 : f32 to vector<8x16xf32>
    %465 = arith.mulf %463, %464 : vector<8x16xf32>
    %466 = vector.extract_strided_slice %433 {offsets = [0, 16], sizes = [16, 16], strides = [1, 1]} : vector<16x64xf32> to vector<16x16xf32>
    %cst_147 = arith.constant dense<0.000000e+00> : vector<8x16xf32>
    %467 = tpu.matmul %465, %466, %cst_147 {dimension_numbers = #tpu.dot_dimension_numbers<[1], [1], [0], [0], [0, 0, 1, 0], [], []>} : vector<8x16xf32>, vector<16x16xf32>, vector<8x16xf32> -> vector<8x16xf32>
    %cst_148 = arith.constant dense<0xFF800000> : vector<8xf32>
    %468 = vector.multi_reduction <maximumf>, %467, %cst_148 [1] : vector<8x16xf32> to vector<8xf32>
    %469 = vector.shape_cast %468 : vector<8xf32> to vector<8x1xf32>
    %470 = vector.broadcast %469 : vector<8x1xf32> to vector<8x16xf32>
    %471 = arith.subf %467, %470 : vector<8x16xf32>
    %472 = math.exp %471 : vector<8x16xf32>
    %cst_149 = arith.constant dense<0.000000e+00> : vector<8xf32>
    %473 = vector.multi_reduction <add>, %472, %cst_149 [1] : vector<8x16xf32> to vector<8xf32>
    %474 = vector.shape_cast %473 : vector<8xf32> to vector<8x1xf32>
    %475 = vector.broadcast %474 : vector<8x1xf32> to vector<8x16xf32>
    %476 = arith.divf %472, %475 : vector<8x16xf32>
    %477 = vector.extract_strided_slice %439 {offsets = [0, 16], sizes = [16, 16], strides = [1, 1]} : vector<16x64xf32> to vector<16x16xf32>
    %cst_150 = arith.constant dense<0.000000e+00> : vector<8x16xf32>
    %478 = tpu.matmul %476, %477, %cst_150 {dimension_numbers = #tpu.dot_dimension_numbers<[1], [0], [0], [1], [0, 0, 1, 1], [], []>} : vector<8x16xf32>, vector<16x16xf32>, vector<8x16xf32> -> vector<8x16xf32>
    %479 = vector.extract_strided_slice %441 {offsets = [16, 0], sizes = [16, 64], strides = [1, 1]} : vector<64x64xf32> to vector<16x64xf32>
    %cst_151 = arith.constant dense<0.000000e+00> : vector<8x64xf32>
    %480 = tpu.matmul %478, %479, %cst_151 {dimension_numbers = #tpu.dot_dimension_numbers<[1], [0], [0], [1], [0, 0, 1, 1], [], []>} : vector<8x16xf32>, vector<16x64xf32>, vector<8x64xf32> -> vector<8x64xf32>
    %481 = arith.addf %462, %480 : vector<8x64xf32>
    %482 = vector.extract_strided_slice %427 {offsets = [0, 32], sizes = [8, 16], strides = [1, 1]} : vector<8x64xf32> to vector<8x16xf32>
    %cst_152 = arith.constant 2.500000e-01 : f32
    %483 = vector.broadcast %cst_152 : f32 to vector<8x16xf32>
    %484 = arith.mulf %482, %483 : vector<8x16xf32>
    %485 = vector.extract_strided_slice %433 {offsets = [0, 32], sizes = [16, 16], strides = [1, 1]} : vector<16x64xf32> to vector<16x16xf32>
    %cst_153 = arith.constant dense<0.000000e+00> : vector<8x16xf32>
    %486 = tpu.matmul %484, %485, %cst_153 {dimension_numbers = #tpu.dot_dimension_numbers<[1], [1], [0], [0], [0, 0, 1, 0], [], []>} : vector<8x16xf32>, vector<16x16xf32>, vector<8x16xf32> -> vector<8x16xf32>
    %cst_154 = arith.constant dense<0xFF800000> : vector<8xf32>
    %487 = vector.multi_reduction <maximumf>, %486, %cst_154 [1] : vector<8x16xf32> to vector<8xf32>
    %488 = vector.shape_cast %487 : vector<8xf32> to vector<8x1xf32>
    %489 = vector.broadcast %488 : vector<8x1xf32> to vector<8x16xf32>
    %490 = arith.subf %486, %489 : vector<8x16xf32>
    %491 = math.exp %490 : vector<8x16xf32>
    %cst_155 = arith.constant dense<0.000000e+00> : vector<8xf32>
    %492 = vector.multi_reduction <add>, %491, %cst_155 [1] : vector<8x16xf32> to vector<8xf32>
    %493 = vector.shape_cast %492 : vector<8xf32> to vector<8x1xf32>
    %494 = vector.broadcast %493 : vector<8x1xf32> to vector<8x16xf32>
    %495 = arith.divf %491, %494 : vector<8x16xf32>
    %496 = vector.extract_strided_slice %439 {offsets = [0, 32], sizes = [16, 16], strides = [1, 1]} : vector<16x64xf32> to vector<16x16xf32>
    %cst_156 = arith.constant dense<0.000000e+00> : vector<8x16xf32>
    %497 = tpu.matmul %495, %496, %cst_156 {dimension_numbers = #tpu.dot_dimension_numbers<[1], [0], [0], [1], [0, 0, 1, 1], [], []>} : vector<8x16xf32>, vector<16x16xf32>, vector<8x16xf32> -> vector<8x16xf32>
    %498 = vector.extract_strided_slice %441 {offsets = [32, 0], sizes = [16, 64], strides = [1, 1]} : vector<64x64xf32> to vector<16x64xf32>
    %cst_157 = arith.constant dense<0.000000e+00> : vector<8x64xf32>
    %499 = tpu.matmul %497, %498, %cst_157 {dimension_numbers = #tpu.dot_dimension_numbers<[1], [0], [0], [1], [0, 0, 1, 1], [], []>} : vector<8x16xf32>, vector<16x64xf32>, vector<8x64xf32> -> vector<8x64xf32>
    %500 = arith.addf %481, %499 : vector<8x64xf32>
    %501 = vector.extract_strided_slice %427 {offsets = [0, 48], sizes = [8, 16], strides = [1, 1]} : vector<8x64xf32> to vector<8x16xf32>
    %cst_158 = arith.constant 2.500000e-01 : f32
    %502 = vector.broadcast %cst_158 : f32 to vector<8x16xf32>
    %503 = arith.mulf %501, %502 : vector<8x16xf32>
    %504 = vector.extract_strided_slice %433 {offsets = [0, 48], sizes = [16, 16], strides = [1, 1]} : vector<16x64xf32> to vector<16x16xf32>
    %cst_159 = arith.constant dense<0.000000e+00> : vector<8x16xf32>
    %505 = tpu.matmul %503, %504, %cst_159 {dimension_numbers = #tpu.dot_dimension_numbers<[1], [1], [0], [0], [0, 0, 1, 0], [], []>} : vector<8x16xf32>, vector<16x16xf32>, vector<8x16xf32> -> vector<8x16xf32>
    %cst_160 = arith.constant dense<0xFF800000> : vector<8xf32>
    %506 = vector.multi_reduction <maximumf>, %505, %cst_160 [1] : vector<8x16xf32> to vector<8xf32>
    %507 = vector.shape_cast %506 : vector<8xf32> to vector<8x1xf32>
    %508 = vector.broadcast %507 : vector<8x1xf32> to vector<8x16xf32>
    %509 = arith.subf %505, %508 : vector<8x16xf32>
    %510 = math.exp %509 : vector<8x16xf32>
    %cst_161 = arith.constant dense<0.000000e+00> : vector<8xf32>
    %511 = vector.multi_reduction <add>, %510, %cst_161 [1] : vector<8x16xf32> to vector<8xf32>
    %512 = vector.shape_cast %511 : vector<8xf32> to vector<8x1xf32>
    %513 = vector.broadcast %512 : vector<8x1xf32> to vector<8x16xf32>
    %514 = arith.divf %510, %513 : vector<8x16xf32>
    %515 = vector.extract_strided_slice %439 {offsets = [0, 48], sizes = [16, 16], strides = [1, 1]} : vector<16x64xf32> to vector<16x16xf32>
    %cst_162 = arith.constant dense<0.000000e+00> : vector<8x16xf32>
    %516 = tpu.matmul %514, %515, %cst_162 {dimension_numbers = #tpu.dot_dimension_numbers<[1], [0], [0], [1], [0, 0, 1, 1], [], []>} : vector<8x16xf32>, vector<16x16xf32>, vector<8x16xf32> -> vector<8x16xf32>
    %517 = vector.extract_strided_slice %441 {offsets = [48, 0], sizes = [16, 64], strides = [1, 1]} : vector<64x64xf32> to vector<16x64xf32>
    %cst_163 = arith.constant dense<0.000000e+00> : vector<8x64xf32>
    %518 = tpu.matmul %516, %517, %cst_163 {dimension_numbers = #tpu.dot_dimension_numbers<[1], [0], [0], [1], [0, 0, 1, 1], [], []>} : vector<8x16xf32>, vector<16x64xf32>, vector<8x64xf32> -> vector<8x64xf32>
    %519 = arith.addf %500, %518 : vector<8x64xf32>
    %520 = vector.broadcast %442 : vector<1x64xf32> to vector<8x64xf32>
    %521 = arith.addf %519, %520 : vector<8x64xf32>
    %522 = arith.addf %420, %521 : vector<8x64xf32>
    %523 = vector.extract_strided_slice %295 {offsets = [5, 0], sizes = [1, 64], strides = [1, 1]} : vector<16x128xf32> to vector<1x64xf32>
    %524 = vector.extract_strided_slice %295 {offsets = [5, 64], sizes = [1, 64], strides = [1, 1]} : vector<16x128xf32> to vector<1x64xf32>
    %cst_164 = arith.constant dense<0.000000e+00> : vector<8xf32>
    %525 = vector.multi_reduction <add>, %522, %cst_164 [1] : vector<8x64xf32> to vector<8xf32>
    %526 = vector.shape_cast %525 : vector<8xf32> to vector<8x1xf32>
    %cst_165 = arith.constant 6.400000e+01 : f32
    %527 = vector.broadcast %cst_165 : f32 to vector<8x1xf32>
    %528 = arith.divf %526, %527 : vector<8x1xf32>
    %529 = vector.broadcast %528 : vector<8x1xf32> to vector<8x64xf32>
    %530 = arith.subf %522, %529 : vector<8x64xf32>
    %531 = arith.mulf %530, %530 : vector<8x64xf32>
    %cst_166 = arith.constant dense<0.000000e+00> : vector<8xf32>
    %532 = vector.multi_reduction <add>, %531, %cst_166 [1] : vector<8x64xf32> to vector<8xf32>
    %533 = vector.shape_cast %532 : vector<8xf32> to vector<8x1xf32>
    %cst_167 = arith.constant 6.400000e+01 : f32
    %534 = vector.broadcast %cst_167 : f32 to vector<8x1xf32>
    %535 = arith.divf %533, %534 : vector<8x1xf32>
    %cst_168 = arith.constant 9.99999974E-6 : f32
    %536 = vector.broadcast %cst_168 : f32 to vector<8x1xf32>
    %537 = arith.addf %535, %536 : vector<8x1xf32>
    %538 = math.rsqrt %537 : vector<8x1xf32>
    %539 = vector.broadcast %538 : vector<8x1xf32> to vector<8x64xf32>
    %540 = arith.mulf %530, %539 : vector<8x64xf32>
    %541 = vector.broadcast %523 : vector<1x64xf32> to vector<8x64xf32>
    %542 = arith.mulf %540, %541 : vector<8x64xf32>
    %543 = vector.broadcast %524 : vector<1x64xf32> to vector<8x64xf32>
    %544 = arith.addf %542, %543 : vector<8x64xf32>
    %c1_169 = arith.constant 1 : index
    %c0_170 = arith.constant 0 : index
    %c0_171 = arith.constant 0 : index
    %545 = vector.load %arg6[%c1_169, %c0_170, %c0_171] : memref<2x64x128xf32, #tpu.memory_space<vmem>>, vector<1x64x128xf32>
    %546 = vector.shape_cast %545 : vector<1x64x128xf32> to vector<64x128xf32>
    %cst_172 = arith.constant dense<0.000000e+00> : vector<8x128xf32>
    %547 = tpu.matmul %544, %546, %cst_172 {dimension_numbers = #tpu.dot_dimension_numbers<[1], [0], [0], [1], [0, 0, 1, 1], [], []>} : vector<8x64xf32>, vector<64x128xf32>, vector<8x128xf32> -> vector<8x128xf32>
    %548 = vector.extract_strided_slice %295 {offsets = [7, 0], sizes = [1, 128], strides = [1, 1]} : vector<16x128xf32> to vector<1x128xf32>
    %549 = vector.broadcast %548 : vector<1x128xf32> to vector<8x128xf32>
    %550 = arith.addf %547, %549 : vector<8x128xf32>
    %cst_173 = arith.constant 0.000000e+00 : f32
    %551 = vector.broadcast %cst_173 : f32 to vector<8x128xf32>
    %552 = arith.maximumf %550, %551 : vector<8x128xf32>
    %c1_174 = arith.constant 1 : index
    %c0_175 = arith.constant 0 : index
    %c0_176 = arith.constant 0 : index
    %553 = vector.load %arg7[%c1_174, %c0_175, %c0_176] : memref<2x128x64xf32, #tpu.memory_space<vmem>>, vector<1x128x64xf32>
    %554 = vector.shape_cast %553 : vector<1x128x64xf32> to vector<128x64xf32>
    %cst_177 = arith.constant dense<0.000000e+00> : vector<8x64xf32>
    %555 = tpu.matmul %552, %554, %cst_177 {dimension_numbers = #tpu.dot_dimension_numbers<[1], [0], [0], [1], [0, 0, 1, 1], [], []>} : vector<8x128xf32>, vector<128x64xf32>, vector<8x64xf32> -> vector<8x64xf32>
    %556 = vector.extract_strided_slice %295 {offsets = [8, 0], sizes = [1, 64], strides = [1, 1]} : vector<16x128xf32> to vector<1x64xf32>
    %557 = vector.broadcast %556 : vector<1x64xf32> to vector<8x64xf32>
    %558 = arith.addf %555, %557 : vector<8x64xf32>
    %559 = arith.addf %544, %558 : vector<8x64xf32>
    %560 = vector.extract_strided_slice %295 {offsets = [6, 0], sizes = [1, 64], strides = [1, 1]} : vector<16x128xf32> to vector<1x64xf32>
    %561 = vector.extract_strided_slice %295 {offsets = [6, 64], sizes = [1, 64], strides = [1, 1]} : vector<16x128xf32> to vector<1x64xf32>
    %cst_178 = arith.constant dense<0.000000e+00> : vector<8xf32>
    %562 = vector.multi_reduction <add>, %559, %cst_178 [1] : vector<8x64xf32> to vector<8xf32>
    %563 = vector.shape_cast %562 : vector<8xf32> to vector<8x1xf32>
    %cst_179 = arith.constant 6.400000e+01 : f32
    %564 = vector.broadcast %cst_179 : f32 to vector<8x1xf32>
    %565 = arith.divf %563, %564 : vector<8x1xf32>
    %566 = vector.broadcast %565 : vector<8x1xf32> to vector<8x64xf32>
    %567 = arith.subf %559, %566 : vector<8x64xf32>
    %568 = arith.mulf %567, %567 : vector<8x64xf32>
    %cst_180 = arith.constant dense<0.000000e+00> : vector<8xf32>
    %569 = vector.multi_reduction <add>, %568, %cst_180 [1] : vector<8x64xf32> to vector<8xf32>
    %570 = vector.shape_cast %569 : vector<8xf32> to vector<8x1xf32>
    %cst_181 = arith.constant 6.400000e+01 : f32
    %571 = vector.broadcast %cst_181 : f32 to vector<8x1xf32>
    %572 = arith.divf %570, %571 : vector<8x1xf32>
    %cst_182 = arith.constant 9.99999974E-6 : f32
    %573 = vector.broadcast %cst_182 : f32 to vector<8x1xf32>
    %574 = arith.addf %572, %573 : vector<8x1xf32>
    %575 = math.rsqrt %574 : vector<8x1xf32>
    %576 = vector.broadcast %575 : vector<8x1xf32> to vector<8x64xf32>
    %577 = arith.mulf %567, %576 : vector<8x64xf32>
    %578 = vector.broadcast %560 : vector<1x64xf32> to vector<8x64xf32>
    %579 = arith.mulf %577, %578 : vector<8x64xf32>
    %580 = vector.broadcast %561 : vector<1x64xf32> to vector<8x64xf32>
    %581 = arith.addf %579, %580 : vector<8x64xf32>
    %c0_183 = arith.constant 0 : index
    %c0_184 = arith.constant 0 : index
    %582 = vector.load %arg11[%c0_183, %c0_184] : memref<8x128xf32, #tpu.memory_space<vmem>>, vector<8x128xf32>
    %583 = vector.extract_strided_slice %582 {offsets = [0, 0], sizes = [1, 64], strides = [1, 1]} : vector<8x128xf32> to vector<1x64xf32>
    %584 = vector.extract_strided_slice %582 {offsets = [0, 64], sizes = [1, 64], strides = [1, 1]} : vector<8x128xf32> to vector<1x64xf32>
    %cst_185 = arith.constant dense<0.000000e+00> : vector<8xf32>
    %585 = vector.multi_reduction <add>, %581, %cst_185 [1] : vector<8x64xf32> to vector<8xf32>
    %586 = vector.shape_cast %585 : vector<8xf32> to vector<8x1xf32>
    %cst_186 = arith.constant 6.400000e+01 : f32
    %587 = vector.broadcast %cst_186 : f32 to vector<8x1xf32>
    %588 = arith.divf %586, %587 : vector<8x1xf32>
    %589 = vector.broadcast %588 : vector<8x1xf32> to vector<8x64xf32>
    %590 = arith.subf %581, %589 : vector<8x64xf32>
    %591 = arith.mulf %590, %590 : vector<8x64xf32>
    %cst_187 = arith.constant dense<0.000000e+00> : vector<8xf32>
    %592 = vector.multi_reduction <add>, %591, %cst_187 [1] : vector<8x64xf32> to vector<8xf32>
    %593 = vector.shape_cast %592 : vector<8xf32> to vector<8x1xf32>
    %cst_188 = arith.constant 6.400000e+01 : f32
    %594 = vector.broadcast %cst_188 : f32 to vector<8x1xf32>
    %595 = arith.divf %593, %594 : vector<8x1xf32>
    %cst_189 = arith.constant 9.99999974E-6 : f32
    %596 = vector.broadcast %cst_189 : f32 to vector<8x1xf32>
    %597 = arith.addf %595, %596 : vector<8x1xf32>
    %598 = math.rsqrt %597 : vector<8x1xf32>
    %599 = vector.broadcast %598 : vector<8x1xf32> to vector<8x64xf32>
    %600 = arith.mulf %590, %599 : vector<8x64xf32>
    %601 = vector.broadcast %583 : vector<1x64xf32> to vector<8x64xf32>
    %602 = arith.mulf %600, %601 : vector<8x64xf32>
    %603 = vector.broadcast %584 : vector<1x64xf32> to vector<8x64xf32>
    %604 = arith.addf %602, %603 : vector<8x64xf32>
    %c0_190 = arith.constant 0 : index
    %c0_191 = arith.constant 0 : index
    %c0_192 = arith.constant 0 : index
    %605 = vector.load %arg10[%c0_190, %c0_191, %c0_192] : memref<2x64x128xf32, #tpu.memory_space<vmem>>, vector<1x64x128xf32>
    %606 = vector.shape_cast %605 : vector<1x64x128xf32> to vector<64x128xf32>
    %cst_193 = arith.constant dense<0.000000e+00> : vector<8x128xf32>
    %607 = tpu.matmul %604, %606, %cst_193 {dimension_numbers = #tpu.dot_dimension_numbers<[1], [0], [0], [1], [0, 0, 1, 1], [], []>} : vector<8x64xf32>, vector<64x128xf32>, vector<8x128xf32> -> vector<8x128xf32>
    %608 = vector.extract_strided_slice %582 {offsets = [1, 0], sizes = [1, 128], strides = [1, 1]} : vector<8x128xf32> to vector<1x128xf32>
    %609 = vector.broadcast %608 : vector<1x128xf32> to vector<8x128xf32>
    %610 = arith.addf %607, %609 : vector<8x128xf32>
    %c0_194 = arith.constant 0 : index
    %c0_195 = arith.constant 0 : index
    %c0_196 = arith.constant 0 : index
    %611 = vector.load %arg9[%c0_194, %c0_195, %c0_196] : memref<2x64x64xf32, #tpu.memory_space<vmem>>, vector<1x64x64xf32>
    %612 = vector.shape_cast %611 : vector<1x64x64xf32> to vector<64x64xf32>
    %cst_197 = arith.constant dense<0.000000e+00> : vector<8x64xf32>
    %613 = tpu.matmul %604, %612, %cst_197 {dimension_numbers = #tpu.dot_dimension_numbers<[1], [0], [0], [1], [0, 0, 1, 1], [], []>} : vector<8x64xf32>, vector<64x64xf32>, vector<8x64xf32> -> vector<8x64xf32>
    %614 = vector.extract_strided_slice %582 {offsets = [2, 0], sizes = [1, 64], strides = [1, 1]} : vector<8x128xf32> to vector<1x64xf32>
    %615 = vector.broadcast %614 : vector<1x64xf32> to vector<8x64xf32>
    %616 = arith.addf %613, %615 : vector<8x64xf32>
    %cst_198 = arith.constant 0.000000e+00 : f32
    %617 = vector.broadcast %cst_198 : f32 to vector<8x64xf32>
    %618 = arith.maximumf %616, %617 : vector<8x64xf32>
    %c1_199 = arith.constant 1 : index
    %c0_200 = arith.constant 0 : index
    %c0_201 = arith.constant 0 : index
    %619 = vector.load %arg9[%c1_199, %c0_200, %c0_201] : memref<2x64x64xf32, #tpu.memory_space<vmem>>, vector<1x64x64xf32>
    %620 = vector.shape_cast %619 : vector<1x64x64xf32> to vector<64x64xf32>
    %cst_202 = arith.constant dense<0.000000e+00> : vector<8x64xf32>
    %621 = tpu.matmul %618, %620, %cst_202 {dimension_numbers = #tpu.dot_dimension_numbers<[1], [0], [0], [1], [0, 0, 1, 1], [], []>} : vector<8x64xf32>, vector<64x64xf32>, vector<8x64xf32> -> vector<8x64xf32>
    %622 = vector.extract_strided_slice %582 {offsets = [2, 64], sizes = [1, 64], strides = [1, 1]} : vector<8x128xf32> to vector<1x64xf32>
    %623 = vector.broadcast %622 : vector<1x64xf32> to vector<8x64xf32>
    %624 = arith.addf %621, %623 : vector<8x64xf32>
    %cst_203 = arith.constant 0.000000e+00 : f32
    %625 = vector.broadcast %cst_203 : f32 to vector<8x64xf32>
    %626 = arith.maximumf %624, %625 : vector<8x64xf32>
    %c1_204 = arith.constant 1 : index
    %c0_205 = arith.constant 0 : index
    %c0_206 = arith.constant 0 : index
    %627 = vector.load %arg10[%c1_204, %c0_205, %c0_206] : memref<2x64x128xf32, #tpu.memory_space<vmem>>, vector<1x64x128xf32>
    %628 = vector.shape_cast %627 : vector<1x64x128xf32> to vector<64x128xf32>
    %cst_207 = arith.constant dense<0.000000e+00> : vector<8x128xf32>
    %629 = tpu.matmul %626, %628, %cst_207 {dimension_numbers = #tpu.dot_dimension_numbers<[1], [0], [0], [1], [0, 0, 1, 1], [], []>} : vector<8x64xf32>, vector<64x128xf32>, vector<8x128xf32> -> vector<8x128xf32>
    %630 = vector.extract_strided_slice %582 {offsets = [3, 0], sizes = [1, 128], strides = [1, 1]} : vector<8x128xf32> to vector<1x128xf32>
    %631 = vector.broadcast %630 : vector<1x128xf32> to vector<8x128xf32>
    %632 = arith.addf %629, %631 : vector<8x128xf32>
    %633 = arith.negf %632 : vector<8x128xf32>
    %634 = math.exp %633 : vector<8x128xf32>
    %cst_208 = arith.constant 1.000000e+00 : f32
    %635 = vector.broadcast %cst_208 : f32 to vector<8x128xf32>
    %636 = arith.addf %635, %634 : vector<8x128xf32>
    %637 = arith.divf %635, %636 : vector<8x128xf32>
    %638 = tpu.iota {dimensions = array<i32: 1>} : vector<8x128xi32>
    %c64_i32 = arith.constant 64 : i32
    %639 = vector.broadcast %c64_i32 : i32 to vector<8x128xi32>
    %640 = arith.cmpi slt, %638, %639 : vector<8x128xi32>
    %641 = arith.select %640, %610, %637 : vector<8x128xi1>, vector<8x128xf32>
    %c0_209 = arith.constant 0 : index
    %c0_210 = arith.constant 0 : index
    %c0_211 = arith.constant 0 : index
    %642 = vector.load %arg12[%c0_209, %c0_210, %c0_211] : memref<1x8x128xf32, #tpu.memory_space<vmem>>, vector<1x8x128xf32>
    %643 = vector.shape_cast %642 : vector<1x8x128xf32> to vector<8x128xf32>
    %644 = vector.shape_cast %641 : vector<8x128xf32> to vector<1x8x128xf32>
    tpu.vector_store %arg12[%c0_209, %c0_210, %c0_211], %644 {strides = array<i32>} : memref<1x8x128xf32, #tpu.memory_space<vmem>>, vector<1x8x128xf32>,
    return
  }
  func.func @transform_0(%arg0: i32) -> (i32, i32, i32) {
    %c0_i32 = arith.constant 0 : i32
    %c0_i32_0 = arith.constant 0 : i32
    %c0_i32_1 = arith.constant 0 : i32
    return %arg0, %c0_i32, %c0_i32_0 : i32, i32, i32
  }
  func.func @transform_1(%arg0: i32) -> (i32, i32) {
    %c0_i32 = arith.constant 0 : i32
    %c0_i32_0 = arith.constant 0 : i32
    %c0_i32_1 = arith.constant 0 : i32
    return %c0_i32, %c0_i32_0 : i32, i32
  }
  func.func @transform_2(%arg0: i32) -> (i32, i32) {
    %c0_i32 = arith.constant 0 : i32
    %c0_i32_0 = arith.constant 0 : i32
    %c0_i32_1 = arith.constant 0 : i32
    return %c0_i32, %c0_i32_0 : i32, i32
  }
  func.func @transform_3(%arg0: i32) -> (i32, i32, i32) {
    %c0_i32 = arith.constant 0 : i32
    %c0_i32_0 = arith.constant 0 : i32
    %c0_i32_1 = arith.constant 0 : i32
    %c0_i32_2 = arith.constant 0 : i32
    return %c0_i32, %c0_i32_0, %c0_i32_1 : i32, i32, i32
  }
  func.func @transform_4(%arg0: i32) -> (i32, i32, i32, i32) {
    %c0_i32 = arith.constant 0 : i32
    %c0_i32_0 = arith.constant 0 : i32
    %c0_i32_1 = arith.constant 0 : i32
    %c0_i32_2 = arith.constant 0 : i32
    %c0_i32_3 = arith.constant 0 : i32
    return %c0_i32, %c0_i32_0, %c0_i32_1, %c0_i32_2 : i32, i32, i32, i32
  }
  func.func @transform_5(%arg0: i32) -> (i32, i32, i32) {
    %c0_i32 = arith.constant 0 : i32
    %c0_i32_0 = arith.constant 0 : i32
    %c0_i32_1 = arith.constant 0 : i32
    %c0_i32_2 = arith.constant 0 : i32
    return %c0_i32, %c0_i32_0, %c0_i32_1 : i32, i32, i32
  }
  func.func @transform_6(%arg0: i32) -> (i32, i32, i32) {
    %c0_i32 = arith.constant 0 : i32
    %c0_i32_0 = arith.constant 0 : i32
    %c0_i32_1 = arith.constant 0 : i32
    %c0_i32_2 = arith.constant 0 : i32
    return %c0_i32, %c0_i32_0, %c0_i32_1 : i32, i32, i32
  }
  func.func @transform_7(%arg0: i32) -> (i32, i32, i32) {
    %c0_i32 = arith.constant 0 : i32
    %c0_i32_0 = arith.constant 0 : i32
    %c0_i32_1 = arith.constant 0 : i32
    %c0_i32_2 = arith.constant 0 : i32
    return %c0_i32, %c0_i32_0, %c0_i32_1 : i32, i32, i32
  }
  func.func @transform_8(%arg0: i32) -> (i32, i32, i32) {
    %c0_i32 = arith.constant 0 : i32
    %c0_i32_0 = arith.constant 0 : i32
    %c0_i32_1 = arith.constant 0 : i32
    %c0_i32_2 = arith.constant 0 : i32
    return %c0_i32, %c0_i32_0, %c0_i32_1 : i32, i32, i32
  }
  func.func @transform_9(%arg0: i32) -> (i32, i32, i32) {
    %c0_i32 = arith.constant 0 : i32
    %c0_i32_0 = arith.constant 0 : i32
    %c0_i32_1 = arith.constant 0 : i32
    %c0_i32_2 = arith.constant 0 : i32
    return %c0_i32, %c0_i32_0, %c0_i32_1 : i32, i32, i32
  }
  func.func @transform_10(%arg0: i32) -> (i32, i32) {
    %c0_i32 = arith.constant 0 : i32
    %c0_i32_0 = arith.constant 0 : i32
    %c0_i32_1 = arith.constant 0 : i32
    return %c0_i32, %c0_i32_0 : i32, i32
  }
  func.func @transform_11(%arg0: i32) -> (i32, i32, i32) {
    %c0_i32 = arith.constant 0 : i32
    %c0_i32_0 = arith.constant 0 : i32
    %c0_i32_1 = arith.constant 0 : i32
    return %arg0, %c0_i32, %c0_i32_0 : i32, i32, i32
  }
}

</mosaic_0001>

<bundles_post_ra>
// kernel: detr_vit_forward.2
= control target key start
LH: loop header
LB: loop body
LE: loop exit
PB: predicated region body
PF: predicated region fallthrough
CT: control target
= control target key end

     0   :  { %s5103_s13 = smov 0   ;;  %s5877_s0 = inlined_call_operand.vmem [shape: f32[2,16,192], index: 0, kind: input, shape index: {}]   ;;  %s5878_s1 = inlined_call_operand.vmem [shape: f32[16,64], index: 1, kind: input, shape index: {}]   ;;  %s5879_s2 = inlined_call_operand.vmem [shape: f32[192,32], index: 2, kind: input, shape index: {}]   ;;  %s5880_s3 = inlined_call_operand.vmem [shape: f32[32,64], index: 3, kind: input, shape index: {}]   ;;  %s5881_s4 = inlined_call_operand.vmem [shape: f32[8,128], index: 4, kind: input, shape index: {}]   ;;  %s5882_s5 = inlined_call_operand.vmem [shape: f32[2,64,128], index: 5, kind: input, shape index: {}]   ;;  %s5883_s6 = inlined_call_operand.vmem [shape: f32[2,2,64,64], index: 6, kind: input, shape index: {}]   ;;  %s5884_s7 = inlined_call_operand.vmem [shape: f32[2,64,128], index: 7, kind: input, shape index: {}]   ;;  %s5885_s8 = inlined_call_operand.vmem [shape: f32[2,128,64], index: 8, kind: input, shape index: {}]   ;;  %s5886_s9 = inlined_call_operand.vmem [shape: f32[2,8,128], index: 9, kind: input, shape index: {}]   ;;  %s5887_s10 = inlined_call_operand.vmem [shape: f32[2,16,64], index: 10, kind: output, shape index: {}]  }
   0x1 LB: > { %s3835_s14 = sadd.s32 4294967295, %s5038_s13   ;;  %p3839_p0 = scmp.ge.s32.totalorder %s5038_s13, 1  ;;  %s5038_s13 = sphi %s5103_s13, %s20_s13  }
   0x2   : > { %p312_p1 = scmp.lt.s32.totalorder %s5038_s13, 3 }
   0x4   : > { %p313_p2 = pnand %p3839_p0, %p312_p1 }
   0x5   : > { %v367_v0 = vld [vmem:[%s5879_s2] sm:$0xff] (!%p313_p2)  ;;  %v368_v1 = vld [vmem:[%s5879_s2 + $0x8] sm:$0xff] (!%p313_p2)  ;;  %v369_v2 = vld [vmem:[%s5879_s2 + $0x10] sm:$0xff] (!%p313_p2)  ;;  %p350_p3 = scmp.lt.s32.totalorder (!%p313_p2), %s3835_s14, 1  ;;  %v5040_v3 = vmov (!%p313_p2), 0.0|0.0   ;;  %vm395_vm0 = vcmask (!%p313_p2), 523264   ;;  %v391_v50 = vlaneseq (!%p313_p2) }
   0x6   : > { %316 = sbr.rel (%p313_p2) target bundleno = 6772 (0x1a74), region = 60  ;;  %4538 = vmatprep.subr.bf16.mxu0 (!%p313_p2), %v5040_v3  ;;  %v4539_v4 = vpack.c.bf16 (!%p313_p2), %v368_v1, %v367_v0  ;;  %v370_v5 = vld [vmem:[%s5879_s2 + $0x18] sm:$0xff] (!%p313_p2)  ;;  %v371_v7 = vld [vmem:[%s5879_s2 + $0x20] sm:$0xff] (!%p313_p2)  ;;  %v372_v8 = vld [vmem:[%s5879_s2 + $0x28] sm:$0xff] (!%p313_p2)  ;;  %vm487_vm1 = vcmask (!%p313_p2), 261120   ;;  %vm776_vm2 = vcmask (!%p313_p2), 130048  }
   0x7   : > { %v4542_v6 = vpack.c.bf16 (!%p313_p2), %v370_v5, %v369_v2  ;;  %v4545_v9 = vpack.c.bf16 (!%p313_p2), %v372_v8, %v371_v7  ;;  %v373_v10 = vld [vmem:[%s5879_s2 + $0x30] sm:$0xff] (!%p313_p2)  ;;  %v374_v11 = vld [vmem:[%s5879_s2 + $0x38] sm:$0xff] (!%p313_p2)  ;;  %v375_v14 = vld [vmem:[%s5879_s2 + $0x40] sm:$0xff] (!%p313_p2)  ;;  %v5215_v51 = vshrl.u32 (!%p313_p2), %v391_v50, 7  ;;  %s5041_s26 = smov (!%p313_p2), 64   ;;  %s5043_s28 = smov (!%p313_p2), 48  }
   0x8   : > { %4540 = vmatpush1.bf16.msra.mxu0 (!%p313_p2), %v4539_v4  ;;  %v4548_v13 = vpack.c.bf16 (!%p313_p2), %v374_v11, %v373_v10  ;;  %v376_v15 = vld [vmem:[%s5879_s2 + $0x48] sm:$0xff] (!%p313_p2)  ;;  %v377_v17 = vld [vmem:[%s5879_s2 + $0x50] sm:$0xff] (!%p313_p2)  ;;  %v378_v18 = vld [vmem:[%s5879_s2 + $0x58] sm:$0xff] (!%p313_p2)  ;;  %s5044_s29 = smov (!%p313_p2), 96   ;;  %s5045_s11 = smov (!%p313_p2), 32  }
   0x9   : > { %4541 = vmatprep.subr.bf16.mxu0 (!%p313_p2), %v5040_v3  ;;  %v4551_v16 = vpack.c.bf16 (!%p313_p2), %v376_v15, %v375_v14  ;;  %v4554_v19 = vpack.c.bf16 (!%p313_p2), %v378_v18, %v377_v17  ;;  %v379_v20 = vld [vmem:[%s5879_s2 + $0x60] sm:$0xff] (!%p313_p2)  ;;  %v380_v21 = vld [vmem:[%s5879_s2 + $0x68] sm:$0xff] (!%p313_p2)  ;;  %v381_v23 = vld [vmem:[%s5879_s2 + $0x70] sm:$0xff] (!%p313_p2)  ;;  %v5218_v52 = vsub.s32 (!%p313_p2), 0, %v5215_v51  ;;  %v5249_v11 = vsub.s32 (!%p313_p2), 1, %v5215_v51  ;;  %s5046_s12 = smov (!%p313_p2), 80  }
   0xa   : > { %v4557_v22 = vpack.c.bf16 (!%p313_p2), %v380_v21, %v379_v20  ;;  %v382_v24 = vld [vmem:[%s5879_s2 + $0x78] sm:$0xff] (!%p313_p2)  ;;  %v383_v26 = vld [vmem:[%s5879_s2 + $0x80] sm:$0xff] (!%p313_p2)  ;;  %v384_v27 = vld [vmem:[%s5879_s2 + $0x88] sm:$0xff] (!%p313_p2)  ;;  %s5047_s15 = smov (!%p313_p2), 16  }
   0xb   : > { %v4560_v25 = vpack.c.bf16 (!%p313_p2), %v382_v24, %v381_v23  ;;  %v4563_v28 = vpack.c.bf16 (!%p313_p2), %v384_v27, %v383_v26  ;;  %v385_v29 = vld [vmem:[%s5879_s2 + $0x90] sm:$0xff] (!%p313_p2)  ;;  %v386_v30 = vld [vmem:[%s5879_s2 + $0x98] sm:$0xff] (!%p313_p2)  ;;  %v387_v32 = vld [vmem:[%s5879_s2 + $0xa0] sm:$0xff] (!%p313_p2) }
   0xc   : > { %4543 = vmatpush1.bf16.msra.mxu0 (!%p313_p2), %v4542_v6  ;;  %v4566_v31 = vpack.c.bf16 (!%p313_p2), %v386_v30, %v385_v29  ;;  %v388_v33 = vld [vmem:[%s5879_s2 + $0xa8] sm:$0xff] (!%p313_p2)  ;;  %v389_v35 = vld [vmem:[%s5879_s2 + $0xb0] sm:$0xff] (!%p313_p2)  ;;  %v390_v36 = vld [vmem:[%s5879_s2 + $0xb8] sm:$0xff] (!%p313_p2) }
   0xd   : > { %s5891_s14 = smov (!%p350_p3, %s3835_s14), 1  ;;  %4544 = vmatprep.subr.bf16.mxu0 %v5040_v3  ;;  %v4569_v34 = vpack.c.bf16 %v388_v33, %v387_v32  ;;  %v4572_v37 = vpack.c.bf16 %v390_v36, %v389_v35  ;;  %v479_v41 = vld [vmem:[%s5880_s3] sm:$0xff]  ;;  %v480_v42 = vld [vmem:[%s5880_s3 + $0x8] sm:$0xff]  ;;  %v481_v44 = vld [vmem:[%s5880_s3 + $0x10] sm:$0xff] }
   0xe   : > { %s3975_s27 = sshll.u32 %s5891_s14, 5  ;;  %v4574_v43 = vpack.c.bf16 %v480_v42, %v479_v41  ;;  %v482_v45 = vld [vmem:[%s5880_s3 + $0x18] sm:$0xff]  ;;  %v588_v47 = vld [vmem:[%s5882_s5] sm:$0xff]  ;;  %v589_v48 = vld [vmem:[%s5882_s5 + $0x8] sm:$0xff] }
   0xf   : > { %s5135_s30 = scalar_lea.vmem %s5877_s0, %s3975_s27  ;;  %v4578_v46 = vpack.c.bf16 %v482_v45, %v481_v44  ;;  %v4582_v49 = vpack.c.bf16 %v589_v48, %v588_v47  ;;  %v362_v53 = vld [vmem:[%s5881_s4] sm:$0xff]  ;;  %v590_v60 = vld [vmem:[%s5882_s5 + $0x10] sm:$0xff]  ;;  %v591_v61 = vld [vmem:[%s5882_s5 + $0x18] sm:$0xff]  ;;  %s5042_s27 = smov 112  }
  0x10   : > { %v364_v12 = vld [vmem:[%s5135_s30 + $0x8] sm:$0xff]  ;;  %4546 = vmatpush1.bf16.msra.mxu0 %v4545_v9  ;;  %v363_v38 = vld [vmem:[%s5135_s30] sm:$0xff]  ;;  %v366_v39 = vld [vmem:[%s5135_s30 + $0x18] sm:$0xff]  ;;  %4575 = vmatprep.subr.bf16.mxu1 %v4574_v43  ;;  %v394_v54 = vrot.slane %v362_v53, %v5218_v52  ;;  %v4586_v1 = vpack.c.bf16 %v591_v61, %v590_v60 }
  0x11   : > { %3844 = vmatprep.mubr.msk.f32.mxu0 %vm395_vm0, %v364_v12  ;;  %4547 = vmatprep.subr.bf16.mxu0 %v5040_v3  ;;  %v365_v40 = vld [vmem:[%s5135_s30 + $0x10] sm:$0xff]  ;;  %v592_v2 = vld [vmem:[%s5882_s5 + $0x20] sm:$0xff]  ;;  %v595_v6 = vld [vmem:[%s5882_s5 + $0x38] sm:$0xff]  ;;  %v486_v12 = vrot.slane %v362_v53, %v5249_v11  ;;  %s3976_s30 = sshll.u32 %s5891_s14, 4 }
  0x12   : > { %4577 = vmatpush3.bf16.msra.mxu1 %v4574_v43  ;;  %v594_v5 = vld [vmem:[%s5882_s5 + $0x30] sm:$0xff]  ;;  %v570_v8 = vld [vmem:[%s5883_s6] sm:$0xff]  ;;  %v571_v9 = vld [vmem:[%s5883_s6 + $0x8] sm:$0xff] }
  0x13   : > { %4579 = vmatprep.subr.bf16.mxu1 %v4578_v46  ;;  %v4594_v7 = vpack.c.bf16 %v595_v6, %v594_v5  ;;  %v4598_v10 = vpack.c.bf16 %v571_v9, %v570_v8  ;;  %v5257_v15 = vld [vmem:[%s5878_s1] sm:$0xff]  ;;  %v5262_v17 = vld [vmem:[%s5878_s1 + $0x8] sm:$0xff]  ;;  %v573_v20 = vld [vmem:[%s5883_s6 + $0x18] sm:$0xff] }
  0x14   : > { %4549 = vmatpush1.bf16.msra.mxu0 %v4548_v13  ;;  %v574_v24 = vld [vmem:[%s5883_s6 + $0x20] sm:$0xff]  ;;  %v576_v27 = vld [vmem:[%s5883_s6 + $0x30] sm:$0xff]  ;;  %vm5328_vm3 = vmpackc.low %vm776_vm2, %vm776_vm2 }
  0x15   : > { %4550 = vmatprep.subr.bf16.mxu0 %v5040_v3  ;;  %v5297_v30 = vld [vmem:[%s5886_s9] sm:$0xff] }
  0x16   : > { %4581 = vmatpush3.bf16.msra.mxu1 %v4578_v46 }
  0x17   : > { %4583 = vmatprep.subr.bf16.mxu1 %v4582_v49 }
  0x18   : > { %4552 = vmatpush1.bf16.msra.mxu0 %v4551_v16 }
  0x19   : > { %4553 = vmatprep.subr.bf16.mxu0 %v5040_v3 }
  0x1c   : > { %4555 = vmatpush1.bf16.msra.mxu0 %v4554_v19  ;;  %v572_v19 = vld [vmem:[%s5883_s6 + $0x10] sm:$0xff] }
  0x1d   : > { %4556 = vmatprep.subr.bf16.mxu0 %v5040_v3  ;;  %v4602_v23 = vpack.c.bf16 %v573_v20, %v572_v19 }
  0x20   : > { %4558 = vmatpush1.bf16.msra.mxu0 %v4557_v22 }
  0x21   : > { %4559 = vmatprep.subr.bf16.mxu0 %v5040_v3 }
  0x24   : > { %4561 = vmatpush1.bf16.msra.mxu0 %v4560_v25  ;;  %v575_v25 = vld [vmem:[%s5883_s6 + $0x28] sm:$0xff] }
  0x25   : > { %4562 = vmatprep.subr.bf16.mxu0 %v5040_v3  ;;  %v4606_v26 = vpack.c.bf16 %v575_v25, %v574_v24 }
  0x28   : > { %4564 = vmatpush1.bf16.msra.mxu0 %v4563_v28  ;;  %v577_v28 = vld [vmem:[%s5883_s6 + $0x38] sm:$0xff] }
  0x29   : > { %4565 = vmatprep.subr.bf16.mxu0 %v5040_v3  ;;  %v4610_v29 = vpack.c.bf16 %v577_v28, %v576_v27  ;;  %v578_v28 = vld [vmem:[%s5883_s6 + $0x40] sm:$0xff] }
  0x2c   : > { %4567 = vmatpush1.bf16.msra.mxu0 %v4566_v31  ;;  %v680_v31 = vrot.slane %v5297_v30, %v5218_v52 }
  0x2d   : > { %4568 = vmatprep.subr.bf16.mxu0 %v5040_v3 }
  0x30   : > { %4570 = vmatpush1.bf16.msra.mxu0 %v4569_v34 }
  0x31   : > { %4571 = vmatprep.subr.bf16.mxu0 %v5040_v3  ;;  %v593_v3 = vld [vmem:[%s5882_s5 + $0x28] sm:$0xff] }
  0x32   : > { %v4590_v4 = vpack.c.bf16 %v593_v3, %v592_v2 }
  0x34   : > { %4573 = vmatpush1.bf16.msra.mxu0 %v4572_v37 }
  0x37   : > { %467 = vmatmul.mubr.f32.vlgmr.msra.gmra.mrb[0].mxu0 %v363_v38 }
  0x38   : > { %3845 = vmatprep.mubr.msk.f32.mxu0 %vm395_vm0, %v366_v39  ;;  %v5319_v39 = vrot.slane %v5297_v30, %v5249_v11 }
  0x3b   : > { %472 = vmatmul.mubr.f32.gmra.mrb[2].mxu0 %v365_v40 }
 0x10a   : > { %v468_v55 = vpop.f32.mrb[0].mxu0 }
 0x10b   : > { %v469_v56 = vadd.f32 %v468_v55, %v394_v54  ;;  %v470_v57 = vpop.f32.mrb[1].mxu0 }
 0x10d   : > { %v477_v58 = vmax.f32 %v469_v56, 0.0 }
 0x10e   : > { %v473_v59 = vpop.f32.mrb[2].mxu0 }
 0x10f   : > { %v474_v62 = vadd.f32 %v473_v59, %v394_v54  ;;  %v475_v63 = vpop.f32.mrb[3].mxu0  ;;  %4183 = vmatprep.mubr.msk.f32.mxu1 %vm487_vm1, %v477_v58 }
 0x111   : > { %v478_v0 = vmax.f32 %v474_v62, 0.0 }
 0x113   : > { %4184 = vmatmul.mubr.msk.f32.vlgmr.msra.gmra.mrb[0].mxu1 %vm487_vm1, %v478_v0 }
 0x114   : > { %4585 = vmatpush3.bf16.msra.mxu1 %v4582_v49 }
 0x115   : > { %4587 = vmatprep.subr.bf16.mxu1 %v4586_v1 }
 0x118   : > { %4589 = vmatpush3.bf16.msra.mxu1 %v4586_v1 }
 0x119   : > { %4591 = vmatprep.subr.bf16.mxu1 %v4590_v4 }
 0x11c   : > { %4593 = vmatpush3.bf16.msra.mxu1 %v4590_v4 }
 0x11d   : > { %4595 = vmatprep.subr.bf16.mxu1 %v4594_v7 }
 0x120   : > { %4597 = vmatpush3.bf16.msra.mxu1 %v4594_v7 }
 0x121   : > { %4599 = vmatprep.subr.bf16.mxu1 %v4598_v10 }
 0x1e6   : > { %v4185_v13 = vpop.f32.mrb[0].mxu1 }
 0x1e7   : > { %v5252_v14 = vadd.f32 %v4185_v13, %v486_v12  ;;  %v560_v16 = vpop.f32.mrb[1].mxu1 }
 0x1e8   : > { %v5264_v18 = vadd.f32 %v560_v16, %v486_v12 }
 0x1e9   : > { %v587_v22 = vadd.f32 %v5252_v14, %v5262_v17 }
 0x1ea   : > { %v586_v21 = vadd.f32 %v5264_v18, %v5257_v15 }
 0x1ec   : > { %4202 = vmatprep.mubr.msk.f32.mxu1 %vm395_vm0, %v586_v21 }
 0x1ed   : > { %4203 = vmatmul.mubr.msk.f32.vlgmr.msra.gmra.mrb[2].mxu1 %vm395_vm0, %v587_v22 }
 0x1ee   : > { %4601 = vmatpush3.bf16.msra.mxu1 %v4598_v10  ;;  %4221 = vmatprep.mubr.msk.f32.mxu1 %vm395_vm0, %v5264_v18 }
 0x1ef   : > { %4603 = vmatprep.subr.bf16.mxu1 %v4602_v23 }
 0x1f2   : > { %4605 = vmatpush3.bf16.msra.mxu1 %v4602_v23 }
 0x1f3   : > { %4607 = vmatprep.subr.bf16.mxu1 %v4606_v26 }
 0x1f6   : > { %4609 = vmatpush3.bf16.msra.mxu1 %v4606_v26 }
 0x1f7   : > { %4611 = vmatprep.subr.bf16.mxu1 %v4610_v29 }
 0x1fa   : > { %4613 = vmatpush3.bf16.msra.mxu1 %v4610_v29  ;;  %v579_v29 = vld [vmem:[%s5883_s6 + $0x48] sm:$0xff] }
 0x1fd   : > { %4222 = vmatmul.mubr.msk.f32.vlgmr.msra.gmra.mrb[4].mxu1 %vm395_vm0, %v5252_v14 }
 0x2c0   : > { %v4204_v32 = vpop.f32.mrb[2].mxu1 }
 0x2c1   : > { %v682_v33 = vadd.f32 %v4204_v32, %v680_v31  ;;  %v668_v34 = vpop.f32.mrb[3].mxu1 }
 0x2c2   : > { %v681_v35 = vadd.f32 %v680_v31, %v668_v34  ;;  %v4638_v31 = vpack.c.bf16 %v579_v29, %v578_v28 }
 0x2c3   : > { %v5311_v38 = vmul.f32 0.25, %v682_v33 }
 0x2c4   : > { %v5301_v36 = vpack.i.bf16 %v682_v33, %v681_v35  ;;  %v5303_v37 = vmul.f32 0.25, %v681_v35 }
 0x2c6   : > { %4883 = vrot.lane.b32.xlu0 %v5301_v36, %s5041_s26  ;;  %965 = vrot.lane.b32.xlu1 %v5303_v37, %s5042_s27 }
 0x2c7   : > { %4228 = vmatprep.mubr.msk.f32.mxu1 %vm776_vm2, %v5303_v37 }
 0x2ca   : > { %4888 = vrot.lane.b32.xlu0 %v5301_v36, %s5043_s28  ;;  %967 = vrot.lane.b32.xlu1 %v5311_v38, %s5042_s27 }
 0x2d0   : > { %v4223_v40 = vpop.f32.mrb[4].mxu1 }
 0x2d1   : > { %v765_v41 = vadd.f32 %v4223_v40, %v5319_v39  ;;  %v759_v42 = vpop.f32.mrb[5].mxu1 }
 0x2d2   : > { %v760_v43 = vadd.f32 %v759_v42, %v5319_v39  ;;  %v580_v42 = vld [vmem:[%s5883_s6 + $0x50] sm:$0xff] }
 0x2d4   : > { %v4620_v44 = vpack.c.bf16 %v765_v41, %v760_v43  ;;  %v5323_v45 = vpack.i.bf16 %v765_v41, %v760_v43 }
 0x338   : > { %v4884_v46 = vpop.permute.xlu0 %4883  ;;  %v966_v47 = vpop.permute.xlu1 %965 }
 0x339   : > { %v4886_v48 = vunpack.i.h.bf16 %v4884_v46  ;;  %v4885_v49 = vunpack.i.l.bf16 %v4884_v46  ;;  %4242 = vmatprep.mubr.msk.f32.mxu0 %vm776_vm2, %v966_v47 }
 0x33b   : > { %v4614_v53 = vpack.c.bf16 %v4886_v48, %v4885_v49 }
 0x33c   : > { %v4889_v54 = vpop.permute.xlu0 %4888  ;;  %v968_v58 = vpop.permute.xlu1 %967 }
 0x33d   : > { %v4891_v55 = vunpack.i.h.bf16 %v4889_v54  ;;  %v4890_v56 = vunpack.i.l.bf16 %v4889_v54  ;;  %4616 = vmatprep.subr.msk.bf16.mxu1 %vm5328_vm3, %v4614_v53 }
 0x33e   : > { %4619 = vmatpush3.bf16.xpose.msk.msra.mxu1 %vm5328_vm3, %v4614_v53 }
 0x33f   : > { %v4624_v57 = vpack.c.bf16 %v4891_v55, %v4890_v56  ;;  %4621 = vmatprep.subr.bf16.mxu1 %v4620_v44 }
 0x341   : > { %4626 = vmatprep.subr.msk.bf16.mxu0 %vm5328_vm3, %v4624_v57 }
 0x342   : > { %4629 = vmatpush3.bf16.xpose.msk.msra.mxu0 %vm5328_vm3, %v4624_v57 }
 0x343   : > { %4639 = vmatprep.subr.bf16.mxu0 %v4638_v31 }
 0x345   : > { %4229 = vmatmul.mubr.msk.f32.vlgmr.msra.gmra.mrb[6].mxu1 %vm776_vm2, %v5311_v38 }
 0x346   : > { %4623 = vmatpush3.bf16.msra.mxu1 %v4620_v44 }
 0x349   : > { %4243 = vmatmul.mubr.msk.f32.vlgmr.msra.gmra.mrb[4].mxu0 %vm776_vm2, %v968_v58 }
 0x34a   : > { %4641 = vmatpush3.bf16.msra.mxu0 %v4638_v31 }
 0x418   : > { %v4230_v59 = vpop.f32.mrb[6].mxu1 }
 0x419   : > { %v853_v60 = vpop.f32.mrb[7].mxu1  ;;  %v865_v61 = vsel %vm776_vm2, %v4230_v59, -inf }
 0x41a   : > { %866 = vmax.xlane.f32.xlu1 %v865_v61  ;;  %v862_v62 = vsel %vm776_vm2, %v853_v60, -inf }
 0x41b   : > { %863 = vmax.xlane.f32.xlu0 %v862_v62 }
 0x41c   : > { %v4244_v63 = vpop.f32.mrb[4].mxu0 }
 0x41d   : > { %v1047_v0 = vpop.f32.mrb[5].mxu0  ;;  %v1059_v2 = vsel %vm776_vm2, %v4244_v63, -inf }
 0x41e   : > { %v1056_v1 = vsel %vm776_vm2, %v1047_v0, -inf }
 0x41f   : > { %1057 = vmax.xlane.f32.xlu0 %v1056_v1 }
 0x423   : > { %1060 = vmax.xlane.f32.xlu0 %v1059_v2 }
 0x4a7   : > { %v867_v3 = vpop.xlane.xlu1 %866 }
 0x4a8   : > { %v869_v4 = vsub.f32 %v4230_v59, %v867_v3  ;;  %v864_v5 = vpop.xlane.xlu0 %863 }
 0x4a9   : > { %v868_v6 = vsub.f32 %v853_v60, %v864_v5 }
 0x4aa   : > { %v872_v7 = vmul.f32 1.442695, %v869_v4 }
 0x4ab   : > { %v870_v8 = vmul.f32 1.442695, %v868_v6 }
 0x4ac   : > { %4952 = vpow2.f32 %v872_v7  ;;  %v1058_v9 = vpop.xlane.xlu0 %1057 }
 0x4ad   : > { %4954 = vpow2.f32 %v870_v8  ;;  %v1062_v10 = vsub.f32 %v1047_v0, %v1058_v9 }
 0x4af   : > { %v1064_v12 = vmul.f32 1.442695, %v1062_v10 }
 0x4b0   : > { %v1061_v13 = vpop.xlane.xlu0 %1060 }
 0x4b1   : > { %4956 = vpow2.f32 %v1064_v12  ;;  %v1063_v16 = vsub.f32 %v4244_v63, %v1061_v13 }
 0x4b3   : > { %v1066_v19 = vmul.f32 1.442695, %v1063_v16 }
 0x4b5   : > { %4958 = vpow2.f32 %v1066_v19 }
 0x4b6   : > { %v4953_v20 = vpop.eup %4952 }
 0x4b7   : > { %v4955_v21 = vpop.eup %4954  ;;  %v877_v22 = vsel %vm776_vm2, %v4953_v20, 0.0 }
 0x4b8   : > { %878 = vadd.xlane.f32.xlu0 %v877_v22  ;;  %v874_v23 = vsel %vm776_vm2, %v4955_v21, 0.0 }
 0x4b9   : > { %875 = vadd.xlane.f32.xlu1 %v874_v23 }
 0x4bb   : > { %v4957_v24 = vpop.eup %4956 }
 0x4bc   : > { %v1068_v25 = vsel %vm776_vm2, %v4957_v24, 0.0 }
 0x4bd   : > { %1069 = vadd.xlane.f32.xlu1 %v1068_v25 }
 0x4bf   : > { %v4959_v26 = vpop.eup %4958 }
 0x4c0   : > { %v1071_v27 = vsel %vm776_vm2, %v4959_v26, 0.0 }
 0x4c1   : > { %1072 = vadd.xlane.f32.xlu0 %v1071_v27 }
 0x4ce   : > { %4893 = vrot.lane.b32.xlu1 %v5323_v45, %s5042_s27 }
 0x4d2   : > { %1329 = vrot.lane.b32.xlu1 %v5303_v37, %s5044_s29 }
 0x4d6   : > { %1331 = vrot.lane.b32.xlu1 %v5311_v38, %s5044_s29 }
 0x4d7   : > { %4898 = vrot.lane.b32.xlu0 %v5301_v36, %s5045_s11 }
 0x4da   : > { %1612 = vrot.lane.b32.xlu1 %v5303_v37, %s5046_s12 }
 0x4db   : > { %4903 = vrot.lane.b32.xlu0 %v5301_v36, %s5047_s15 }
 0x4df   : > { %1614 = vrot.lane.b32.xlu0 %v5311_v38, %s5046_s12  ;;  %v581_v38 = vld [vmem:[%s5883_s6 + $0x58] sm:$0xff] }
 0x4e0   : > { %v4634_v48 = vpack.c.bf16 %v581_v38, %v580_v42 }
 0x545   : > { %v879_v32 = vpop.xlane.xlu0 %878 }
 0x546   : > { %4960 = vrcp.f32 %v879_v32  ;;  %v876_v33 = vpop.xlane.xlu1 %875 }
 0x547   : > { %4962 = vrcp.f32 %v876_v33 }
 0x54a   : > { %v1070_v34 = vpop.xlane.xlu1 %1069 }
 0x54b   : > { %4964 = vrcp.f32 %v1070_v34 }
 0x54e   : > { %v4894_v35 = vpop.permute.xlu1 %4893  ;;  %v1073_v36 = vpop.xlane.xlu0 %1072 }
 0x54f   : > { %v4896_v37 = vunpack.i.h.bf16 %v4894_v35  ;;  %v4895_v40 = vunpack.i.l.bf16 %v4894_v35  ;;  %4966 = vrcp.f32 %v1073_v36 }
 0x550   : > { %v4961_v41 = vpop.eup %4960 }
 0x551   : > { %v4963_v43 = vpop.eup %4962  ;;  %v4630_v44 = vpack.c.bf16 %v4896_v37, %v4895_v40  ;;  %v883_v47 = vmul.f32 %v4961_v41, %v4953_v20 }
 0x552   : > { %v881_v46 = vmul.f32 %v4963_v43, %v4955_v21  ;;  %v4899_v53 = vpop.permute.xlu0 %4898  ;;  %v1330_v63 = vpop.permute.xlu1 %1329 }
 0x553   : > { %4631 = vmatprep.subr.bf16.mxu1 %v4630_v44  ;;  %v4901_v55 = vunpack.i.h.bf16 %v4899_v53  ;;  %v4900_v56 = vunpack.i.l.bf16 %v4899_v53 }
 0x554   : > { %4235 = vmatprep.mubr.msk.f32.mxu1 %vm776_vm2, %v881_v46 }
 0x555   : > { %v4965_v49 = vpop.eup %4964  ;;  %4236 = vmatmul.mubr.msk.f32.vlgmr.msra.gmra.mrb[8].mxu1 %vm776_vm2, %v883_v47  ;;  %v4642_v59 = vpack.c.bf16 %v4901_v55, %v4900_v56 }
 0x556   : > { %4633 = vmatpush3.bf16.msra.mxu1 %v4630_v44  ;;  %v1075_v54 = vmul.f32 %v4965_v49, %v4957_v24  ;;  %v4904_v62 = vpop.permute.xlu0 %4903  ;;  %v1332_v5 = vpop.permute.xlu1 %1331 }
 0x557   : > { %4635 = vmatprep.subr.bf16.mxu1 %v4634_v48  ;;  %v4906_v0 = vunpack.i.h.bf16 %v4904_v62  ;;  %v4905_v1 = vunpack.i.l.bf16 %v4904_v62 }
 0x558   : > { %4249 = vmatprep.mubr.msk.f32.mxu1 %vm776_vm2, %v1075_v54 }
 0x559   : > { %v4967_v57 = vpop.eup %4966  ;;  %v4656_v4 = vpack.c.bf16 %v4906_v0, %v4905_v1 }
 0x55a   : > { %v1077_v58 = vmul.f32 %v4967_v57, %v4959_v26  ;;  %v1613_v6 = vpop.permute.xlu1 %1612  ;;  %v1615_v7 = vpop.permute.xlu0 %1614 }
 0x55c   : > { %4250 = vmatmul.mubr.msk.f32.vlgmr.msra.gmra.mrb[10].mxu1 %vm776_vm2, %v1077_v58  ;;  %v582_v58 = vld [vmem:[%s5883_s6 + $0x60] sm:$0xff] }
 0x55d   : > { %4637 = vmatpush3.bf16.msra.mxu1 %v4634_v48 }
 0x55e   : > { %4644 = vmatprep.subr.msk.bf16.mxu1 %vm5328_vm3, %v4642_v59 }
 0x628   : > { %v4237_v60 = vpop.f32.mrb[8].mxu1 }
 0x629   : > { %v956_v61 = vpop.f32.mrb[9].mxu1 }
 0x62a   : > { %4263 = vmatprep.mubr.msk.f32.mxu0 %vm776_vm2, %v956_v61 }
 0x62b   : > { %4264 = vmatmul.mubr.msk.f32.vlgmr.msra.gmra.mrb[6].mxu0 %vm776_vm2, %v4237_v60 }
 0x62f   : > { %v4251_v2 = vpop.f32.mrb[10].mxu1 }
 0x630   : > { %v1158_v3 = vpop.f32.mrb[11].mxu1 }
 0x631   : > { %4256 = vmatprep.mubr.msk.f32.mxu1 %vm776_vm2, %v1158_v3  ;;  %v585_v3 = vld [vmem:[%s5883_s6 + $0x78] sm:$0xff] }
 0x632   : > { %4257 = vmatmul.mubr.msk.f32.vlgmr.msra.gmra.mrb[12].mxu1 %vm776_vm2, %v4251_v2 }
 0x633   : > { %4647 = vmatpush3.bf16.xpose.msk.msra.mxu1 %vm5328_vm3, %v4642_v59  ;;  %4270 = vmatprep.mubr.msk.f32.mxu1 %vm776_vm2, %v1330_v63  ;;  %v583_v59 = vld [vmem:[%s5883_s6 + $0x68] sm:$0xff] }
 0x634   : > { %4658 = vmatprep.subr.msk.bf16.mxu1 %vm5328_vm3, %v4656_v4  ;;  %v4652_v60 = vpack.c.bf16 %v583_v59, %v582_v58  ;;  %v2039_v58 = vld [vmem:[%s5885_s8 + $0x10] sm:$0xff] }
 0x63a   : > { %4271 = vmatmul.mubr.msk.f32.vlgmr.msra.gmra.mrb[14].mxu1 %vm776_vm2, %v1332_v5 }
 0x63b   : > { %4661 = vmatpush3.bf16.xpose.msk.msra.mxu1 %vm5328_vm3, %v4656_v4  ;;  %4291 = vmatprep.mubr.msk.f32.mxu1 %vm776_vm2, %v1613_v6 }
 0x642   : > { %4292 = vmatmul.mubr.msk.f32.vlgmr.msra.gmra.mrb[16].mxu1 %vm776_vm2, %v1615_v7 }
 0x705   : > { %v5397_v8 = vpop.f32.mrb[12].mxu1 }
 0x706   : > { %v5399_v9 = vpop.f32.mrb[13].mxu1 }
 0x70d   : > { %v4272_v10 = vpop.f32.mrb[14].mxu1 }
 0x70e   : > { %v1411_v12 = vpop.f32.mrb[15].mxu1  ;;  %v1423_v13 = vsel %vm776_vm2, %v4272_v10, -inf }
 0x70f   : > { %1424 = vmax.xlane.f32.xlu0 %v1423_v13  ;;  %v1420_v16 = vsel %vm776_vm2, %v1411_v12, -inf }
 0x710   : > { %1421 = vmax.xlane.f32.xlu1 %v1420_v16 }
 0x715   : > { %v4293_v19 = vpop.f32.mrb[16].mxu1 }
 0x716   : > { %v1694_v20 = vpop.f32.mrb[17].mxu1  ;;  %v1706_v33 = vsel %vm776_vm2, %v4293_v19, -inf }
 0x717   : > { %v1703_v32 = vsel %vm776_vm2, %v1694_v20, -inf }
 0x79c   : > { %v1425_v21 = vpop.xlane.xlu0 %1424 }
 0x79d   : > { %v1427_v22 = vsub.f32 %v4272_v10, %v1425_v21  ;;  %v1422_v23 = vpop.xlane.xlu1 %1421 }
 0x79e   : > { %v1426_v24 = vsub.f32 %v1411_v12, %v1422_v23 }
 0x79f   : > { %v1430_v25 = vmul.f32 1.442695, %v1427_v22 }
 0x7a0   : > { %v1428_v26 = vmul.f32 1.442695, %v1426_v24 }
 0x7a1   : > { %4968 = vpow2.f32 %v1430_v25 }
 0x7a2   : > { %4970 = vpow2.f32 %v1428_v26 }
 0x7ab   : > { %v4969_v27 = vpop.eup %4968 }
 0x7ac   : > { %v4971_v28 = vpop.eup %4970  ;;  %v1435_v29 = vsel %vm776_vm2, %v4969_v27, 0.0 }
 0x7ad   : > { %1436 = vadd.xlane.f32.xlu1 %v1435_v29  ;;  %v1432_v31 = vsel %vm776_vm2, %v4971_v28, 0.0 }
 0x7ae   : > { %1433 = vadd.xlane.f32.xlu0 %v1432_v31 }
 0x7b1   : > { %1704 = vmax.xlane.f32.xlu1 %v1703_v32 }
 0x7b5   : > { %1707 = vmax.xlane.f32.xlu1 %v1706_v33 }
 0x7c4   : > { %4908 = vrot.lane.b32.xlu0 %v5323_v45, %s5044_s29 }
 0x7c8   : > { %1896 = vrot.lane.b32.xlu0 %v5319_v39, %s5041_s26 }
 0x83a   : > { %v1437_v34 = vpop.xlane.xlu1 %1436 }
 0x83b   : > { %4972 = vrcp.f32 %v1437_v34  ;;  %v1434_v35 = vpop.xlane.xlu0 %1433 }
 0x83c   : > { %4974 = vrcp.f32 %v1434_v35 }
 0x83e   : > { %v1705_v36 = vpop.xlane.xlu1 %1704 }
 0x83f   : > { %v4909_v37 = vpop.permute.xlu0 %4908  ;;  %v1709_v42 = vsub.f32 %v1694_v20, %v1705_v36 }
 0x840   : > { %v4911_v40 = vunpack.i.h.bf16 %v4909_v37  ;;  %v4910_v41 = vunpack.i.l.bf16 %v4909_v37 }
 0x841   : > { %v1711_v47 = vmul.f32 1.442695, %v1709_v42  ;;  %v1943_v42 = vld [vmem:[%s5884_s7 + $0x8] sm:$0xff] }
 0x842   : > { %v4648_v38 = vpack.c.bf16 %v4911_v40, %v4910_v41  ;;  %v1708_v43 = vpop.xlane.xlu1 %1707  ;;  %v1932_v40 = vsub.s32 2, %v5215_v51  ;;  %v1942_v41 = vld [vmem:[%s5884_s7] sm:$0xff] }
 0x843   : > { %v1710_v44 = vsub.f32 %v4293_v19, %v1708_v43  ;;  %v1897_v21 = vpop.permute.xlu0 %1896  ;;  %v4670_v43 = vpack.c.bf16 %v1943_v42, %v1942_v41 }
 0x844   : > { %4649 = vmatprep.subr.bf16.mxu0 %v4648_v38 }
 0x845   : > { %v4973_v46 = vpop.eup %4972  ;;  %v1713_v48 = vmul.f32 1.442695, %v1710_v44  ;;  %4651 = vmatpush3.bf16.msra.mxu0 %v4648_v38  ;;  %v5461_v38 = vrot.slane %v5297_v30, %v1932_v40  ;;  %v1944_v44 = vld [vmem:[%s5884_s7 + $0x10] sm:$0xff]  ;;  %4671 = vmatprep.subr.bf16.mxu1 %v4670_v43 }
 0x846   : > { %v4975_v49 = vpop.eup %4974  ;;  %v1441_v53 = vmul.f32 %v4973_v46, %v4969_v27  ;;  %4653 = vmatprep.subr.bf16.mxu0 %v4652_v60  ;;  %v1945_v46 = vld [vmem:[%s5884_s7 + $0x18] sm:$0xff]  ;;  %4673 = vmatpush3.bf16.msra.mxu1 %v4670_v43 }
 0x847   : > { %4976 = vpow2.f32 %v1713_v48  ;;  %v1439_v39 = vmul.f32 %v4975_v49, %v4971_v28  ;;  %v1946_v48 = vld [vmem:[%s5884_s7 + $0x20] sm:$0xff]  ;;  %v1947_v49 = vld [vmem:[%s5884_s7 + $0x28] sm:$0xff] }
 0x848   : > { %4978 = vpow2.f32 %v1711_v47  ;;  %v4674_v47 = vpack.c.bf16 %v1945_v46, %v1944_v44  ;;  %v2055_v44 = vsub.s32 5, %v5215_v51 }
 0x849   : > { %4277 = vmatprep.mubr.msk.f32.mxu0 %vm776_vm2, %v1439_v39  ;;  %v4678_v39 = vpack.c.bf16 %v1947_v49, %v1946_v48 }
 0x84a   : > { %4278 = vmatmul.mubr.msk.f32.vlgmr.msra.gmra.mrb[8].mxu0 %vm776_vm2, %v1441_v53  ;;  %4675 = vmatprep.subr.bf16.mxu1 %v4674_v47  ;;  %v1948_v53 = vld [vmem:[%s5884_s7 + $0x30] sm:$0xff]  ;;  %v2056_v46 = vrot.slane %v5297_v30, %v2055_v44 }
 0x84b   : > { %4655 = vmatpush3.bf16.msra.mxu0 %v4652_v60  ;;  %4677 = vmatpush3.bf16.msra.mxu1 %v4674_v47  ;;  %v2040_v60 = vld [vmem:[%s5885_s8 + $0x18] sm:$0xff] }
 0x84c   : > { %4679 = vmatprep.subr.bf16.mxu1 %v4678_v39 }
 0x84f   : > { %4681 = vmatpush3.bf16.msra.mxu1 %v4678_v39 }
 0x851   : > { %v4977_v54 = vpop.eup %4976 }
 0x852   : > { %v1718_v55 = vsel %vm776_vm2, %v4977_v54, 0.0  ;;  %v4979_v56 = vpop.eup %4978 }
 0x853   : > { %1719 = vadd.xlane.f32.xlu1 %v1718_v55  ;;  %v1715_v57 = vsel %vm776_vm2, %v4979_v56, 0.0 }
 0x857   : > { %1716 = vadd.xlane.f32.xlu1 %v1715_v57  ;;  %v2038_v57 = vld [vmem:[%s5885_s8 + $0x8] sm:$0xff] }
 0x868   : > { %4913 = vrot.lane.b32.xlu1 %v5323_v45, %s5046_s12  ;;  %v584_v45 = vld [vmem:[%s5883_s6 + $0x70] sm:$0xff] }
 0x869   : > { %v4666_v7 = vpack.c.bf16 %v585_v3, %v584_v45  ;;  %v2045_v3 = vld [vmem:[%s5885_s8 + $0x40] sm:$0xff] }
 0x8e0   : > { %v1720_v61 = vpop.xlane.xlu1 %1719 }
 0x8e4   : > { %v1717_v62 = vpop.xlane.xlu1 %1716 }
 0x8e5   : > { %4980 = vrcp.f32 %v1717_v62  ;;  %v2041_v62 = vld [vmem:[%s5885_s8 + $0x20] sm:$0xff] }
 0x8e6   : > { %4982 = vrcp.f32 %v1720_v61  ;;  %v4690_v61 = vpack.c.bf16 %v2040_v60, %v2039_v58 }
 0x8e8   : > { %v4914_v63 = vpop.permute.xlu1 %4913 }
 0x8e9   : > { %v4916_v0 = vunpack.i.h.bf16 %v4914_v63  ;;  %v4915_v1 = vunpack.i.l.bf16 %v4914_v63  ;;  %v2042_v63 = vld [vmem:[%s5885_s8 + $0x28] sm:$0xff] }
 0x8eb   : > { %v4662_v2 = vpack.c.bf16 %v4916_v0, %v4915_v1  ;;  %v4694_v0 = vpack.c.bf16 %v2042_v63, %v2041_v62  ;;  %v2043_v1 = vld [vmem:[%s5885_s8 + $0x30] sm:$0xff] }
 0x8ed   : > { %4663 = vmatprep.subr.bf16.mxu0 %v4662_v2 }
 0x8ef   : > { %v4981_v4 = vpop.eup %4980 }
 0x8f0   : > { %v4983_v10 = vpop.eup %4982  ;;  %v1722_v12 = vmul.f32 %v4981_v4, %v4979_v56  ;;  %v2037_v56 = vld [vmem:[%s5885_s8] sm:$0xff]  ;;  %v2046_v4 = vld [vmem:[%s5885_s8 + $0x48] sm:$0xff] }
 0x8f1   : > { %v1724_v13 = vmul.f32 %v4983_v10, %v4977_v54  ;;  %v1949_v54 = vld [vmem:[%s5884_s7 + $0x38] sm:$0xff]  ;;  %v4686_v59 = vpack.c.bf16 %v2038_v57, %v2037_v56 }
 0x8f2   : > { %v4682_v55 = vpack.c.bf16 %v1949_v54, %v1948_v53 }
 0x8f4   : > { %4683 = vmatprep.subr.bf16.mxu1 %v4682_v55 }
 0x8f5   : > { %4685 = vmatpush3.bf16.msra.mxu1 %v4682_v55 }
 0x91d   : > { %v4279_v5 = vpop.f32.mrb[8].mxu0 }
 0x91e   : > { %v1520_v6 = vpop.f32.mrb[9].mxu0 }
 0x91f   : > { %4284 = vmatprep.mubr.msk.f32.mxu0 %vm776_vm2, %v1520_v6  ;;  %v2047_v6 = vld [vmem:[%s5885_s8 + $0x50] sm:$0xff] }
 0x920   : > { %4285 = vmatmul.mubr.msk.f32.vlgmr.msra.gmra.mrb[6].mxu0 %vm776_vm2, %v4279_v5  ;;  %v4702_v5 = vpack.c.bf16 %v2046_v4, %v2045_v3  ;;  %v3903_v4 = vld [vmem:[%s5882_s5 + $0x40] sm:$0xff] }
 0x921   : > { %4665 = vmatpush3.bf16.msra.mxu0 %v4662_v2  ;;  %4298 = vmatprep.mubr.msk.f32.mxu0 %vm776_vm2, %v1722_v12  ;;  %v2044_v2 = vld [vmem:[%s5885_s8 + $0x38] sm:$0xff]  ;;  %v2049_v12 = vld [vmem:[%s5885_s8 + $0x60] sm:$0xff] }
 0x922   : > { %4667 = vmatprep.subr.bf16.mxu0 %v4666_v7  ;;  %v4698_v45 = vpack.c.bf16 %v2044_v2, %v2043_v1 }
 0x924   : > { %4299 = vmatmul.mubr.msk.f32.vlgmr.msra.gmra.mrb[10].mxu0 %vm776_vm2, %v1724_v13  ;;  %v2050_v13 = vld [vmem:[%s5885_s8 + $0x68] sm:$0xff] }
 0x925   : > { %4669 = vmatpush3.bf16.msra.mxu0 %v4666_v7  ;;  %v2048_v7 = vld [vmem:[%s5885_s8 + $0x58] sm:$0xff] }
 0x926   : > { %4687 = vmatprep.subr.bf16.mxu0 %v4686_v59  ;;  %v4706_v10 = vpack.c.bf16 %v2048_v7, %v2047_v6  ;;  %v3905_v6 = vld [vmem:[%s5882_s5 + $0x50] sm:$0xff] }
 0x9f7   : > { %v4300_v16 = vpop.f32.mrb[10].mxu0 }
 0x9f8   : > { %v1803_v19 = vpop.f32.mrb[11].mxu0 }
 0x9f9   : > { %4305 = vmatprep.mubr.msk.f32.mxu0 %vm776_vm2, %v1803_v19 }
 0x9fa   : > { %4306 = vmatmul.mubr.msk.f32.vlgmr.msra.gmra.mrb[6].mxu0 %vm776_vm2, %v4300_v16  ;;  %v4710_v16 = vpack.c.bf16 %v2050_v13, %v2049_v12  ;;  %v3907_v12 = vld [vmem:[%s5882_s5 + $0x60] sm:$0xff]  ;;  %v3908_v13 = vld [vmem:[%s5882_s5 + $0x68] sm:$0xff] }
 0x9fb   : > { %4689 = vmatpush3.bf16.msra.mxu0 %v4686_v59 }
 0x9fc   : > { %4691 = vmatprep.subr.bf16.mxu0 %v4690_v61 }
 0x9ff   : > { %4693 = vmatpush3.bf16.msra.mxu0 %v4690_v61 }
 0xa00   : > { %4695 = vmatprep.subr.bf16.mxu0 %v4694_v0 }
 0xa03   : > { %4697 = vmatpush3.bf16.msra.mxu0 %v4694_v0 }
 0xa04   : > { %4699 = vmatprep.subr.bf16.mxu0 %v4698_v45 }
 0xa07   : > { %4701 = vmatpush3.bf16.msra.mxu0 %v4698_v45  ;;  %v2162_v45 = vsub.s32 3, %v5215_v51 }
 0xa08   : > { %4703 = vmatprep.subr.bf16.mxu0 %v4702_v5 }
 0xa09   : > { %v2163_v3 = vrot.slane %v5297_v30, %v2162_v45 }
 0xa0b   : > { %4705 = vmatpush3.bf16.msra.mxu0 %v4702_v5  ;;  %v3904_v5 = vld [vmem:[%s5882_s5 + $0x48] sm:$0xff] }
 0xa0c   : > { %4707 = vmatprep.subr.bf16.mxu0 %v4706_v10  ;;  %v4718_v7 = vpack.c.bf16 %v3904_v5, %v3903_v4 }
 0xa0e   : > { %4719 = vmatprep.subr.bf16.mxu1 %v4718_v7 }
 0xa0f   : > { %4709 = vmatpush3.bf16.msra.mxu0 %v4706_v10  ;;  %v3906_v10 = vld [vmem:[%s5882_s5 + $0x58] sm:$0xff] }
 0xa10   : > { %4711 = vmatprep.subr.bf16.mxu0 %v4710_v16 }
 0xa13   : > { %4713 = vmatpush3.bf16.msra.mxu0 %v4710_v16  ;;  %v4726_v16 = vpack.c.bf16 %v3908_v13, %v3907_v12 }
 0xacd   : > { %v4307_v20 = vpop.f32.mrb[6].mxu0 }
 0xace   : > { %v4854_v22 = vadd.f32 %v4307_v20, %v5397_v8  ;;  %v1884_v23 = vpop.f32.mrb[7].mxu0 }
 0xacf   : > { %v4855_v24 = vadd.f32 %v1884_v23, %v5399_v9 }
 0xad0   : > { %v1900_v25 = vadd.f32 %v4854_v22, %v1897_v21 }
 0xad1   : > { %v1899_v26 = vadd.f32 %v4855_v24, %v1897_v21 }
 0xad2   : > { %v1902_v27 = vadd.f32 %v1900_v25, %v5252_v14 }
 0xad3   : > { %v1901_v28 = vadd.f32 %v1899_v26, %v5264_v18 }
 0xad4   : > { %v1906_v29 = vsel %vm395_vm0, %v1902_v27, 0.0 }
 0xad5   : > { %1907 = vadd.xlane.f32.xlu1 %v1906_v29  ;;  %v1903_v31 = vsel %vm395_vm0, %v1901_v28, 0.0 }
 0xad6   : > { %1904 = vadd.xlane.f32.xlu0 %v1903_v31 }
 0xb62   : > { %v1908_v32 = vpop.xlane.xlu1 %1907 }
 0xb63   : > { %v1911_v33 = vmul.f32 0.015625, %v1908_v32  ;;  %v1905_v34 = vpop.xlane.xlu0 %1904 }
 0xb64   : > { %v1910_v35 = vmul.f32 0.015625, %v1905_v34 }
 0xb65   : > { %v5441_v8 = vsub.f32 %v1902_v27, %v1911_v33 }
 0xb66   : > { %v5443_v36 = vsub.f32 %v1901_v28, %v1910_v35  ;;  %v2051_v35 = vld [vmem:[%s5885_s8 + $0x70] sm:$0xff] }
 0xb67   : > { %v1915_v18 = vmul.f32 %v5441_v8, %v5441_v8 }
 0xb68   : > { %v1914_v9 = vmul.f32 %v5443_v36, %v5443_v36 }
 0xb69   : > { %v1919_v37 = vsel %vm395_vm0, %v1915_v18, 0.0 }
 0xb6a   : > { %v1916_v14 = vsel %vm395_vm0, %v1914_v9, 0.0 }
 0xb6b   : > { %1917 = vadd.xlane.f32.xlu0 %v1916_v14 }
 0xb6f   : > { %1920 = vadd.xlane.f32.xlu0 %v1919_v37 }
 0xb85   : > { %1937 = vrot.lane.b32.xlu0 %v5461_v38, %s5041_s26 }
 0xbf8   : > { %v1918_v19 = vpop.xlane.xlu0 %1917 }
 0xbf9   : > { %v1922_v20 = vmul.f32 0.015625, %v1918_v19  ;;  %v3909_v19 = vld [vmem:[%s5882_s5 + $0x70] sm:$0xff] }
 0xbfb   : > { %v1924_v21 = vadd.f32 1e-05, %v1922_v20  ;;  %v3910_v20 = vld [vmem:[%s5882_s5 + $0x78] sm:$0xff] }
 0xbfc   : > { %v1921_v22 = vpop.xlane.xlu0 %1920 }
 0xbfd   : > { %4984 = vrsqrt.f32 %v1924_v21  ;;  %v1923_v23 = vmul.f32 0.015625, %v1921_v22  ;;  %v4730_v21 = vpack.c.bf16 %v3910_v20, %v3909_v19  ;;  %v3887_v22 = vld [vmem:[%s5883_s6 + $0x80] sm:$0xff] }
 0xbff   : > { %v1925_v24 = vadd.f32 1e-05, %v1923_v23  ;;  %v3888_v23 = vld [vmem:[%s5883_s6 + $0x88] sm:$0xff] }
 0xc00   : > { %v1938_v27 = vpop.permute.xlu0 %1937 }
 0xc01   : > { %4986 = vrsqrt.f32 %v1925_v24  ;;  %v4734_v24 = vpack.c.bf16 %v3888_v23, %v3887_v22 }
 0xc07   : > { %v4985_v25 = vpop.eup %4984 }
 0xc08   : > { %v1928_v26 = vmul.f32 %v4985_v25, %v5443_v36  ;;  %v2052_v36 = vld [vmem:[%s5885_s8 + $0x78] sm:$0xff] }
 0xc09   : > { %v4714_v9 = vpack.c.bf16 %v2052_v36, %v2051_v35 }
 0xc0a   : > { %v1934_v28 = vmul.f32 %v5461_v38, %v1928_v26 }
 0xc0b   : > { %v4987_v29 = vpop.eup %4986  ;;  %4715 = vmatprep.subr.bf16.mxu0 %v4714_v9 }
 0xc0c   : > { %v1929_v31 = vmul.f32 %v4987_v29, %v5441_v8  ;;  %v1940_v32 = vadd.f32 %v1938_v27, %v1934_v28  ;;  %4717 = vmatpush3.bf16.msra.mxu0 %v4714_v9  ;;  %v1952_v8 = vsub.s32 4, %v5215_v51 }
 0xc0e   : > { %v1935_v33 = vmul.f32 %v5461_v38, %v1929_v31  ;;  %4324 = vmatprep.mubr.msk.f32.mxu1 %vm395_vm0, %v1940_v32  ;;  %v1953_v14 = vrot.slane %v5297_v30, %v1952_v8  ;;  %v4722_v30 = vpack.c.bf16 %v3906_v10, %v3905_v6 }
 0xc10   : > { %v1941_v34 = vadd.f32 %v1938_v27, %v1935_v33 }
 0xc12   : > { %4325 = vmatmul.mubr.msk.f32.vlgmr.msra.gmra.mrb[18].mxu1 %vm395_vm0, %v1941_v34 }
 0xc13   : > { %4721 = vmatpush3.bf16.msra.mxu1 %v4718_v7 }
 0xc14   : > { %4723 = vmatprep.subr.bf16.mxu1 %v4722_v30 }
 0xc17   : > { %4725 = vmatpush3.bf16.msra.mxu1 %v4722_v30 }
 0xc18   : > { %4727 = vmatprep.subr.bf16.mxu1 %v4726_v16 }
 0xc1b   : > { %4729 = vmatpush3.bf16.msra.mxu1 %v4726_v16 }
 0xc1c   : > { %4731 = vmatprep.subr.bf16.mxu1 %v4730_v21 }
 0xc1f   : > { %4733 = vmatpush3.bf16.msra.mxu1 %v4730_v21 }
 0xc20   : > { %4735 = vmatprep.subr.bf16.mxu1 %v4734_v24 }
 0xce5   : > { %v4326_v18 = vpop.f32.mrb[18].mxu1 }
 0xce6   : > { %v2032_v37 = vadd.f32 %v4326_v18, %v1953_v14  ;;  %v2026_v41 = vpop.f32.mrb[19].mxu1 }
 0xce7   : > { %v2027_v42 = vadd.f32 %v2026_v41, %v1953_v14  ;;  %v3889_v41 = vld [vmem:[%s5883_s6 + $0x90] sm:$0xff] }
 0xce8   : > { %v2036_v43 = vmax.f32 %v2032_v37, 0.0 }
 0xce9   : > { %v2035_v38 = vmax.f32 %v2027_v42, 0.0  ;;  %v3890_v42 = vld [vmem:[%s5883_s6 + $0x98] sm:$0xff] }
 0xceb   : > { %4359 = vmatprep.mubr.f32.mxu0 %v2035_v38 }
 0xcec   : > { %4360 = vmatmul.mubr.f32.vlgmr.msra.gmra.mrb[12].mxu0 %v2036_v43 }
 0xdbf   : > { %v4361_v47 = vpop.f32.mrb[12].mxu0 }
 0xdc0   : > { %v2123_v48 = vpop.f32.mrb[13].mxu0  ;;  %v2129_v49 = vadd.f32 %v4361_v47, %v2056_v46  ;;  %v3891_v47 = vld [vmem:[%s5883_s6 + $0xa0] sm:$0xff] }
 0xdc1   : > { %v2124_v39 = vadd.f32 %v2123_v48, %v2056_v46  ;;  %v4738_v46 = vpack.c.bf16 %v3890_v42, %v3889_v41  ;;  %v3892_v48 = vld [vmem:[%s5883_s6 + $0xa8] sm:$0xff] }
 0xdc2   : > { %v2133_v55 = vadd.f32 %v2129_v49, %v1941_v34  ;;  %v3894_v49 = vld [vmem:[%s5883_s6 + $0xb8] sm:$0xff] }
 0xdc3   : > { %v2132_v53 = vadd.f32 %v2124_v39, %v1940_v32 }
 0xdc4   : > { %v2137_v56 = vsel %vm395_vm0, %v2133_v55, 0.0 }
 0xdc5   : > { %v2134_v54 = vsel %vm395_vm0, %v2132_v53, 0.0 }
 0xdc6   : > { %2135 = vadd.xlane.f32.xlu1 %v2134_v54 }
 0xdca   : > { %2138 = vadd.xlane.f32.xlu1 %v2137_v56 }
 0xe53   : > { %v2136_v57 = vpop.xlane.xlu1 %2135 }
 0xe54   : > { %v2140_v58 = vmul.f32 0.015625, %v2136_v57 }
 0xe56   : > { %v2142_v61 = vsub.f32 %v2132_v53, %v2140_v58  ;;  %v5619_v53 = vld [vmem:[%s5886_s9 + $0x8] sm:$0xff] }
 0xe57   : > { %v2139_v59 = vpop.xlane.xlu1 %2138  ;;  %v2286_v54 = vrot.slane %v5619_v53, %v5218_v52  ;;  %v5637_v52 = vrot.slane %v5619_v53, %v5249_v11 }
 0xe58   : > { %v2141_v60 = vmul.f32 0.015625, %v2139_v59  ;;  %v2144_v1 = vmul.f32 %v2142_v61, %v2142_v61 }
 0xe5a   : > { %v2143_v62 = vsub.f32 %v2133_v55, %v2141_v60  ;;  %v2146_v2 = vsel %vm395_vm0, %v2144_v1, 0.0 }
 0xe5c   : > { %v2145_v63 = vmul.f32 %v2143_v62, %v2143_v62 }
 0xe5e   : > { %v2149_v0 = vsel %vm395_vm0, %v2145_v63, 0.0 }
 0xe5f   : > { %2150 = vadd.xlane.f32.xlu1 %v2149_v0 }
 0xe63   : > { %2147 = vadd.xlane.f32.xlu1 %v2146_v2 }
 0xe74   : > { %2167 = vrot.lane.b32.xlu1 %v2163_v3, %s5041_s26 }
 0xeec   : > { %v2151_v25 = vpop.xlane.xlu1 %2150 }
 0xeed   : > { %v2153_v26 = vmul.f32 0.015625, %v2151_v25 }
 0xeef   : > { %v2155_v27 = vadd.f32 1e-05, %v2153_v26 }
 0xef0   : > { %v2148_v28 = vpop.xlane.xlu1 %2147 }
 0xef1   : > { %4988 = vrsqrt.f32 %v2155_v27  ;;  %v2152_v29 = vmul.f32 0.015625, %v2148_v28 }
 0xef3   : > { %v2154_v31 = vadd.f32 1e-05, %v2152_v29 }
 0xef4   : > { %v2168_v9 = vpop.permute.xlu1 %2167 }
 0xef5   : > { %4990 = vrsqrt.f32 %v2154_v31 }
 0xefb   : > { %v4989_v32 = vpop.eup %4988 }
 0xefc   : > { %v2159_v33 = vmul.f32 %v4989_v32, %v2143_v62 }
 0xefe   : > { %v2165_v35 = vmul.f32 %v2163_v3, %v2159_v33 }
 0xeff   : > { %v4991_v34 = vpop.eup %4990 }
 0xf00   : > { %v2158_v36 = vmul.f32 %v4991_v34, %v2142_v61  ;;  %v5584_v18 = vadd.f32 %v2168_v9, %v2165_v35 }
 0xf02   : > { %v2164_v14 = vmul.f32 %v2163_v3, %v2158_v36  ;;  %v2192_v43 = vadd.f32 %v5584_v18, %v5262_v17  ;;  %v3893_v17 = vld [vmem:[%s5883_s6 + $0xb0] sm:$0xff] }
 0xf03   : > { %v4746_v39 = vpack.c.bf16 %v3894_v49, %v3893_v17 }
 0xf04   : > { %v5586_v37 = vadd.f32 %v2168_v9, %v2164_v14 }
 0xf06   : > { %v2191_v38 = vadd.f32 %v5586_v37, %v5257_v15  ;;  %v4742_v15 = vpack.c.bf16 %v3892_v48, %v3891_v47 }
 0xf08   : > { %4378 = vmatprep.mubr.msk.f32.mxu1 %vm395_vm0, %v2191_v38 }
 0xf09   : > { %4379 = vmatmul.mubr.msk.f32.vlgmr.msra.gmra.mrb[20].mxu1 %vm395_vm0, %v2192_v43 }
 0xf0a   : > { %4737 = vmatpush3.bf16.msra.mxu1 %v4734_v24  ;;  %4397 = vmatprep.mubr.msk.f32.mxu1 %vm395_vm0, %v5586_v37 }
 0xf0b   : > { %4739 = vmatprep.subr.bf16.mxu1 %v4738_v46 }
 0xf0e   : > { %4741 = vmatpush3.bf16.msra.mxu1 %v4738_v46 }
 0xf0f   : > { %4743 = vmatprep.subr.bf16.mxu1 %v4742_v15 }
 0xf12   : > { %4745 = vmatpush3.bf16.msra.mxu1 %v4742_v15 }
 0xf13   : > { %4747 = vmatprep.subr.bf16.mxu1 %v4746_v39 }
 0xf16   : > { %4749 = vmatpush3.bf16.msra.mxu1 %v4746_v39 }
 0xf19   : > { %4398 = vmatmul.mubr.msk.f32.vlgmr.msra.gmra.mrb[22].mxu1 %vm395_vm0, %v5584_v18 }
 0xfdc   : > { %v4380_v55 = vpop.f32.mrb[20].mxu1 }
 0xfdd   : > { %v2288_v56 = vadd.f32 %v4380_v55, %v2286_v54  ;;  %v2274_v57 = vpop.f32.mrb[21].mxu1 }
 0xfde   : > { %v2287_v58 = vadd.f32 %v2286_v54, %v2274_v57 }
 0xfdf   : > { %v5641_v62 = vmul.f32 0.25, %v2288_v56 }
 0xfe0   : > { %v5623_v59 = vpack.i.bf16 %v2288_v56, %v2287_v58  ;;  %v5625_v60 = vmul.f32 0.25, %v2287_v58 }
 0xfe2   : > { %4918 = vrot.lane.b32.xlu0 %v5623_v59, %s5041_s26  ;;  %2934 = vrot.lane.b32.xlu1 %v5625_v60, %s5044_s29 }
 0xfe3   : > { %4404 = vmatprep.mubr.msk.f32.mxu1 %vm776_vm2, %v5625_v60 }
 0xfe6   : > { %4923 = vrot.lane.b32.xlu0 %v5623_v59, %s5043_s28 }
 0xfea   : > { %2570 = vrot.lane.b32.xlu0 %v5625_v60, %s5042_s27 }
 0xfec   : > { %v4399_v61 = vpop.f32.mrb[22].mxu1 }
 0xfed   : > { %v2371_v63 = vadd.f32 %v4399_v61, %v5637_v52  ;;  %v2365_v0 = vpop.f32.mrb[23].mxu1 }
 0xfee   : > { %v2366_v1 = vadd.f32 %v2365_v0, %v5637_v52  ;;  %2572 = vrot.lane.b32.xlu0 %v5641_v62, %s5042_s27 }
 0xff0   : > { %v4756_v2 = vpack.c.bf16 %v2371_v63, %v2366_v1  ;;  %v5647_v3 = vpack.i.bf16 %v2371_v63, %v2366_v1 }
 0xff2   : > { %4757 = vmatprep.subr.bf16.mxu0 %v4756_v2  ;;  %4928 = vrot.lane.b32.xlu0 %v5623_v59, %s5045_s11 }
 0xff3   : > { %4759 = vmatpush3.bf16.msra.mxu0 %v4756_v2 }
 0xff6   : > { %2936 = vrot.lane.b32.xlu0 %v5641_v62, %s5044_s29 }
0x1054   : > { %v4919_v11 = vpop.permute.xlu0 %4918  ;;  %v2935_v23 = vpop.permute.xlu1 %2934 }
0x1055   : > { %v4921_v4 = vunpack.i.h.bf16 %v4919_v11  ;;  %v4920_v5 = vunpack.i.l.bf16 %v4919_v11 }
0x1057   : > { %v4750_v6 = vpack.c.bf16 %v4921_v4, %v4920_v5 }
0x1058   : > { %v4924_v7 = vpop.permute.xlu0 %4923 }
0x1059   : > { %v4926_v10 = vunpack.i.h.bf16 %v4924_v7  ;;  %v4925_v30 = vunpack.i.l.bf16 %v4924_v7  ;;  %4752 = vmatprep.subr.msk.bf16.mxu1 %vm5328_vm3, %v4750_v6 }
0x105a   : > { %4755 = vmatpush3.bf16.xpose.msk.msra.mxu1 %vm5328_vm3, %v4750_v6 }
0x105b   : > { %v4760_v12 = vpack.c.bf16 %v4926_v10, %v4925_v30 }
0x105c   : > { %v2571_v13 = vpop.permute.xlu0 %2570 }
0x105d   : > { %4762 = vmatprep.subr.msk.bf16.mxu1 %vm5328_vm3, %v4760_v12 }
0x1060   : > { %v2573_v16 = vpop.permute.xlu0 %2572 }
0x1061   : > { %4405 = vmatmul.mubr.msk.f32.vlgmr.msra.gmra.mrb[24].mxu1 %vm776_vm2, %v5641_v62 }
0x1062   : > { %4765 = vmatpush3.bf16.xpose.msk.msra.mxu1 %vm5328_vm3, %v4760_v12  ;;  %4418 = vmatprep.mubr.msk.f32.mxu1 %vm776_vm2, %v2571_v13 }
0x1064   : > { %v4929_v19 = vpop.permute.xlu0 %4928 }
0x1065   : > { %v4931_v20 = vunpack.i.h.bf16 %v4929_v19  ;;  %v4930_v21 = vunpack.i.l.bf16 %v4929_v19 }
0x1067   : > { %v4778_v22 = vpack.c.bf16 %v4931_v20, %v4930_v21 }
0x1068   : > { %v2937_v24 = vpop.permute.xlu0 %2936 }
0x1069   : > { %4419 = vmatmul.mubr.msk.f32.vlgmr.msra.gmra.mrb[26].mxu1 %vm776_vm2, %v2573_v16  ;;  %4780 = vmatprep.subr.msk.bf16.mxu1 %vm5328_vm3, %v4778_v22 }
0x106a   : > { %4783 = vmatpush3.bf16.xpose.msk.msra.mxu1 %vm5328_vm3, %v4778_v22  ;;  %4446 = vmatprep.mubr.msk.f32.mxu1 %vm776_vm2, %v2935_v23 }
0x1071   : > { %4447 = vmatmul.mubr.msk.f32.vlgmr.msra.gmra.mrb[28].mxu1 %vm776_vm2, %v2937_v24 }
0x1134   : > { %v4406_v25 = vpop.f32.mrb[24].mxu1 }
0x1135   : > { %v2458_v26 = vpop.f32.mrb[25].mxu1  ;;  %v2470_v27 = vsel %vm776_vm2, %v4406_v25, -inf }
0x1136   : > { %2471 = vmax.xlane.f32.xlu0 %v2470_v27  ;;  %v2467_v28 = vsel %vm776_vm2, %v2458_v26, -inf }
0x1137   : > { %2468 = vmax.xlane.f32.xlu1 %v2467_v28 }
0x113c   : > { %v4420_v29 = vpop.f32.mrb[26].mxu1 }
0x113d   : > { %v2652_v31 = vpop.f32.mrb[27].mxu1  ;;  %v2664_v32 = vsel %vm776_vm2, %v4420_v29, -inf }
0x113e   : > { %2665 = vmax.xlane.f32.xlu1 %v2664_v32  ;;  %v2661_v33 = vsel %vm776_vm2, %v2652_v31, -inf }
0x113f   : > { %2662 = vmax.xlane.f32.xlu0 %v2661_v33 }
0x1144   : > { %v5675_v34 = vpop.f32.mrb[28].mxu1 }
0x1145   : > { %v5677_v35 = vpop.f32.mrb[29].mxu1  ;;  %v3028_v0 = vsel %vm776_vm2, %v5675_v34, -inf }
0x1146   : > { %v3025_v63 = vsel %vm776_vm2, %v5677_v35, -inf }
0x11c3   : > { %v2472_v36 = vpop.xlane.xlu0 %2471 }
0x11c4   : > { %v2474_v9 = vsub.f32 %v4406_v25, %v2472_v36  ;;  %v2469_v14 = vpop.xlane.xlu1 %2468 }
0x11c5   : > { %v2473_v41 = vsub.f32 %v2458_v26, %v2469_v14  ;;  %v3897_v14 = vld [vmem:[%s5883_s6 + $0xd0] sm:$0xff] }
0x11c6   : > { %v2477_v42 = vmul.f32 1.442695, %v2474_v9 }
0x11c7   : > { %v2475_v38 = vmul.f32 1.442695, %v2473_v41  ;;  %v3895_v41 = vld [vmem:[%s5883_s6 + $0xc0] sm:$0xff] }
0x11c8   : > { %4992 = vpow2.f32 %v2477_v42  ;;  %v3896_v42 = vld [vmem:[%s5883_s6 + $0xc8] sm:$0xff] }
0x11c9   : > { %4994 = vpow2.f32 %v2475_v38  ;;  %v4774_v38 = vpack.c.bf16 %v3896_v42, %v3895_v41 }
0x11cb   : > { %v2666_v43 = vpop.xlane.xlu1 %2665 }
0x11cc   : > { %v2668_v46 = vsub.f32 %v4420_v29, %v2666_v43  ;;  %v2663_v47 = vpop.xlane.xlu0 %2662 }
0x11cd   : > { %v2667_v48 = vsub.f32 %v2652_v31, %v2663_v47 }
0x11ce   : > { %v2671_v15 = vmul.f32 1.442695, %v2668_v46 }
0x11cf   : > { %v2669_v17 = vmul.f32 1.442695, %v2667_v48 }
0x11d0   : > { %4996 = vpow2.f32 %v2671_v15 }
0x11d1   : > { %4998 = vpow2.f32 %v2669_v17 }
0x11d2   : > { %v4993_v49 = vpop.eup %4992 }
0x11d3   : > { %v4995_v39 = vpop.eup %4994  ;;  %v2482_v54 = vsel %vm776_vm2, %v4993_v49, 0.0 }
0x11d4   : > { %2483 = vadd.xlane.f32.xlu1 %v2482_v54  ;;  %v2479_v55 = vsel %vm776_vm2, %v4995_v39, 0.0 }
0x11d5   : > { %2480 = vadd.xlane.f32.xlu0 %v2479_v55 }
0x11da   : > { %v4997_v56 = vpop.eup %4996 }
0x11db   : > { %v4999_v57 = vpop.eup %4998  ;;  %v2676_v58 = vsel %vm776_vm2, %v4997_v56, 0.0 }
0x11dc   : > { %2677 = vadd.xlane.f32.xlu1 %v2676_v58  ;;  %v2673_v61 = vsel %vm776_vm2, %v4999_v57, 0.0 }
0x11dd   : > { %2674 = vadd.xlane.f32.xlu0 %v2673_v61 }
0x11ed   : > { %4938 = vrot.lane.b32.xlu1 %v5623_v59, %s5047_s15 }
0x11f1   : > { %3217 = vrot.lane.b32.xlu1 %v5625_v60, %s5046_s12 }
0x11f3   : > { %4933 = vrot.lane.b32.xlu0 %v5647_v3, %s5042_s27 }
0x11f7   : > { %3219 = vrot.lane.b32.xlu0 %v5641_v62, %s5046_s12 }
0x1215   : > { %3026 = vmax.xlane.f32.xlu1 %v3025_v63 }
0x1216   : > { %3029 = vmax.xlane.f32.xlu0 %v3028_v0 }
0x1261   : > { %v2484_v1 = vpop.xlane.xlu1 %2483 }
0x1262   : > { %5000 = vrcp.f32 %v2484_v1  ;;  %v2481_v59 = vpop.xlane.xlu0 %2480 }
0x1263   : > { %5002 = vrcp.f32 %v2481_v59  ;;  %v3899_v59 = vld [vmem:[%s5883_s6 + $0xe0] sm:$0xff] }
0x1269   : > { %v2678_v2 = vpop.xlane.xlu1 %2677 }
0x126a   : > { %5004 = vrcp.f32 %v2678_v2  ;;  %v2675_v60 = vpop.xlane.xlu0 %2674  ;;  %v3900_v2 = vld [vmem:[%s5883_s6 + $0xe8] sm:$0xff] }
0x126b   : > { %5006 = vrcp.f32 %v2675_v60  ;;  %v4788_v60 = vpack.c.bf16 %v3900_v2, %v3899_v59  ;;  %v3953_v59 = vld [vmem:[%s5884_s7 + $0x70] sm:$0xff]  ;;  %v3954_v2 = vld [vmem:[%s5884_s7 + $0x78] sm:$0xff] }
0x126c   : > { %v5001_v11 = vpop.eup %5000 }
0x126d   : > { %v5003_v4 = vpop.eup %5002  ;;  %v4939_v5 = vpop.permute.xlu1 %4938  ;;  %v2488_v30 = vmul.f32 %v5001_v11, %v4993_v49 }
0x126e   : > { %v4941_v62 = vunpack.i.h.bf16 %v4939_v5  ;;  %v4940_v6 = vunpack.i.l.bf16 %v4939_v5  ;;  %v4934_v7 = vpop.permute.xlu0 %4933  ;;  %v2486_v10 = vmul.f32 %v5003_v4, %v4995_v39 }
0x126f   : > { %v4936_v12 = vunpack.i.h.bf16 %v4934_v7  ;;  %v4935_v13 = vunpack.i.l.bf16 %v4934_v7 }
0x1270   : > { %v4792_v16 = vpack.c.bf16 %v4941_v62, %v4940_v6  ;;  %4411 = vmatprep.mubr.msk.f32.mxu0 %vm776_vm2, %v2486_v10 }
0x1271   : > { %v4766_v19 = vpack.c.bf16 %v4936_v12, %v4935_v13  ;;  %4412 = vmatmul.mubr.msk.f32.vlgmr.msra.gmra.mrb[14].mxu0 %vm776_vm2, %v2488_v30  ;;  %v3218_v20 = vpop.permute.xlu1 %3217 }
0x1272   : > { %4794 = vmatprep.subr.msk.bf16.mxu1 %vm5328_vm3, %v4792_v16  ;;  %4467 = vmatprep.mubr.msk.f32.mxu1 %vm776_vm2, %v3218_v20  ;;  %v3220_v25 = vpop.permute.xlu0 %3219 }
0x1273   : > { %4767 = vmatprep.subr.bf16.mxu0 %v4766_v19  ;;  %4797 = vmatpush3.bf16.xpose.msk.msra.mxu1 %vm5328_vm3, %v4792_v16 }
0x1274   : > { %v5005_v21 = vpop.eup %5004  ;;  %4769 = vmatpush3.bf16.msra.mxu0 %v4766_v19 }
0x1275   : > { %v5007_v22 = vpop.eup %5006  ;;  %v2682_v24 = vmul.f32 %v5005_v21, %v4997_v56 }
0x1276   : > { %v2680_v23 = vmul.f32 %v5007_v22, %v4999_v57 }
0x1278   : > { %4425 = vmatprep.mubr.msk.f32.mxu0 %vm776_vm2, %v2680_v23  ;;  %v3901_v23 = vld [vmem:[%s5883_s6 + $0xf0] sm:$0xff] }
0x1279   : > { %4426 = vmatmul.mubr.msk.f32.vlgmr.msra.gmra.mrb[16].mxu0 %vm776_vm2, %v2682_v24  ;;  %v3902_v24 = vld [vmem:[%s5883_s6 + $0xf8] sm:$0xff] }
0x127a   : > { %4468 = vmatmul.mubr.msk.f32.vlgmr.msra.gmra.mrb[30].mxu1 %vm776_vm2, %v3220_v25 }
0x12a2   : > { %v3027_v26 = vpop.xlane.xlu1 %3026 }
0x12a3   : > { %v3031_v27 = vsub.f32 %v5677_v35, %v3027_v26  ;;  %v3030_v28 = vpop.xlane.xlu0 %3029 }
0x12a4   : > { %v3032_v29 = vsub.f32 %v5675_v34, %v3030_v28  ;;  %v3898_v34 = vld [vmem:[%s5883_s6 + $0xd8] sm:$0xff] }
0x12a5   : > { %v3033_v50 = vmul.f32 1.442695, %v3031_v27  ;;  %v4770_v35 = vpack.c.bf16 %v3898_v34, %v3897_v14  ;;  %v4802_v27 = vpack.c.bf16 %v3902_v24, %v3901_v23  ;;  %v3967_v23 = vld [vmem:[%s5885_s8 + $0xd0] sm:$0xff]  ;;  %v3968_v24 = vld [vmem:[%s5885_s8 + $0xd8] sm:$0xff] }
0x12a6   : > { %v3035_v31 = vmul.f32 1.442695, %v3032_v29 }
0x12a7   : > { %5008 = vpow2.f32 %v3033_v50  ;;  %4771 = vmatprep.subr.bf16.mxu0 %v4770_v35 }
0x12a8   : > { %5010 = vpow2.f32 %v3035_v31  ;;  %4773 = vmatpush3.bf16.msra.mxu0 %v4770_v35 }
0x12a9   : > { %4775 = vmatprep.subr.bf16.mxu0 %v4774_v38 }
0x12b1   : > { %v5009_v32 = vpop.eup %5008 }
0x12b2   : > { %v5011_v33 = vpop.eup %5010  ;;  %v3037_v36 = vsel %vm776_vm2, %v5009_v32, 0.0 }
0x12b3   : > { %3038 = vadd.xlane.f32.xlu0 %v3037_v36  ;;  %v3040_v9 = vsel %vm776_vm2, %v5011_v33, 0.0 }
0x12b4   : > { %3041 = vadd.xlane.f32.xlu1 %v3040_v9 }
0x12c9   : > { %4943 = vrot.lane.b32.xlu0 %v5647_v3, %s5044_s29 }
0x12cd   : > { %3501 = vrot.lane.b32.xlu0 %v5637_v52, %s5041_s26 }
0x1340   : > { %v3039_v43 = vpop.xlane.xlu0 %3038 }
0x1341   : > { %5012 = vrcp.f32 %v3039_v43  ;;  %v3042_v15 = vpop.xlane.xlu1 %3041 }
0x1342   : > { %5014 = vrcp.f32 %v3042_v15 }
0x1344   : > { %v4413_v46 = vpop.f32.mrb[14].mxu0  ;;  %v4944_v48 = vpop.permute.xlu0 %4943 }
0x1345   : > { %v2561_v47 = vpop.f32.mrb[15].mxu0  ;;  %v4946_v17 = vunpack.i.h.bf16 %v4944_v48  ;;  %v4945_v49 = vunpack.i.l.bf16 %v4944_v48 }
0x1347   : > { %v4784_v57 = vpack.c.bf16 %v4946_v17, %v4945_v49 }
0x1348   : > { %v3502_v36 = vpop.permute.xlu0 %3501 }
0x134b   : > { %v5013_v58 = vpop.eup %5012 }
0x134c   : > { %v4427_v39 = vpop.f32.mrb[16].mxu0  ;;  %v5015_v63 = vpop.eup %5014  ;;  %v3044_v0 = vmul.f32 %v5013_v58, %v5009_v32  ;;  %v3949_v58 = vld [vmem:[%s5884_s7 + $0x50] sm:$0xff] }
0x134d   : > { %v2763_v54 = vpop.f32.mrb[17].mxu0  ;;  %v4469_v55 = vpop.f32.mrb[30].mxu1  ;;  %v3046_v1 = vmul.f32 %v5015_v63, %v5011_v33  ;;  %v3951_v63 = vld [vmem:[%s5884_s7 + $0x60] sm:$0xff] }
0x134e   : > { %4432 = vmatprep.mubr.msk.f32.mxu0 %vm776_vm2, %v2763_v54  ;;  %v3299_v56 = vpop.f32.mrb[31].mxu1  ;;  %v3311_v61 = vsel %vm776_vm2, %v4469_v55, -inf }
0x134f   : > { %4433 = vmatmul.mubr.msk.f32.vlgmr.msra.gmra.mrb[18].mxu0 %vm776_vm2, %v4427_v39  ;;  %v3308_v52 = vsel %vm776_vm2, %v3299_v56, -inf }
0x1350   : > { %4777 = vmatpush3.bf16.msra.mxu0 %v4774_v38  ;;  %4439 = vmatprep.mubr.msk.f32.mxu0 %vm776_vm2, %v2561_v47 }
0x1351   : > { %4785 = vmatprep.subr.bf16.mxu0 %v4784_v57  ;;  %3309 = vmax.xlane.f32.xlu1 %v3308_v52  ;;  %v5778_v52 = vrot.slane %v5619_v53, %v1932_v40 }
0x1355   : > { %3312 = vmax.xlane.f32.xlu1 %v3311_v61  ;;  %v3950_v61 = vld [vmem:[%s5884_s7 + $0x58] sm:$0xff] }
0x1357   : > { %4440 = vmatmul.mubr.msk.f32.vlgmr.msra.gmra.mrb[18].mxu0 %vm776_vm2, %v4413_v46 }
0x1358   : > { %4787 = vmatpush3.bf16.msra.mxu0 %v4784_v57  ;;  %4453 = vmatprep.mubr.msk.f32.mxu0 %vm776_vm2, %v3044_v0  ;;  %v4810_v0 = vpack.c.bf16 %v3950_v61, %v3949_v58 }
0x1359   : > { %4789 = vmatprep.subr.bf16.mxu0 %v4788_v60 }
0x135b   : > { %4454 = vmatmul.mubr.msk.f32.vlgmr.msra.gmra.mrb[20].mxu0 %vm776_vm2, %v3046_v1  ;;  %v3952_v1 = vld [vmem:[%s5884_s7 + $0x68] sm:$0xff] }
0x135c   : > { %4791 = vmatpush3.bf16.msra.mxu0 %v4788_v60  ;;  %v4814_v40 = vpack.c.bf16 %v3952_v1, %v3951_v63  ;;  %v4818_v60 = vpack.c.bf16 %v3954_v2, %v3953_v59 }
0x13de   : > { %v3310_v11 = vpop.xlane.xlu1 %3309 }
0x13df   : > { %v3314_v4 = vsub.f32 %v3299_v56, %v3310_v11  ;;  %v3948_v56 = vld [vmem:[%s5884_s7 + $0x48] sm:$0xff]  ;;  %v3957_v11 = vld [vmem:[%s5885_s8 + $0x80] sm:$0xff] }
0x13e1   : > { %v3316_v6 = vmul.f32 1.442695, %v3314_v4  ;;  %v3958_v4 = vld [vmem:[%s5885_s8 + $0x88] sm:$0xff] }
0x13e2   : > { %v3313_v5 = vpop.xlane.xlu1 %3312 }
0x13e3   : > { %v3315_v62 = vsub.f32 %v4469_v55, %v3313_v5  ;;  %v3947_v55 = vld [vmem:[%s5884_s7 + $0x40] sm:$0xff]  ;;  %v3959_v5 = vld [vmem:[%s5885_s8 + $0x90] sm:$0xff] }
0x13e4   : > { %v4806_v57 = vpack.c.bf16 %v3948_v56, %v3947_v55  ;;  %v3662_v55 = vrot.slane %v5619_v53, %v2055_v44 }
0x13e5   : > { %v3318_v7 = vmul.f32 1.442695, %v3315_v62  ;;  %v4822_v62 = vpack.c.bf16 %v3958_v4, %v3957_v11 }
0x13e6   : > { %4807 = vmatprep.subr.bf16.mxu1 %v4806_v57 }
0x13e7   : > { %5016 = vpow2.f32 %v3318_v7  ;;  %4809 = vmatpush3.bf16.msra.mxu1 %v4806_v57 }
0x13e8   : > { %5018 = vpow2.f32 %v3316_v6  ;;  %4811 = vmatprep.subr.bf16.mxu1 %v4810_v0  ;;  %v3960_v6 = vld [vmem:[%s5885_s8 + $0x98] sm:$0xff] }
0x13e9   : > { %v4826_v7 = vpack.c.bf16 %v3960_v6, %v3959_v5  ;;  %v3769_v6 = vrot.slane %v5619_v53, %v2162_v45 }
0x13eb   : > { %4813 = vmatpush3.bf16.msra.mxu1 %v4810_v0 }
0x13ec   : > { %4815 = vmatprep.subr.bf16.mxu1 %v4814_v40 }
0x13ef   : > { %4817 = vmatpush3.bf16.msra.mxu1 %v4814_v40 }
0x13f0   : > { %4819 = vmatprep.subr.bf16.mxu1 %v4818_v60 }
0x13f1   : > { %v5017_v10 = vpop.eup %5016 }
0x13f2   : > { %v3323_v30 = vsel %vm776_vm2, %v5017_v10, 0.0  ;;  %v5019_v12 = vpop.eup %5018 }
0x13f3   : > { %3324 = vadd.xlane.f32.xlu1 %v3323_v30  ;;  %v3320_v13 = vsel %vm776_vm2, %v5019_v12, 0.0  ;;  %4821 = vmatpush3.bf16.msra.mxu1 %v4818_v60  ;;  %v3962_v30 = vld [vmem:[%s5885_s8 + $0xa8] sm:$0xff] }
0x13f7   : > { %3321 = vadd.xlane.f32.xlu1 %v3320_v13  ;;  %v3963_v13 = vld [vmem:[%s5885_s8 + $0xb0] sm:$0xff] }
0x1408   : > { %4948 = vrot.lane.b32.xlu1 %v5647_v3, %s5046_s12  ;;  %s359_s12 = scalar_lea.vmem %s5887_s10, %s3976_s30 }
0x142e   : > { %v4455_v16 = vpop.f32.mrb[20].mxu0 }
0x142f   : > { %v3125_v19 = vpop.f32.mrb[21].mxu0 }
0x1430   : > { %4460 = vmatprep.mubr.msk.f32.mxu0 %vm776_vm2, %v3125_v19 }
0x1431   : > { %4461 = vmatmul.mubr.msk.f32.vlgmr.msra.gmra.mrb[18].mxu0 %vm776_vm2, %v4455_v16  ;;  %v3964_v16 = vld [vmem:[%s5885_s8 + $0xb8] sm:$0xff] }
0x1432   : > { %v4834_v19 = vpack.c.bf16 %v3964_v16, %v3963_v13 }
0x1480   : > { %v3325_v20 = vpop.xlane.xlu1 %3324 }
0x1481   : > { %5020 = vrcp.f32 %v3325_v20  ;;  %v3965_v20 = vld [vmem:[%s5885_s8 + $0xc0] sm:$0xff] }
0x1484   : > { %v3322_v21 = vpop.xlane.xlu1 %3321 }
0x1485   : > { %5022 = vrcp.f32 %v3322_v21  ;;  %v3966_v21 = vld [vmem:[%s5885_s8 + $0xc8] sm:$0xff] }
0x1488   : > { %v4949_v22 = vpop.permute.xlu1 %4948 }
0x1489   : > { %v4951_v3 = vunpack.i.h.bf16 %v4949_v22  ;;  %v4950_v25 = vunpack.i.l.bf16 %v4949_v22  ;;  %v4838_v22 = vpack.c.bf16 %v3966_v21, %v3965_v20 }
0x148b   : > { %v4798_v26 = vpack.c.bf16 %v4951_v3, %v4950_v25  ;;  %v5021_v28 = vpop.eup %5020  ;;  %v4842_v3 = vpack.c.bf16 %v3968_v24, %v3967_v23  ;;  %v3969_v25 = vld [vmem:[%s5885_s8 + $0xe0] sm:$0xff] }
0x148c   : > { %v3329_v31 = vmul.f32 %v5021_v28, %v5017_v10  ;;  %v3961_v10 = vld [vmem:[%s5885_s8 + $0xa0] sm:$0xff] }
0x148d   : > { %4799 = vmatprep.subr.bf16.mxu0 %v4798_v26 }
0x148e   : > { %4801 = vmatpush3.bf16.msra.mxu0 %v4798_v26  ;;  %v3970_v26 = vld [vmem:[%s5885_s8 + $0xe8] sm:$0xff] }
0x148f   : > { %v5023_v29 = vpop.eup %5022  ;;  %4803 = vmatprep.subr.bf16.mxu0 %v4802_v27 }
0x1490   : > { %v3327_v50 = vmul.f32 %v5023_v29, %v5019_v12  ;;  %v4830_v12 = vpack.c.bf16 %v3962_v30, %v3961_v10 }
0x1492   : > { %4474 = vmatprep.mubr.msk.f32.mxu0 %vm776_vm2, %v3327_v50 }
0x1493   : > { %4475 = vmatmul.mubr.msk.f32.vlgmr.msra.gmra.mrb[22].mxu0 %vm776_vm2, %v3329_v31 }
0x1494   : > { %4805 = vmatpush3.bf16.msra.mxu0 %v4802_v27  ;;  %v4846_v27 = vpack.c.bf16 %v3970_v26, %v3969_v25 }
0x1495   : > { %4823 = vmatprep.subr.bf16.mxu0 %v4822_v62 }
0x1566   : > { %v4476_v32 = vpop.f32.mrb[22].mxu0 }
0x1567   : > { %v3408_v33 = vpop.f32.mrb[23].mxu0 }
0x1568   : > { %4481 = vmatprep.mubr.msk.f32.mxu0 %vm776_vm2, %v3408_v33 }
0x1569   : > { %4482 = vmatmul.mubr.msk.f32.vlgmr.msra.gmra.mrb[18].mxu0 %vm776_vm2, %v4476_v32 }
0x156a   : > { %4825 = vmatpush3.bf16.msra.mxu0 %v4822_v62 }
0x156b   : > { %4827 = vmatprep.subr.bf16.mxu0 %v4826_v7 }
0x156e   : > { %4829 = vmatpush3.bf16.msra.mxu0 %v4826_v7 }
0x156f   : > { %4831 = vmatprep.subr.bf16.mxu0 %v4830_v12 }
0x1572   : > { %4833 = vmatpush3.bf16.msra.mxu0 %v4830_v12 }
0x1573   : > { %4835 = vmatprep.subr.bf16.mxu0 %v4834_v19 }
0x1576   : > { %4837 = vmatpush3.bf16.msra.mxu0 %v4834_v19 }
0x1577   : > { %4839 = vmatprep.subr.bf16.mxu0 %v4838_v22 }
0x157a   : > { %4841 = vmatpush3.bf16.msra.mxu0 %v4838_v22 }
0x157b   : > { %4843 = vmatprep.subr.bf16.mxu0 %v4842_v3 }
0x157e   : > { %4845 = vmatpush3.bf16.msra.mxu0 %v4842_v3 }
0x157f   : > { %4847 = vmatprep.subr.bf16.mxu0 %v4846_v27 }
0x1582   : > { %4849 = vmatpush3.bf16.msra.mxu0 %v4846_v27 }
0x163c   : > { %v4483_v9 = vpop.f32.mrb[18].mxu0 }
0x163d   : > { %v3505_v14 = vadd.f32 %v4483_v9, %v3502_v36  ;;  %v3489_v34 = vpop.f32.mrb[19].mxu0 }
0x163e   : > { %v3504_v35 = vadd.f32 %v3502_v36, %v3489_v34 }
0x163f   : > { %v3507_v41 = vadd.f32 %v3505_v14, %v5584_v18 }
0x1640   : > { %v3506_v42 = vadd.f32 %v3504_v35, %v5586_v37 }
0x1641   : > { %v3511_v38 = vsel %vm395_vm0, %v3507_v41, 0.0 }
0x1642   : > { %3512 = vadd.xlane.f32.xlu1 %v3511_v38  ;;  %v3508_v43 = vsel %vm395_vm0, %v3506_v42, 0.0 }
0x1643   : > { %3509 = vadd.xlane.f32.xlu0 %v3508_v43 }
0x16cf   : > { %v3513_v46 = vpop.xlane.xlu1 %3512 }
0x16d0   : > { %v3515_v47 = vmul.f32 0.015625, %v3513_v46  ;;  %v3510_v48 = vpop.xlane.xlu0 %3509  ;;  %v3971_v46 = vld [vmem:[%s5885_s8 + $0xf0] sm:$0xff] }
0x16d1   : > { %v3514_v15 = vmul.f32 0.015625, %v3510_v48 }
0x16d2   : > { %v5759_v17 = vsub.f32 %v3507_v41, %v3515_v47  ;;  %v3972_v47 = vld [vmem:[%s5885_s8 + $0xf8] sm:$0xff] }
0x16d3   : > { %v5761_v49 = vsub.f32 %v3506_v42, %v3514_v15  ;;  %v4850_v48 = vpack.c.bf16 %v3972_v47, %v3971_v46  ;;  %v3558_v15 = vrot.slane %v5619_v53, %v1952_v8 }
0x16d4   : > { %v3519_v37 = vmul.f32 %v5759_v17, %v5759_v17 }
0x16d5   : > { %v3518_v39 = vmul.f32 %v5761_v49, %v5761_v49  ;;  %4851 = vmatprep.subr.bf16.mxu0 %v4850_v48 }
0x16d6   : > { %v3523_v54 = vsel %vm395_vm0, %v3519_v37, 0.0  ;;  %4853 = vmatpush3.bf16.msra.mxu0 %v4850_v48 }
0x16d7   : > { %v3520_v18 = vsel %vm395_vm0, %v3518_v39, 0.0 }
0x16d8   : > { %3521 = vadd.xlane.f32.xlu0 %v3520_v18 }
0x16dc   : > { %3524 = vadd.xlane.f32.xlu0 %v3523_v54 }
0x16f2   : > { %3541 = vrot.lane.b32.xlu0 %v5778_v52, %s5041_s26 }
0x1765   : > { %v3522_v28 = vpop.xlane.xlu0 %3521 }
0x1766   : > { %v3526_v29 = vmul.f32 0.015625, %v3522_v28 }
0x1768   : > { %v3528_v50 = vadd.f32 1e-05, %v3526_v29 }
0x1769   : > { %v3525_v31 = vpop.xlane.xlu0 %3524 }
0x176a   : > { %5024 = vrsqrt.f32 %v3528_v50  ;;  %v3527_v32 = vmul.f32 0.015625, %v3525_v31 }
0x176c   : > { %v3529_v33 = vadd.f32 1e-05, %v3527_v32 }
0x176d   : > { %v3542_v14 = vpop.permute.xlu0 %3541 }
0x176e   : > { %5026 = vrsqrt.f32 %v3529_v33 }
0x1774   : > { %v5025_v36 = vpop.eup %5024 }
0x1775   : > { %v3532_v9 = vmul.f32 %v5025_v36, %v5761_v49 }
0x1777   : > { %v3538_v34 = vmul.f32 %v5778_v52, %v3532_v9 }
0x1778   : > { %v5027_v35 = vpop.eup %5026 }
0x1779   : > { %v3533_v41 = vmul.f32 %v5027_v35, %v5759_v17  ;;  %v3544_v42 = vadd.f32 %v3542_v14, %v3538_v34 }
0x177b   : > { %v3539_v38 = vmul.f32 %v5778_v52, %v3533_v41  ;;  %4500 = vmatprep.mubr.msk.f32.mxu1 %vm395_vm0, %v3544_v42 }
0x177d   : > { %v3545_v43 = vadd.f32 %v3542_v14, %v3539_v38 }
0x177f   : > { %4501 = vmatmul.mubr.msk.f32.vlgmr.msra.gmra.mrb[32].mxu1 %vm395_vm0, %v3545_v43 }
0x1852   : > { %v4502_v17 = vpop.f32.mrb[32].mxu1 }
0x1853   : > { %v3637_v49 = vadd.f32 %v4502_v17, %v3558_v15  ;;  %v3631_v39 = vpop.f32.mrb[33].mxu1 }
0x1854   : > { %v3632_v18 = vadd.f32 %v3631_v39, %v3558_v15 }
0x1855   : > { %v3641_v54 = vmax.f32 %v3637_v49, 0.0 }
0x1856   : > { %v3640_v37 = vmax.f32 %v3632_v18, 0.0 }
0x1858   : > { %4535 = vmatprep.mubr.f32.mxu0 %v3640_v37 }
0x1859   : > { %4536 = vmatmul.mubr.f32.vlgmr.msra.gmra.mrb[24].mxu0 %v3641_v54 }
0x192c   : > { %v4537_v56 = vpop.f32.mrb[24].mxu0 }
0x192d   : > { %v3729_v57 = vpop.f32.mrb[25].mxu0  ;;  %v3735_v52 = vadd.f32 %v4537_v56, %v3662_v55 }
0x192e   : > { %v3730_v58 = vadd.f32 %v3729_v57, %v3662_v55 }
0x192f   : > { %v3739_v8 = vadd.f32 %v3735_v52, %v3545_v43 }
0x1930   : > { %v3738_v61 = vadd.f32 %v3730_v58, %v3544_v42 }
0x1931   : > { %v3743_v0 = vsel %vm395_vm0, %v3739_v8, 0.0 }
0x1932   : > { %v3740_v63 = vsel %vm395_vm0, %v3738_v61, 0.0 }
0x1933   : > { %3741 = vadd.xlane.f32.xlu1 %v3740_v63 }
0x1937   : > { %3744 = vadd.xlane.f32.xlu1 %v3743_v0 }
0x19c0   : > { %v3742_v1 = vpop.xlane.xlu1 %3741 }
0x19c1   : > { %v3746_v40 = vmul.f32 0.015625, %v3742_v1 }
0x19c3   : > { %v3748_v60 = vsub.f32 %v3738_v61, %v3746_v40 }
0x19c4   : > { %v3745_v59 = vpop.xlane.xlu1 %3744 }
0x19c5   : > { %v3747_v2 = vmul.f32 0.015625, %v3745_v59  ;;  %v3750_v5 = vmul.f32 %v3748_v60, %v3748_v60 }
0x19c7   : > { %v3749_v11 = vsub.f32 %v3739_v8, %v3747_v2  ;;  %v3752_v62 = vsel %vm395_vm0, %v3750_v5, 0.0 }
0x19c9   : > { %v3751_v4 = vmul.f32 %v3749_v11, %v3749_v11 }
0x19cb   : > { %v3755_v44 = vsel %vm395_vm0, %v3751_v4, 0.0 }
0x19cc   : > { %3756 = vadd.xlane.f32.xlu1 %v3755_v44 }
0x19d0   : > { %3753 = vadd.xlane.f32.xlu1 %v3752_v62 }
0x19e1   : > { %3773 = vrot.lane.b32.xlu1 %v3769_v6, %s5041_s26 }
0x1a59   : > { %v3757_v7 = vpop.xlane.xlu1 %3756 }
0x1a5a   : > { %v3759_v10 = vmul.f32 0.015625, %v3757_v7 }
0x1a5c   : > { %v3761_v30 = vadd.f32 1e-05, %v3759_v10 }
0x1a5d   : > { %v3754_v12 = vpop.xlane.xlu1 %3753 }
0x1a5e   : > { %5028 = vrsqrt.f32 %v3761_v30  ;;  %v3758_v13 = vmul.f32 0.015625, %v3754_v12 }
0x1a60   : > { %v3760_v16 = vadd.f32 1e-05, %v3758_v13 }
0x1a61   : > { %v3774_v21 = vpop.permute.xlu1 %3773 }
0x1a62   : > { %5030 = vrsqrt.f32 %v3760_v16 }
0x1a68   : > { %v5029_v19 = vpop.eup %5028 }
0x1a69   : > { %v3765_v20 = vmul.f32 %v5029_v19, %v3749_v11 }
0x1a6b   : > { %v3771_v22 = vmul.f32 %v3769_v6, %v3765_v20 }
0x1a6c   : > { %v5031_v23 = vpop.eup %5030 }
0x1a6d   : > { %v3764_v51 = vmul.f32 %v5031_v23, %v3748_v60  ;;  %v3777_v45 = vadd.f32 %v3774_v21, %v3771_v22 }
0x1a6f   : > { %v3770_v53 = vmul.f32 %v3769_v6, %v3764_v51  ;;  %3779 = vst.msk [vmem:[%s359_s12 + $0x8] sm:$0xff] %vm395_vm0, %v3777_v45 }
0x1a71   : > { %v3776_v24 = vadd.f32 %v3774_v21, %v3770_v53 }
0x1a73   : > { %3778 = vst.msk [vmem:[%s359_s12] sm:$0xff] %vm395_vm0, %v3776_v24 }
0x1a74 PF: > { %s20_s13 = sadd.s32 1, %s5038_s13  }
0x1a75   : > { %p17_p4 = scmp.ge.s32.totalorder %s20_s13, 4  }
0x1a77   :  { %19 = sbr.rel (!%p17_p4) target bundleno = 1 (0x1), region = 95 }

// kernel: detr_vit_forward.3
= control target key start
LH: loop header
LB: loop body
LE: loop exit
PB: predicated region body
PF: predicated region fallthrough
CT: control target
= control target key end

     0   :  { %s7908_s17 = smov 0   ;;  %s9199_s0 = inlined_call_operand.vmem [shape: f32[2,16,64], index: 0, kind: input, shape index: {}]   ;;  %s9200_s1 = inlined_call_operand.vmem [shape: f32[16,64], index: 1, kind: input, shape index: {}]   ;;  %s9201_s2 = inlined_call_operand.vmem [shape: f32[8,64], index: 2, kind: input, shape index: {}]   ;;  %s9202_s3 = inlined_call_operand.vmem [shape: f32[2,64,128], index: 3, kind: input, shape index: {}]   ;;  %s9203_s4 = inlined_call_operand.vmem [shape: f32[2,6,64,64], index: 4, kind: input, shape index: {}]   ;;  %s9204_s5 = inlined_call_operand.vmem [shape: f32[2,64,128], index: 5, kind: input, shape index: {}]   ;;  %s9205_s6 = inlined_call_operand.vmem [shape: f32[2,128,64], index: 6, kind: input, shape index: {}]   ;;  %s9206_s7 = inlined_call_operand.vmem [shape: f32[2,16,128], index: 7, kind: input, shape index: {}]   ;;  %s9207_s8 = inlined_call_operand.vmem [shape: f32[2,64,64], index: 8, kind: input, shape index: {}]   ;;  %s9208_s9 = inlined_call_operand.vmem [shape: f32[2,64,128], index: 9, kind: input, shape index: {}]   ;;  %s9209_s10 = inlined_call_operand.vmem [shape: f32[8,128], index: 10, kind: input, shape index: {}]   ;;  %s9210_s11 = inlined_call_operand.vmem [shape: f32[2,8,128], index: 11, kind: output, shape index: {}]  }
   0x1 LB: > { %s6116_s18 = sadd.s32 4294967295, %s7836_s17   ;;  %p6120_p0 = scmp.ge.s32.totalorder %s7836_s17, 1  ;;  %s7836_s17 = sphi %s7908_s17, %s21_s17  }
   0x2   : > { %p337_p1 = scmp.lt.s32.totalorder %s7836_s17, 3 }
   0x4   : > { %p338_p2 = pnand %p6120_p0, %p337_p1 }
   0x5   : > { %v443_v0 = vld [vmem:[%s9202_s3] sm:$0xff] (!%p338_p2)  ;;  %v444_v1 = vld [vmem:[%s9202_s3 + $0x8] sm:$0xff] (!%p338_p2)  ;;  %v445_v2 = vld [vmem:[%s9202_s3 + $0x10] sm:$0xff] (!%p338_p2)  ;;  %v7838_v3 = vmov (!%p338_p2), 0.0|0.0   ;;  %vm7839_vm0 = vmmov (!%p338_p2), 0   ;;  %v7840_v6 = vmov (!%p338_p2), 0.0   ;;  %v525_v15 = vlaneseq (!%p338_p2) }
   0x6   : > { %341 = sbr.rel (%p338_p2) target bundleno = 14546 (0x38d2), region = 64  ;;  %7305 = vmatprep.subr.bf16.mxu0 (!%p338_p2), %v7838_v3  ;;  %v7306_v4 = vpack.c.bf16 (!%p338_p2), %v444_v1, %v443_v0  ;;  %v446_v5 = vld [vmem:[%s9202_s3 + $0x18] sm:$0xff] (!%p338_p2)  ;;  %6643 = vmatprep.mubr.msk.f32.mxu0 (!%p338_p2), %vm7839_vm0, %v7840_v6  ;;  %v447_v8 = vld [vmem:[%s9202_s3 + $0x20] sm:$0xff] (!%p338_p2)  ;;  %v448_v9 = vld [vmem:[%s9202_s3 + $0x28] sm:$0xff] (!%p338_p2)  ;;  %vm451_vm1 = vcmask (!%p338_p2), 523264   ;;  %s7841_s15 = smov (!%p338_p2), 64  }
   0x7   : > { %7317 = vmatprep.subr.bf16.mxu1 (!%p338_p2), %v7838_v3  ;;  %6662 = vmatprep.mubr.msk.f32.mxu1 (!%p338_p2), %vm7839_vm0, %v7840_v6  ;;  %v7309_v7 = vpack.c.bf16 (!%p338_p2), %v446_v5, %v445_v2  ;;  %v7312_v10 = vpack.c.bf16 (!%p338_p2), %v448_v9, %v447_v8  ;;  %v449_v11 = vld [vmem:[%s9202_s3 + $0x30] sm:$0xff] (!%p338_p2)  ;;  %v450_v12 = vld [vmem:[%s9202_s3 + $0x38] sm:$0xff] (!%p338_p2)  ;;  %v7952_v14 = vld [vmem:[%s9201_s2] sm:$0xff] (!%p338_p2)  ;;  %v7960_v16 = vshrl.u32 (!%p338_p2), %v525_v15, 7  ;;  %s7842_s16 = smov (!%p338_p2), 112   ;;  %s7843_s23 = smov (!%p338_p2), 48  }
   0x8   : > { %7307 = vmatpush3.bf16.msra.mxu0 (!%p338_p2), %v7306_v4  ;;  %v7315_v13 = vpack.c.bf16 (!%p338_p2), %v450_v12, %v449_v11  ;;  %v7968_v18 = vld [vmem:[%s9206_s7] sm:$0xff] (!%p338_p2)  ;;  %v395_v21 = vld [vmem:[%s9203_s4 + $0x8] sm:$0xff] (!%p338_p2)  ;;  %v396_v22 = vld [vmem:[%s9203_s4 + $0x10] sm:$0xff] (!%p338_p2)  ;;  %vm611_vm2 = vcmask (!%p338_p2), 130048   ;;  %vm687_vm3 = vcmask (!%p338_p2), 64512   ;;  %s7844_s24 = smov (!%p338_p2), 32  }
   0x9   : > { %7308 = vmatprep.subr.bf16.mxu0 (!%p338_p2), %v7838_v3  ;;  %v7963_v17 = vsub.s32 (!%p338_p2), 0, %v7960_v16  ;;  %v394_v20 = vld [vmem:[%s9203_s4] sm:$0xff] (!%p338_p2)  ;;  %v397_v24 = vld [vmem:[%s9203_s4 + $0x18] sm:$0xff] (!%p338_p2)  ;;  %v399_v30 = vld [vmem:[%s9203_s4 + $0x28] sm:$0xff] (!%p338_p2)  ;;  %v8028_v45 = vsub.s32 (!%p338_p2), 1, %v7960_v16  ;;  %s7845_s25 = smov (!%p338_p2), 96  }
   0xa   : > { %v7318_v23 = vpack.c.bf16 (!%p338_p2), %v395_v21, %v394_v20  ;;  %v7321_v26 = vpack.c.bf16 (!%p338_p2), %v397_v24, %v396_v22  ;;  %v398_v29 = vld [vmem:[%s9203_s4 + $0x20] sm:$0xff] (!%p338_p2)  ;;  %v400_v33 = vld [vmem:[%s9203_s4 + $0x30] sm:$0xff] (!%p338_p2)  ;;  %v401_v34 = vld [vmem:[%s9203_s4 + $0x38] sm:$0xff] (!%p338_p2)  ;;  %s7846_s19 = smov (!%p338_p2), 80   ;;  %s9211_s20 = smov (!%p338_p2), 16  }
   0xb   : > { %v528_v19 = vrot.slane (!%p338_p2), %v7968_v18, %v7963_v17  ;;  %v7324_v32 = vpack.c.bf16 (!%p338_p2), %v399_v30, %v398_v29  ;;  %v7327_v35 = vpack.c.bf16 (!%p338_p2), %v401_v34, %v400_v33  ;;  %v8032_v48 = vrot.slane (!%p338_p2), %v7968_v18, %v8028_v45  ;;  %v404_v60 = vld [vmem:[%s9203_s4 + $0x50] sm:$0xff] (!%p338_p2)  ;;  %v405_v61 = vld [vmem:[%s9203_s4 + $0x58] sm:$0xff] (!%p338_p2)  ;;  %v402_v5 = vld [vmem:[%s9203_s4 + $0x40] sm:$0xff] (!%p338_p2)  ;;  %p376_p3 = scmp.lt.s32.totalorder (!%p338_p2), %s6116_s18, 1 }
   0xc   : > { %7310 = vmatpush3.bf16.msra.mxu0 (!%p338_p2), %v7309_v7  ;;  %7319 = vmatpush3.bf16.msra.mxu1 (!%p338_p2), %v7318_v23  ;;  %v7330_v62 = vpack.c.bf16 (!%p338_p2), %v405_v61, %v404_v60  ;;  %v403_v7 = vld [vmem:[%s9203_s4 + $0x48] sm:$0xff] (!%p338_p2)  ;;  %vm8234_vm4 = vmpackc.low (!%p338_p2), %vm611_vm2, %vm611_vm2 }
   0xd   : > { %7311 = vmatprep.subr.bf16.mxu0 %v7838_v3  ;;  %7320 = vmatprep.subr.bf16.mxu1 %v7838_v3  ;;  %v7333_v9 = vpack.c.bf16 %v403_v7, %v402_v5  ;;  %s9216_s18 = smov (!%p376_p3, %s6116_s18), 1 }
   0xe   : > { %s6316_s26 = sshll.u32 %s9216_s18, 4 }
   0xf   : > { %s8186_s14 = scalar_lea.vmem %s9199_s0, %s6316_s26 }
  0x10   : > { %7313 = vmatpush3.bf16.msra.mxu0 %v7312_v10  ;;  %7322 = vmatpush3.bf16.msra.mxu1 %v7321_v26 }
  0x11   : > { %7314 = vmatprep.subr.bf16.mxu0 %v7838_v3  ;;  %7323 = vmatprep.subr.bf16.mxu1 %v7838_v3 }
  0x14   : > { %7316 = vmatpush3.bf16.msra.mxu0 %v7315_v13  ;;  %7325 = vmatpush3.bf16.msra.mxu1 %v7324_v32 }
  0x15   : > { %6665 = vmatprep.subr.mxu0 %v7840_v6  ;;  %7326 = vmatprep.subr.bf16.mxu1 %v7838_v3 }
  0x17   : > { %6644 = vmatmul.mubr.msk.f32.vlgmr.msra.gmra.mrb[0].mxu0 %vm451_vm1, %v7952_v14 }
  0x18   : > { %6667 = vmatprep.mubr.msk.f32.mxu0 %vm7839_vm0, %v7840_v6  ;;  %7328 = vmatpush3.bf16.msra.mxu1 %v7327_v35 }
  0x19   : > { %6670 = vmatprep.subr.mxu1 %v7840_v6 }
  0x1b   : > { %6663 = vmatmul.mubr.f32.vlgmr.msra.gmra.mrb[0].mxu1 %v7840_v6 }
  0x1c   : > { %6672 = vmatprep.mubr.msk.f32.mxu1 %vm7839_vm0, %v7840_v6 }
  0xea   : > { %v521_v25 = vpop.f32.mrb[0].mxu0 }
  0xeb   : > { %v7984_v27 = vadd.f32 %v528_v19, %v521_v25  ;;  %v6645_v28 = vpop.f32.mrb[1].mxu0 }
  0xed   : > { %609 = vrot.lane.b32.xlu0 %v7984_v27, %s7841_s15  ;;  %v7996_v31 = vmul.f32 0.25, %v7984_v27 }
  0xee   : > { %v603_v46 = vpop.f32.mrb[0].mxu1 }
  0xef   : > { %772 = vrot.lane.b32.xlu1 %v7996_v31, %s7842_s16  ;;  %v6664_v47 = vpop.f32.mrb[1].mxu1  ;;  %v8035_v49 = vadd.f32 %v603_v46, %v8032_v48 }
  0xf1   : > { %774 = vrot.lane.b32.xlu0 %v7984_v27, %s7843_s23  ;;  %6671 = vmatpush3.msra.mxu1 %v8035_v49 }
  0xf2   : > { %6680 = vmatprep.subr.mxu1 %v7840_v6 }
 0x15f   : > { %v610_v36 = vpop.permute.xlu0 %609 }
 0x160   : > { %6666 = vmatpush3.xpose.msk.msra.mxu0 %vm611_vm2, %v610_v36 }
 0x161   : > { %6675 = vmatprep.subr.mxu0 %v7840_v6  ;;  %v773_v38 = vpop.permute.xlu1 %772 }
 0x163   : > { %v775_v37 = vpop.permute.xlu0 %774  ;;  %6668 = vmatmul.mubr.msk.f32.vlgmr.msra.gmra.mrb[2].mxu0 %vm611_vm2, %v7996_v31 }
 0x164   : > { %6676 = vmatpush3.xpose.msk.msra.mxu0 %vm611_vm2, %v775_v37  ;;  %6677 = vmatprep.mubr.msk.f32.mxu0 %vm7839_vm0, %v7840_v6 }
 0x165   : > { %7329 = vmatprep.subr.bf16.mxu0 %v7838_v3 }
 0x167   : > { %6678 = vmatmul.mubr.msk.f32.vlgmr.msra.gmra.mrb[4].mxu0 %vm611_vm2, %v773_v38  ;;  %v407_v38 = vld [vmem:[%s9203_s4 + $0x68] sm:$0xff] }
 0x168   : > { %6689 = vmatprep.mubr.msk.f32.mxu0 %vm7839_vm0, %v7840_v6  ;;  %7331 = vmatpush3.bf16.msra.mxu0 %v7330_v62 }
 0x169   : > { %6699 = vmatprep.subr.mxu0 %v7840_v6 }
 0x236   : > { %v683_v39 = vpop.f32.mrb[2].mxu0 }
 0x237   : > { %v6669_v40 = vpop.f32.mrb[3].mxu0  ;;  %v688_v41 = vsel %vm687_vm3, %v683_v39, -inf }
 0x238   : > { %689 = vmax.xlane.f32.xlu1 %v688_v41 }
 0x23a   : > { %v846_v42 = vpop.f32.mrb[4].mxu0 }
 0x23b   : > { %v6679_v43 = vpop.f32.mrb[5].mxu0  ;;  %v850_v44 = vsel %vm687_vm3, %v846_v42, -inf }
 0x23c   : > { %851 = vmax.xlane.f32.xlu0 %v850_v44 }
 0x2c5   : > { %v690_v50 = vpop.xlane.xlu1 %689 }
 0x2c6   : > { %v691_v51 = vsub.f32 %v683_v39, %v690_v50 }
 0x2c8   : > { %v692_v52 = vmul.f32 1.442695, %v691_v51 }
 0x2c9   : > { %v852_v53 = vpop.xlane.xlu0 %851 }
 0x2ca   : > { %7743 = vpow2.f32 %v692_v52  ;;  %v853_v54 = vsub.f32 %v846_v42, %v852_v53 }
 0x2cc   : > { %v854_v55 = vmul.f32 1.442695, %v853_v54 }
 0x2ce   : > { %7745 = vpow2.f32 %v854_v55 }
 0x2d4   : > { %v7744_v56 = vpop.eup %7743 }
 0x2d5   : > { %v694_v57 = vsel %vm687_vm3, %v7744_v56, 0.0 }
 0x2d6   : > { %695 = vadd.xlane.f32.xlu0 %v694_v57  ;;  %v408_v57 = vld [vmem:[%s9203_s4 + $0x70] sm:$0xff] }
 0x2d8   : > { %v7746_v58 = vpop.eup %7745 }
 0x2d9   : > { %v856_v59 = vsel %vm687_vm3, %v7746_v58, 0.0 }
 0x2da   : > { %857 = vadd.xlane.f32.xlu1 %v856_v59 }
 0x2eb   : > { %1086 = vrot.lane.b32.xlu1 %v7984_v27, %s7844_s24 }
 0x2ec   : > { %862 = vrot.lane.b32.xlu0 %v8035_v49, %s7842_s16 }
 0x2ef   : > { %1084 = vrot.lane.b32.xlu1 %v7996_v31, %s7845_s25 }
 0x363   : > { %v696_v63 = vpop.xlane.xlu0 %695 }
 0x364   : > { %7747 = vrcp.f32 %v696_v63 }
 0x367   : > { %v858_v0 = vpop.xlane.xlu1 %857  ;;  %v863_v4 = vpop.permute.xlu0 %862 }
 0x368   : > { %7749 = vrcp.f32 %v858_v0 }
 0x36b   : > { %v1087_v13 = vpop.permute.xlu1 %1086 }
 0x36e   : > { %v7748_v1 = vpop.eup %7747 }
 0x36f   : > { %v698_v2 = vmul.f32 %v7748_v1, %v7744_v56  ;;  %v1085_v21 = vpop.permute.xlu1 %1084 }
 0x371   : > { %6673 = vmatmul.mubr.msk.f32.vlgmr.msra.gmra.mrb[2].mxu1 %vm687_vm3, %v698_v2 }
 0x372   : > { %v7750_v8 = vpop.eup %7749  ;;  %6681 = vmatpush3.msra.mxu1 %v863_v4  ;;  %6682 = vmatprep.mubr.msk.f32.mxu1 %vm7839_vm0, %v7840_v6 }
 0x373   : > { %v860_v10 = vmul.f32 %v7750_v8, %v7746_v58  ;;  %7332 = vmatprep.subr.bf16.mxu1 %v7838_v3  ;;  %v409_v58 = vld [vmem:[%s9203_s4 + $0x78] sm:$0xff] }
 0x375   : > { %6683 = vmatmul.mubr.msk.f32.vlgmr.msra.gmra.mrb[4].mxu1 %vm687_vm3, %v860_v10 }
 0x376   : > { %7334 = vmatpush3.bf16.msra.mxu1 %v7333_v9  ;;  %6696 = vmatprep.mubr.msk.f32.mxu1 %vm7839_vm0, %v7840_v6 }
 0x377   : > { %6704 = vmatprep.subr.mxu1 %v7840_v6 }
 0x444   : > { %v768_v11 = vpop.f32.mrb[2].mxu1 }
 0x445   : > { %v6674_v12 = vpop.f32.mrb[3].mxu1  ;;  %6697 = vmatmul.mubr.msk.f32.vlgmr.msra.gmra.mrb[6].mxu1 %vm611_vm2, %v768_v11  ;;  %v418_v11 = vld [vmem:[%s9203_s4 + $0xc0] sm:$0xff] }
 0x446   : > { %6706 = vmatprep.mubr.msk.f32.mxu1 %vm7839_vm0, %v7840_v6  ;;  %v419_v12 = vld [vmem:[%s9203_s4 + $0xc8] sm:$0xff] }
 0x448   : > { %v934_v19 = vpop.f32.mrb[4].mxu1 }
 0x449   : > { %v6684_v20 = vpop.f32.mrb[5].mxu1  ;;  %6690 = vmatmul.mubr.msk.f32.vlgmr.msra.gmra.mrb[6].mxu0 %vm611_vm2, %v934_v19 }
 0x44a   : > { %6700 = vmatpush3.xpose.msk.msra.mxu0 %vm611_vm2, %v1087_v13  ;;  %6701 = vmatprep.mubr.msk.f32.mxu0 %vm7839_vm0, %v7840_v6  ;;  %v7353_v13 = vpack.c.bf16 %v419_v12, %v418_v11 }
 0x44b   : > { %7335 = vmatprep.subr.bf16.mxu0 %v7838_v3 }
 0x44d   : > { %6702 = vmatmul.mubr.msk.f32.vlgmr.msra.gmra.mrb[8].mxu0 %vm611_vm2, %v1085_v21 }
 0x44e   : > { %6713 = vmatprep.mubr.msk.f32.mxu0 %vm7839_vm0, %v7840_v6 }
 0x518   : > { %v1080_v22 = vpop.f32.mrb[6].mxu1 }
 0x519   : > { %v6698_v23 = vpop.f32.mrb[7].mxu1 }
 0x51c   : > { %v1007_v24 = vpop.f32.mrb[6].mxu0 }
 0x51d   : > { %v1081_v25 = vadd.f32 %v1080_v22, %v1007_v24  ;;  %v6691_v26 = vpop.f32.mrb[7].mxu0  ;;  %v1584_v24 = vsub.s32 4, %v7960_v16 }
 0x51e   : > { %v421_v26 = vld [vmem:[%s9203_s4 + $0xd8] sm:$0xff] }
 0x520   : > { %v1158_v28 = vpop.f32.mrb[8].mxu0 }
 0x521   : > { %v6703_v29 = vpop.f32.mrb[9].mxu0  ;;  %v1162_v30 = vsel %vm687_vm3, %v1158_v28, -inf }
 0x522   : > { %1163 = vmax.xlane.f32.xlu0 %v1162_v30  ;;  %v1585_v29 = vrot.slane %v7968_v18, %v1584_v24  ;;  %v422_v30 = vld [vmem:[%s9203_s4 + $0xe0] sm:$0xff] }
 0x538   : > { %1173 = vrot.lane.b32.xlu0 %v8035_v49, %s7845_s25 }
 0x53c   : > { %1323 = vrot.lane.b32.xlu0 %v7996_v31, %s7846_s19  ;;  %v406_v31 = vld [vmem:[%s9203_s4 + $0x60] sm:$0xff] }
 0x53d   : > { %v7336_v39 = vpack.c.bf16 %v407_v38, %v406_v31 }
 0x53f   : > { %7337 = vmatpush3.bf16.msra.mxu0 %v7336_v39  ;;  %v412_v39 = vld [vmem:[%s9203_s4 + $0x90] sm:$0xff] }
 0x540   : > { %6721 = vmatprep.subr.mxu0 %v7840_v6 }
 0x5af   : > { %v1164_v32 = vpop.xlane.xlu0 %1163 }
 0x5b0   : > { %v1165_v33 = vsub.f32 %v1158_v28, %v1164_v32  ;;  %v423_v32 = vld [vmem:[%s9203_s4 + $0xe8] sm:$0xff] }
 0x5b2   : > { %v1166_v34 = vmul.f32 1.442695, %v1165_v33  ;;  %v410_v33 = vld [vmem:[%s9203_s4 + $0x80] sm:$0xff] }
 0x5b3   : > { %v1174_v35 = vpop.permute.xlu0 %1173 }
 0x5b4   : > { %7751 = vpow2.f32 %v1166_v34  ;;  %6705 = vmatpush3.msra.mxu1 %v1174_v35  ;;  %v7361_v34 = vpack.c.bf16 %v423_v32, %v422_v30  ;;  %v411_v35 = vld [vmem:[%s9203_s4 + $0x88] sm:$0xff]  ;;  %v432_v30 = vld [vmem:[%s9203_s4 + $0x130] sm:$0xff]  ;;  %v433_v32 = vld [vmem:[%s9203_s4 + $0x138] sm:$0xff] }
 0x5b5   : > { %6716 = vmatprep.subr.mxu1 %v7840_v6  ;;  %v7342_v31 = vpack.c.bf16 %v411_v35, %v410_v33  ;;  %v7381_v33 = vpack.c.bf16 %v433_v32, %v432_v30  ;;  %v436_v32 = vld [vmem:[%s9203_s4 + $0x150] sm:$0xff] }
 0x5be   : > { %v7752_v36 = vpop.eup %7751 }
 0x5bf   : > { %v1168_v37 = vsel %vm687_vm3, %v7752_v36, 0.0 }
 0x5c0   : > { %1169 = vadd.xlane.f32.xlu1 %v1168_v37  ;;  %v425_v37 = vld [vmem:[%s9203_s4 + $0xf8] sm:$0xff] }
 0x5d1   : > { %1325 = vrot.lane.b32.xlu1 %v7984_v27, %s9211_s20  ;;  %v1324_v27 = vpop.permute.xlu0 %1323  ;;  %s9214_s20 = smov 16  }
 0x64d   : > { %v1170_v40 = vpop.xlane.xlu1 %1169 }
 0x64e   : > { %7753 = vrcp.f32 %v1170_v40  ;;  %v413_v40 = vld [vmem:[%s9203_s4 + $0x98] sm:$0xff] }
 0x651   : > { %v1326_v43 = vpop.permute.xlu1 %1325 }
 0x658   : > { %v7754_v41 = vpop.eup %7753 }
 0x659   : > { %v1172_v42 = vmul.f32 %v7754_v41, %v7752_v36  ;;  %v424_v36 = vld [vmem:[%s9203_s4 + $0xf0] sm:$0xff]  ;;  %v387_v41 = vld [vmem:[%s9200_s1] sm:$0xff] }
 0x65a   : > { %v7365_v38 = vpack.c.bf16 %v425_v37, %v424_v36 }
 0x65b   : > { %6707 = vmatmul.mubr.msk.f32.vlgmr.msra.gmra.mrb[8].mxu1 %vm687_vm3, %v1172_v42  ;;  %v388_v42 = vld [vmem:[%s9200_s1 + $0x8] sm:$0xff] }
 0x65c   : > { %6717 = vmatpush3.xpose.msk.msra.mxu1 %vm611_vm2, %v1326_v43  ;;  %6718 = vmatprep.mubr.msk.f32.mxu1 %vm7839_vm0, %v7840_v6  ;;  %v7345_v43 = vpack.c.bf16 %v413_v40, %v412_v39 }
 0x65d   : > { %7338 = vmatprep.subr.bf16.mxu1 %v7838_v3 }
 0x65f   : > { %6719 = vmatmul.mubr.msk.f32.vlgmr.msra.gmra.mrb[10].mxu1 %vm611_vm2, %v1324_v27  ;;  %v414_v27 = vld [vmem:[%s9203_s4 + $0xa0] sm:$0xff] }
 0x660   : > { %6730 = vmatprep.mubr.msk.f32.mxu1 %vm7839_vm0, %v7840_v6 }
 0x72e   : > { %v1245_v44 = vpop.f32.mrb[8].mxu1 }
 0x72f   : > { %v6708_v46 = vpop.f32.mrb[9].mxu1  ;;  %6714 = vmatmul.mubr.msk.f32.vlgmr.msra.gmra.mrb[10].mxu0 %vm611_vm2, %v1245_v44  ;;  %v385_v44 = vld [vmem:[%s8186_s14] sm:$0xff] }
 0x730   : > { %6723 = vmatprep.mubr.msk.f32.mxu0 %vm7839_vm0, %v7840_v6  ;;  %v8194_v46 = vld [vmem:[%s8186_s14 + $0x8] sm:$0xff] }
 0x732   : > { %v1397_v47 = vpop.f32.mrb[10].mxu1 }
 0x733   : > { %v6720_v50 = vpop.f32.mrb[11].mxu1  ;;  %v1401_v51 = vsel %vm687_vm3, %v1397_v47, -inf }
 0x734   : > { %1402 = vmax.xlane.f32.xlu1 %v1401_v51  ;;  %v8199_v50 = vadd.f32 %v387_v41, %v385_v44  ;;  %v8202_v51 = vadd.f32 %v388_v42, %v8194_v46 }
 0x745   : > { %1563 = vrot.lane.b32.xlu1 %v8032_v48, %s7841_s15  ;;  %v7339_v48 = vpack.c.bf16 %v409_v58, %v408_v57 }
 0x747   : > { %7340 = vmatpush3.bf16.msra.mxu1 %v7339_v48 }
 0x748   : > { %7354 = vmatprep.subr.bf16.mxu1 %v7353_v13 }
 0x7c1   : > { %v1403_v52 = vpop.xlane.xlu1 %1402 }
 0x7c2   : > { %v1404_v53 = vsub.f32 %v1397_v47, %v1403_v52  ;;  %v415_v47 = vld [vmem:[%s9203_s4 + $0xa8] sm:$0xff] }
 0x7c3   : > { %v7348_v52 = vpack.c.bf16 %v415_v47, %v414_v27 }
 0x7c4   : > { %v1405_v54 = vmul.f32 1.442695, %v1404_v53  ;;  %v416_v53 = vld [vmem:[%s9203_s4 + $0xb0] sm:$0xff] }
 0x7c5   : > { %v1564_v5 = vpop.permute.xlu1 %1563 }
 0x7c6   : > { %7755 = vpow2.f32 %v1405_v54  ;;  %v417_v54 = vld [vmem:[%s9203_s4 + $0xb8] sm:$0xff] }
 0x7d0   : > { %v7756_v55 = vpop.eup %7755 }
 0x7d1   : > { %v1407_v56 = vsel %vm687_vm3, %v7756_v55, 0.0 }
 0x7d2   : > { %1408 = vadd.xlane.f32.xlu0 %v1407_v56  ;;  %v8220_v56 = vsub.s32 2, %v7960_v16 }
 0x7d4   : > { %v1596_v57 = vrot.slane %v7968_v18, %v8220_v56 }
 0x7e8   : > { %1412 = vrot.lane.b32.xlu0 %v8035_v49, %s7846_s19 }
 0x802   : > { %v1318_v59 = vpop.f32.mrb[10].mxu0 }
 0x803   : > { %v1322_v60 = vadd.f32 %v1318_v59, %v1081_v25  ;;  %v6715_v61 = vpop.f32.mrb[11].mxu0  ;;  %v420_v25 = vld [vmem:[%s9203_s4 + $0xd0] sm:$0xff] }
 0x804   : > { %v7357_v28 = vpack.c.bf16 %v421_v26, %v420_v25  ;;  %v430_v26 = vld [vmem:[%s9203_s4 + $0x120] sm:$0xff] }
 0x85f   : > { %v1409_v62 = vpop.xlane.xlu0 %1408 }
 0x860   : > { %7757 = vrcp.f32 %v1409_v62 }
 0x863   : > { %v1413_v63 = vpop.permute.xlu0 %1412 }
 0x864   : > { %6722 = vmatpush3.msra.mxu0 %v1413_v63 }
 0x865   : > { %7341 = vmatprep.subr.bf16.mxu0 %v7838_v3 }
 0x86a   : > { %v7758_v49 = vpop.eup %7757 }
 0x86b   : > { %v1411_v0 = vmul.f32 %v7758_v49, %v7756_v55  ;;  %v7351_v55 = vpack.c.bf16 %v417_v54, %v416_v53 }
 0x86d   : > { %6724 = vmatmul.mubr.msk.f32.vlgmr.msra.gmra.mrb[12].mxu0 %vm687_vm3, %v1411_v0 }
 0x86e   : > { %6749 = vmatprep.mubr.msk.f32.mxu0 %vm7839_vm0, %v7840_v6  ;;  %7343 = vmatpush3.bf16.msra.mxu0 %v7342_v31 }
 0x86f   : > { %7344 = vmatprep.subr.bf16.mxu0 %v7838_v3 }
 0x872   : > { %7346 = vmatpush3.bf16.msra.mxu0 %v7345_v43  ;;  %v8283_v43 = vsub.s32 3, %v7960_v16 }
 0x873   : > { %7347 = vmatprep.subr.bf16.mxu0 %v7838_v3 }
 0x874   : > { %v8287_v27 = vrot.slane %v7968_v18, %v8283_v43 }
 0x876   : > { %7349 = vmatpush3.bf16.msra.mxu0 %v7348_v52 }
 0x877   : > { %7350 = vmatprep.subr.bf16.mxu0 %v7838_v3 }
 0x87a   : > { %7352 = vmatpush3.bf16.msra.mxu0 %v7351_v55 }
 0x940   : > { %v1484_v1 = vpop.f32.mrb[12].mxu0 }
 0x941   : > { %v6725_v2 = vpop.f32.mrb[13].mxu0  ;;  %6731 = vmatmul.mubr.msk.f32.vlgmr.msra.gmra.mrb[12].mxu1 %vm611_vm2, %v1484_v1 }
 0x942   : > { %7356 = vmatpush3.bf16.msra.mxu1 %v7353_v13  ;;  %6768 = vmatprep.mubr.msk.f32.mxu1 %vm451_vm1, %v8199_v50 }
 0x943   : > { %7358 = vmatprep.subr.bf16.mxu1 %v7357_v28 }
 0x946   : > { %7360 = vmatpush3.bf16.msra.mxu1 %v7357_v28  ;;  %v431_v28 = vld [vmem:[%s9203_s4 + $0x128] sm:$0xff] }
 0x947   : > { %7362 = vmatprep.subr.bf16.mxu1 %v7361_v34 }
 0x94a   : > { %7364 = vmatpush3.bf16.msra.mxu1 %v7361_v34 }
 0x94b   : > { %7366 = vmatprep.subr.bf16.mxu1 %v7365_v38 }
 0x94e   : > { %7368 = vmatpush3.bf16.msra.mxu1 %v7365_v38 }
 0x94f   : > { %7385 = vmatprep.subr.bf16.mxu1 %v7838_v3 }
 0x951   : > { %6769 = vmatmul.mubr.msk.f32.vlgmr.msra.gmra.mrb[14].mxu1 %vm451_vm1, %v8202_v51 }
 0x952   : > { %6794 = vmatprep.mubr.msk.f32.mxu1 %vm7839_vm0, %v7840_v6 }
 0xa14   : > { %v1557_v4 = vpop.f32.mrb[12].mxu1 }
 0xa15   : > { %v1561_v7 = vadd.f32 %v1557_v4, %v1322_v60  ;;  %v6732_v8 = vpop.f32.mrb[13].mxu1 }
 0xa17   : > { %v1566_v9 = vadd.f32 %v1564_v5, %v1561_v7 }
 0xa19   : > { %v1568_v10 = vsel %vm451_vm1, %v1566_v9, 0.0 }
 0xa1a   : > { %1569 = vadd.xlane.f32.xlu1 %v1568_v10 }
 0xa24   : > { %v6770_v2 = vpop.f32.mrb[14].mxu1 }
 0xa25   : > { %v1746_v5 = vpop.f32.mrb[15].mxu1 }
 0xa2b   : > { %1671 = vrot.lane.b32.xlu1 %v1596_v57, %s7841_s15 }
 0xaa7   : > { %v1570_v19 = vpop.xlane.xlu1 %1569 }
 0xaa8   : > { %v1572_v20 = vmul.f32 0.015625, %v1570_v19  ;;  %v426_v19 = vld [vmem:[%s9203_s4 + $0x100] sm:$0xff] }
 0xaaa   : > { %v8130_v21 = vsub.f32 %v1566_v9, %v1572_v20  ;;  %v427_v20 = vld [vmem:[%s9203_s4 + $0x108] sm:$0xff] }
 0xaab   : > { %v1672_v1 = vpop.permute.xlu1 %1671 }
 0xaac   : > { %v1574_v22 = vmul.f32 %v8130_v21, %v8130_v21  ;;  %v1752_v4 = vadd.f32 %v6770_v2, %v1672_v1  ;;  %v1747_v7 = vadd.f32 %v1746_v5, %v1672_v1 }
 0xaae   : > { %v1575_v23 = vsel %vm451_vm1, %v1574_v22, 0.0  ;;  %v7386_v9 = vpack.c.bf16 %v1752_v4, %v1747_v7  ;;  %v8238_v10 = vpack.i.bf16 %v1752_v4, %v1747_v7  ;;  %v7369_v22 = vpack.c.bf16 %v427_v20, %v426_v19 }
 0xaaf   : > { %1576 = vadd.xlane.f32.xlu0 %v1575_v23  ;;  %v429_v23 = vld [vmem:[%s9203_s4 + $0x118] sm:$0xff] }
 0xab0   : > { %7388 = vmatpush3.bf16.xpose.msk.msra.mxu1 %vm8234_vm4, %v7386_v9  ;;  %7370 = vmatprep.subr.bf16.mxu0 %v7369_v22 }
 0xab1   : > { %7389 = vmatprep.subr.bf16.mxu1 %v7838_v3 }
 0xac5   : > { %1588 = vrot.lane.b32.xlu0 %v1585_v29, %s7841_s15 }
 0xb3c   : > { %v1577_v58 = vpop.xlane.xlu0 %1576 }
 0xb3d   : > { %v1578_v48 = vmul.f32 0.015625, %v1577_v58 }
 0xb3f   : > { %v1579_v59 = vadd.f32 1e-05, %v1578_v48 }
 0xb40   : > { %v1589_v62 = vpop.permute.xlu0 %1588 }
 0xb41   : > { %7759 = vrsqrt.f32 %v1579_v59 }
 0xb4b   : > { %v7760_v60 = vpop.eup %7759 }
 0xb4c   : > { %v1581_v61 = vmul.f32 %v7760_v60, %v8130_v21  ;;  %v428_v21 = vld [vmem:[%s9203_s4 + $0x110] sm:$0xff]  ;;  %v434_v60 = vld [vmem:[%s9203_s4 + $0x140] sm:$0xff] }
 0xb4d   : > { %v7373_v25 = vpack.c.bf16 %v429_v23, %v428_v21 }
 0xb4e   : > { %v1586_v63 = vmul.f32 %v1585_v29, %v1581_v61  ;;  %v7377_v29 = vpack.c.bf16 %v431_v28, %v430_v26  ;;  %v435_v61 = vld [vmem:[%s9203_s4 + $0x148] sm:$0xff] }
 0xb50   : > { %v8226_v49 = vadd.f32 %v1589_v62, %v1586_v63  ;;  %v7403_v62 = vpack.c.bf16 %v435_v61, %v434_v60 }
 0xb52   : > { %v1592_v0 = vadd.f32 %v8226_v49, %v7952_v14 }
 0xb54   : > { %6750 = vmatmul.mubr.msk.f32.vlgmr.msra.gmra.mrb[14].mxu0 %vm451_vm1, %v1592_v0 }
 0xb55   : > { %6787 = vmatprep.mubr.msk.f32.mxu0 %vm451_vm1, %v385_v44  ;;  %7372 = vmatpush3.bf16.msra.mxu0 %v7369_v22 }
 0xb56   : > { %7374 = vmatprep.subr.bf16.mxu0 %v7373_v25 }
 0xb59   : > { %7376 = vmatpush3.bf16.msra.mxu0 %v7373_v25 }
 0xb5a   : > { %7378 = vmatprep.subr.bf16.mxu0 %v7377_v29 }
 0xb5d   : > { %7380 = vmatpush3.bf16.msra.mxu0 %v7377_v29 }
 0xb5e   : > { %7382 = vmatprep.subr.bf16.mxu0 %v7381_v33 }
 0xb61   : > { %7384 = vmatpush3.bf16.msra.mxu0 %v7381_v33  ;;  %v437_v33 = vld [vmem:[%s9203_s4 + $0x158] sm:$0xff] }
 0xb62   : > { %7396 = vmatprep.subr.bf16.mxu0 %v7838_v3 }
 0xb64   : > { %6788 = vmatmul.mubr.msk.f32.vlgmr.msra.gmra.mrb[16].mxu0 %vm451_vm1, %v8194_v46 }
 0xb65   : > { %6815 = vmatprep.mubr.msk.f32.mxu0 %vm7839_vm0, %v7840_v6 }
 0xc27   : > { %v1666_v14 = vpop.f32.mrb[14].mxu0 }
 0xc28   : > { %v1667_v11 = vadd.f32 %v1666_v14, %v1596_v57  ;;  %v6751_v12 = vpop.f32.mrb[15].mxu0 }
 0xc2a   : > { %v8243_v13 = vmul.f32 0.25, %v1667_v11 }
 0xc2c   : > { %6795 = vmatmul.mubr.msk.f32.vlgmr.msra.gmra.mrb[16].mxu1 %vm611_vm2, %v8243_v13 }
 0xc2d   : > { %6801 = vmatprep.mubr.msk.f32.mxu1 %vm7839_vm0, %v7840_v6 }
 0xc37   : > { %v6789_v37 = vpop.f32.mrb[16].mxu0 }
 0xc38   : > { %v1831_v31 = vpop.f32.mrb[17].mxu0  ;;  %v1837_v44 = vadd.f32 %v6789_v37, %v8287_v27 }
 0xc39   : > { %v1832_v46 = vadd.f32 %v1831_v31, %v8287_v27 }
 0xc3b   : > { %v7390_v47 = vpack.c.bf16 %v1837_v44, %v1832_v46  ;;  %v8291_v52 = vpack.i.bf16 %v1837_v44, %v1832_v46 }
 0xc3d   : > { %7391 = vmatpush3.bf16.msra.mxu1 %v7390_v47 }
 0xc3e   : > { %7392 = vmatprep.subr.bf16.mxu1 %v7838_v3 }
 0xcff   : > { %v1916_v34 = vpop.f32.mrb[16].mxu1 }
 0xd00   : > { %v6796_v35 = vpop.f32.mrb[17].mxu1  ;;  %v1920_v36 = vsel %vm611_vm2, %v1916_v34, -inf }
 0xd01   : > { %1921 = vmax.xlane.f32.xlu1 %v1920_v36 }
 0xd12   : > { %2004 = vrot.lane.b32.xlu1 %v8243_v13, %s7842_s16 }
 0xd8e   : > { %v1922_v38 = vpop.xlane.xlu1 %1921 }
 0xd8f   : > { %v1923_v39 = vsub.f32 %v1916_v34, %v1922_v38  ;;  %v7400_v34 = vpack.c.bf16 %v437_v33, %v436_v32  ;;  %v440_v33 = vld [vmem:[%s9203_s4 + $0x170] sm:$0xff] }
 0xd91   : > { %v1924_v40 = vmul.f32 1.442695, %v1923_v39 }
 0xd92   : > { %v2005_v63 = vpop.permute.xlu1 %2004 }
 0xd93   : > { %7761 = vpow2.f32 %v1924_v40 }
 0xd9d   : > { %v7762_v41 = vpop.eup %7761 }
 0xd9e   : > { %v1926_v42 = vsel %vm611_vm2, %v7762_v41, 0.0 }
 0xd9f   : > { %1927 = vadd.xlane.f32.xlu0 %v1926_v42 }
 0xdb5   : > { %7684 = vrot.lane.b32.xlu0 %v8238_v10, %s7842_s16 }
 0xe2c   : > { %v1928_v53 = vpop.xlane.xlu0 %1927 }
 0xe2d   : > { %7763 = vrcp.f32 %v1928_v53 }
 0xe30   : > { %v7685_v54 = vpop.permute.xlu0 %7684 }
 0xe31   : > { %v7687_v55 = vunpack.i.h.bf16 %v7685_v54  ;;  %v7686_v57 = vunpack.i.l.bf16 %v7685_v54 }
 0xe33   : > { %v7393_v59 = vpack.c.bf16 %v7687_v55, %v7686_v57 }
 0xe37   : > { %v7764_v58 = vpop.eup %7763 }
 0xe38   : > { %v1930_v48 = vmul.f32 %v7764_v58, %v7762_v41 }
 0xe3a   : > { %6802 = vmatmul.mubr.msk.f32.vlgmr.msra.gmra.mrb[18].mxu1 %vm611_vm2, %v1930_v48 }
 0xe3b   : > { %7395 = vmatpush3.bf16.xpose.msk.msra.mxu1 %vm8234_vm4, %v7393_v59  ;;  %6808 = vmatprep.mubr.msk.f32.mxu1 %vm7839_vm0, %v7840_v6 }
 0xe3c   : > { %7402 = vmatprep.subr.bf16.mxu1 %v7838_v3 }
 0xe42   : > { %6809 = vmatmul.mubr.msk.f32.vlgmr.msra.gmra.mrb[20].mxu1 %vm611_vm2, %v2005_v63 }
 0xe43   : > { %7404 = vmatpush3.bf16.msra.mxu1 %v7403_v62  ;;  %6829 = vmatprep.mubr.msk.f32.mxu1 %vm7839_vm0, %v7840_v6 }
 0xe44   : > { %7405 = vmatprep.subr.bf16.mxu1 %v7838_v3 }
 0xf0d   : > { %v2000_v0 = vpop.f32.mrb[18].mxu1 }
 0xf0e   : > { %v6803_v1 = vpop.f32.mrb[19].mxu1  ;;  %6830 = vmatmul.mubr.msk.f32.vlgmr.msra.gmra.mrb[22].mxu1 %vm611_vm2, %v2000_v0 }
 0xf0f   : > { %6836 = vmatprep.mubr.msk.f32.mxu1 %vm7839_vm0, %v7840_v6 }
 0xf15   : > { %v2082_v2 = vpop.f32.mrb[20].mxu1 }
 0xf16   : > { %v6810_v4 = vpop.f32.mrb[21].mxu1  ;;  %v2086_v5 = vsel %vm611_vm2, %v2082_v2, -inf }
 0xf17   : > { %2087 = vmax.xlane.f32.xlu1 %v2086_v5 }
 0xf28   : > { %7694 = vrot.lane.b32.xlu1 %v8291_v52, %s7842_s16 }
 0xf2c   : > { %2324 = vrot.lane.b32.xlu1 %v8243_v13, %s7845_s25 }
 0xf30   : > { %2570 = vrot.lane.b32.xlu1 %v8243_v13, %s7846_s19 }
 0xfa4   : > { %v2088_v7 = vpop.xlane.xlu1 %2087 }
 0xfa5   : > { %v2089_v9 = vsub.f32 %v2082_v2, %v2088_v7 }
 0xfa7   : > { %v2090_v14 = vmul.f32 1.442695, %v2089_v9 }
 0xfa8   : > { %v7695_v11 = vpop.permute.xlu1 %7694 }
 0xfa9   : > { %7765 = vpow2.f32 %v2090_v14  ;;  %v7697_v12 = vunpack.i.h.bf16 %v7695_v11  ;;  %v7696_v19 = vunpack.i.l.bf16 %v7695_v11 }
 0xfab   : > { %v7397_v20 = vpack.c.bf16 %v7697_v12, %v7696_v19 }
 0xfac   : > { %v2325_v36 = vpop.permute.xlu1 %2324 }
 0xfad   : > { %7398 = vmatpush3.bf16.msra.mxu0 %v7397_v20  ;;  %v438_v20 = vld [vmem:[%s9203_s4 + $0x160] sm:$0xff] }
 0xfae   : > { %7399 = vmatprep.subr.bf16.mxu0 %v7838_v3 }
 0xfb0   : > { %v2571_v47 = vpop.permute.xlu1 %2570 }
 0xfb3   : > { %v7766_v21 = vpop.eup %7765 }
 0xfb4   : > { %v2092_v22 = vsel %vm611_vm2, %v7766_v21, 0.0 }
 0xfb5   : > { %2093 = vadd.xlane.f32.xlu0 %v2092_v22 }
 0xfcb   : > { %7689 = vrot.lane.b32.xlu0 %v8238_v10, %s7845_s25 }
 0xfcf   : > { %7699 = vrot.lane.b32.xlu0 %v8238_v10, %s7846_s19 }
 0xfe1   : > { %v2320_v13 = vpop.f32.mrb[22].mxu1 }
 0xfe2   : > { %v6831_v23 = vpop.f32.mrb[23].mxu1 }
0x1042   : > { %v2094_v25 = vpop.xlane.xlu0 %2093 }
0x1043   : > { %7767 = vrcp.f32 %v2094_v25 }
0x1046   : > { %v7690_v26 = vpop.permute.xlu0 %7689 }
0x1047   : > { %v7692_v28 = vunpack.i.h.bf16 %v7690_v26  ;;  %v7691_v29 = vunpack.i.l.bf16 %v7690_v26 }
0x1049   : > { %v7406_v30 = vpack.c.bf16 %v7692_v28, %v7691_v29 }
0x104a   : > { %v7700_v37 = vpop.permute.xlu0 %7699 }
0x104b   : > { %7408 = vmatpush3.bf16.xpose.msk.msra.mxu1 %vm8234_vm4, %v7406_v30  ;;  %v7702_v31 = vunpack.i.h.bf16 %v7700_v37  ;;  %v7701_v38 = vunpack.i.l.bf16 %v7700_v37 }
0x104c   : > { %7409 = vmatprep.subr.bf16.mxu1 %v7838_v3 }
0x104d   : > { %v7768_v10 = vpop.eup %7767  ;;  %v7416_v39 = vpack.c.bf16 %v7702_v31, %v7701_v38 }
0x104e   : > { %v2096_v35 = vmul.f32 %v7768_v10, %v7766_v21  ;;  %v439_v21 = vld [vmem:[%s9203_s4 + $0x168] sm:$0xff]  ;;  %v441_v10 = vld [vmem:[%s9203_s4 + $0x178] sm:$0xff] }
0x104f   : > { %v7413_v22 = vpack.c.bf16 %v439_v21, %v438_v20  ;;  %v2935_v20 = vld [vmem:[%s9205_s6 + $0x20] sm:$0xff]  ;;  %v2936_v21 = vld [vmem:[%s9205_s6 + $0x28] sm:$0xff] }
0x1050   : > { %6816 = vmatmul.mubr.msk.f32.vlgmr.msra.gmra.mrb[18].mxu0 %vm611_vm2, %v2096_v35 }
0x1051   : > { %7401 = vmatpush3.bf16.msra.mxu0 %v7400_v34  ;;  %6822 = vmatprep.mubr.msk.f32.mxu0 %vm7839_vm0, %v7840_v6  ;;  %v7423_v34 = vpack.c.bf16 %v441_v10, %v440_v33  ;;  %v2943_v33 = vld [vmem:[%s9205_s6 + $0x60] sm:$0xff]  ;;  %v2944_v10 = vld [vmem:[%s9205_s6 + $0x68] sm:$0xff] }
0x1052   : > { %6837 = vmatmul.mubr.msk.f32.vlgmr.msra.gmra.mrb[24].mxu1 %vm611_vm2, %v2325_v36  ;;  %7415 = vmatprep.subr.bf16.mxu0 %v7838_v3 }
0x1053   : > { %6843 = vmatprep.mubr.msk.f32.mxu1 %vm7839_vm0, %v7840_v6 }
0x1123   : > { %v2174_v40 = vpop.f32.mrb[18].mxu0 }
0x1124   : > { %v6817_v41 = vpop.f32.mrb[19].mxu0  ;;  %6823 = vmatmul.mubr.msk.f32.vlgmr.msra.gmra.mrb[20].mxu0 %vm611_vm2, %v2174_v40 }
0x1125   : > { %7418 = vmatpush3.bf16.xpose.msk.msra.mxu0 %vm8234_vm4, %v7416_v39  ;;  %v2402_v42 = vpop.f32.mrb[24].mxu1  ;;  %6857 = vmatprep.mubr.msk.f32.mxu0 %vm7839_vm0, %v7840_v6 }
0x1126   : > { %v6838_v44 = vpop.f32.mrb[25].mxu1  ;;  %v2406_v46 = vsel %vm611_vm2, %v2402_v42, -inf  ;;  %7425 = vmatprep.subr.bf16.mxu0 %v7838_v3 }
0x1127   : > { %2407 = vmax.xlane.f32.xlu0 %v2406_v46 }
0x112c   : > { %6858 = vmatmul.mubr.msk.f32.vlgmr.msra.gmra.mrb[22].mxu0 %vm611_vm2, %v2571_v47 }
0x112d   : > { %6890 = vmatprep.mubr.msk.f32.mxu0 %vm7839_vm0, %v7840_v6 }
0x113d   : > { %7704 = vrot.lane.b32.xlu0 %v8291_v52, %s7845_s25 }
0x1141   : > { %2817 = vrot.lane.b32.xlu0 %v8287_v27, %s7841_s15 }
0x11b4   : > { %v2408_v53 = vpop.xlane.xlu0 %2407 }
0x11b5   : > { %v2409_v54 = vsub.f32 %v2402_v42, %v2408_v53  ;;  %v2837_v53 = vsub.s32 5, %v7960_v16 }
0x11b7   : > { %v2410_v55 = vmul.f32 1.442695, %v2409_v54  ;;  %v8397_v54 = vrot.slane %v7968_v18, %v2837_v53  ;;  %v2846_v18 = vld [vmem:[%s9204_s5 + $0x8] sm:$0xff] }
0x11b8   : > { %v7705_v57 = vpop.permute.xlu0 %7704 }
0x11b9   : > { %7769 = vpow2.f32 %v2410_v55  ;;  %v7707_v58 = vunpack.i.h.bf16 %v7705_v57  ;;  %v7706_v48 = vunpack.i.l.bf16 %v7705_v57 }
0x11bb   : > { %v7410_v59 = vpack.c.bf16 %v7707_v58, %v7706_v48 }
0x11bc   : > { %v2818_v40 = vpop.permute.xlu0 %2817 }
0x11bd   : > { %7411 = vmatpush3.bf16.msra.mxu1 %v7410_v59  ;;  %v2845_v59 = vld [vmem:[%s9204_s5] sm:$0xff] }
0x11be   : > { %7412 = vmatprep.subr.bf16.mxu1 %v7838_v3 }
0x11c3   : > { %v7770_v60 = vpop.eup %7769 }
0x11c4   : > { %v2412_v61 = vsel %vm611_vm2, %v7770_v60, 0.0 }
0x11c5   : > { %2413 = vadd.xlane.f32.xlu1 %v2412_v61  ;;  %v2847_v61 = vld [vmem:[%s9204_s5 + $0x10] sm:$0xff] }
0x11f7   : > { %v2247_v62 = vpop.f32.mrb[20].mxu0 }
0x11f8   : > { %v2321_v63 = vadd.f32 %v2320_v13, %v2247_v62  ;;  %v6824_v0 = vpop.f32.mrb[21].mxu0  ;;  %v2848_v62 = vld [vmem:[%s9204_s5 + $0x18] sm:$0xff] }
0x11f9   : > { %v2849_v0 = vld [vmem:[%s9204_s5 + $0x20] sm:$0xff] }
0x11ff   : > { %v2648_v1 = vpop.f32.mrb[22].mxu0 }
0x1200   : > { %v6859_v27 = vpop.f32.mrb[23].mxu0  ;;  %v2652_v2 = vsel %vm611_vm2, %v2648_v1, -inf }
0x1201   : > { %2653 = vmax.xlane.f32.xlu1 %v2652_v2  ;;  %v2851_v2 = vld [vmem:[%s9204_s5 + $0x30] sm:$0xff] }
0x1252   : > { %v2414_v4 = vpop.xlane.xlu1 %2413 }
0x1253   : > { %7771 = vrcp.f32 %v2414_v4  ;;  %v2852_v4 = vld [vmem:[%s9204_s5 + $0x38] sm:$0xff] }
0x125d   : > { %v7772_v5 = vpop.eup %7771 }
0x125e   : > { %v2416_v7 = vmul.f32 %v7772_v5, %v7770_v60  ;;  %v7426_v60 = vpack.c.bf16 %v2846_v18, %v2845_v59  ;;  %v7435_v5 = vpack.c.bf16 %v2852_v4, %v2851_v2  ;;  %v393_v59 = vld [vmem:[%s9206_s7 + $0x8] sm:$0xff] }
0x125f   : > { %v2950_v18 = vrot.slane %v393_v59, %v7963_v17 }
0x1260   : > { %6844 = vmatmul.mubr.msk.f32.vlgmr.msra.gmra.mrb[26].mxu1 %vm611_vm2, %v2416_v7  ;;  %7427 = vmatpush3.bf16.msra.mxu0 %v7426_v60  ;;  %v2931_v7 = vld [vmem:[%s9205_s6] sm:$0xff] }
0x1261   : > { %6850 = vmatprep.mubr.msk.f32.mxu1 %vm7839_vm0, %v7840_v6  ;;  %7414 = vmatpush3.bf16.msra.mxu1 %v7413_v22  ;;  %v7444_v22 = vpack.c.bf16 %v2936_v21, %v2935_v20  ;;  %v6220_v20 = vld [vmem:[%s9202_s3 + $0x58] sm:$0xff] }
0x1262   : > { %7419 = vmatprep.subr.bf16.mxu1 %v7838_v3  ;;  %7428 = vmatprep.subr.bf16.mxu0 %v7838_v3 }
0x128e   : > { %v2654_v9 = vpop.xlane.xlu1 %2653 }
0x128f   : > { %v2655_v14 = vsub.f32 %v2648_v1, %v2654_v9  ;;  %v2850_v1 = vld [vmem:[%s9204_s5 + $0x28] sm:$0xff] }
0x1290   : > { %v7432_v27 = vpack.c.bf16 %v2850_v1, %v2849_v0  ;;  %v2932_v9 = vld [vmem:[%s9205_s6 + $0x8] sm:$0xff] }
0x1291   : > { %v2656_v11 = vmul.f32 1.442695, %v2655_v14  ;;  %v2933_v14 = vld [vmem:[%s9205_s6 + $0x10] sm:$0xff] }
0x1293   : > { %7773 = vpow2.f32 %v2656_v11  ;;  %v7438_v11 = vpack.c.bf16 %v2932_v9, %v2931_v7  ;;  %v3037_v7 = vsub.s32 6, %v7960_v16 }
0x129d   : > { %v7774_v12 = vpop.eup %7773 }
0x129e   : > { %v2658_v19 = vsel %vm611_vm2, %v7774_v12, 0.0 }
0x129f   : > { %2659 = vadd.xlane.f32.xlu1 %v2658_v19 }
0x12b0   : > { %7709 = vrot.lane.b32.xlu1 %v8291_v52, %s7846_s19 }
0x132c   : > { %v2660_v13 = vpop.xlane.xlu1 %2659 }
0x132d   : > { %7775 = vrcp.f32 %v2660_v13  ;;  %v2937_v13 = vld [vmem:[%s9205_s6 + $0x30] sm:$0xff] }
0x1330   : > { %v7710_v23 = vpop.permute.xlu1 %7709 }
0x1331   : > { %v7712_v25 = vunpack.i.h.bf16 %v7710_v23  ;;  %v7711_v26 = vunpack.i.l.bf16 %v7710_v23  ;;  %v2938_v23 = vld [vmem:[%s9205_s6 + $0x38] sm:$0xff] }
0x1333   : > { %v7420_v28 = vpack.c.bf16 %v7712_v25, %v7711_v26  ;;  %v2492_v29 = vpop.f32.mrb[26].mxu1  ;;  %v7447_v25 = vpack.c.bf16 %v2938_v23, %v2937_v13  ;;  %v2939_v26 = vld [vmem:[%s9205_s6 + $0x40] sm:$0xff]  ;;  %v6222_v13 = vld [vmem:[%s9202_s3 + $0x68] sm:$0xff] }
0x1334   : > { %v6845_v30 = vpop.f32.mrb[27].mxu1  ;;  %6851 = vmatmul.mubr.msk.f32.vlgmr.msra.gmra.mrb[28].mxu1 %vm611_vm2, %v2492_v29 }
0x1335   : > { %7421 = vmatpush3.bf16.msra.mxu1 %v7420_v28  ;;  %6864 = vmatprep.mubr.msk.f32.mxu1 %vm7839_vm0, %v7840_v6  ;;  %v2940_v28 = vld [vmem:[%s9205_s6 + $0x48] sm:$0xff]  ;;  %v2941_v30 = vld [vmem:[%s9205_s6 + $0x50] sm:$0xff] }
0x1336   : > { %7422 = vmatprep.subr.bf16.mxu1 %v7838_v3  ;;  %v7450_v29 = vpack.c.bf16 %v2940_v28, %v2939_v26  ;;  %v6224_v26 = vld [vmem:[%s9202_s3 + $0x78] sm:$0xff] }
0x1337   : > { %v7776_v52 = vpop.eup %7775 }
0x1338   : > { %v2662_v32 = vmul.f32 %v7776_v52, %v7774_v12  ;;  %v2934_v12 = vld [vmem:[%s9205_s6 + $0x18] sm:$0xff] }
0x1339   : > { %v7441_v19 = vpack.c.bf16 %v2934_v12, %v2933_v14  ;;  %v2942_v52 = vld [vmem:[%s9205_s6 + $0x58] sm:$0xff]  ;;  %v6217_v14 = vld [vmem:[%s9202_s3 + $0x40] sm:$0xff]  ;;  %v6219_v12 = vld [vmem:[%s9202_s3 + $0x50] sm:$0xff] }
0x133a   : > { %6865 = vmatmul.mubr.msk.f32.vlgmr.msra.gmra.mrb[30].mxu1 %vm611_vm2, %v2662_v32  ;;  %v7453_v32 = vpack.c.bf16 %v2942_v52, %v2941_v30  ;;  %v7465_v21 = vpack.c.bf16 %v6220_v20, %v6219_v12 }
0x133b   : > { %6871 = vmatprep.mubr.msk.f32.mxu1 %vm7839_vm0, %v7840_v6  ;;  %7424 = vmatpush3.bf16.msra.mxu1 %v7423_v34  ;;  %v7456_v34 = vpack.c.bf16 %v2944_v10, %v2943_v33 }
0x133c   : > { %7437 = vmatprep.subr.bf16.mxu1 %v7838_v3 }
0x1407   : > { %v2565_v35 = vpop.f32.mrb[28].mxu1 }
0x1408   : > { %v2569_v36 = vadd.f32 %v2565_v35, %v2321_v63  ;;  %v6852_v37 = vpop.f32.mrb[29].mxu1  ;;  %v7429_v63 = vpack.c.bf16 %v2848_v62, %v2847_v61 }
0x140a   : > { %7430 = vmatpush3.bf16.msra.mxu0 %v7429_v63 }
0x140b   : > { %7431 = vmatprep.subr.bf16.mxu0 %v7838_v3 }
0x140d   : > { %v2738_v31 = vpop.f32.mrb[30].mxu1 }
0x140e   : > { %v6866_v38 = vpop.f32.mrb[31].mxu1  ;;  %6872 = vmatmul.mubr.msk.f32.vlgmr.msra.gmra.mrb[32].mxu1 %vm611_vm2, %v2738_v31  ;;  %7433 = vmatpush3.bf16.msra.mxu0 %v7432_v27 }
0x140f   : > { %6925 = vmatprep.mubr.msk.f32.mxu1 %vm7839_vm0, %v7840_v6  ;;  %7434 = vmatprep.subr.bf16.mxu0 %v7838_v3 }
0x1410   : > { %7439 = vmatpush3.bf16.msra.mxu1 %v7438_v11  ;;  %v6218_v11 = vld [vmem:[%s9202_s3 + $0x48] sm:$0xff] }
0x1411   : > { %7440 = vmatprep.subr.bf16.mxu1 %v7838_v3 }
0x1412   : > { %7436 = vmatpush3.bf16.msra.mxu0 %v7435_v5 }
0x1413   : > { %7461 = vmatprep.subr.bf16.mxu0 %v7838_v3 }
0x1414   : > { %7442 = vmatpush3.bf16.msra.mxu1 %v7441_v19  ;;  %v7462_v19 = vpack.c.bf16 %v6218_v11, %v6217_v14 }
0x1415   : > { %7443 = vmatprep.subr.bf16.mxu1 %v7838_v3 }
0x1418   : > { %7445 = vmatpush3.bf16.msra.mxu1 %v7444_v22  ;;  %v6221_v22 = vld [vmem:[%s9202_s3 + $0x60] sm:$0xff] }
0x1419   : > { %7446 = vmatprep.subr.bf16.mxu1 %v7838_v3  ;;  %v7468_v23 = vpack.c.bf16 %v6222_v13, %v6221_v22 }
0x141c   : > { %7448 = vmatpush3.bf16.msra.mxu1 %v7447_v25  ;;  %v6223_v25 = vld [vmem:[%s9202_s3 + $0x70] sm:$0xff] }
0x141d   : > { %7449 = vmatprep.subr.bf16.mxu1 %v7838_v3  ;;  %v7471_v28 = vpack.c.bf16 %v6224_v26, %v6223_v25 }
0x1420   : > { %7451 = vmatpush3.bf16.msra.mxu1 %v7450_v29 }
0x1421   : > { %7452 = vmatprep.subr.bf16.mxu1 %v7838_v3 }
0x1424   : > { %7454 = vmatpush3.bf16.msra.mxu1 %v7453_v32 }
0x1425   : > { %7455 = vmatprep.subr.bf16.mxu1 %v7838_v3 }
0x1428   : > { %7457 = vmatpush3.bf16.msra.mxu1 %v7456_v34 }
0x1429   : > { %7458 = vmatprep.subr.bf16.mxu1 %v7838_v3 }
0x14e1   : > { %v2811_v39 = vpop.f32.mrb[32].mxu1 }
0x14e2   : > { %v2815_v41 = vadd.f32 %v2811_v39, %v2569_v36  ;;  %v6873_v42 = vpop.f32.mrb[33].mxu1 }
0x14e3   : > { %v2945_v42 = vld [vmem:[%s9205_s6 + $0x70] sm:$0xff] }
0x14e4   : > { %v2820_v44 = vadd.f32 %v2818_v40, %v2815_v41 }
0x14e6   : > { %v2821_v46 = vadd.f32 %v2820_v44, %v8226_v49  ;;  %v2946_v44 = vld [vmem:[%s9205_s6 + $0x78] sm:$0xff] }
0x14e8   : > { %v2822_v47 = vsel %vm451_vm1, %v2821_v46, 0.0 }
0x14e9   : > { %2823 = vadd.xlane.f32.xlu0 %v2822_v47  ;;  %v2855_v47 = vsub.s32 7, %v7960_v16 }
0x14ff   : > { %2841 = vrot.lane.b32.xlu0 %v8397_v54, %s7841_s15 }
0x1576   : > { %v2824_v55 = vpop.xlane.xlu0 %2823 }
0x1577   : > { %v2825_v57 = vmul.f32 0.015625, %v2824_v55 }
0x1579   : > { %v8401_v58 = vsub.f32 %v2821_v46, %v2825_v57  ;;  %v7459_v46 = vpack.c.bf16 %v2946_v44, %v2945_v42  ;;  %v6173_v44 = vld [vmem:[%s9203_s4 + $0x1a0] sm:$0xff] }
0x157a   : > { %v2842_v39 = vpop.permute.xlu0 %2841 }
0x157b   : > { %v2827_v49 = vmul.f32 %v8401_v58, %v8401_v58  ;;  %7460 = vmatpush3.bf16.msra.mxu1 %v7459_v46  ;;  %v6174_v46 = vld [vmem:[%s9203_s4 + $0x1a8] sm:$0xff] }
0x157c   : > { %6966 = vmatprep.subr.mxu1 %v7840_v6 }
0x157d   : > { %v2828_v48 = vsel %vm451_vm1, %v2827_v49, 0.0 }
0x157e   : > { %2829 = vadd.xlane.f32.xlu1 %v2828_v48 }
0x160b   : > { %v2830_v35 = vpop.xlane.xlu1 %2829 }
0x160c   : > { %v2831_v36 = vmul.f32 0.015625, %v2830_v35  ;;  %v6169_v35 = vld [vmem:[%s9203_s4 + $0x180] sm:$0xff] }
0x160e   : > { %v2832_v37 = vadd.f32 1e-05, %v2831_v36  ;;  %v6170_v36 = vld [vmem:[%s9203_s4 + $0x188] sm:$0xff] }
0x1610   : > { %7777 = vrsqrt.f32 %v2832_v37 }
0x161a   : > { %v7778_v31 = vpop.eup %7777 }
0x161b   : > { %v2834_v38 = vmul.f32 %v7778_v31, %v8401_v58  ;;  %v7474_v31 = vpack.c.bf16 %v6170_v36, %v6169_v35  ;;  %v6179_v36 = vld [vmem:[%s9203_s4 + $0x1d0] sm:$0xff] }
0x161d   : > { %v2839_v40 = vmul.f32 %v8397_v54, %v2834_v38  ;;  %v7825_v54 = vld [vmem:[%s9206_s7] sm:$0xff] }
0x161e   : > { %v2856_v55 = vrot.slane %v7825_v54, %v2855_v47  ;;  %v3038_v9 = vrot.slane %v7825_v54, %v3037_v7  ;;  %v8552_v38 = vld [vmem:[%s9201_s2] sm:$0xff]  ;;  %v7480_v54 = vpack.c.bf16 %v6174_v46, %v6173_v44 }
0x161f   : > { %v2844_v41 = vadd.f32 %v2842_v39, %v2839_v40  ;;  %v6171_v40 = vld [vmem:[%s9203_s4 + $0x190] sm:$0xff] }
0x1621   : > { %6891 = vmatmul.mubr.msk.f32.vlgmr.msra.gmra.mrb[24].mxu0 %vm451_vm1, %v2844_v41 }
0x1622   : > { %6944 = vmatprep.mubr.msk.f32.mxu0 %vm7839_vm0, %v7840_v6  ;;  %7463 = vmatpush3.bf16.msra.mxu0 %v7462_v19 }
0x1623   : > { %7464 = vmatprep.subr.bf16.mxu0 %v7838_v3 }
0x1626   : > { %7466 = vmatpush3.bf16.msra.mxu0 %v7465_v21 }
0x1627   : > { %7467 = vmatprep.subr.bf16.mxu0 %v7838_v3 }
0x162a   : > { %7469 = vmatpush3.bf16.msra.mxu0 %v7468_v23 }
0x162b   : > { %7470 = vmatprep.subr.bf16.mxu0 %v7838_v3 }
0x162e   : > { %7472 = vmatpush3.bf16.msra.mxu0 %v7471_v28 }
0x162f   : > { %7473 = vmatprep.subr.bf16.mxu0 %v7838_v3 }
0x16f4   : > { %v2926_v57 = vpop.f32.mrb[24].mxu0 }
0x16f5   : > { %v2927_v58 = vadd.f32 %v2926_v57, %v2856_v55  ;;  %v6892_v49 = vpop.f32.mrb[25].mxu0  ;;  %v6175_v55 = vld [vmem:[%s9203_s4 + $0x1b0] sm:$0xff]  ;;  %v6176_v57 = vld [vmem:[%s9203_s4 + $0x1b8] sm:$0xff] }
0x16f6   : > { %v8588_v49 = vld [vmem:[%s9206_s7 + $0x10] sm:$0xff] }
0x16f7   : > { %v2930_v48 = vmax.f32 %v2927_v58, 0.0  ;;  %v7483_v58 = vpack.c.bf16 %v6176_v57, %v6175_v55 }
0x16f9   : > { %6926 = vmatmul.mubr.f32.vlgmr.msra.gmra.mrb[34].mxu1 %v2930_v48  ;;  %v3183_v48 = vrot.slane %v8588_v49, %v7963_v17 }
0x16fa   : > { %6968 = vmatprep.mubr.msk.f32.mxu1 %vm7839_vm0, %v7840_v6 }
0x17cc   : > { %v3017_v60 = vpop.f32.mrb[34].mxu1 }
0x17cd   : > { %v3018_v61 = vadd.f32 %v3017_v60, %v2950_v18  ;;  %v6927_v62 = vpop.f32.mrb[35].mxu1 }
0x17cf   : > { %v3021_v63 = vadd.f32 %v3018_v61, %v2844_v41  ;;  %v6172_v41 = vld [vmem:[%s9203_s4 + $0x198] sm:$0xff] }
0x17d0   : > { %v7477_v42 = vpack.c.bf16 %v6172_v41, %v6171_v40  ;;  %v6177_v41 = vld [vmem:[%s9203_s4 + $0x1c0] sm:$0xff] }
0x17d1   : > { %v3022_v0 = vsel %vm451_vm1, %v3021_v63, 0.0 }
0x17d2   : > { %3023 = vadd.xlane.f32.xlu1 %v3022_v0 }
0x185f   : > { %v3024_v1 = vpop.xlane.xlu1 %3023 }
0x1860   : > { %v3025_v27 = vmul.f32 0.015625, %v3024_v1 }
0x1862   : > { %v3026_v2 = vsub.f32 %v3021_v63, %v3025_v27  ;;  %v8598_v63 = vrot.slane %v8588_v49, %v8028_v45 }
0x1864   : > { %v3027_v4 = vmul.f32 %v3026_v2, %v3026_v2 }
0x1866   : > { %v3028_v5 = vsel %vm451_vm1, %v3027_v4, 0.0 }
0x1867   : > { %3029 = vadd.xlane.f32.xlu1 %v3028_v5 }
0x1878   : > { %3041 = vrot.lane.b32.xlu1 %v3038_v9, %s7841_s15 }
0x18f4   : > { %v3030_v29 = vpop.xlane.xlu1 %3029 }
0x18f5   : > { %v3031_v30 = vmul.f32 0.015625, %v3030_v29 }
0x18f7   : > { %v3032_v52 = vadd.f32 1e-05, %v3031_v30 }
0x18f8   : > { %v3042_v10 = vpop.permute.xlu1 %3041 }
0x18f9   : > { %7779 = vrsqrt.f32 %v3032_v52 }
0x1903   : > { %v7780_v32 = vpop.eup %7779 }
0x1904   : > { %v3034_v33 = vmul.f32 %v7780_v32, %v3026_v2 }
0x1906   : > { %v3039_v34 = vmul.f32 %v3038_v9, %v3034_v33 }
0x1908   : > { %v8547_v37 = vadd.f32 %v3042_v10, %v3039_v34 }
0x190a   : > { %v3097_v39 = vadd.f32 %v8552_v38, %v8547_v37 }
0x190c   : > { %6945 = vmatmul.mubr.msk.f32.vlgmr.msra.gmra.mrb[26].mxu0 %vm451_vm1, %v3097_v39 }
0x190d   : > { %7475 = vmatpush3.bf16.msra.mxu0 %v7474_v31  ;;  %6963 = vmatprep.mubr.msk.f32.mxu0 %vm7839_vm0, %v7840_v6  ;;  %v6180_v31 = vld [vmem:[%s9203_s4 + $0x1d8] sm:$0xff] }
0x190e   : > { %7476 = vmatprep.subr.bf16.mxu0 %v7838_v3  ;;  %v7486_v39 = vpack.c.bf16 %v6180_v31, %v6179_v36 }
0x1911   : > { %7478 = vmatpush3.bf16.msra.mxu0 %v7477_v42  ;;  %v6178_v42 = vld [vmem:[%s9203_s4 + $0x1c8] sm:$0xff] }
0x1912   : > { %7479 = vmatprep.subr.bf16.mxu0 %v7838_v3  ;;  %v7489_v46 = vpack.c.bf16 %v6178_v42, %v6177_v41 }
0x1915   : > { %7481 = vmatpush3.bf16.msra.mxu0 %v7480_v54 }
0x1916   : > { %7482 = vmatprep.subr.bf16.mxu0 %v7838_v3 }
0x1919   : > { %7484 = vmatpush3.bf16.msra.mxu0 %v7483_v58 }
0x191a   : > { %7485 = vmatprep.subr.bf16.mxu0 %v7838_v3 }
0x191c   : > { %6964 = vmatmul.mubr.msk.f32.vlgmr.msra.gmra.mrb[28].mxu0 %vm451_vm1, %v8547_v37 }
0x191d   : > { %6990 = vmatprep.mubr.msk.f32.mxu0 %vm7839_vm0, %v7840_v6  ;;  %7487 = vmatpush3.bf16.msra.mxu0 %v7486_v39  ;;  %v6183_v39 = vld [vmem:[%s9203_s4 + $0x1f0] sm:$0xff] }
0x191e   : > { %7000 = vmatprep.subr.mxu0 %v7840_v6 }
0x19df   : > { %v3176_v59 = vpop.f32.mrb[26].mxu0 }
0x19e0   : > { %v8592_v18 = vadd.f32 %v3183_v48, %v3176_v59  ;;  %v6946_v60 = vpop.f32.mrb[27].mxu0 }
0x19e2   : > { %3264 = vrot.lane.b32.xlu0 %v8592_v18, %s7841_s15  ;;  %v8602_v1 = vmul.f32 0.25, %v8592_v18 }
0x19ef   : > { %v3258_v61 = vpop.f32.mrb[28].mxu0 }
0x19f0   : > { %v6965_v62 = vpop.f32.mrb[29].mxu0  ;;  %v8606_v27 = vadd.f32 %v3258_v61, %v8598_v63 }
0x1a54   : > { %v3265_v0 = vpop.permute.xlu0 %3264 }
0x1a55   : > { %6967 = vmatpush3.xpose.msk.msra.mxu1 %vm611_vm2, %v3265_v0 }
0x1a56   : > { %6971 = vmatprep.subr.mxu1 %v7840_v6 }
0x1a58   : > { %6969 = vmatmul.mubr.msk.f32.vlgmr.msra.gmra.mrb[36].mxu1 %vm611_vm2, %v8602_v1 }
0x1a59   : > { %6972 = vmatpush3.msra.mxu1 %v8606_v27  ;;  %6973 = vmatprep.mubr.msk.f32.mxu1 %vm7839_vm0, %v7840_v6 }
0x1a5a   : > { %6976 = vmatprep.subr.mxu1 %v7840_v6 }
0x1b2b   : > { %v3337_v2 = vpop.f32.mrb[36].mxu1 }
0x1b2c   : > { %v6970_v4 = vpop.f32.mrb[37].mxu1  ;;  %v3341_v5 = vsel %vm687_vm3, %v3337_v2, -inf }
0x1b2d   : > { %3342 = vmax.xlane.f32.xlu0 %v3341_v5 }
0x1b43   : > { %3427 = vrot.lane.b32.xlu0 %v8592_v18, %s7843_s23 }
0x1bba   : > { %v3343_v9 = vpop.xlane.xlu0 %3342 }
0x1bbb   : > { %v3344_v14 = vsub.f32 %v3337_v2, %v3343_v9 }
0x1bbd   : > { %v3345_v11 = vmul.f32 1.442695, %v3344_v14 }
0x1bbe   : > { %v3428_v13 = vpop.permute.xlu0 %3427 }
0x1bbf   : > { %7781 = vpow2.f32 %v3345_v11 }
0x1bc9   : > { %v7782_v12 = vpop.eup %7781 }
0x1bca   : > { %v3347_v19 = vsel %vm687_vm3, %v7782_v12, 0.0 }
0x1bcb   : > { %3348 = vadd.xlane.f32.xlu1 %v3347_v19 }
0x1bdc   : > { %3425 = vrot.lane.b32.xlu1 %v8602_v1, %s7842_s16 }
0x1c58   : > { %v3349_v20 = vpop.xlane.xlu1 %3348 }
0x1c59   : > { %7783 = vrcp.f32 %v3349_v20 }
0x1c5c   : > { %v3426_v23 = vpop.permute.xlu1 %3425 }
0x1c63   : > { %v7784_v21 = vpop.eup %7783 }
0x1c64   : > { %v3351_v22 = vmul.f32 %v7784_v21, %v7782_v12  ;;  %v6181_v21 = vld [vmem:[%s9203_s4 + $0x1e0] sm:$0xff] }
0x1c66   : > { %6974 = vmatmul.mubr.msk.f32.vlgmr.msra.gmra.mrb[38].mxu1 %vm687_vm3, %v3351_v22 }
0x1c67   : > { %6977 = vmatpush3.xpose.msk.msra.mxu1 %vm611_vm2, %v3428_v13  ;;  %6978 = vmatprep.mubr.msk.f32.mxu1 %vm7839_vm0, %v7840_v6 }
0x1c68   : > { %6981 = vmatprep.subr.mxu1 %v7840_v6 }
0x1c6a   : > { %6979 = vmatmul.mubr.msk.f32.vlgmr.msra.gmra.mrb[40].mxu1 %vm611_vm2, %v3426_v23 }
0x1c6b   : > { %6983 = vmatprep.mubr.msk.f32.mxu1 %vm7839_vm0, %v7840_v6 }
0x1d39   : > { %v3421_v25 = vpop.f32.mrb[38].mxu1 }
0x1d3a   : > { %v6975_v26 = vpop.f32.mrb[39].mxu1 }
0x1d3d   : > { %v3499_v28 = vpop.f32.mrb[40].mxu1 }
0x1d3e   : > { %v6980_v29 = vpop.f32.mrb[41].mxu1  ;;  %v3503_v30 = vsel %vm687_vm3, %v3499_v28, -inf }
0x1d3f   : > { %3504 = vmax.xlane.f32.xlu0 %v3503_v30 }
0x1d55   : > { %3515 = vrot.lane.b32.xlu0 %v8606_v27, %s7842_s16 }
0x1d59   : > { %3737 = vrot.lane.b32.xlu0 %v8602_v1, %s7845_s25 }
0x1dcc   : > { %v3505_v52 = vpop.xlane.xlu0 %3504 }
0x1dcd   : > { %v3506_v32 = vsub.f32 %v3499_v28, %v3505_v52 }
0x1dcf   : > { %v3507_v33 = vmul.f32 1.442695, %v3506_v32 }
0x1dd0   : > { %v3516_v10 = vpop.permute.xlu0 %3515 }
0x1dd1   : > { %7785 = vpow2.f32 %v3507_v33  ;;  %6982 = vmatpush3.msra.mxu1 %v3516_v10 }
0x1dd2   : > { %7488 = vmatprep.subr.bf16.mxu1 %v7838_v3 }
0x1dd4   : > { %v3738_v48 = vpop.permute.xlu0 %3737 }
0x1ddb   : > { %v7786_v34 = vpop.eup %7785 }
0x1ddc   : > { %v3509_v35 = vsel %vm687_vm3, %v7786_v34, 0.0 }
0x1ddd   : > { %3510 = vadd.xlane.f32.xlu1 %v3509_v35 }
0x1dee   : > { %3739 = vrot.lane.b32.xlu1 %v8592_v18, %s7844_s24 }
0x1e6a   : > { %v3511_v40 = vpop.xlane.xlu1 %3510 }
0x1e6b   : > { %7787 = vrcp.f32 %v3511_v40 }
0x1e6e   : > { %v3740_v57 = vpop.permute.xlu1 %3739 }
0x1e75   : > { %v7788_v44 = vpop.eup %7787 }
0x1e76   : > { %v3513_v54 = vmul.f32 %v7788_v44, %v7786_v34 }
0x1e78   : > { %6984 = vmatmul.mubr.msk.f32.vlgmr.msra.gmra.mrb[42].mxu1 %vm687_vm3, %v3513_v54 }
0x1e79   : > { %7490 = vmatpush3.bf16.msra.mxu1 %v7489_v46  ;;  %6997 = vmatprep.mubr.msk.f32.mxu1 %vm7839_vm0, %v7840_v6 }
0x1e7a   : > { %7005 = vmatprep.subr.mxu1 %v7840_v6 }
0x1e7c   : > { %6998 = vmatmul.mubr.msk.f32.vlgmr.msra.gmra.mrb[44].mxu1 %vm611_vm2, %v3421_v25 }
0x1e7d   : > { %7007 = vmatprep.mubr.msk.f32.mxu1 %vm7839_vm0, %v7840_v6 }
0x1f4b   : > { %v3587_v55 = vpop.f32.mrb[42].mxu1 }
0x1f4c   : > { %v6985_v58 = vpop.f32.mrb[43].mxu1  ;;  %6991 = vmatmul.mubr.msk.f32.vlgmr.msra.gmra.mrb[30].mxu0 %vm611_vm2, %v3587_v55 }
0x1f4d   : > { %7001 = vmatpush3.xpose.msk.msra.mxu0 %vm611_vm2, %v3740_v57  ;;  %7002 = vmatprep.mubr.msk.f32.mxu0 %vm7839_vm0, %v7840_v6 }
0x1f4e   : > { %7491 = vmatprep.subr.bf16.mxu0 %v7838_v3 }
0x1f4f   : > { %v3733_v59 = vpop.f32.mrb[44].mxu1 }
0x1f50   : > { %v6999_v60 = vpop.f32.mrb[45].mxu1  ;;  %7003 = vmatmul.mubr.msk.f32.vlgmr.msra.gmra.mrb[32].mxu0 %vm611_vm2, %v3738_v48 }
0x1f51   : > { %7014 = vmatprep.mubr.msk.f32.mxu0 %vm7839_vm0, %v7840_v6 }
0x201f   : > { %v3660_v61 = vpop.f32.mrb[30].mxu0 }
0x2020   : > { %v3734_v62 = vadd.f32 %v3733_v59, %v3660_v61  ;;  %v6992_v0 = vpop.f32.mrb[31].mxu0 }
0x2023   : > { %v3811_v2 = vpop.f32.mrb[32].mxu0 }
0x2024   : > { %v7004_v4 = vpop.f32.mrb[33].mxu0  ;;  %v3815_v5 = vsel %vm687_vm3, %v3811_v2, -inf }
0x2025   : > { %3816 = vmax.xlane.f32.xlu0 %v3815_v5  ;;  %v6193_v4 = vld [vmem:[%s9203_s4 + $0x240] sm:$0xff] }
0x203b   : > { %3826 = vrot.lane.b32.xlu0 %v8606_v27, %s7845_s25 }
0x203f   : > { %3976 = vrot.lane.b32.xlu0 %v8602_v1, %s7846_s19  ;;  %v6182_v1 = vld [vmem:[%s9203_s4 + $0x1e8] sm:$0xff] }
0x2040   : > { %v7492_v22 = vpack.c.bf16 %v6182_v1, %v6181_v21  ;;  %v6197_v21 = vld [vmem:[%s9203_s4 + $0x260] sm:$0xff]  ;;  %v6198_v1 = vld [vmem:[%s9203_s4 + $0x268] sm:$0xff] }
0x2042   : > { %7493 = vmatpush3.bf16.msra.mxu0 %v7492_v22  ;;  %v6185_v22 = vld [vmem:[%s9203_s4 + $0x200] sm:$0xff] }
0x2043   : > { %7022 = vmatprep.subr.mxu0 %v7840_v6 }
0x20b2   : > { %v3817_v9 = vpop.xlane.xlu0 %3816 }
0x20b3   : > { %v3818_v14 = vsub.f32 %v3811_v2, %v3817_v9  ;;  %v4237_v2 = vrot.slane %v8588_v49, %v1584_v24  ;;  %v6195_v24 = vld [vmem:[%s9203_s4 + $0x250] sm:$0xff] }
0x20b5   : > { %v3819_v11 = vmul.f32 1.442695, %v3818_v14 }
0x20b6   : > { %v3827_v12 = vpop.permute.xlu0 %3826 }
0x20b7   : > { %7789 = vpow2.f32 %v3819_v11  ;;  %7006 = vmatpush3.msra.mxu1 %v3827_v12 }
0x20b8   : > { %7017 = vmatprep.subr.mxu1 %v7840_v6 }
0x20c1   : > { %v7790_v19 = vpop.eup %7789 }
0x20c2   : > { %v3821_v20 = vsel %vm687_vm3, %v7790_v19, 0.0 }
0x20c3   : > { %3822 = vadd.xlane.f32.xlu1 %v3821_v20 }
0x20d4   : > { %3978 = vrot.lane.b32.xlu1 %v8592_v18, %s9214_s20  ;;  %v3977_v18 = vpop.permute.xlu0 %3976 }
0x2150   : > { %v3823_v13 = vpop.xlane.xlu1 %3822 }
0x2151   : > { %7791 = vrcp.f32 %v3823_v13  ;;  %v7517_v13 = vpack.c.bf16 %v6198_v1, %v6197_v21  ;;  %v7828_v1 = vld [vmem:[%s8186_s14 + $0x8] sm:$0xff] }
0x2154   : > { %v3979_v26 = vpop.permute.xlu1 %3978 }
0x215b   : > { %v7792_v23 = vpop.eup %7791 }
0x215c   : > { %v3825_v25 = vmul.f32 %v7792_v23, %v7790_v19  ;;  %v6196_v19 = vld [vmem:[%s9203_s4 + $0x258] sm:$0xff]  ;;  %v6186_v23 = vld [vmem:[%s9203_s4 + $0x208] sm:$0xff] }
0x215d   : > { %v7513_v20 = vpack.c.bf16 %v6196_v19, %v6195_v24  ;;  %v6207_v19 = vld [vmem:[%s9203_s4 + $0x2b0] sm:$0xff] }
0x215e   : > { %7008 = vmatmul.mubr.msk.f32.vlgmr.msra.gmra.mrb[46].mxu1 %vm687_vm3, %v3825_v25  ;;  %v6199_v25 = vld [vmem:[%s9203_s4 + $0x270] sm:$0xff] }
0x215f   : > { %7018 = vmatpush3.xpose.msk.msra.mxu1 %vm611_vm2, %v3979_v26  ;;  %7019 = vmatprep.mubr.msk.f32.mxu1 %vm7839_vm0, %v7840_v6  ;;  %v6200_v26 = vld [vmem:[%s9203_s4 + $0x278] sm:$0xff] }
0x2160   : > { %7494 = vmatprep.subr.bf16.mxu1 %v7838_v3 }
0x2162   : > { %7020 = vmatmul.mubr.msk.f32.vlgmr.msra.gmra.mrb[48].mxu1 %vm611_vm2, %v3977_v18  ;;  %v7498_v18 = vpack.c.bf16 %v6186_v23, %v6185_v22 }
0x2163   : > { %7031 = vmatprep.mubr.msk.f32.mxu1 %vm7839_vm0, %v7840_v6 }
0x2231   : > { %v3898_v28 = vpop.f32.mrb[46].mxu1 }
0x2232   : > { %v7009_v29 = vpop.f32.mrb[47].mxu1  ;;  %7015 = vmatmul.mubr.msk.f32.vlgmr.msra.gmra.mrb[34].mxu0 %vm611_vm2, %v3898_v28  ;;  %v7521_v28 = vpack.c.bf16 %v6200_v26, %v6199_v25 }
0x2233   : > { %7024 = vmatprep.mubr.msk.f32.mxu0 %vm7839_vm0, %v7840_v6  ;;  %v6187_v29 = vld [vmem:[%s9203_s4 + $0x210] sm:$0xff] }
0x2235   : > { %v4050_v30 = vpop.f32.mrb[48].mxu1 }
0x2236   : > { %v7021_v52 = vpop.f32.mrb[49].mxu1  ;;  %v4054_v32 = vsel %vm687_vm3, %v4050_v30, -inf }
0x2237   : > { %4055 = vmax.xlane.f32.xlu0 %v4054_v32  ;;  %v6189_v32 = vld [vmem:[%s9203_s4 + $0x220] sm:$0xff] }
0x224d   : > { %4065 = vrot.lane.b32.xlu0 %v8606_v27, %s7846_s19  ;;  %v6184_v27 = vld [vmem:[%s9203_s4 + $0x1f8] sm:$0xff] }
0x224e   : > { %v7495_v40 = vpack.c.bf16 %v6184_v27, %v6183_v39 }
0x2250   : > { %7496 = vmatpush3.bf16.msra.mxu1 %v7495_v40 }
0x22c4   : > { %v4056_v33 = vpop.xlane.xlu0 %4055 }
0x22c5   : > { %v4057_v10 = vsub.f32 %v4050_v30, %v4056_v33  ;;  %v6188_v30 = vld [vmem:[%s9203_s4 + $0x218] sm:$0xff]  ;;  %v6190_v33 = vld [vmem:[%s9203_s4 + $0x228] sm:$0xff] }
0x22c6   : > { %v7501_v52 = vpack.c.bf16 %v6188_v30, %v6187_v29 }
0x22c7   : > { %v4058_v34 = vmul.f32 1.442695, %v4057_v10  ;;  %v7504_v10 = vpack.c.bf16 %v6190_v33, %v6189_v32  ;;  %v8830_v32 = vrot.slane %v8588_v49, %v8283_v43 }
0x22c8   : > { %v4066_v35 = vpop.permute.xlu0 %4065 }
0x22c9   : > { %7793 = vpow2.f32 %v4058_v34  ;;  %7023 = vmatpush3.msra.mxu0 %v4066_v35  ;;  %v6191_v34 = vld [vmem:[%s9203_s4 + $0x230] sm:$0xff]  ;;  %v6192_v35 = vld [vmem:[%s9203_s4 + $0x238] sm:$0xff] }
0x22ca   : > { %7497 = vmatprep.subr.bf16.mxu0 %v7838_v3 }
0x22d3   : > { %v7794_v36 = vpop.eup %7793 }
0x22d4   : > { %v4060_v31 = vsel %vm687_vm3, %v7794_v36, 0.0 }
0x22d5   : > { %4061 = vadd.xlane.f32.xlu1 %v4060_v31 }
0x22e6   : > { %4216 = vrot.lane.b32.xlu1 %v8598_v63, %s7841_s15 }
0x2305   : > { %v3971_v41 = vpop.f32.mrb[34].mxu0 }
0x2306   : > { %v3975_v42 = vadd.f32 %v3971_v41, %v3734_v62  ;;  %v7016_v44 = vpop.f32.mrb[35].mxu0 }
0x2362   : > { %v4062_v46 = vpop.xlane.xlu1 %4061 }
0x2363   : > { %7795 = vrcp.f32 %v4062_v46 }
0x2366   : > { %v4217_v48 = vpop.permute.xlu1 %4216 }
0x236d   : > { %v7796_v54 = vpop.eup %7795 }
0x236e   : > { %v4064_v55 = vmul.f32 %v7796_v54, %v7794_v36  ;;  %v7507_v36 = vpack.c.bf16 %v6192_v35, %v6191_v34 }
0x2370   : > { %7025 = vmatmul.mubr.msk.f32.vlgmr.msra.gmra.mrb[36].mxu0 %vm687_vm3, %v4064_v55  ;;  %v7827_v55 = vld [vmem:[%s8186_s14] sm:$0xff] }
0x2371   : > { %7050 = vmatprep.mubr.msk.f32.mxu0 %vm7839_vm0, %v7840_v6  ;;  %7499 = vmatpush3.bf16.msra.mxu0 %v7498_v18 }
0x2372   : > { %7500 = vmatprep.subr.bf16.mxu0 %v7838_v3 }
0x2375   : > { %7502 = vmatpush3.bf16.msra.mxu0 %v7501_v52 }
0x2376   : > { %7503 = vmatprep.subr.bf16.mxu0 %v7838_v3 }
0x2379   : > { %7505 = vmatpush3.bf16.msra.mxu0 %v7504_v10 }
0x237a   : > { %7506 = vmatprep.subr.bf16.mxu0 %v7838_v3 }
0x237d   : > { %7508 = vmatpush3.bf16.msra.mxu0 %v7507_v36 }
0x2443   : > { %v4137_v63 = vpop.f32.mrb[36].mxu0 }
0x2444   : > { %v7026_v57 = vpop.f32.mrb[37].mxu0  ;;  %7032 = vmatmul.mubr.msk.f32.vlgmr.msra.gmra.mrb[50].mxu1 %vm611_vm2, %v4137_v63 }
0x2445   : > { %7069 = vmatprep.mubr.msk.f32.mxu1 %vm451_vm1, %v8199_v50  ;;  %v6194_v50 = vld [vmem:[%s9203_s4 + $0x248] sm:$0xff] }
0x2446   : > { %v7509_v5 = vpack.c.bf16 %v6194_v50, %v6193_v4  ;;  %v6201_v4 = vld [vmem:[%s9203_s4 + $0x280] sm:$0xff]  ;;  %v6202_v50 = vld [vmem:[%s9203_s4 + $0x288] sm:$0xff] }
0x2448   : > { %7510 = vmatprep.subr.bf16.mxu1 %v7509_v5 }
0x2449   : > { %7512 = vmatpush3.bf16.msra.mxu1 %v7509_v5  ;;  %v6203_v5 = vld [vmem:[%s9203_s4 + $0x290] sm:$0xff] }
0x244a   : > { %7514 = vmatprep.subr.bf16.mxu1 %v7513_v20 }
0x244d   : > { %7516 = vmatpush3.bf16.msra.mxu1 %v7513_v20  ;;  %v6208_v20 = vld [vmem:[%s9203_s4 + $0x2b8] sm:$0xff] }
0x244e   : > { %7518 = vmatprep.subr.bf16.mxu1 %v7517_v13  ;;  %v7537_v21 = vpack.c.bf16 %v6208_v20, %v6207_v19 }
0x2451   : > { %7520 = vmatpush3.bf16.msra.mxu1 %v7517_v13 }
0x2452   : > { %7522 = vmatprep.subr.bf16.mxu1 %v7521_v28 }
0x2455   : > { %7524 = vmatpush3.bf16.msra.mxu1 %v7521_v28 }
0x2456   : > { %7541 = vmatprep.subr.bf16.mxu1 %v7838_v3 }
0x2458   : > { %7070 = vmatmul.mubr.msk.f32.vlgmr.msra.gmra.mrb[52].mxu1 %vm451_vm1, %v8202_v51  ;;  %v4248_v51 = vrot.slane %v8588_v49, %v8220_v56 }
0x2459   : > { %7095 = vmatprep.mubr.msk.f32.mxu1 %vm7839_vm0, %v7840_v6 }
0x2517   : > { %v4210_v58 = vpop.f32.mrb[50].mxu1 }
0x2518   : > { %v4214_v59 = vadd.f32 %v4210_v58, %v3975_v42  ;;  %v7033_v60 = vpop.f32.mrb[51].mxu1 }
0x251a   : > { %v4219_v61 = vadd.f32 %v4217_v48, %v4214_v59 }
0x251c   : > { %v4220_v62 = vadd.f32 %v4219_v61, %v8547_v37 }
0x251e   : > { %v4221_v0 = vsel %vm451_vm1, %v4220_v62, 0.0 }
0x251f   : > { %4222 = vadd.xlane.f32.xlu0 %v4221_v0 }
0x252b   : > { %v7071_v57 = vpop.f32.mrb[52].mxu1 }
0x252c   : > { %v4392_v48 = vpop.f32.mrb[53].mxu1 }
0x2535   : > { %4240 = vrot.lane.b32.xlu0 %v4237_v2, %s7841_s15 }
0x25ac   : > { %v4223_v37 = vpop.xlane.xlu0 %4222 }
0x25ad   : > { %v4224_v9 = vmul.f32 0.015625, %v4223_v37  ;;  %v7525_v37 = vpack.c.bf16 %v6202_v50, %v6201_v4 }
0x25af   : > { %v4225_v14 = vsub.f32 %v4220_v62, %v4224_v9  ;;  %v6204_v9 = vld [vmem:[%s9203_s4 + $0x298] sm:$0xff]  ;;  %7526 = vmatprep.subr.bf16.mxu0 %v7525_v37 }
0x25b0   : > { %v4241_v42 = vpop.permute.xlu0 %4240 }
0x25b1   : > { %v4226_v11 = vmul.f32 %v4225_v14, %v4225_v14 }
0x25b3   : > { %v4227_v12 = vsel %vm451_vm1, %v4226_v11, 0.0  ;;  %v6205_v11 = vld [vmem:[%s9203_s4 + $0x2a0] sm:$0xff] }
0x25b4   : > { %4228 = vadd.xlane.f32.xlu1 %v4227_v12  ;;  %v6206_v12 = vld [vmem:[%s9203_s4 + $0x2a8] sm:$0xff] }
0x25b5   : > { %v7533_v24 = vpack.c.bf16 %v6206_v12, %v6205_v11  ;;  %v6211_v12 = vld [vmem:[%s9203_s4 + $0x2d0] sm:$0xff] }
0x25c5   : > { %4323 = vrot.lane.b32.xlu1 %v4248_v51, %s7841_s15 }
0x2641   : > { %v4229_v31 = vpop.xlane.xlu1 %4228 }
0x2642   : > { %v4230_v39 = vmul.f32 0.015625, %v4229_v31 }
0x2644   : > { %v4231_v27 = vadd.f32 1e-05, %v4230_v39 }
0x2645   : > { %v4324_v63 = vpop.permute.xlu1 %4323 }
0x2646   : > { %7797 = vrsqrt.f32 %v4231_v27  ;;  %v4398_v58 = vadd.f32 %v7071_v57, %v4324_v63  ;;  %v4393_v59 = vadd.f32 %v4392_v48, %v4324_v63 }
0x2648   : > { %v7542_v60 = vpack.c.bf16 %v4398_v58, %v4393_v59  ;;  %v8784_v61 = vpack.i.bf16 %v4398_v58, %v4393_v59 }
0x264a   : > { %7544 = vmatpush3.bf16.xpose.msk.msra.mxu1 %vm8234_vm4, %v7542_v60 }
0x264b   : > { %7545 = vmatprep.subr.bf16.mxu1 %v7838_v3 }
0x2650   : > { %v7798_v40 = vpop.eup %7797 }
0x2651   : > { %v4233_v41 = vmul.f32 %v7798_v40, %v4225_v14  ;;  %v7529_v14 = vpack.c.bf16 %v6204_v9, %v6203_v5 }
0x2653   : > { %v4238_v44 = vmul.f32 %v4237_v2, %v4233_v41 }
0x2655   : > { %v8777_v46 = vadd.f32 %v4241_v42, %v4238_v44  ;;  %v6209_v42 = vld [vmem:[%s9203_s4 + $0x2c0] sm:$0xff]  ;;  %v6210_v44 = vld [vmem:[%s9203_s4 + $0x2c8] sm:$0xff] }
0x2657   : > { %v4244_v54 = vadd.f32 %v8552_v38, %v8777_v46 }
0x2659   : > { %7051 = vmatmul.mubr.msk.f32.vlgmr.msra.gmra.mrb[38].mxu0 %vm451_vm1, %v4244_v54  ;;  %v7559_v54 = vpack.c.bf16 %v6210_v44, %v6209_v42 }
0x265a   : > { %7088 = vmatprep.mubr.msk.f32.mxu0 %vm451_vm1, %v7827_v55  ;;  %7528 = vmatpush3.bf16.msra.mxu0 %v7525_v37 }
0x265b   : > { %7530 = vmatprep.subr.bf16.mxu0 %v7529_v14 }
0x265e   : > { %7532 = vmatpush3.bf16.msra.mxu0 %v7529_v14 }
0x265f   : > { %7534 = vmatprep.subr.bf16.mxu0 %v7533_v24 }
0x2662   : > { %7536 = vmatpush3.bf16.msra.mxu0 %v7533_v24  ;;  %v6212_v24 = vld [vmem:[%s9203_s4 + $0x2d8] sm:$0xff] }
0x2663   : > { %7538 = vmatprep.subr.bf16.mxu0 %v7537_v21  ;;  %v7556_v20 = vpack.c.bf16 %v6212_v24, %v6211_v12 }
0x2666   : > { %7540 = vmatpush3.bf16.msra.mxu0 %v7537_v21 }
0x2667   : > { %7552 = vmatprep.subr.bf16.mxu0 %v7838_v3 }
0x2669   : > { %7089 = vmatmul.mubr.msk.f32.vlgmr.msra.gmra.mrb[40].mxu0 %vm451_vm1, %v7828_v1 }
0x266a   : > { %7116 = vmatprep.mubr.msk.f32.mxu0 %vm7839_vm0, %v7840_v6 }
0x272c   : > { %v4318_v62 = vpop.f32.mrb[38].mxu0 }
0x272d   : > { %v4319_v38 = vadd.f32 %v4318_v62, %v4248_v51  ;;  %v7052_v0 = vpop.f32.mrb[39].mxu0 }
0x272f   : > { %v8789_v2 = vmul.f32 0.25, %v4319_v38 }
0x2731   : > { %7096 = vmatmul.mubr.msk.f32.vlgmr.msra.gmra.mrb[54].mxu1 %vm611_vm2, %v8789_v2 }
0x2732   : > { %7102 = vmatprep.mubr.msk.f32.mxu1 %vm7839_vm0, %v7840_v6 }
0x273c   : > { %v7090_v25 = vpop.f32.mrb[40].mxu0 }
0x273d   : > { %v4471_v26 = vpop.f32.mrb[41].mxu0  ;;  %v4477_v33 = vadd.f32 %v7090_v25, %v8830_v32 }
0x273e   : > { %v4472_v10 = vadd.f32 %v4471_v26, %v8830_v32 }
0x2740   : > { %v7546_v34 = vpack.c.bf16 %v4477_v33, %v4472_v10  ;;  %v8834_v35 = vpack.i.bf16 %v4477_v33, %v4472_v10 }
0x2742   : > { %7547 = vmatpush3.bf16.msra.mxu1 %v7546_v34 }
0x2743   : > { %7548 = vmatprep.subr.bf16.mxu1 %v7838_v3 }
0x2804   : > { %v4556_v22 = vpop.f32.mrb[54].mxu1 }
0x2805   : > { %v7097_v13 = vpop.f32.mrb[55].mxu1  ;;  %v4560_v23 = vsel %vm611_vm2, %v4556_v22, -inf }
0x2806   : > { %4561 = vmax.xlane.f32.xlu0 %v4560_v23 }
0x281c   : > { %7714 = vrot.lane.b32.xlu0 %v8784_v61, %s7842_s16 }
0x2893   : > { %v4562_v18 = vpop.xlane.xlu0 %4561 }
0x2894   : > { %v4563_v28 = vsub.f32 %v4556_v22, %v4562_v18 }
0x2896   : > { %v4564_v29 = vmul.f32 1.442695, %v4563_v28 }
0x2897   : > { %v7715_v51 = vpop.permute.xlu0 %7714 }
0x2898   : > { %7799 = vpow2.f32 %v4564_v29  ;;  %v7717_v31 = vunpack.i.h.bf16 %v7715_v51  ;;  %v7716_v39 = vunpack.i.l.bf16 %v7715_v51 }
0x289a   : > { %v7549_v41 = vpack.c.bf16 %v7717_v31, %v7716_v39 }
0x28a2   : > { %v7800_v30 = vpop.eup %7799 }
0x28a3   : > { %v4566_v52 = vsel %vm611_vm2, %v7800_v30, 0.0 }
0x28a4   : > { %4567 = vadd.xlane.f32.xlu1 %v4566_v52 }
0x28b5   : > { %4644 = vrot.lane.b32.xlu1 %v8789_v2, %s7842_s16 }
0x2931   : > { %v4568_v36 = vpop.xlane.xlu1 %4567 }
0x2932   : > { %7801 = vrcp.f32 %v4568_v36 }
0x2935   : > { %v4645_v55 = vpop.permute.xlu1 %4644 }
0x293c   : > { %v7802_v27 = vpop.eup %7801 }
0x293d   : > { %v4570_v40 = vmul.f32 %v7802_v27, %v7800_v30 }
0x293f   : > { %7103 = vmatmul.mubr.msk.f32.vlgmr.msra.gmra.mrb[56].mxu1 %vm611_vm2, %v4570_v40 }
0x2940   : > { %7551 = vmatpush3.bf16.xpose.msk.msra.mxu1 %vm8234_vm4, %v7549_v41  ;;  %7109 = vmatprep.mubr.msk.f32.mxu1 %vm7839_vm0, %v7840_v6 }
0x2941   : > { %7558 = vmatprep.subr.bf16.mxu1 %v7838_v3 }
0x2947   : > { %7110 = vmatmul.mubr.msk.f32.vlgmr.msra.gmra.mrb[58].mxu1 %vm611_vm2, %v4645_v55 }
0x2948   : > { %7560 = vmatpush3.bf16.msra.mxu1 %v7559_v54  ;;  %7130 = vmatprep.mubr.msk.f32.mxu1 %vm7839_vm0, %v7840_v6 }
0x2949   : > { %7565 = vmatprep.subr.bf16.mxu1 %v7838_v3 }
0x2a12   : > { %v4640_v63 = vpop.f32.mrb[56].mxu1 }
0x2a13   : > { %v7104_v57 = vpop.f32.mrb[57].mxu1  ;;  %7131 = vmatmul.mubr.msk.f32.vlgmr.msra.gmra.mrb[60].mxu1 %vm611_vm2, %v4640_v63 }
0x2a14   : > { %7144 = vmatprep.mubr.msk.f32.mxu1 %vm7839_vm0, %v7840_v6 }
0x2a1a   : > { %v4722_v58 = vpop.f32.mrb[58].mxu1 }
0x2a1b   : > { %v7111_v48 = vpop.f32.mrb[59].mxu1  ;;  %v4726_v59 = vsel %vm611_vm2, %v4722_v58, -inf }
0x2a1c   : > { %4727 = vmax.xlane.f32.xlu0 %v4726_v59 }
0x2a32   : > { %7719 = vrot.lane.b32.xlu0 %v8834_v35, %s7842_s16  ;;  %s6123_s16 = sshll.u32 %s9216_s18, 3 }
0x2a33   : > { %s384_s30 = scalar_lea.vmem %s9210_s11, %s6123_s16 }
0x2a36   : > { %4964 = vrot.lane.b32.xlu0 %v8789_v2, %s7845_s25 }
0x2a3a   : > { %5210 = vrot.lane.b32.xlu0 %v8789_v2, %s7846_s19 }
0x2aa9   : > { %v4728_v60 = vpop.xlane.xlu0 %4727 }
0x2aaa   : > { %v4729_v62 = vsub.f32 %v4722_v58, %v4728_v60 }
0x2aac   : > { %v4730_v38 = vmul.f32 1.442695, %v4729_v62 }
0x2aad   : > { %v7720_v0 = vpop.permute.xlu0 %7719 }
0x2aae   : > { %7803 = vpow2.f32 %v4730_v38  ;;  %v7722_v4 = vunpack.i.h.bf16 %v7720_v0  ;;  %v7721_v50 = vunpack.i.l.bf16 %v7720_v0 }
0x2ab0   : > { %v7553_v5 = vpack.c.bf16 %v7722_v4, %v7721_v50  ;;  %v6213_v4 = vld [vmem:[%s9203_s4 + $0x2e0] sm:$0xff]  ;;  %v6214_v50 = vld [vmem:[%s9203_s4 + $0x2e8] sm:$0xff] }
0x2ab1   : > { %v4965_v29 = vpop.permute.xlu0 %4964 }
0x2ab2   : > { %7554 = vmatpush3.bf16.msra.mxu0 %v7553_v5  ;;  %v7569_v5 = vpack.c.bf16 %v6214_v50, %v6213_v4  ;;  %v6282_v4 = vld [vmem:[%s9205_s6 + $0xa8] sm:$0xff] }
0x2ab3   : > { %7555 = vmatprep.subr.bf16.mxu0 %v7838_v3 }
0x2ab5   : > { %v5211_v52 = vpop.permute.xlu0 %5210 }
0x2ab8   : > { %v7804_v37 = vpop.eup %7803 }
0x2ab9   : > { %v4732_v9 = vsel %vm611_vm2, %v7804_v37, 0.0 }
0x2aba   : > { %4733 = vadd.xlane.f32.xlu1 %v4732_v9 }
0x2acb   : > { %7724 = vrot.lane.b32.xlu1 %v8784_v61, %s7845_s25 }
0x2acf   : > { %7729 = vrot.lane.b32.xlu1 %v8784_v61, %s7846_s19 }
0x2ae6   : > { %v4960_v2 = vpop.f32.mrb[60].mxu1 }
0x2ae7   : > { %v7132_v14 = vpop.f32.mrb[61].mxu1 }
0x2b47   : > { %v4734_v11 = vpop.xlane.xlu1 %4733 }
0x2b48   : > { %7805 = vrcp.f32 %v4734_v11 }
0x2b4b   : > { %v7725_v61 = vpop.permute.xlu1 %7724 }
0x2b4c   : > { %v7727_v1 = vunpack.i.h.bf16 %v7725_v61  ;;  %v7726_v22 = vunpack.i.l.bf16 %v7725_v61  ;;  %v6216_v61 = vld [vmem:[%s9203_s4 + $0x2f8] sm:$0xff] }
0x2b4e   : > { %v7562_v13 = vpack.c.bf16 %v7727_v1, %v7726_v22 }
0x2b4f   : > { %v7730_v25 = vpop.permute.xlu1 %7729 }
0x2b50   : > { %v7732_v18 = vunpack.i.h.bf16 %v7730_v25  ;;  %v7731_v28 = vunpack.i.l.bf16 %v7730_v25 }
0x2b52   : > { %v7806_v19 = vpop.eup %7805  ;;  %v7572_v30 = vpack.c.bf16 %v7732_v18, %v7731_v28 }
0x2b53   : > { %v4736_v21 = vmul.f32 %v7806_v19, %v7804_v37 }
0x2b55   : > { %7117 = vmatmul.mubr.msk.f32.vlgmr.msra.gmra.mrb[42].mxu0 %vm611_vm2, %v4736_v21  ;;  %v6215_v21 = vld [vmem:[%s9203_s4 + $0x2f0] sm:$0xff] }
0x2b56   : > { %7557 = vmatpush3.bf16.msra.mxu0 %v7556_v20  ;;  %7123 = vmatprep.mubr.msk.f32.mxu0 %vm7839_vm0, %v7840_v6  ;;  %v7579_v1 = vpack.c.bf16 %v6216_v61, %v6215_v21 }
0x2b57   : > { %7561 = vmatprep.subr.bf16.mxu0 %v7838_v3 }
0x2c28   : > { %v4814_v23 = vpop.f32.mrb[42].mxu0 }
0x2c29   : > { %v7118_v26 = vpop.f32.mrb[43].mxu0  ;;  %7124 = vmatmul.mubr.msk.f32.vlgmr.msra.gmra.mrb[44].mxu0 %vm611_vm2, %v4814_v23 }
0x2c2a   : > { %7564 = vmatpush3.bf16.xpose.msk.msra.mxu0 %vm8234_vm4, %v7562_v13  ;;  %7137 = vmatprep.mubr.msk.f32.mxu0 %vm7839_vm0, %v7840_v6 }
0x2c2b   : > { %7571 = vmatprep.subr.bf16.mxu0 %v7838_v3 }
0x2c31   : > { %7138 = vmatmul.mubr.msk.f32.vlgmr.msra.gmra.mrb[46].mxu0 %vm611_vm2, %v4965_v29 }
0x2c32   : > { %7574 = vmatpush3.bf16.xpose.msk.msra.mxu0 %vm8234_vm4, %v7572_v30  ;;  %7158 = vmatprep.mubr.msk.f32.mxu0 %vm7839_vm0, %v7840_v6 }
0x2c33   : > { %7581 = vmatprep.subr.bf16.mxu0 %v7838_v3 }
0x2c39   : > { %7159 = vmatmul.mubr.msk.f32.vlgmr.msra.gmra.mrb[48].mxu0 %vm611_vm2, %v5211_v52 }
0x2c3a   : > { %7191 = vmatprep.mubr.msk.f32.mxu0 %vm7839_vm0, %v7840_v6 }
0x2cfc   : > { %v4887_v33 = vpop.f32.mrb[44].mxu0 }
0x2cfd   : > { %v8896_v10 = vadd.f32 %v4960_v2, %v4887_v33  ;;  %v7125_v34 = vpop.f32.mrb[45].mxu0 }
0x2d04   : > { %v5042_v36 = vpop.f32.mrb[46].mxu0 }
0x2d05   : > { %v7139_v51 = vpop.f32.mrb[47].mxu0  ;;  %v5046_v8 = vsel %vm611_vm2, %v5042_v36, -inf }
0x2d06   : > { %5047 = vmax.xlane.f32.xlu1 %v5046_v8 }
0x2d0c   : > { %v5288_v31 = vpop.f32.mrb[48].mxu0 }
0x2d0d   : > { %v7160_v39 = vpop.f32.mrb[49].mxu0  ;;  %v5292_v27 = vsel %vm611_vm2, %v5288_v31, -inf }
0x2d0e   : > { %5293 = vmax.xlane.f32.xlu1 %v5292_v27  ;;  %v6268_v39 = vld [vmem:[%s9204_s5 + $0x40] sm:$0xff] }
0x2d93   : > { %v5048_v40 = vpop.xlane.xlu1 %5047 }
0x2d94   : > { %v5049_v41 = vsub.f32 %v5042_v36, %v5048_v40  ;;  %v6271_v40 = vld [vmem:[%s9204_s5 + $0x58] sm:$0xff] }
0x2d96   : > { %v5050_v42 = vmul.f32 1.442695, %v5049_v41 }
0x2d98   : > { %7807 = vpow2.f32 %v5050_v42  ;;  %v6272_v42 = vld [vmem:[%s9204_s5 + $0x60] sm:$0xff] }
0x2d9b   : > { %v5294_v44 = vpop.xlane.xlu1 %5293 }
0x2d9c   : > { %v5295_v54 = vsub.f32 %v5288_v31, %v5294_v44  ;;  %v6273_v44 = vld [vmem:[%s9204_s5 + $0x68] sm:$0xff] }
0x2d9e   : > { %v5296_v55 = vmul.f32 1.442695, %v5295_v54  ;;  %v7588_v54 = vpack.c.bf16 %v6273_v44, %v6272_v42 }
0x2da0   : > { %7809 = vpow2.f32 %v5296_v55  ;;  %v6274_v55 = vld [vmem:[%s9204_s5 + $0x70] sm:$0xff] }
0x2da2   : > { %v7808_v63 = vpop.eup %7807 }
0x2da3   : > { %v5052_v57 = vsel %vm611_vm2, %v7808_v63, 0.0 }
0x2da4   : > { %5053 = vadd.xlane.f32.xlu0 %v5052_v57 }
0x2daa   : > { %v7810_v58 = vpop.eup %7809 }
0x2dab   : > { %v5298_v48 = vsel %vm611_vm2, %v7810_v58, 0.0 }
0x2dac   : > { %5299 = vadd.xlane.f32.xlu1 %v5298_v48  ;;  %v6278_v48 = vld [vmem:[%s9205_s6 + $0x88] sm:$0xff] }
0x2dba   : > { %7734 = vrot.lane.b32.xlu0 %v8834_v35, %s7845_s25 }
0x2dbd   : > { %7739 = vrot.lane.b32.xlu1 %v8834_v35, %s7846_s19 }
0x2dbe   : > { %5457 = vrot.lane.b32.xlu0 %v8830_v32, %s7841_s15 }
0x2e31   : > { %v5054_v59 = vpop.xlane.xlu0 %5053 }
0x2e32   : > { %7811 = vrcp.f32 %v5054_v59  ;;  %v6279_v59 = vld [vmem:[%s9205_s6 + $0x90] sm:$0xff] }
0x2e35   : > { %v7735_v60 = vpop.permute.xlu0 %7734 }
0x2e36   : > { %v7737_v62 = vunpack.i.h.bf16 %v7735_v60  ;;  %v7736_v38 = vunpack.i.l.bf16 %v7735_v60 }
0x2e38   : > { %v7566_v0 = vpack.c.bf16 %v7737_v62, %v7736_v38  ;;  %v6280_v62 = vld [vmem:[%s9205_s6 + $0x98] sm:$0xff] }
0x2e39   : > { %v5300_v37 = vpop.xlane.xlu1 %5299  ;;  %v5458_v28 = vpop.permute.xlu0 %5457  ;;  %v7597_v38 = vpack.c.bf16 %v6280_v62, %v6279_v59 }
0x2e3a   : > { %7567 = vmatpush3.bf16.msra.mxu1 %v7566_v0  ;;  %7813 = vrcp.f32 %v5300_v37  ;;  %v6281_v0 = vld [vmem:[%s9205_s6 + $0xa0] sm:$0xff] }
0x2e3b   : > { %7568 = vmatprep.subr.bf16.mxu1 %v7838_v3  ;;  %v7600_v50 = vpack.c.bf16 %v6282_v4, %v6281_v0  ;;  %v6285_v37 = vld [vmem:[%s9205_s6 + $0xc0] sm:$0xff] }
0x2e3c   : > { %v7812_v35 = vpop.eup %7811 }
0x2e3d   : > { %v5056_v32 = vmul.f32 %v7812_v35, %v7808_v63  ;;  %v7740_v9 = vpop.permute.xlu1 %7739  ;;  %v6275_v63 = vld [vmem:[%s9204_s5 + $0x78] sm:$0xff]  ;;  %v6283_v35 = vld [vmem:[%s9205_s6 + $0xb0] sm:$0xff] }
0x2e3e   : > { %v7742_v2 = vunpack.i.h.bf16 %v7740_v9  ;;  %v7741_v14 = vunpack.i.l.bf16 %v7740_v9  ;;  %v7591_v57 = vpack.c.bf16 %v6275_v63, %v6274_v55  ;;  %v6286_v9 = vld [vmem:[%s9205_s6 + $0xc8] sm:$0xff] }
0x2e3f   : > { %7145 = vmatmul.mubr.msk.f32.vlgmr.msra.gmra.mrb[62].mxu1 %vm611_vm2, %v5056_v32 }
0x2e40   : > { %7570 = vmatpush3.bf16.msra.mxu1 %v7569_v5  ;;  %7151 = vmatprep.mubr.msk.f32.mxu1 %vm7839_vm0, %v7840_v6  ;;  %v7576_v12 = vpack.c.bf16 %v7742_v2, %v7741_v14  ;;  %v6284_v5 = vld [vmem:[%s9205_s6 + $0xb8] sm:$0xff]  ;;  %v7606_v2 = vpack.c.bf16 %v6286_v9, %v6285_v37  ;;  %v6287_v14 = vld [vmem:[%s9205_s6 + $0xd0] sm:$0xff] }
0x2e41   : > { %7575 = vmatprep.subr.bf16.mxu1 %v7838_v3  ;;  %v7603_v32 = vpack.c.bf16 %v6284_v5, %v6283_v35  ;;  %v5711_v5 = vld [vmem:[%s9208_s9] sm:$0xff]  ;;  %v5714_v9 = vld [vmem:[%s9208_s9 + $0x18] sm:$0xff] }
0x2e44   : > { %v7814_v11 = vpop.eup %7813 }
0x2e45   : > { %v5302_v20 = vmul.f32 %v7814_v11, %v7810_v58  ;;  %v6277_v58 = vld [vmem:[%s9205_s6 + $0x80] sm:$0xff]  ;;  %v6288_v11 = vld [vmem:[%s9205_s6 + $0xd8] sm:$0xff] }
0x2e46   : > { %v7594_v60 = vpack.c.bf16 %v6278_v48, %v6277_v58 }
0x2f12   : > { %v5132_v24 = vpop.f32.mrb[62].mxu1 }
0x2f13   : > { %v7146_v19 = vpop.f32.mrb[63].mxu1  ;;  %7152 = vmatmul.mubr.msk.f32.vlgmr.msra.gmra.mrb[64].mxu1 %vm611_vm2, %v5132_v24  ;;  %v6289_v24 = vld [vmem:[%s9205_s6 + $0xe0] sm:$0xff] }
0x2f14   : > { %7577 = vmatpush3.bf16.msra.mxu1 %v7576_v12  ;;  %7165 = vmatprep.mubr.msk.f32.mxu1 %vm7839_vm0, %v7840_v6  ;;  %v7609_v12 = vpack.c.bf16 %v6288_v11, %v6287_v14  ;;  %v6290_v19 = vld [vmem:[%s9205_s6 + $0xe8] sm:$0xff]  ;;  %v5715_v14 = vld [vmem:[%s9208_s9 + $0x20] sm:$0xff] }
0x2f15   : > { %7578 = vmatprep.subr.bf16.mxu1 %v7838_v3  ;;  %v5716_v11 = vld [vmem:[%s9208_s9 + $0x28] sm:$0xff] }
0x2f17   : > { %7166 = vmatmul.mubr.msk.f32.vlgmr.msra.gmra.mrb[66].mxu1 %vm611_vm2, %v5302_v20  ;;  %v7612_v20 = vpack.c.bf16 %v6290_v19, %v6289_v24  ;;  %v5717_v24 = vld [vmem:[%s9208_s9 + $0x30] sm:$0xff]  ;;  %v5718_v19 = vld [vmem:[%s9208_s9 + $0x38] sm:$0xff] }
0x2f18   : > { %7172 = vmatprep.mubr.msk.f32.mxu1 %vm7839_vm0, %v7840_v6  ;;  %7580 = vmatpush3.bf16.msra.mxu1 %v7579_v1 }
0x2f19   : > { %7593 = vmatprep.subr.bf16.mxu1 %v7838_v3 }
0x2fe6   : > { %v5205_v22 = vpop.f32.mrb[64].mxu1 }
0x2fe7   : > { %v5209_v13 = vadd.f32 %v5205_v22, %v8896_v10  ;;  %v7153_v23 = vpop.f32.mrb[65].mxu1  ;;  %v8942_v10 = vrot.slane %v8588_v49, %v2837_v53  ;;  %v6269_v53 = vld [vmem:[%s9204_s5 + $0x48] sm:$0xff]  ;;  %v6270_v49 = vld [vmem:[%s9204_s5 + $0x50] sm:$0xff] }
0x2fe8   : > { %v7582_v27 = vpack.c.bf16 %v6269_v53, %v6268_v39  ;;  %v7585_v41 = vpack.c.bf16 %v6271_v40, %v6270_v49 }
0x2fea   : > { %v5378_v25 = vpop.f32.mrb[66].mxu1  ;;  %7583 = vmatpush3.bf16.msra.mxu0 %v7582_v27 }
0x2feb   : > { %v7167_v26 = vpop.f32.mrb[67].mxu1  ;;  %7173 = vmatmul.mubr.msk.f32.vlgmr.msra.gmra.mrb[68].mxu1 %vm611_vm2, %v5378_v25  ;;  %7584 = vmatprep.subr.bf16.mxu0 %v7838_v3 }
0x2fec   : > { %7226 = vmatprep.mubr.msk.f32.mxu1 %vm7839_vm0, %v7840_v6  ;;  %7595 = vmatpush3.bf16.msra.mxu1 %v7594_v60 }
0x2fed   : > { %7596 = vmatprep.subr.bf16.mxu1 %v7838_v3 }
0x2fee   : > { %7586 = vmatpush3.bf16.msra.mxu0 %v7585_v41 }
0x2fef   : > { %7587 = vmatprep.subr.bf16.mxu0 %v7838_v3 }
0x2ff0   : > { %7598 = vmatpush3.bf16.msra.mxu1 %v7597_v38  ;;  %v9060_v38 = vld [vmem:[%s9209_s10] sm:$0xff] }
0x2ff1   : > { %7599 = vmatprep.subr.bf16.mxu1 %v7838_v3  ;;  %v5704_v16 = vrot.slane %v9060_v38, %v7963_v17 }
0x2ff2   : > { %7589 = vmatpush3.bf16.msra.mxu0 %v7588_v54 }
0x2ff3   : > { %7590 = vmatprep.subr.bf16.mxu0 %v7838_v3 }
0x2ff4   : > { %7601 = vmatpush3.bf16.msra.mxu1 %v7600_v50 }
0x2ff5   : > { %7602 = vmatprep.subr.bf16.mxu1 %v7838_v3 }
0x2ff6   : > { %7592 = vmatpush3.bf16.msra.mxu0 %v7591_v57 }
0x2ff7   : > { %7617 = vmatprep.subr.bf16.mxu0 %v7838_v3 }
0x2ff8   : > { %7604 = vmatpush3.bf16.msra.mxu1 %v7603_v32  ;;  %v5712_v32 = vld [vmem:[%s9208_s9 + $0x8] sm:$0xff] }
0x2ff9   : > { %7605 = vmatprep.subr.bf16.mxu1 %v7838_v3  ;;  %v7618_v37 = vpack.c.bf16 %v5712_v32, %v5711_v5  ;;  %v6310_v32 = vld [vmem:[%s9208_s9 + $0x70] sm:$0xff] }
0x2ffc   : > { %7607 = vmatpush3.bf16.msra.mxu1 %v7606_v2 }
0x2ffd   : > { %7608 = vmatprep.subr.bf16.mxu1 %v7838_v3 }
0x3000   : > { %7610 = vmatpush3.bf16.msra.mxu1 %v7609_v12  ;;  %v7624_v12 = vpack.c.bf16 %v5716_v11, %v5715_v14 }
0x3001   : > { %7611 = vmatprep.subr.bf16.mxu1 %v7838_v3 }
0x3004   : > { %7613 = vmatpush3.bf16.msra.mxu1 %v7612_v20  ;;  %v7627_v20 = vpack.c.bf16 %v5718_v19, %v5717_v24 }
0x3005   : > { %7614 = vmatprep.subr.bf16.mxu1 %v7838_v3 }
0x30be   : > { %v5451_v18 = vpop.f32.mrb[68].mxu1 }
0x30bf   : > { %v5455_v29 = vadd.f32 %v5451_v18, %v5209_v13  ;;  %v7174_v30 = vpop.f32.mrb[69].mxu1  ;;  %v6291_v18 = vld [vmem:[%s9205_s6 + $0xf0] sm:$0xff] }
0x30c0   : > { %v7829_v30 = vld [vmem:[%s9206_s7 + $0x10] sm:$0xff] }
0x30c1   : > { %v5460_v52 = vadd.f32 %v5458_v28, %v5455_v29  ;;  %v6292_v28 = vld [vmem:[%s9205_s6 + $0xf8] sm:$0xff]  ;;  %v5680_v44 = vrot.slane %v7829_v30, %v3037_v7 }
0x30c2   : > { %v7615_v29 = vpack.c.bf16 %v6292_v28, %v6291_v18 }
0x30c3   : > { %v5461_v33 = vadd.f32 %v5460_v52, %v8777_v46  ;;  %v5497_v52 = vrot.slane %v7829_v30, %v2855_v47  ;;  %v5798_v30 = vld [vmem:[%s9207_s8 + $0x10] sm:$0xff] }
0x30c4   : > { %7616 = vmatpush3.bf16.msra.mxu1 %v7615_v29 }
0x30c5   : > { %v5462_v34 = vsel %vm451_vm1, %v5461_v33, 0.0  ;;  %7641 = vmatprep.subr.bf16.mxu1 %v7838_v3 }
0x30c6   : > { %5463 = vadd.xlane.f32.xlu0 %v5462_v34 }
0x30dc   : > { %5481 = vrot.lane.b32.xlu0 %v8942_v10, %s7841_s15 }
0x3153   : > { %v5464_v36 = vpop.xlane.xlu0 %5463 }
0x3154   : > { %v5465_v51 = vmul.f32 0.015625, %v5464_v36 }
0x3156   : > { %v8946_v8 = vsub.f32 %v5461_v33, %v5465_v51  ;;  %v6168_v51 = vld [vmem:[%s9206_s7 + $0x18] sm:$0xff] }
0x3157   : > { %v5482_v23 = vpop.permute.xlu0 %5481 }
0x3158   : > { %v5467_v31 = vmul.f32 %v8946_v8, %v8946_v8 }
0x315a   : > { %v5468_v46 = vsel %vm451_vm1, %v5467_v31, 0.0 }
0x315b   : > { %5469 = vadd.xlane.f32.xlu1 %v5468_v46 }
0x31e8   : > { %v5470_v21 = vpop.xlane.xlu1 %5469 }
0x31e9   : > { %v5471_v61 = vmul.f32 0.015625, %v5470_v21 }
0x31eb   : > { %v5472_v1 = vadd.f32 1e-05, %v5471_v61 }
0x31ed   : > { %7815 = vrsqrt.f32 %v5472_v1 }
0x31f7   : > { %v7816_v22 = vpop.eup %7815 }
0x31f8   : > { %v5474_v13 = vmul.f32 %v7816_v22, %v8946_v8  ;;  %v5592_v8 = vrot.slane %v6168_v51, %v7963_v17  ;;  %v5713_v17 = vld [vmem:[%s9208_s9 + $0x10] sm:$0xff] }
0x31f9   : > { %v7621_v2 = vpack.c.bf16 %v5714_v9, %v5713_v17  ;;  %v5802_v51 = vld [vmem:[%s9207_s8 + $0x30] sm:$0xff] }
0x31fa   : > { %v5479_v25 = vmul.f32 %v8942_v10, %v5474_v13 }
0x31fc   : > { %v5484_v26 = vadd.f32 %v5482_v23, %v5479_v25  ;;  %v5796_v23 = vld [vmem:[%s9207_s8] sm:$0xff]  ;;  %v5797_v25 = vld [vmem:[%s9207_s8 + $0x8] sm:$0xff] }
0x31fd   : > { %v7630_v28 = vpack.c.bf16 %v5797_v25, %v5796_v23 }
0x31fe   : > { %7192 = vmatmul.mubr.msk.f32.vlgmr.msra.gmra.mrb[50].mxu0 %vm451_vm1, %v5484_v26 }
0x31ff   : > { %7245 = vmatprep.mubr.msk.f32.mxu0 %vm7839_vm0, %v7840_v6  ;;  %7619 = vmatpush3.bf16.msra.mxu0 %v7618_v37  ;;  %v6311_v37 = vld [vmem:[%s9208_s9 + $0x78] sm:$0xff] }
0x3200   : > { %7620 = vmatprep.subr.bf16.mxu0 %v7838_v3  ;;  %v7663_v17 = vpack.c.bf16 %v6311_v37, %v6310_v32 }
0x3203   : > { %7622 = vmatpush3.bf16.msra.mxu0 %v7621_v2 }
0x3204   : > { %7623 = vmatprep.subr.bf16.mxu0 %v7838_v3 }
0x3207   : > { %7625 = vmatpush3.bf16.msra.mxu0 %v7624_v12  ;;  %v5978_v12 = vrot.slane %v9060_v38, %v8283_v43 }
0x3208   : > { %7626 = vmatprep.subr.bf16.mxu0 %v7838_v3 }
0x320b   : > { %7628 = vmatpush3.bf16.msra.mxu0 %v7627_v20 }
0x320c   : > { %7629 = vmatprep.subr.bf16.mxu0 %v7838_v3 }
0x32d1   : > { %v5567_v33 = vpop.f32.mrb[50].mxu0 }
0x32d2   : > { %v5568_v34 = vadd.f32 %v5567_v33, %v5497_v52  ;;  %v7193_v10 = vpop.f32.mrb[51].mxu0  ;;  %v5799_v52 = vld [vmem:[%s9207_s8 + $0x18] sm:$0xff] }
0x32d3   : > { %v7633_v33 = vpack.c.bf16 %v5799_v52, %v5798_v30  ;;  %v5801_v10 = vld [vmem:[%s9207_s8 + $0x28] sm:$0xff] }
0x32d4   : > { %v5571_v36 = vmax.f32 %v5568_v34, 0.0  ;;  %v5800_v34 = vld [vmem:[%s9207_s8 + $0x20] sm:$0xff] }
0x32d6   : > { %7227 = vmatmul.mubr.f32.vlgmr.msra.gmra.mrb[70].mxu1 %v5571_v36  ;;  %v7636_v36 = vpack.c.bf16 %v5801_v10, %v5800_v34 }
0x32d7   : > { %7283 = vmatprep.mubr.msk.f32.mxu1 %vm7839_vm0, %v7840_v6 }
0x33a9   : > { %v5659_v31 = vpop.f32.mrb[70].mxu1 }
0x33aa   : > { %v5660_v46 = vadd.f32 %v5659_v31, %v5592_v8  ;;  %v7228_v39 = vpop.f32.mrb[71].mxu1  ;;  %v5803_v8 = vld [vmem:[%s9207_s8 + $0x38] sm:$0xff] }
0x33ab   : > { %v7639_v31 = vpack.c.bf16 %v5803_v8, %v5802_v51  ;;  %v6296_v39 = vld [vmem:[%s9207_s8 + $0x48] sm:$0xff] }
0x33ac   : > { %v5663_v53 = vadd.f32 %v5660_v46, %v5484_v26  ;;  %v6295_v46 = vld [vmem:[%s9207_s8 + $0x40] sm:$0xff] }
0x33ae   : > { %v5664_v47 = vsel %vm451_vm1, %v5663_v53, 0.0 }
0x33af   : > { %5665 = vadd.xlane.f32.xlu1 %v5664_v47  ;;  %v5807_v47 = vrot.slane %v9060_v38, %v8220_v56 }
0x343c   : > { %v5666_v49 = vpop.xlane.xlu1 %5665 }
0x343d   : > { %v5667_v27 = vmul.f32 0.015625, %v5666_v49  ;;  %v7642_v49 = vpack.c.bf16 %v6296_v39, %v6295_v46 }
0x343f   : > { %v5668_v40 = vsub.f32 %v5663_v53, %v5667_v27  ;;  %v6297_v53 = vld [vmem:[%s9207_s8 + $0x50] sm:$0xff]  ;;  %7643 = vmatpush3.bf16.msra.mxu1 %v7642_v49 }
0x3440   : > { %7644 = vmatprep.subr.bf16.mxu1 %v7838_v3 }
0x3441   : > { %v5669_v41 = vmul.f32 %v5668_v40, %v5668_v40 }
0x3443   : > { %v5670_v42 = vsel %vm451_vm1, %v5669_v41, 0.0  ;;  %v6300_v41 = vld [vmem:[%s9207_s8 + $0x68] sm:$0xff] }
0x3444   : > { %5671 = vadd.xlane.f32.xlu1 %v5670_v42  ;;  %v6301_v42 = vld [vmem:[%s9207_s8 + $0x70] sm:$0xff] }
0x3455   : > { %5683 = vrot.lane.b32.xlu1 %v5680_v44, %s7841_s15 }
0x34d1   : > { %v5672_v54 = vpop.xlane.xlu1 %5671 }
0x34d2   : > { %v5673_v55 = vmul.f32 0.015625, %v5672_v54 }
0x34d4   : > { %v5674_v63 = vadd.f32 1e-05, %v5673_v55  ;;  %v6304_v55 = vld [vmem:[%s9208_s9 + $0x40] sm:$0xff] }
0x34d5   : > { %v5684_v48 = vpop.permute.xlu1 %5683 }
0x34d6   : > { %7817 = vrsqrt.f32 %v5674_v63  ;;  %v6305_v63 = vld [vmem:[%s9208_s9 + $0x48] sm:$0xff] }
0x34e0   : > { %v7818_v57 = vpop.eup %7817 }
0x34e1   : > { %v5676_v58 = vmul.f32 %v7818_v57, %v5668_v40  ;;  %v6299_v40 = vld [vmem:[%s9207_s8 + $0x60] sm:$0xff]  ;;  %v6306_v57 = vld [vmem:[%s9208_s9 + $0x50] sm:$0xff] }
0x34e2   : > { %v7648_v56 = vpack.c.bf16 %v6300_v41, %v6299_v40 }
0x34e3   : > { %v5681_v59 = vmul.f32 %v5680_v44, %v5676_v58  ;;  %v6302_v44 = vld [vmem:[%s9207_s8 + $0x78] sm:$0xff]  ;;  %v7654_v58 = vpack.c.bf16 %v6305_v63, %v6304_v55 }
0x34e4   : > { %v7651_v54 = vpack.c.bf16 %v6302_v44, %v6301_v42 }
0x34e5   : > { %v5686_v60 = vadd.f32 %v5684_v48, %v5681_v59  ;;  %v6307_v48 = vld [vmem:[%s9208_s9 + $0x58] sm:$0xff] }
0x34e6   : > { %v7657_v59 = vpack.c.bf16 %v6307_v48, %v6306_v57 }
0x34e7   : > { %v5688_v62 = vsel %vm451_vm1, %v5686_v60, 0.0 }
0x34e8   : > { %5689 = vadd.xlane.f32.xlu0 %v5688_v62  ;;  %v6309_v62 = vld [vmem:[%s9208_s9 + $0x68] sm:$0xff] }
0x34fe   : > { %5707 = vrot.lane.b32.xlu0 %v5704_v16, %s7841_s15 }
0x3575   : > { %v5690_v7 = vpop.xlane.xlu0 %5689 }
0x3576   : > { %v5691_v0 = vmul.f32 0.015625, %v5690_v7 }
0x3578   : > { %v5692_v4 = vsub.f32 %v5686_v60, %v5691_v0  ;;  %v6308_v60 = vld [vmem:[%s9208_s9 + $0x60] sm:$0xff] }
0x3579   : > { %v5708_v26 = vpop.permute.xlu0 %5707 }
0x357a   : > { %v5693_v50 = vmul.f32 %v5692_v4, %v5692_v4 }
0x357c   : > { %v5694_v35 = vsel %vm451_vm1, %v5693_v50, 0.0 }
0x357d   : > { %5695 = vadd.xlane.f32.xlu1 %v5694_v35 }
0x358e   : > { %5889 = vrot.lane.b32.xlu1 %v5807_v47, %s7841_s15 }
0x360a   : > { %v5696_v21 = vpop.xlane.xlu1 %5695 }
0x360b   : > { %v5697_v61 = vmul.f32 0.015625, %v5696_v21 }
0x360d   : > { %v5698_v1 = vadd.f32 1e-05, %v5697_v61 }
0x360e   : > { %v5890_v9 = vpop.permute.xlu1 %5889 }
0x360f   : > { %7819 = vrsqrt.f32 %v5698_v1 }
0x3619   : > { %v7820_v22 = vpop.eup %7819 }
0x361a   : > { %v5700_v13 = vmul.f32 %v7820_v22, %v5692_v4  ;;  %v6059_v22 = vand.u32 127, %v525_v15 }
0x361c   : > { %v5705_v18 = vmul.f32 %v5704_v16, %v5700_v13  ;;  %v7660_v16 = vpack.c.bf16 %v6309_v62, %v6308_v60  ;;  %v5722_v13 = vrot.slane %v9060_v38, %v8028_v45  ;;  %vm6060_vm5 = vcmp.lt.s32.totalorder %v6059_v22, 64 }
0x361e   : > { %v5710_v29 = vadd.f32 %v5708_v26, %v5705_v18 }
0x3620   : > { %7246 = vmatmul.mubr.msk.f32.vlgmr.msra.gmra.mrb[52].mxu0 %vm451_vm1, %v5710_v29 }
0x3621   : > { %7631 = vmatpush3.bf16.msra.mxu0 %v7630_v28  ;;  %7264 = vmatprep.mubr.msk.f32.mxu0 %vm7839_vm0, %v7840_v6 }
0x3622   : > { %7632 = vmatprep.subr.bf16.mxu0 %v7838_v3 }
0x3625   : > { %7634 = vmatpush3.bf16.msra.mxu0 %v7633_v33 }
0x3626   : > { %7635 = vmatprep.subr.bf16.mxu0 %v7838_v3 }
0x3629   : > { %7637 = vmatpush3.bf16.msra.mxu0 %v7636_v36 }
0x362a   : > { %7638 = vmatprep.subr.bf16.mxu0 %v7838_v3 }
0x362d   : > { %7640 = vmatpush3.bf16.msra.mxu0 %v7639_v31 }
0x362e   : > { %7653 = vmatprep.subr.bf16.mxu0 %v7838_v3 }
0x3630   : > { %7265 = vmatmul.mubr.msk.f32.vlgmr.msra.gmra.mrb[54].mxu0 %vm451_vm1, %v5710_v29 }
0x3631   : > { %7302 = vmatprep.mubr.msk.f32.mxu0 %vm7839_vm0, %v7840_v6  ;;  %v6298_v6 = vld [vmem:[%s9207_s8 + $0x58] sm:$0xff]  ;;  %7655 = vmatpush3.bf16.msra.mxu0 %v7654_v58 }
0x3632   : > { %v7645_v27 = vpack.c.bf16 %v6298_v6, %v6297_v53  ;;  %7656 = vmatprep.subr.bf16.mxu0 %v7838_v3 }
0x3634   : > { %7646 = vmatpush3.bf16.msra.mxu1 %v7645_v27 }
0x3635   : > { %7647 = vmatprep.subr.bf16.mxu1 %v7838_v3  ;;  %7658 = vmatpush3.bf16.msra.mxu0 %v7657_v59 }
0x3636   : > { %7659 = vmatprep.subr.bf16.mxu0 %v7838_v3 }
0x3638   : > { %7649 = vmatpush3.bf16.msra.mxu1 %v7648_v56 }
0x3639   : > { %7650 = vmatprep.subr.bf16.mxu1 %v7838_v3  ;;  %7661 = vmatpush3.bf16.msra.mxu0 %v7660_v16 }
0x363a   : > { %7662 = vmatprep.subr.bf16.mxu0 %v7838_v3 }
0x363c   : > { %7652 = vmatpush3.bf16.msra.mxu1 %v7651_v54 }
0x363d   : > { %7664 = vmatpush3.bf16.msra.mxu0 %v7663_v17 }
0x36f3   : > { %v5792_v7 = vpop.f32.mrb[52].mxu0 }
0x36f4   : > { %v7247_v0 = vpop.f32.mrb[53].mxu0  ;;  %v5793_v43 = vadd.f32 %v5792_v7, %v5722_v13 }
0x3703   : > { %v5874_v4 = vpop.f32.mrb[54].mxu0 }
0x3704   : > { %v5875_v50 = vadd.f32 %v5874_v4, %v5807_v47  ;;  %v7266_v35 = vpop.f32.mrb[55].mxu0 }
0x3706   : > { %v5878_v5 = vmax.f32 %v5875_v50, 0.0 }
0x3708   : > { %7284 = vmatmul.mubr.msk.f32.vlgmr.msra.gmra.mrb[72].mxu1 %vm451_vm1, %v5878_v5 }
0x37db   : > { %v5961_v3 = vpop.f32.mrb[72].mxu1 }
0x37dc   : > { %v5962_v2 = vadd.f32 %v5961_v3, %v5890_v9  ;;  %v7285_v14 = vpop.f32.mrb[73].mxu1 }
0x37de   : > { %v5965_v11 = vmax.f32 %v5962_v2, 0.0 }
0x37e0   : > { %7303 = vmatmul.mubr.msk.f32.vlgmr.msra.gmra.mrb[56].mxu0 %vm451_vm1, %v5965_v11 }
0x38b3   : > { %v6048_v24 = vpop.f32.mrb[56].mxu0 }
0x38b4   : > { %v6049_v19 = vadd.f32 %v6048_v24, %v5978_v12  ;;  %v7304_v20 = vpop.f32.mrb[57].mxu0 }
0x38b6   : > { %v6313_v21 = vmul.f32 -1.442695, %v6049_v19 }
0x38b8   : > { %7821 = vpow2.f32 %v6313_v21 }
0x38c2   : > { %v7822_v61 = vpop.eup %7821 }
0x38c3   : > { %v6055_v1 = vadd.f32 1.0, %v7822_v61 }
0x38c5   : > { %7823 = vrcp.f32 %v6055_v1 }
0x38cf   : > { %v7824_v23 = vpop.eup %7823 }
0x38d0   : > { %v6061_v25 = vsel %vm6060_vm5, %v5793_v43, %v7824_v23 }
0x38d1   : > { %6062 = vst [vmem:[%s384_s30] sm:$0xff] %v6061_v25 }
0x38d2 PF: > { %s21_s17 = sadd.s32 1, %s7836_s17  }
0x38d3   : > { %p18_p4 = scmp.ge.s32.totalorder %s21_s17, 4  }
0x38d5   :  { %20 = sbr.rel (!%p18_p4) target bundleno = 1 (0x1), region = 101 }

</bundles_post_ra>
